<compile_context>
chip_gen: v7x
topology: tpu7x:2x2x1
jax: 0.10.0
libtpu: 0.0.40
codegen_flags: <defaults>
</compile_context>

<pallas_src>
import functools
import math

import numpy as np
import jax
import jax.numpy as jnp
from jax.experimental import pallas as pl
from jax.experimental.pallas import tpu as pltpu

EPS = 1e-5
VMEM_LIMIT = 32 * 1024 * 1024


def _round_up(x, m):
    return -(-x // m) * m


def _compiler_params():
    return pltpu.CompilerParams(dimension_semantics=("parallel",),
                                vmem_limit_bytes=VMEM_LIMIT)


# --------------------------------------------------------------------------
# Fused two-branch conv kernel (conv+BN+ReLU+pool x2 for position and orientation)
# --------------------------------------------------------------------------

def _twochan_conv_kernel(xp_ref, xo_ref, w1p_ref, b1p_ref, w2p_ref, b2p_ref,
                         w1o_ref, b1o_ref, w2o_ref, b2o_ref, out_ref,
                         *, bt, p1, p2, hc, p1o, hco, fr):
    f32 = jnp.float32
    bf16 = jnp.bfloat16
    h1 = p1 // 2
    n2 = 2 * p2
    h1o = p1o // 2

    # ---------------- position branch, layer 1 ----------------
    # One block-diagonal matmul over (4 pool candidates x 4 taps); the 2x2 max-pool is
    # an elementwise max over the 4 candidate lane groups (bias/ReLU commute with max).
    x1 = xp_ref[...].reshape(bt * p1 * p1, 16)
    c1 = jnp.dot(x1, w1p_ref[...], preferred_element_type=f32)          # (M1, 512)
    m1 = jnp.maximum(jnp.maximum(c1[:, 0:128], c1[:, 128:256]),
                     jnp.maximum(c1[:, 256:384], c1[:, 384:512]))
    l1 = jnp.maximum(m1 + b1p_ref[...], 0.0)                            # (bt*p1*p1, 128)

    # Column-parity split + zero padding of the layer-2 input.
    #   rows r = conv-padded row index 0..p1 (row 0 is the zero pad)
    #   ov[., r, k, :] = L1pad[r, 2k+1]   (even x),  ev -> col 2k+2 (odd x),  er -> col 2k
    l1v = l1.reshape(bt * p1, p1, 128)
    o_int = l1v[:, 0:h1, :].reshape(bt, p1, h1, 128)
    e_int = l1v[:, h1:p1, :].reshape(bt, p1, h1, 128)
    zc = jnp.zeros((bt, p1, hc - h1, 128), f32)
    zr = jnp.zeros((bt, 1, hc, 128), f32)
    ov = jnp.concatenate([zr, jnp.concatenate([o_int, zc], axis=2)], axis=1)
    ev = jnp.concatenate([zr, jnp.concatenate([e_int, zc], axis=2)], axis=1)
    er = jnp.concatenate([ev[:, :, hc - 1:hc, :], ev[:, :, 0:hc - 1, :]], axis=2)

    # ---------------- position branch, layer 2 ----------------
    # Taps concatenated along K (K = 4*128 = 512); one matmul per output-column parity.
    def slab(v, dr):
        return v[:, dr:dr + n2].reshape(bt * n2 * hc, 128)

    im_e = jnp.concatenate([slab(er, 0), slab(ov, 0), slab(er, 1), slab(ov, 1)],
                           axis=1).astype(bf16)
    im_o = jnp.concatenate([slab(ov, 0), slab(ev, 0), slab(ov, 1), slab(ev, 1)],
                           axis=1).astype(bf16)
    c2e = jnp.dot(im_e, w2p_ref[...], preferred_element_type=f32)
    c2o = jnp.dot(im_o, w2p_ref[...], preferred_element_type=f32)
    cw = jnp.maximum(c2e, c2o).reshape(bt, p2, 2, hc, 128)      # width pool
    p2v = jnp.maximum(jnp.maximum(cw[:, :, 0], cw[:, :, 1]) + b2p_ref[...], 0.0)
    pos_feat = p2v.reshape(bt, p2 * hc, 128)
    # Half-columns >= p2 are finite zero-input "garbage"; they are masked out by zero
    # rows in the permuted fc1 weights, so no extraction/relayout is needed here.

    # ---------------- orientation branch (same scheme in 1-D) ----------------
    y1 = xo_ref[...].reshape(bt * p1o, 4)
    c1o = jnp.dot(y1, w1o_ref[...], preferred_element_type=f32)         # (bt*p1o, 256)
    l1o = jnp.maximum(jnp.maximum(c1o[:, 0:128], c1o[:, 128:256]) + b1o_ref[...], 0.0)
    l1ov = l1o.reshape(bt, p1o, 128)
    zco = jnp.zeros((bt, hco - h1o, 128), f32)
    oo = jnp.concatenate([l1ov[:, 0:h1o, :], zco], axis=1)     # padded pos 2k+1
    eo = jnp.concatenate([l1ov[:, h1o:p1o, :], zco], axis=1)   # padded pos 2k+2
    eor = jnp.concatenate([eo[:, hco - 1:hco, :], eo[:, 0:hco - 1, :]], axis=1)
    ime = jnp.concatenate([eor, oo], axis=2).reshape(bt * hco, 256).astype(bf16)
    imo = jnp.concatenate([oo, eo], axis=2).reshape(bt * hco, 256).astype(bf16)
    c2eo = jnp.dot(ime, w2o_ref[...], preferred_element_type=f32)
    c2oo = jnp.dot(imo, w2o_ref[...], preferred_element_type=f32)
    ori_feat = jnp.maximum(jnp.maximum(c2eo, c2oo) + b2o_ref[...],
                           0.0).reshape(bt, hco, 128)

    parts = [pos_feat, ori_feat]
    used = p2 * hc + hco
    if fr > used:
        parts.append(jnp.zeros((bt, fr - used, 128), f32))
    out_ref[...] = jnp.concatenate(parts, axis=1).astype(out_ref.dtype)


def _pos_l1_im2col(x, p1):
    """x: (N, W, W) -> (N, p1*p1, 16) bf16; lane = (candidate i*2+j)*4 + tap dr*2+dc,
    row = y*p1 + xparity*(p1//2) + k with x = 2k + xparity."""
    n = x.shape[0]
    xpad = jnp.pad(x, ((0, 0), (1, 1), (1, 1)))
    cols = []
    for i in (0, 1):
        for j in (0, 1):
            for dr in (0, 1):
                for dc in (0, 1):
                    cols.append(xpad[:, i + dr:i + dr + 2 * p1:2,
                                     j + dc:j + dc + 2 * p1:2])
    v = jnp.stack(cols, axis=-1)                     # (N, p1, p1, 16)
    h = p1 // 2
    v = v.reshape(n, p1, h, 2, 16)
    v = jnp.transpose(v, (0, 1, 3, 2, 4))            # (y, parity, k, lane)
    return v.reshape(n, p1 * p1, 16).astype(jnp.bfloat16)


def _ori_l1_im2col(y, p1o):
    """y: (N, L) -> (N, p1o, 4) bf16; lane = candidate i*2 + tap dt,
    row = parity*(p1o//2) + k with pooled position = 2k + parity."""
    n = y.shape[0]
    ypad = jnp.pad(y, ((0, 0), (1, 1)))
    cols = []
    for i in (0, 1):
        for dt in (0, 1):
            cols.append(ypad[:, i + dt:i + dt + 2 * p1o:2])
    v = jnp.stack(cols, axis=-1)                     # (N, p1o, 4)
    h = p1o // 2
    v = v.reshape(n, h, 2, 4)
    v = jnp.transpose(v, (0, 2, 1, 3))
    return v.reshape(n, p1o, 4).astype(jnp.bfloat16)


def conv_branches(position, orientation, w1p, b1p, w2p, b2p, w1o, b1o, w2o, b2o,
                  *, p1, p2, hc, p1o, hco, fr, bt):
    n = position.shape[0]
    xp = _pos_l1_im2col(position[:, 0].astype(jnp.float32), p1)
    xo = _ori_l1_im2col(orientation[:, 0].astype(jnp.float32), p1o)
    npad = _round_up(n, bt)
    if npad != n:
        xp = jnp.pad(xp, ((0, npad - n), (0, 0), (0, 0)))
        xo = jnp.pad(xo, ((0, npad - n), (0, 0), (0, 0)))
    kernel = functools.partial(_twochan_conv_kernel, bt=bt, p1=p1, p2=p2, hc=hc,
                               p1o=p1o, hco=hco, fr=fr)
    flops = npad * 2 * (p1 * p1 * 16 * 512 + 2 * 2 * p2 * hc * 512 * 128
                        + p1o * 4 * 256 + 2 * hco * 256 * 128)
    bytes_accessed = (xp.size + xo.size) * 2 + npad * fr * 128 * 2 \
        + (w1p.size + w2p.size + w1o.size + w2o.size) * 2 + 4 * 128 * 4
    return pl.pallas_call(
        kernel,
        out_shape=jax.ShapeDtypeStruct((npad, fr, 128), jnp.bfloat16),
        grid=(npad // bt,),
        in_specs=[
            pl.BlockSpec((bt, p1 * p1, 16), lambda i: (i, 0, 0)),
            pl.BlockSpec((bt, p1o, 4), lambda i: (i, 0, 0)),
            pl.BlockSpec((16, 512), lambda i: (0, 0)),
            pl.BlockSpec((1, 128), lambda i: (0, 0)),
            pl.BlockSpec((512, 128), lambda i: (0, 0)),
            pl.BlockSpec((1, 128), lambda i: (0, 0)),
            pl.BlockSpec((4, 256), lambda i: (0, 0)),
            pl.BlockSpec((1, 128), lambda i: (0, 0)),
            pl.BlockSpec((256, 128), lambda i: (0, 0)),
            pl.BlockSpec((1, 128), lambda i: (0, 0)),
        ],
        out_specs=pl.BlockSpec((bt, fr, 128), lambda i: (i, 0, 0)),
        compiler_params=_compiler_params(),
        cost_estimate=pl.CostEstimate(flops=flops, transcendentals=0,
                                      bytes_accessed=bytes_accessed),
    )(xp, xo, w1p, b1p, w2p, b2p, w1o, b1o, w2o, b2o)


# --------------------------------------------------------------------------
# Fused MLP head: relu(x@W1+b1) -> relu(@W2+b2) -> @W3+b3 in a single kernel
# --------------------------------------------------------------------------

def _mlp_kernel(x_ref, w1_ref, b1_ref, w2_ref, b2_ref, w3_ref, b3_ref, o_ref):
    h = jnp.dot(x_ref[...], w1_ref[...], preferred_element_type=jnp.float32)
    h = jnp.maximum(h + b1_ref[...], 0.0)
    h = jnp.dot(h.astype(w2_ref.dtype), w2_ref[...], preferred_element_type=jnp.float32)
    h = jnp.maximum(h + b2_ref[...], 0.0)
    h = jnp.dot(h.astype(w3_ref.dtype), w3_ref[...], preferred_element_type=jnp.float32)
    o_ref[...] = (h + b3_ref[...]).astype(o_ref.dtype)


def mlp_head(x, w1, b1, w2, b2, w3, b3):
    m, k = x.shape
    h1, h2, nout = w1.shape[1], w2.shape[1], w3.shape[1]
    tm = 256 if m >= 256 else _round_up(max(m, 1), 16)
    mpad = _round_up(m, tm)
    if mpad != m:
        x = jnp.pad(x, ((0, mpad - m), (0, 0)))
    flops = 2 * mpad * (k * h1 + h1 * h2 + h2 * nout)
    bytes_accessed = (mpad * k + k * h1 + h1 * h2 + h2 * nout) * 2 + mpad * nout * 4
    out = pl.pallas_call(
        _mlp_kernel,
        out_shape=jax.ShapeDtypeStruct((mpad, nout), jnp.float32),
        grid=(mpad // tm,),
        in_specs=[
            pl.BlockSpec((tm, k), lambda i: (i, 0)),
            pl.BlockSpec((k, h1), lambda i: (0, 0)),
            pl.BlockSpec((1, h1), lambda i: (0, 0)),
            pl.BlockSpec((h1, h2), lambda i: (0, 0)),
            pl.BlockSpec((1, h2), lambda i: (0, 0)),
            pl.BlockSpec((h2, nout), lambda i: (0, 0)),
            pl.BlockSpec((1, nout), lambda i: (0, 0)),
        ],
        out_specs=pl.BlockSpec((tm, nout), lambda i: (i, 0)),
        compiler_params=_compiler_params(),
        cost_estimate=pl.CostEstimate(flops=flops, transcendentals=0,
                                      bytes_accessed=bytes_accessed),
    )(x.astype(jnp.bfloat16), w1, b1, w2, b2, w3, b3)
    return out[:m]


# --------------------------------------------------------------------------
# Parameter prep: fold inference-mode BN, build block-diagonal / tap-concatenated
# weight matrices, fold the PyTorch flatten order into fc1's row permutation.
# --------------------------------------------------------------------------

def _prep_pos_l1(w, b, scale, shift):
    wt = jnp.transpose(w[:, 0] * scale[:, None, None], (1, 2, 0)).reshape(4, 32)
    wt = jnp.pad(wt, ((0, 0), (0, 96)))                          # (4, 128)
    wbd = jnp.kron(jnp.eye(4, dtype=wt.dtype), wt)               # (16, 512)
    beff = jnp.pad(b * scale + shift, (0, 96)).reshape(1, 128)
    return wbd.astype(jnp.bfloat16), beff.astype(jnp.float32)


def _prep_pos_l2(w, b, scale, shift):
    wf = w * scale[:, None, None, None]
    taps = jnp.transpose(wf, (2, 3, 1, 0))                       # (2,2,32,64)
    taps = jnp.pad(taps, ((0, 0), (0, 0), (0, 96), (0, 64)))     # (2,2,128,128)
    wmat = taps.reshape(512, 128)
    beff = jnp.pad(b * scale + shift, (0, 64)).reshape(1, 128)
    return wmat.astype(jnp.bfloat16), beff.astype(jnp.float32)


def _prep_ori_l1(w, b, scale, shift):
    wt = jnp.transpose(w[:, 0] * scale[:, None], (1, 0))         # (2, 32)
    wt = jnp.pad(wt, ((0, 0), (0, 96)))
    wbd = jnp.kron(jnp.eye(2, dtype=wt.dtype), wt)               # (4, 256)
    beff = jnp.pad(b * scale + shift, (0, 96)).reshape(1, 128)
    return wbd.astype(jnp.bfloat16), beff.astype(jnp.float32)


def _prep_ori_l2(w, b, scale, shift):
    wf = w * scale[:, None, None]
    taps = jnp.transpose(wf, (2, 1, 0))                          # (2,32,64)
    taps = jnp.pad(taps, ((0, 0), (0, 96), (0, 64)))             # (2,128,128)
    wmat = taps.reshape(256, 128)
    beff = jnp.pad(b * scale + shift, (0, 64)).reshape(1, 128)
    return wmat.astype(jnp.bfloat16), beff.astype(jnp.float32)


def _prep_fc1(fc1_w, p2, hc, p2o, hco, fr):
    """Permute fc1 rows so the kernel's (spatial, padded-channel) feature layout maps
    directly onto the PyTorch NCHW/NCL flatten order (zero rows for padding)."""
    n_pos_s = p2 * hc
    nrow = fr * 128
    src = np.zeros(nrow, np.int32)
    valid = np.zeros(nrow, bool)
    pos_feat = 64 * p2 * p2
    for s in range(n_pos_s):
        pr, v = divmod(s, hc)
        if v < p2:
            for ch in range(64):
                r = s * 128 + ch
                src[r] = ch * p2 * p2 + pr * p2 + v
                valid[r] = True
    for v in range(p2o):
        for ch in range(64):
            r = (n_pos_s + v) * 128 + ch
            src[r] = pos_feat + ch * p2o + v
            valid[r] = True
    w = jnp.take(fc1_w, jnp.asarray(src), axis=1).T
    w = jnp.where(jnp.asarray(valid)[:, None], w, 0.0)
    return w.astype(jnp.bfloat16)


def _prep_linear(w, b, nout_pad=None):
    nout = w.shape[0]
    w_mat = jnp.transpose(w)
    b_vec = b
    if nout_pad is not None and nout_pad != nout:
        w_mat = jnp.pad(w_mat, ((0, 0), (0, nout_pad - nout)))
        b_vec = jnp.pad(b_vec, (0, nout_pad - nout))
    return w_mat.astype(jnp.bfloat16), b_vec.reshape(1, -1).astype(jnp.float32)


# --------------------------------------------------------------------------
# Parameter init (replicates xavier_init from the PyTorch module)
# --------------------------------------------------------------------------

def _uniform(key, shape, bound):
    return jax.random.uniform(key, shape, jnp.float32, -bound, bound)


def init_params(key, pos_w, ori_w, num_actions):
    l1 = (pos_w + 1) // 2
    l2 = (l1 + 1) // 2
    o1 = (ori_w + 1) // 2
    o2 = (o1 + 1) // 2
    fc_in = 64 * l2 * l2 + 64 * o2

    ks = jax.random.split(key, 7)
    p = {}
    b = math.sqrt(6.0 / (4 + 128))
    p['posc1_w'] = _uniform(ks[0], (32, 1, 2, 2), b)
    p['posc1_b'] = jnp.zeros((32,), jnp.float32)
    b = math.sqrt(6.0 / (128 + 256))
    p['posc2_w'] = _uniform(ks[1], (64, 32, 2, 2), b)
    p['posc2_b'] = jnp.zeros((64,), jnp.float32)
    b = math.sqrt(6.0 / (2 + 64))
    p['oric1_w'] = _uniform(ks[2], (32, 1, 2), b)
    p['oric1_b'] = jnp.zeros((32,), jnp.float32)
    b = math.sqrt(6.0 / (64 + 128))
    p['oric2_w'] = _uniform(ks[3], (64, 32, 2), b)
    p['oric2_b'] = jnp.zeros((64,), jnp.float32)
    b = math.sqrt(6.0 / (fc_in + 128))
    p['fc1_w'] = _uniform(ks[4], (128, fc_in), b)
    p['fc1_b'] = jnp.zeros((128,), jnp.float32)
    b = math.sqrt(6.0 / (128 + 128))
    p['fc2_w'] = _uniform(ks[5], (128, 128), b)
    p['fc2_b'] = jnp.zeros((128,), jnp.float32)
    b = math.sqrt(6.0 / (128 + num_actions))
    p['pred_w'] = _uniform(ks[6], (num_actions, 128), b)
    p['pred_b'] = jnp.zeros((num_actions,), jnp.float32)

    # BatchNorm (inference, fresh init): gamma=1, beta=0, mean=0, var=1
    bn_scale = 1.0 / math.sqrt(1.0 + EPS)
    for name, c in (('posbn1', 32), ('posbn2', 64), ('oribn1', 32), ('oribn2', 64)):
        p[f'{name}_scale'] = jnp.full((c,), bn_scale, jnp.float32)
        p[f'{name}_shift'] = jnp.zeros((c,), jnp.float32)
    return p


# --------------------------------------------------------------------------
# Forward pass (matches TwoChanConvNet.forward)
# --------------------------------------------------------------------------

def forward(params, position, orientation, *, batch_tile=8):
    """position: (N,1,W,W); orientation: (N,1,L) -> (N, num_actions) f32."""
    n = position.shape[0]
    w = position.shape[2]
    l = orientation.shape[2]
    assert position.shape[1] == 1 and orientation.shape[1] == 1
    assert w % 4 == 0 and l % 4 == 0, "kernel specialised to widths divisible by 4"
    num_actions = params['pred_w'].shape[0]

    p1, p2 = w // 2, w // 4
    p1o, p2o = l // 2, l // 4
    hc = _round_up(p1 // 2 + 1, 8)
    hco = _round_up(p1o // 2 + 1, 8)
    fr = _round_up(p2 * hc + hco, 16)

    w1p, b1p = _prep_pos_l1(params['posc1_w'], params['posc1_b'],
                            params['posbn1_scale'], params['posbn1_shift'])
    w2p, b2p = _prep_pos_l2(params['posc2_w'], params['posc2_b'],
                            params['posbn2_scale'], params['posbn2_shift'])
    w1o, b1o = _prep_ori_l1(params['oric1_w'], params['oric1_b'],
                            params['oribn1_scale'], params['oribn1_shift'])
    w2o, b2o = _prep_ori_l2(params['oric2_w'], params['oric2_b'],
                            params['oribn2_scale'], params['oribn2_shift'])
    fw1 = _prep_fc1(params['fc1_w'], p2, hc, p2o, hco, fr)
    fb1 = params['fc1_b'].reshape(1, -1).astype(jnp.float32)
    fw2, fb2 = _prep_linear(params['fc2_w'], params['fc2_b'])
    fw3, fb3 = _prep_linear(params['pred_w'], params['pred_b'], nout_pad=128)

    feats = conv_branches(position, orientation, w1p, b1p, w2p, b2p,
                          w1o, b1o, w2o, b2o, p1=p1, p2=p2, hc=hc,
                          p1o=p1o, hco=hco, fr=fr, bt=batch_tile)
    logits = mlp_head(feats.reshape(feats.shape[0], -1),
                      fw1, fb1, fw2, fb2, fw3, fb3)
    return logits[:n, :num_actions]


# --------------------------------------------------------------------------

if __name__ == "__main__":
    POS_W, ORI_W, NUM_ACTIONS, BATCH = 16, 8, 4, 2

    key = jax.random.PRNGKey(0)
    k_params, k_pos, k_ori = jax.random.split(key, 3)

    params = init_params(k_params, POS_W, ORI_W, NUM_ACTIONS)
    position = jax.random.normal(k_pos, (BATCH, 1, POS_W, POS_W), jnp.float32)
    orientation = jax.random.normal(k_ori, (BATCH, 1, ORI_W), jnp.float32)

    apply_fn = jax.jit(forward)
    out = jax.block_until_ready(apply_fn(params, position, orientation))
    assert out.shape == (BATCH, NUM_ACTIONS), out.shape
    print("KERNEL_OK")
</pallas_src>

<mosaic_0001>
module attributes {stable_mosaic.version = 11 : i64} {
  func.func @_twochan_conv_kernel(%arg0: i32, %arg1: memref<8x64x16xbf16, #tpu.memory_space<vmem>>, %arg2: memref<8x4x4xbf16, #tpu.memory_space<vmem>>, %arg3: memref<16x512xbf16, #tpu.memory_space<vmem>>, %arg4: memref<1x128xf32, #tpu.memory_space<vmem>>, %arg5: memref<512x128xbf16, #tpu.memory_space<vmem>>, %arg6: memref<1x128xf32, #tpu.memory_space<vmem>>, %arg7: memref<4x256xbf16, #tpu.memory_space<vmem>>, %arg8: memref<1x128xf32, #tpu.memory_space<vmem>>, %arg9: memref<256x128xbf16, #tpu.memory_space<vmem>>, %arg10: memref<1x128xf32, #tpu.memory_space<vmem>>, %arg11: memref<8x48x128xbf16, #tpu.memory_space<vmem>>) attributes {dimension_semantics = [#tpu.dimension_semantics<parallel>], iteration_bounds = array<i64: 1>, scalar_prefetch = 0 : i64, scratch_operands = 0 : i64, tpu.core_type = #tpu.core_type<tc>, window_params = [{transform_indices = @transform_0, window_bounds = array<i64: 8, 64, 16>}, {transform_indices = @transform_1, window_bounds = array<i64: 8, 4, 4>}, {pipeline_mode = #tpu.pipeline_mode<synchronous>, transform_indices = @transform_2, window_bounds = array<i64: 16, 512>}, {pipeline_mode = #tpu.pipeline_mode<synchronous>, transform_indices = @transform_3, window_bounds = array<i64: 1, 128>}, {pipeline_mode = #tpu.pipeline_mode<synchronous>, transform_indices = @transform_4, window_bounds = array<i64: 512, 128>}, {pipeline_mode = #tpu.pipeline_mode<synchronous>, transform_indices = @transform_5, window_bounds = array<i64: 1, 128>}, {pipeline_mode = #tpu.pipeline_mode<synchronous>, transform_indices = @transform_6, window_bounds = array<i64: 4, 256>}, {pipeline_mode = #tpu.pipeline_mode<synchronous>, transform_indices = @transform_7, window_bounds = array<i64: 1, 128>}, {pipeline_mode = #tpu.pipeline_mode<synchronous>, transform_indices = @transform_8, window_bounds = array<i64: 256, 128>}, {pipeline_mode = #tpu.pipeline_mode<synchronous>, transform_indices = @transform_9, window_bounds = array<i64: 1, 128>}, {transform_indices = @transform_10, window_bounds = array<i64: 8, 48, 128>}]} {
    %c0 = arith.constant 0 : index
    %c0_0 = arith.constant 0 : index
    %c0_1 = arith.constant 0 : index
    %0 = vector.load %arg1[%c0, %c0_0, %c0_1] : memref<8x64x16xbf16, #tpu.memory_space<vmem>>, vector<8x64x16xbf16>
    %1 = vector.shape_cast %0 : vector<8x64x16xbf16> to vector<512x16xbf16>
    %c0_2 = arith.constant 0 : index
    %c0_3 = arith.constant 0 : index
    %2 = vector.load %arg3[%c0_2, %c0_3] : memref<16x512xbf16, #tpu.memory_space<vmem>>, vector<16x512xbf16>
    %cst = arith.constant dense<0.000000e+00> : vector<512x512xf32>
    %3 = tpu.matmul %1, %2, %cst {dimension_numbers = #tpu.dot_dimension_numbers<[1], [0], [0], [1], [0, 0, 1, 1], [], []>} : vector<512x16xbf16>, vector<16x512xbf16>, vector<512x512xf32> -> vector<512x512xf32>
    %4 = vector.extract_strided_slice %3 {offsets = [0, 0], sizes = [512, 128], strides = [1, 1]} : vector<512x512xf32> to vector<512x128xf32>
    %5 = vector.extract_strided_slice %3 {offsets = [0, 128], sizes = [512, 128], strides = [1, 1]} : vector<512x512xf32> to vector<512x128xf32>
    %6 = arith.maximumf %4, %5 : vector<512x128xf32>
    %7 = vector.extract_strided_slice %3 {offsets = [0, 256], sizes = [512, 128], strides = [1, 1]} : vector<512x512xf32> to vector<512x128xf32>
    %8 = vector.extract_strided_slice %3 {offsets = [0, 384], sizes = [512, 128], strides = [1, 1]} : vector<512x512xf32> to vector<512x128xf32>
    %9 = arith.maximumf %7, %8 : vector<512x128xf32>
    %10 = arith.maximumf %6, %9 : vector<512x128xf32>
    %c0_4 = arith.constant 0 : index
    %c0_5 = arith.constant 0 : index
    %11 = vector.load %arg4[%c0_4, %c0_5] : memref<1x128xf32, #tpu.memory_space<vmem>>, vector<1x128xf32>
    %12 = vector.broadcast %11 : vector<1x128xf32> to vector<512x128xf32>
    %13 = arith.addf %10, %12 : vector<512x128xf32>
    %cst_6 = arith.constant 0.000000e+00 : f32
    %14 = vector.broadcast %cst_6 : f32 to vector<512x128xf32>
    %15 = arith.maximumf %13, %14 : vector<512x128xf32>
    %16 = vector.shape_cast %15 : vector<512x128xf32> to vector<64x8x128xf32>
    %17 = vector.extract_strided_slice %16 {offsets = [0, 0, 0], sizes = [64, 4, 128], strides = [1, 1, 1]} : vector<64x8x128xf32> to vector<64x4x128xf32>
    %18 = vector.shape_cast %17 : vector<64x4x128xf32> to vector<8x8x4x128xf32>
    %19 = vector.extract_strided_slice %16 {offsets = [0, 4, 0], sizes = [64, 4, 128], strides = [1, 1, 1]} : vector<64x8x128xf32> to vector<64x4x128xf32>
    %20 = vector.shape_cast %19 : vector<64x4x128xf32> to vector<8x8x4x128xf32>
    %cst_7 = arith.constant 0.000000e+00 : f32
    %21 = vector.broadcast %cst_7 : f32 to vector<8x8x4x128xf32>
    %cst_8 = arith.constant 0.000000e+00 : f32
    %22 = vector.broadcast %cst_8 : f32 to vector<8x1x8x128xf32>
    %23 = tpu.concatenate %18, %21 in 2 : vector<8x8x4x128xf32>, vector<8x8x4x128xf32> -> vector<8x8x8x128xf32>
    %24 = tpu.concatenate %22, %23 in 1 : vector<8x1x8x128xf32>, vector<8x8x8x128xf32> -> vector<8x9x8x128xf32>
    %25 = tpu.concatenate %20, %21 in 2 : vector<8x8x4x128xf32>, vector<8x8x4x128xf32> -> vector<8x8x8x128xf32>
    %26 = tpu.concatenate %22, %25 in 1 : vector<8x1x8x128xf32>, vector<8x8x8x128xf32> -> vector<8x9x8x128xf32>
    %27 = vector.extract_strided_slice %26 {offsets = [0, 0, 7, 0], sizes = [8, 9, 1, 128], strides = [1, 1, 1, 1]} : vector<8x9x8x128xf32> to vector<8x9x1x128xf32>
    %28 = vector.extract_strided_slice %26 {offsets = [0, 0, 0, 0], sizes = [8, 9, 7, 128], strides = [1, 1, 1, 1]} : vector<8x9x8x128xf32> to vector<8x9x7x128xf32>
    %29 = tpu.concatenate %27, %28 in 2 : vector<8x9x1x128xf32>, vector<8x9x7x128xf32> -> vector<8x9x8x128xf32>
    %30 = vector.extract_strided_slice %29 {offsets = [0, 0, 0, 0], sizes = [8, 8, 8, 128], strides = [1, 1, 1, 1]} : vector<8x9x8x128xf32> to vector<8x8x8x128xf32>
    %31 = vector.shape_cast %30 : vector<8x8x8x128xf32> to vector<512x128xf32>
    %32 = vector.extract_strided_slice %24 {offsets = [0, 0, 0, 0], sizes = [8, 8, 8, 128], strides = [1, 1, 1, 1]} : vector<8x9x8x128xf32> to vector<8x8x8x128xf32>
    %33 = vector.shape_cast %32 : vector<8x8x8x128xf32> to vector<512x128xf32>
    %34 = vector.extract_strided_slice %29 {offsets = [0, 1, 0, 0], sizes = [8, 8, 8, 128], strides = [1, 1, 1, 1]} : vector<8x9x8x128xf32> to vector<8x8x8x128xf32>
    %35 = vector.shape_cast %34 : vector<8x8x8x128xf32> to vector<512x128xf32>
    %36 = vector.extract_strided_slice %24 {offsets = [0, 1, 0, 0], sizes = [8, 8, 8, 128], strides = [1, 1, 1, 1]} : vector<8x9x8x128xf32> to vector<8x8x8x128xf32>
    %37 = vector.shape_cast %36 : vector<8x8x8x128xf32> to vector<512x128xf32>
    %38 = tpu.concatenate %31, %33, %35, %37 in 1 : vector<512x128xf32>, vector<512x128xf32>, vector<512x128xf32>, vector<512x128xf32> -> vector<512x512xf32>
    %39 = arith.truncf %38 : vector<512x512xf32> to vector<512x512xbf16>
    %40 = vector.extract_strided_slice %24 {offsets = [0, 0, 0, 0], sizes = [8, 8, 8, 128], strides = [1, 1, 1, 1]} : vector<8x9x8x128xf32> to vector<8x8x8x128xf32>
    %41 = vector.shape_cast %40 : vector<8x8x8x128xf32> to vector<512x128xf32>
    %42 = vector.extract_strided_slice %26 {offsets = [0, 0, 0, 0], sizes = [8, 8, 8, 128], strides = [1, 1, 1, 1]} : vector<8x9x8x128xf32> to vector<8x8x8x128xf32>
    %43 = vector.shape_cast %42 : vector<8x8x8x128xf32> to vector<512x128xf32>
    %44 = vector.extract_strided_slice %24 {offsets = [0, 1, 0, 0], sizes = [8, 8, 8, 128], strides = [1, 1, 1, 1]} : vector<8x9x8x128xf32> to vector<8x8x8x128xf32>
    %45 = vector.shape_cast %44 : vector<8x8x8x128xf32> to vector<512x128xf32>
    %46 = vector.extract_strided_slice %26 {offsets = [0, 1, 0, 0], sizes = [8, 8, 8, 128], strides = [1, 1, 1, 1]} : vector<8x9x8x128xf32> to vector<8x8x8x128xf32>
    %47 = vector.shape_cast %46 : vector<8x8x8x128xf32> to vector<512x128xf32>
    %48 = tpu.concatenate %41, %43, %45, %47 in 1 : vector<512x128xf32>, vector<512x128xf32>, vector<512x128xf32>, vector<512x128xf32> -> vector<512x512xf32>
    %49 = arith.truncf %48 : vector<512x512xf32> to vector<512x512xbf16>
    %c0_9 = arith.constant 0 : index
    %c0_10 = arith.constant 0 : index
    %50 = vector.load %arg5[%c0_9, %c0_10] : memref<512x128xbf16, #tpu.memory_space<vmem>>, vector<512x128xbf16>
    %cst_11 = arith.constant dense<0.000000e+00> : vector<512x128xf32>
    %51 = tpu.matmul %39, %50, %cst_11 {dimension_numbers = #tpu.dot_dimension_numbers<[1], [0], [0], [1], [0, 0, 1, 1], [], []>} : vector<512x512xbf16>, vector<512x128xbf16>, vector<512x128xf32> -> vector<512x128xf32>
    %c0_12 = arith.constant 0 : index
    %c0_13 = arith.constant 0 : index
    %52 = vector.load %arg5[%c0_12, %c0_13] : memref<512x128xbf16, #tpu.memory_space<vmem>>, vector<512x128xbf16>
    %cst_14 = arith.constant dense<0.000000e+00> : vector<512x128xf32>
    %53 = tpu.matmul %49, %52, %cst_14 {dimension_numbers = #tpu.dot_dimension_numbers<[1], [0], [0], [1], [0, 0, 1, 1], [], []>} : vector<512x512xbf16>, vector<512x128xbf16>, vector<512x128xf32> -> vector<512x128xf32>
    %54 = arith.maximumf %51, %53 : vector<512x128xf32>
    %55 = vector.shape_cast %54 : vector<512x128xf32> to vector<8x4x2x8x128xf32>
    %56 = vector.extract_strided_slice %55 {offsets = [0, 0, 0, 0, 0], sizes = [8, 4, 1, 8, 128], strides = [1, 1, 1, 1, 1]} : vector<8x4x2x8x128xf32> to vector<8x4x1x8x128xf32>
    %57 = vector.shape_cast %56 : vector<8x4x1x8x128xf32> to vector<8x4x8x128xf32>
    %58 = vector.extract_strided_slice %55 {offsets = [0, 0, 1, 0, 0], sizes = [8, 4, 1, 8, 128], strides = [1, 1, 1, 1, 1]} : vector<8x4x2x8x128xf32> to vector<8x4x1x8x128xf32>
    %59 = vector.shape_cast %58 : vector<8x4x1x8x128xf32> to vector<8x4x8x128xf32>
    %60 = arith.maximumf %57, %59 : vector<8x4x8x128xf32>
    %c0_15 = arith.constant 0 : index
    %c0_16 = arith.constant 0 : index
    %61 = vector.load %arg6[%c0_15, %c0_16] : memref<1x128xf32, #tpu.memory_space<vmem>>, vector<1x128xf32>
    %62 = vector.shape_cast %61 : vector<1x128xf32> to vector<1x1x1x128xf32>
    %63 = vector.broadcast %62 : vector<1x1x1x128xf32> to vector<8x4x8x128xf32>
    %64 = arith.addf %60, %63 : vector<8x4x8x128xf32>
    %cst_17 = arith.constant 0.000000e+00 : f32
    %65 = vector.broadcast %cst_17 : f32 to vector<8x4x8x128xf32>
    %66 = arith.maximumf %64, %65 : vector<8x4x8x128xf32>
    %67 = vector.shape_cast %66 : vector<8x4x8x128xf32> to vector<8x32x128xf32>
    %c0_18 = arith.constant 0 : index
    %c0_19 = arith.constant 0 : index
    %c0_20 = arith.constant 0 : index
    %68 = vector.load %arg2[%c0_18, %c0_19, %c0_20] : memref<8x4x4xbf16, #tpu.memory_space<vmem>>, vector<8x4x4xbf16>
    %69 = vector.shape_cast %68 : vector<8x4x4xbf16> to vector<32x4xbf16>
    %c0_21 = arith.constant 0 : index
    %c0_22 = arith.constant 0 : index
    %70 = vector.load %arg7[%c0_21, %c0_22] : memref<4x256xbf16, #tpu.memory_space<vmem>>, vector<4x256xbf16>
    %cst_23 = arith.constant dense<0.000000e+00> : vector<32x256xf32>
    %71 = tpu.matmul %69, %70, %cst_23 {dimension_numbers = #tpu.dot_dimension_numbers<[1], [0], [0], [1], [0, 0, 1, 1], [], []>} : vector<32x4xbf16>, vector<4x256xbf16>, vector<32x256xf32> -> vector<32x256xf32>
    %72 = vector.extract_strided_slice %71 {offsets = [0, 0], sizes = [32, 128], strides = [1, 1]} : vector<32x256xf32> to vector<32x128xf32>
    %73 = vector.extract_strided_slice %71 {offsets = [0, 128], sizes = [32, 128], strides = [1, 1]} : vector<32x256xf32> to vector<32x128xf32>
    %74 = arith.maximumf %72, %73 : vector<32x128xf32>
    %c0_24 = arith.constant 0 : index
    %c0_25 = arith.constant 0 : index
    %75 = vector.load %arg8[%c0_24, %c0_25] : memref<1x128xf32, #tpu.memory_space<vmem>>, vector<1x128xf32>
    %76 = vector.broadcast %75 : vector<1x128xf32> to vector<32x128xf32>
    %77 = arith.addf %74, %76 : vector<32x128xf32>
    %cst_26 = arith.constant 0.000000e+00 : f32
    %78 = vector.broadcast %cst_26 : f32 to vector<32x128xf32>
    %79 = arith.maximumf %77, %78 : vector<32x128xf32>
    %80 = vector.shape_cast %79 : vector<32x128xf32> to vector<8x4x128xf32>
    %cst_27 = arith.constant 0.000000e+00 : f32
    %81 = vector.broadcast %cst_27 : f32 to vector<8x6x128xf32>
    %82 = vector.extract_strided_slice %80 {offsets = [0, 0, 0], sizes = [8, 2, 128], strides = [1, 1, 1]} : vector<8x4x128xf32> to vector<8x2x128xf32>
    %83 = tpu.concatenate %82, %81 in 1 : vector<8x2x128xf32>, vector<8x6x128xf32> -> vector<8x8x128xf32>
    %84 = vector.extract_strided_slice %80 {offsets = [0, 2, 0], sizes = [8, 2, 128], strides = [1, 1, 1]} : vector<8x4x128xf32> to vector<8x2x128xf32>
    %85 = tpu.concatenate %84, %81 in 1 : vector<8x2x128xf32>, vector<8x6x128xf32> -> vector<8x8x128xf32>
    %86 = vector.extract_strided_slice %85 {offsets = [0, 7, 0], sizes = [8, 1, 128], strides = [1, 1, 1]} : vector<8x8x128xf32> to vector<8x1x128xf32>
    %87 = vector.extract_strided_slice %85 {offsets = [0, 0, 0], sizes = [8, 7, 128], strides = [1, 1, 1]} : vector<8x8x128xf32> to vector<8x7x128xf32>
    %88 = tpu.concatenate %86, %87 in 1 : vector<8x1x128xf32>, vector<8x7x128xf32> -> vector<8x8x128xf32>
    %89 = tpu.concatenate %88, %83 in 2 : vector<8x8x128xf32>, vector<8x8x128xf32> -> vector<8x8x256xf32>
    %90 = vector.shape_cast %89 : vector<8x8x256xf32> to vector<64x256xf32>
    %91 = arith.truncf %90 : vector<64x256xf32> to vector<64x256xbf16>
    %92 = tpu.concatenate %83, %85 in 2 : vector<8x8x128xf32>, vector<8x8x128xf32> -> vector<8x8x256xf32>
    %93 = vector.shape_cast %92 : vector<8x8x256xf32> to vector<64x256xf32>
    %94 = arith.truncf %93 : vector<64x256xf32> to vector<64x256xbf16>
    %c0_28 = arith.constant 0 : index
    %c0_29 = arith.constant 0 : index
    %95 = vector.load %arg9[%c0_28, %c0_29] : memref<256x128xbf16, #tpu.memory_space<vmem>>, vector<256x128xbf16>
    %cst_30 = arith.constant dense<0.000000e+00> : vector<64x128xf32>
    %96 = tpu.matmul %91, %95, %cst_30 {dimension_numbers = #tpu.dot_dimension_numbers<[1], [0], [0], [1], [0, 0, 1, 1], [], []>} : vector<64x256xbf16>, vector<256x128xbf16>, vector<64x128xf32> -> vector<64x128xf32>
    %c0_31 = arith.constant 0 : index
    %c0_32 = arith.constant 0 : index
    %97 = vector.load %arg9[%c0_31, %c0_32] : memref<256x128xbf16, #tpu.memory_space<vmem>>, vector<256x128xbf16>
    %cst_33 = arith.constant dense<0.000000e+00> : vector<64x128xf32>
    %98 = tpu.matmul %94, %97, %cst_33 {dimension_numbers = #tpu.dot_dimension_numbers<[1], [0], [0], [1], [0, 0, 1, 1], [], []>} : vector<64x256xbf16>, vector<256x128xbf16>, vector<64x128xf32> -> vector<64x128xf32>
    %99 = arith.maximumf %96, %98 : vector<64x128xf32>
    %c0_34 = arith.constant 0 : index
    %c0_35 = arith.constant 0 : index
    %100 = vector.load %arg10[%c0_34, %c0_35] : memref<1x128xf32, #tpu.memory_space<vmem>>, vector<1x128xf32>
    %101 = vector.broadcast %100 : vector<1x128xf32> to vector<64x128xf32>
    %102 = arith.addf %99, %101 : vector<64x128xf32>
    %cst_36 = arith.constant 0.000000e+00 : f32
    %103 = vector.broadcast %cst_36 : f32 to vector<64x128xf32>
    %104 = arith.maximumf %102, %103 : vector<64x128xf32>
    %105 = vector.shape_cast %104 : vector<64x128xf32> to vector<8x8x128xf32>
    %cst_37 = arith.constant 0.000000e+00 : f32
    %106 = vector.broadcast %cst_37 : f32 to vector<8x8x128xf32>
    %107 = tpu.concatenate %67, %105, %106 in 1 : vector<8x32x128xf32>, vector<8x8x128xf32>, vector<8x8x128xf32> -> vector<8x48x128xf32>
    %108 = arith.truncf %107 : vector<8x48x128xf32> to vector<8x48x128xbf16>
    %c0_38 = arith.constant 0 : index
    %c0_39 = arith.constant 0 : index
    %c0_40 = arith.constant 0 : index
    %109 = vector.load %arg11[%c0_38, %c0_39, %c0_40] : memref<8x48x128xbf16, #tpu.memory_space<vmem>>, vector<8x48x128xbf16>
    tpu.vector_store %arg11[%c0_38, %c0_39, %c0_40], %108 {strides = array<i32>} : memref<8x48x128xbf16, #tpu.memory_space<vmem>>, vector<8x48x128xbf16>,
    return
  }
  func.func @transform_0(%arg0: i32) -> (i32, i32, i32) {
    %c0_i32 = arith.constant 0 : i32
    %c0_i32_0 = arith.constant 0 : i32
    %c0_i32_1 = arith.constant 0 : i32
    return %arg0, %c0_i32, %c0_i32_0 : i32, i32, i32
  }
  func.func @transform_1(%arg0: i32) -> (i32, i32, i32) {
    %c0_i32 = arith.constant 0 : i32
    %c0_i32_0 = arith.constant 0 : i32
    %c0_i32_1 = arith.constant 0 : i32
    return %arg0, %c0_i32, %c0_i32_0 : i32, i32, i32
  }
  func.func @transform_2(%arg0: i32) -> (i32, i32) {
    %c0_i32 = arith.constant 0 : i32
    %c0_i32_0 = arith.constant 0 : i32
    %c0_i32_1 = arith.constant 0 : i32
    return %c0_i32, %c0_i32_0 : i32, i32
  }
  func.func @transform_3(%arg0: i32) -> (i32, i32) {
    %c0_i32 = arith.constant 0 : i32
    %c0_i32_0 = arith.constant 0 : i32
    %c0_i32_1 = arith.constant 0 : i32
    return %c0_i32, %c0_i32_0 : i32, i32
  }
  func.func @transform_4(%arg0: i32) -> (i32, i32) {
    %c0_i32 = arith.constant 0 : i32
    %c0_i32_0 = arith.constant 0 : i32
    %c0_i32_1 = arith.constant 0 : i32
    return %c0_i32, %c0_i32_0 : i32, i32
  }
  func.func @transform_5(%arg0: i32) -> (i32, i32) {
    %c0_i32 = arith.constant 0 : i32
    %c0_i32_0 = arith.constant 0 : i32
    %c0_i32_1 = arith.constant 0 : i32
    return %c0_i32, %c0_i32_0 : i32, i32
  }
  func.func @transform_6(%arg0: i32) -> (i32, i32) {
    %c0_i32 = arith.constant 0 : i32
    %c0_i32_0 = arith.constant 0 : i32
    %c0_i32_1 = arith.constant 0 : i32
    return %c0_i32, %c0_i32_0 : i32, i32
  }
  func.func @transform_7(%arg0: i32) -> (i32, i32) {
    %c0_i32 = arith.constant 0 : i32
    %c0_i32_0 = arith.constant 0 : i32
    %c0_i32_1 = arith.constant 0 : i32
    return %c0_i32, %c0_i32_0 : i32, i32
  }
  func.func @transform_8(%arg0: i32) -> (i32, i32) {
    %c0_i32 = arith.constant 0 : i32
    %c0_i32_0 = arith.constant 0 : i32
    %c0_i32_1 = arith.constant 0 : i32
    return %c0_i32, %c0_i32_0 : i32, i32
  }
  func.func @transform_9(%arg0: i32) -> (i32, i32) {
    %c0_i32 = arith.constant 0 : i32
    %c0_i32_0 = arith.constant 0 : i32
    %c0_i32_1 = arith.constant 0 : i32
    return %c0_i32, %c0_i32_0 : i32, i32
  }
  func.func @transform_10(%arg0: i32) -> (i32, i32, i32) {
    %c0_i32 = arith.constant 0 : i32
    %c0_i32_0 = arith.constant 0 : i32
    %c0_i32_1 = arith.constant 0 : i32
    return %arg0, %c0_i32, %c0_i32_0 : i32, i32, i32
  }
}

module attributes {stable_mosaic.version = 11 : i64} {
  func.func @_mlp_kernel(%arg0: i32, %arg1: memref<16x6144xbf16, #tpu.memory_space<vmem>>, %arg2: memref<6144x128xbf16, #tpu.memory_space<vmem>>, %arg3: memref<1x128xf32, #tpu.memory_space<vmem>>, %arg4: memref<128x128xbf16, #tpu.memory_space<vmem>>, %arg5: memref<1x128xf32, #tpu.memory_space<vmem>>, %arg6: memref<128x128xbf16, #tpu.memory_space<vmem>>, %arg7: memref<1x128xf32, #tpu.memory_space<vmem>>, %arg8: memref<16x128xf32, #tpu.memory_space<vmem>>) attributes {dimension_semantics = [#tpu.dimension_semantics<parallel>], iteration_bounds = array<i64: 1>, scalar_prefetch = 0 : i64, scratch_operands = 0 : i64, tpu.core_type = #tpu.core_type<tc>, window_params = [{transform_indices = @transform_0, window_bounds = array<i64: 16, 6144>}, {pipeline_mode = #tpu.pipeline_mode<synchronous>, transform_indices = @transform_1, window_bounds = array<i64: 6144, 128>}, {pipeline_mode = #tpu.pipeline_mode<synchronous>, transform_indices = @transform_2, window_bounds = array<i64: 1, 128>}, {pipeline_mode = #tpu.pipeline_mode<synchronous>, transform_indices = @transform_3, window_bounds = array<i64: 128, 128>}, {pipeline_mode = #tpu.pipeline_mode<synchronous>, transform_indices = @transform_4, window_bounds = array<i64: 1, 128>}, {pipeline_mode = #tpu.pipeline_mode<synchronous>, transform_indices = @transform_5, window_bounds = array<i64: 128, 128>}, {pipeline_mode = #tpu.pipeline_mode<synchronous>, transform_indices = @transform_6, window_bounds = array<i64: 1, 128>}, {transform_indices = @transform_7, window_bounds = array<i64: 16, 128>}]} {
    %c0 = arith.constant 0 : index
    %c0_0 = arith.constant 0 : index
    %0 = vector.load %arg1[%c0, %c0_0] : memref<16x6144xbf16, #tpu.memory_space<vmem>>, vector<16x6144xbf16>
    %c0_1 = arith.constant 0 : index
    %c0_2 = arith.constant 0 : index
    %1 = vector.load %arg2[%c0_1, %c0_2] : memref<6144x128xbf16, #tpu.memory_space<vmem>>, vector<6144x128xbf16>
    %cst = arith.constant dense<0.000000e+00> : vector<16x128xf32>
    %2 = tpu.matmul %0, %1, %cst {dimension_numbers = #tpu.dot_dimension_numbers<[1], [0], [0], [1], [0, 0, 1, 1], [], []>} : vector<16x6144xbf16>, vector<6144x128xbf16>, vector<16x128xf32> -> vector<16x128xf32>
    %c0_3 = arith.constant 0 : index
    %c0_4 = arith.constant 0 : index
    %3 = vector.load %arg3[%c0_3, %c0_4] : memref<1x128xf32, #tpu.memory_space<vmem>>, vector<1x128xf32>
    %4 = vector.broadcast %3 : vector<1x128xf32> to vector<16x128xf32>
    %5 = arith.addf %2, %4 : vector<16x128xf32>
    %cst_5 = arith.constant 0.000000e+00 : f32
    %6 = vector.broadcast %cst_5 : f32 to vector<16x128xf32>
    %7 = arith.maximumf %5, %6 : vector<16x128xf32>
    %8 = arith.truncf %7 : vector<16x128xf32> to vector<16x128xbf16>
    %c0_6 = arith.constant 0 : index
    %c0_7 = arith.constant 0 : index
    %9 = vector.load %arg4[%c0_6, %c0_7] : memref<128x128xbf16, #tpu.memory_space<vmem>>, vector<128x128xbf16>
    %cst_8 = arith.constant dense<0.000000e+00> : vector<16x128xf32>
    %10 = tpu.matmul %8, %9, %cst_8 {dimension_numbers = #tpu.dot_dimension_numbers<[1], [0], [0], [1], [0, 0, 1, 1], [], []>} : vector<16x128xbf16>, vector<128x128xbf16>, vector<16x128xf32> -> vector<16x128xf32>
    %c0_9 = arith.constant 0 : index
    %c0_10 = arith.constant 0 : index
    %11 = vector.load %arg5[%c0_9, %c0_10] : memref<1x128xf32, #tpu.memory_space<vmem>>, vector<1x128xf32>
    %12 = vector.broadcast %11 : vector<1x128xf32> to vector<16x128xf32>
    %13 = arith.addf %10, %12 : vector<16x128xf32>
    %cst_11 = arith.constant 0.000000e+00 : f32
    %14 = vector.broadcast %cst_11 : f32 to vector<16x128xf32>
    %15 = arith.maximumf %13, %14 : vector<16x128xf32>
    %16 = arith.truncf %15 : vector<16x128xf32> to vector<16x128xbf16>
    %c0_12 = arith.constant 0 : index
    %c0_13 = arith.constant 0 : index
    %17 = vector.load %arg6[%c0_12, %c0_13] : memref<128x128xbf16, #tpu.memory_space<vmem>>, vector<128x128xbf16>
    %cst_14 = arith.constant dense<0.000000e+00> : vector<16x128xf32>
    %18 = tpu.matmul %16, %17, %cst_14 {dimension_numbers = #tpu.dot_dimension_numbers<[1], [0], [0], [1], [0, 0, 1, 1], [], []>} : vector<16x128xbf16>, vector<128x128xbf16>, vector<16x128xf32> -> vector<16x128xf32>
    %c0_15 = arith.constant 0 : index
    %c0_16 = arith.constant 0 : index
    %19 = vector.load %arg7[%c0_15, %c0_16] : memref<1x128xf32, #tpu.memory_space<vmem>>, vector<1x128xf32>
    %20 = vector.broadcast %19 : vector<1x128xf32> to vector<16x128xf32>
    %21 = arith.addf %18, %20 : vector<16x128xf32>
    %c0_17 = arith.constant 0 : index
    %c0_18 = arith.constant 0 : index
    %22 = vector.load %arg8[%c0_17, %c0_18] : memref<16x128xf32, #tpu.memory_space<vmem>>, vector<16x128xf32>
    tpu.vector_store %arg8[%c0_17, %c0_18], %21 {strides = array<i32>} : memref<16x128xf32, #tpu.memory_space<vmem>>, vector<16x128xf32>,
    return
  }
  func.func @transform_0(%arg0: i32) -> (i32, i32) {
    %c0_i32 = arith.constant 0 : i32
    %c0_i32_0 = arith.constant 0 : i32
    return %arg0, %c0_i32 : i32, i32
  }
  func.func @transform_1(%arg0: i32) -> (i32, i32) {
    %c0_i32 = arith.constant 0 : i32
    %c0_i32_0 = arith.constant 0 : i32
    %c0_i32_1 = arith.constant 0 : i32
    return %c0_i32, %c0_i32_0 : i32, i32
  }
  func.func @transform_2(%arg0: i32) -> (i32, i32) {
    %c0_i32 = arith.constant 0 : i32
    %c0_i32_0 = arith.constant 0 : i32
    %c0_i32_1 = arith.constant 0 : i32
    return %c0_i32, %c0_i32_0 : i32, i32
  }
  func.func @transform_3(%arg0: i32) -> (i32, i32) {
    %c0_i32 = arith.constant 0 : i32
    %c0_i32_0 = arith.constant 0 : i32
    %c0_i32_1 = arith.constant 0 : i32
    return %c0_i32, %c0_i32_0 : i32, i32
  }
  func.func @transform_4(%arg0: i32) -> (i32, i32) {
    %c0_i32 = arith.constant 0 : i32
    %c0_i32_0 = arith.constant 0 : i32
    %c0_i32_1 = arith.constant 0 : i32
    return %c0_i32, %c0_i32_0 : i32, i32
  }
  func.func @transform_5(%arg0: i32) -> (i32, i32) {
    %c0_i32 = arith.constant 0 : i32
    %c0_i32_0 = arith.constant 0 : i32
    %c0_i32_1 = arith.constant 0 : i32
    return %c0_i32, %c0_i32_0 : i32, i32
  }
  func.func @transform_6(%arg0: i32) -> (i32, i32) {
    %c0_i32 = arith.constant 0 : i32
    %c0_i32_0 = arith.constant 0 : i32
    %c0_i32_1 = arith.constant 0 : i32
    return %c0_i32, %c0_i32_0 : i32, i32
  }
  func.func @transform_7(%arg0: i32) -> (i32, i32) {
    %c0_i32 = arith.constant 0 : i32
    %c0_i32_0 = arith.constant 0 : i32
    return %arg0, %c0_i32 : i32, i32
  }
}

</mosaic_0001>

<bundles_post_ra>
// kernel: forward.2
= control target key start
LH: loop header
LB: loop body
LE: loop exit
PB: predicated region body
PF: predicated region fallthrough
CT: control target
= control target key end

     0   :  { %v8771_v1 = vmov 0   ;;  %vm284_vm0 = vcmask 130048   ;;  %vm1414_vm1 = vcmask 1043456   ;;  %vm5967_vm2 = vmmov 1   ;;  %s8756_s2 = inlined_call_operand.vmem [shape: bf16[16,512], index: 2, kind: input, shape index: {}]   ;;  %s8757_s0 = inlined_call_operand.vmem [shape: bf16[8,64,16], index: 0, kind: input, shape index: {}]   ;;  %s8758_s4 = inlined_call_operand.vmem [shape: bf16[512,128], index: 4, kind: input, shape index: {}]   ;;  %s8759_s3 = inlined_call_operand.vmem [shape: f32[1,128], index: 3, kind: input, shape index: {}]   ;;  %s8760_s6 = inlined_call_operand.vmem [shape: bf16[4,256], index: 6, kind: input, shape index: {}]   ;;  %s8761_s8 = inlined_call_operand.vmem [shape: bf16[256,128], index: 8, kind: input, shape index: {}]   ;;  %s8762_s1 = inlined_call_operand.vmem [shape: bf16[8,4,4], index: 1, kind: input, shape index: {}]   ;;  %s8763_s5 = inlined_call_operand.vmem [shape: f32[1,128], index: 5, kind: input, shape index: {}]   ;;  %s8764_s10 = inlined_call_operand.vmem [shape: bf16[8,48,128], index: 10, kind: output, shape index: {}]   ;;  %s8765_s7 = inlined_call_operand.vmem [shape: f32[1,128], index: 7, kind: input, shape index: {}]   ;;  %s8766_s9 = inlined_call_operand.vmem [shape: f32[1,128], index: 9, kind: input, shape index: {}]  }
   0x1   :  { %v5875_v0 = vld [vmem:[%s8756_s2 + $0x4] ss:$16 sps:$4 sm:$0xff]   ;;  %713 = vmatprep.mubr.bf16.mxu1 %v8771_v1  ;;  %413 = vmatprep.mubr.bf16.mxu0 %v8771_v1  ;;  %v5877_v2 = vld [vmem:[%s8756_s2] ss:$16 sps:$4 sm:$0xff]   ;;  %v5879_v4 = vld [vmem:[%s8756_s2 + $0x8] ss:$16 sps:$4 sm:$0xff]  }
   0x2   :  { %5613 = vmatprep.subr.bf16.mxu1 %v5875_v0  ;;  %381 = vmatprep.subr.bf16.mxu0 %v5875_v0  ;;  %v5878_v3 = vld [vmem:[%s8757_s0 + $0xf0] sm:$0xff]   ;;  %v5881_v5 = vld [vmem:[%s8756_s2 + $0xc] ss:$16 sps:$4 sm:$0xff]   ;;  %v5882_v6 = vld [vmem:[%s8757_s0] sm:$0xff]   ;;  %vm3834_vm5 = vcmask 1041408   ;;  %vm3827_vm6 = vcmask 31744  }
   0x3   :  { %5614 = vmatpush1.bf16.msra.mxu1 %v5877_v2  ;;  %382 = vmatpush1.bf16.msra.mxu0 %v5877_v2  ;;  %v5883_v7 = vld [vmem:[%s8758_s4] sm:$0xff]   ;;  %v5884_v8 = vld [vmem:[%s8757_s0 + $0xf8] sm:$0xff]   ;;  %v5887_v9 = vld [vmem:[%s8758_s4 + $0x8] sm:$0xff]  }
   0x4   :  { %2444 = vmatprep.subr.bf16.mxu0 %v8771_v1  ;;  %734 = vmatprep.subr.bf16.mxu1 %v5881_v5  ;;  %v5885_v10 = vld [vmem:[%s8757_s0 + $0x8] sm:$0xff]   ;;  %v5890_v11 = vld [vmem:[%s8758_s4 + $0x10] sm:$0xff]   ;;  %v5893_v12 = vld [vmem:[%s8758_s4 + $0x18] sm:$0xff]  }
   0x5   :  { %v5886_v13 = vld [vmem:[%s8757_s0 + $0x10] sm:$0xff]   ;;  %v5895_v14 = vld [vmem:[%s8758_s4 + $0x20] sm:$0xff]   ;;  %v5898_v15 = vld [vmem:[%s8758_s4 + $0x28] sm:$0xff]  }
   0x6   :  { %4600 = vmatmul.mubr.msk.bf16.vlgmr.msra.gmra.mrb[0].mxu1 %vm284_vm0, %v5878_v3  ;;  %4570 = vmatmul.mubr.msk.bf16.vlgmr.msra.gmra.mrb[0].mxu0 %vm284_vm0, %v5882_v6  ;;  %v5888_v16 = vld [vmem:[%s8757_s0 + $0x18] sm:$0xff]   ;;  %v5901_v17 = vld [vmem:[%s8758_s4 + $0x30] sm:$0xff]   ;;  %v5889_v19 = vld [vmem:[%s8757_s0 + $0x20] sm:$0xff]  }
   0x7   :  { %735 = vmatpush1.bf16.msra.mxu1 %v5879_v4  ;;  %2445 = vmatpush1.bf16.msra.mxu0 %v5883_v7  ;;  %v5904_v18 = vld [vmem:[%s8758_s4 + $0x38] sm:$0xff]   ;;  %v5907_v20 = vld [vmem:[%s8758_s4 + $0x40] sm:$0xff]   ;;  %v5910_v21 = vld [vmem:[%s8758_s4 + $0x48] sm:$0xff]  }
   0x8   :  { %723 = vmatprep.mubr.bf16.mxu1 %v8771_v1  ;;  %423 = vmatprep.mubr.bf16.mxu0 %v8771_v1  ;;  %v5891_v22 = vld [vmem:[%s8757_s0 + $0x28] sm:$0xff]   ;;  %v5913_v23 = vld [vmem:[%s8758_s4 + $0x50] sm:$0xff]   ;;  %v5916_v24 = vld [vmem:[%s8758_s4 + $0x58] sm:$0xff]  }
   0x9   :  { %2446 = vmatprep.subr.bf16.mxu0 %v8771_v1  ;;  %3022 = vmatprep.subr.bf16.mxu1 %v8771_v1  ;;  %v5892_v25 = vld [vmem:[%s8757_s0 + $0x30] sm:$0xff]   ;;  %v5894_v26 = vld [vmem:[%s8757_s0 + $0x38] sm:$0xff]   ;;  %v5918_v27 = vld [vmem:[%s8758_s4 + $0x60] sm:$0xff]  }
   0xa   :  { %v5896_v28 = vld [vmem:[%s8757_s0 + $0x40] sm:$0xff]   ;;  %v5897_v29 = vld [vmem:[%s8757_s0 + $0x48] sm:$0xff]   ;;  %v5899_v31 = vld [vmem:[%s8757_s0 + $0x50] sm:$0xff]  }
   0xb   :  { %2447 = vmatpush1.bf16.msra.mxu0 %v5887_v9  ;;  %v5921_v30 = vld [vmem:[%s8758_s4 + $0x68] sm:$0xff]   ;;  %v5900_v32 = vld [vmem:[%s8757_s0 + $0x58] sm:$0xff]   ;;  %v5924_v33 = vld [vmem:[%s8758_s4 + $0x70] sm:$0xff]  }
   0xc   :  { %2448 = vmatprep.subr.bf16.mxu0 %v8771_v1  ;;  %v5902_v34 = vld [vmem:[%s8757_s0 + $0x60] sm:$0xff]   ;;  %v5903_v35 = vld [vmem:[%s8757_s0 + $0x68] sm:$0xff]   ;;  %v5905_v36 = vld [vmem:[%s8757_s0 + $0x70] sm:$0xff]  }
   0xd   :  { %v5927_v37 = vld [vmem:[%s8758_s4 + $0x78] sm:$0xff]   ;;  %v5908_v39 = vld [vmem:[%s8757_s0 + $0x80] sm:$0xff]   ;;  %v5909_v40 = vld [vmem:[%s8757_s0 + $0x88] sm:$0xff]  }
   0xe   :  { %4601 = vmatmul.mubr.msk.bf16.gmra.mrb[4].mxu1 %vm284_vm0, %v5884_v8  ;;  %4571 = vmatmul.mubr.msk.bf16.gmra.mrb[4].mxu0 %vm284_vm0, %v5885_v10  ;;  %v5906_v38 = vld [vmem:[%s8757_s0 + $0x78] sm:$0xff]   ;;  %v5911_v41 = vld [vmem:[%s8757_s0 + $0x90] sm:$0xff]   ;;  %v5914_v43 = vld [vmem:[%s8757_s0 + $0xa0] sm:$0xff]  }
   0xf   :  { %766 = vmatprep.mubr.bf16.mxu1 %v8771_v1  ;;  %433 = vmatprep.mubr.bf16.mxu0 %v8771_v1  ;;  %v5912_v42 = vld [vmem:[%s8757_s0 + $0x98] sm:$0xff]   ;;  %v5915_v44 = vld [vmem:[%s8757_s0 + $0xa8] sm:$0xff]   ;;  %v5917_v45 = vld [vmem:[%s8757_s0 + $0xb0] sm:$0xff]  }
  0x10   :  { %2449 = vmatpush1.bf16.msra.mxu0 %v5890_v11  ;;  %v5919_v46 = vld [vmem:[%s8757_s0 + $0xb8] sm:$0xff]   ;;  %v5920_v47 = vld [vmem:[%s8757_s0 + $0xc0] sm:$0xff]   ;;  %v5922_v48 = vld [vmem:[%s8757_s0 + $0xc8] sm:$0xff]  }
  0x11   :  { %2450 = vmatprep.subr.bf16.mxu0 %v8771_v1  ;;  %v5923_v49 = vld [vmem:[%s8757_s0 + $0xd0] sm:$0xff]   ;;  %v5925_v54 = vld [vmem:[%s8757_s0 + $0xd8] sm:$0xff]   ;;  %v5926_v4 = vld [vmem:[%s8757_s0 + $0xe0] sm:$0xff]  }
  0x12   :  { %vm6393_vm3 = vmpackc.low %vm1414_vm1, %vm5967_vm2 }
  0x13   :  { %vm6436_vm4 = vmpackc.low %vm1414_vm1, %vm1414_vm1 }
  0x14   :  { %2451 = vmatpush1.bf16.msra.mxu0 %v5893_v12  ;;  %vm8663_vm7 = vmpackc.low %vm3834_vm5, %vm3834_vm5 }
  0x15   :  { %2452 = vmatprep.subr.bf16.mxu0 %v8771_v1 }
  0x16   :  { %4602 = vmatmul.mubr.msk.bf16.vlgmr.msra.gmra.mrb[8].mxu1 %vm284_vm0, %v5882_v6  ;;  %4572 = vmatmul.mubr.msk.bf16.gmra.mrb[8].mxu0 %vm284_vm0, %v5886_v13 }
  0x17   :  { %776 = vmatprep.mubr.bf16.mxu1 %v8771_v1  ;;  %443 = vmatprep.mubr.bf16.mxu0 %v8771_v1 }
  0x18   :  { %2453 = vmatpush1.bf16.msra.mxu0 %v5895_v14  ;;  %3023 = vmatpush1.bf16.msra.mxu1 %v5883_v7 }
  0x19   :  { %2454 = vmatprep.subr.bf16.mxu0 %v8771_v1  ;;  %3024 = vmatprep.subr.bf16.mxu1 %v8771_v1 }
  0x1c   :  { %2455 = vmatpush1.bf16.msra.mxu0 %v5898_v15  ;;  %3025 = vmatpush1.bf16.msra.mxu1 %v5887_v9 }
  0x1d   :  { %2456 = vmatprep.subr.bf16.mxu0 %v8771_v1  ;;  %3026 = vmatprep.subr.bf16.mxu1 %v8771_v1 }
  0x1e   :  { %4603 = vmatmul.mubr.msk.bf16.gmra.mrb[12].mxu1 %vm284_vm0, %v5885_v10  ;;  %4573 = vmatmul.mubr.msk.bf16.gmra.mrb[12].mxu0 %vm284_vm0, %v5888_v16 }
  0x1f   :  { %786 = vmatprep.mubr.bf16.mxu1 %v8771_v1  ;;  %453 = vmatprep.mubr.bf16.mxu0 %v8771_v1 }
  0x20   :  { %2457 = vmatpush1.bf16.msra.mxu0 %v5901_v17  ;;  %3027 = vmatpush1.bf16.msra.mxu1 %v5890_v11 }
  0x21   :  { %2458 = vmatprep.subr.bf16.mxu0 %v8771_v1  ;;  %3028 = vmatprep.subr.bf16.mxu1 %v8771_v1 }
  0x24   :  { %2459 = vmatpush1.bf16.msra.mxu0 %v5904_v18  ;;  %3029 = vmatpush1.bf16.msra.mxu1 %v5893_v12 }
  0x25   :  { %2460 = vmatprep.subr.bf16.mxu0 %v8771_v1  ;;  %3030 = vmatprep.subr.bf16.mxu1 %v8771_v1 }
  0x26   :  { %4604 = vmatmul.mubr.msk.bf16.gmra.mrb[16].mxu1 %vm284_vm0, %v5886_v13  ;;  %4574 = vmatmul.mubr.msk.bf16.gmra.mrb[16].mxu0 %vm284_vm0, %v5889_v19 }
  0x27   :  { %796 = vmatprep.mubr.bf16.mxu1 %v8771_v1  ;;  %463 = vmatprep.mubr.bf16.mxu0 %v8771_v1 }
  0x28   :  { %2461 = vmatpush1.bf16.msra.mxu0 %v5907_v20  ;;  %3031 = vmatpush1.bf16.msra.mxu1 %v5895_v14 }
  0x29   :  { %2462 = vmatprep.subr.bf16.mxu0 %v8771_v1  ;;  %3032 = vmatprep.subr.bf16.mxu1 %v8771_v1 }
  0x2c   :  { %2463 = vmatpush1.bf16.msra.mxu0 %v5910_v21  ;;  %3033 = vmatpush1.bf16.msra.mxu1 %v5898_v15 }
  0x2d   :  { %2464 = vmatprep.subr.bf16.mxu0 %v8771_v1  ;;  %3034 = vmatprep.subr.bf16.mxu1 %v8771_v1 }
  0x2e   :  { %4605 = vmatmul.mubr.msk.bf16.gmra.mrb[20].mxu1 %vm284_vm0, %v5888_v16  ;;  %4575 = vmatmul.mubr.msk.bf16.gmra.mrb[20].mxu0 %vm284_vm0, %v5891_v22 }
  0x2f   :  { %806 = vmatprep.mubr.bf16.mxu1 %v8771_v1  ;;  %473 = vmatprep.mubr.bf16.mxu0 %v8771_v1 }
  0x30   :  { %2465 = vmatpush1.bf16.msra.mxu0 %v5913_v23  ;;  %3035 = vmatpush1.bf16.msra.mxu1 %v5901_v17  ;;  %v6361_v17 = vld [vmem:[%s8757_s0 + $0xe8] sm:$0xff]  }
  0x31   :  { %2466 = vmatprep.subr.bf16.mxu0 %v8771_v1  ;;  %3036 = vmatprep.subr.bf16.mxu1 %v8771_v1 }
  0x34   :  { %2467 = vmatpush1.bf16.msra.mxu0 %v5916_v24  ;;  %3037 = vmatpush1.bf16.msra.mxu1 %v5904_v18 }
  0x35   :  { %2468 = vmatprep.subr.bf16.mxu0 %v8771_v1  ;;  %3038 = vmatprep.subr.bf16.mxu1 %v8771_v1 }
  0x36   :  { %4606 = vmatmul.mubr.msk.bf16.gmra.mrb[24].mxu1 %vm284_vm0, %v5889_v19  ;;  %4576 = vmatmul.mubr.msk.bf16.gmra.mrb[24].mxu0 %vm284_vm0, %v5892_v25 }
  0x37   :  { %816 = vmatprep.mubr.bf16.mxu1 %v8771_v1  ;;  %483 = vmatprep.mubr.bf16.mxu0 %v8771_v1 }
  0x38   :  { %3039 = vmatpush1.bf16.msra.mxu1 %v5907_v20  ;;  %2469 = vmatpush1.bf16.msra.mxu0 %v5918_v27 }
  0x39   :  { %3040 = vmatprep.subr.bf16.mxu1 %v8771_v1  ;;  %2470 = vmatprep.subr.bf16.mxu0 %v8771_v1 }
  0x3c   :  { %3041 = vmatpush1.bf16.msra.mxu1 %v5910_v21  ;;  %2471 = vmatpush1.bf16.msra.mxu0 %v5921_v30 }
  0x3d   :  { %3042 = vmatprep.subr.bf16.mxu1 %v8771_v1  ;;  %2472 = vmatprep.subr.bf16.mxu0 %v8771_v1 }
  0x3e   :  { %4607 = vmatmul.mubr.msk.bf16.gmra.mrb[28].mxu1 %vm284_vm0, %v5891_v22  ;;  %4577 = vmatmul.mubr.msk.bf16.gmra.mrb[28].mxu0 %vm284_vm0, %v5894_v26  ;;  %v6370_v22 = vld [vmem:[%s8759_s3] ss:$0 sm:$0xff] }
  0x3f   :  { %826 = vmatprep.mubr.bf16.mxu1 %v8771_v1  ;;  %493 = vmatprep.mubr.bf16.mxu0 %v8771_v1 }
  0x40   :  { %3043 = vmatpush1.bf16.msra.mxu1 %v5913_v23  ;;  %2473 = vmatpush1.bf16.msra.mxu0 %v5924_v33 }
  0x41   :  { %3044 = vmatprep.subr.bf16.mxu1 %v8771_v1  ;;  %2474 = vmatprep.subr.bf16.mxu0 %v8771_v1 }
  0x44   :  { %3045 = vmatpush1.bf16.msra.mxu1 %v5916_v24  ;;  %2475 = vmatpush1.bf16.msra.mxu0 %v5927_v37 }
  0x45   :  { %3046 = vmatprep.subr.bf16.mxu1 %v8771_v1  ;;  %2733 = vmatprep.subr.bf16.mxu0 %v8771_v1 }
  0x46   :  { %4608 = vmatmul.mubr.msk.bf16.gmra.mrb[32].mxu1 %vm284_vm0, %v5892_v25  ;;  %4578 = vmatmul.mubr.msk.bf16.gmra.mrb[32].mxu0 %vm284_vm0, %v5896_v28 }
  0x47   :  { %836 = vmatprep.mubr.bf16.mxu1 %v8771_v1  ;;  %503 = vmatprep.mubr.bf16.mxu0 %v8771_v1 }
  0x48   :  { %3047 = vmatpush1.bf16.msra.mxu1 %v5918_v27 }
  0x49   :  { %3048 = vmatprep.subr.bf16.mxu1 %v8771_v1 }
  0x4c   :  { %3049 = vmatpush1.bf16.msra.mxu1 %v5921_v30 }
  0x4d   :  { %3050 = vmatprep.subr.bf16.mxu1 %v8771_v1 }
  0x4e   :  { %4609 = vmatmul.mubr.msk.bf16.gmra.mrb[36].mxu1 %vm284_vm0, %v5894_v26  ;;  %4579 = vmatmul.mubr.msk.bf16.gmra.mrb[36].mxu0 %vm284_vm0, %v5897_v29 }
  0x4f   :  { %846 = vmatprep.mubr.bf16.mxu1 %v8771_v1  ;;  %513 = vmatprep.mubr.bf16.mxu0 %v8771_v1 }
  0x50   :  { %3051 = vmatpush1.bf16.msra.mxu1 %v5924_v33 }
  0x51   :  { %3052 = vmatprep.subr.bf16.mxu1 %v8771_v1 }
  0x54   :  { %3053 = vmatpush1.bf16.msra.mxu1 %v5927_v37 }
  0x55   :  { %3311 = vmatprep.subr.bf16.mxu1 %v8771_v1 }
  0x56   :  { %4610 = vmatmul.mubr.msk.bf16.gmra.mrb[40].mxu1 %vm284_vm0, %v5896_v28  ;;  %4580 = vmatmul.mubr.msk.bf16.gmra.mrb[40].mxu0 %vm284_vm0, %v5899_v31 }
  0x57   :  { %856 = vmatprep.mubr.bf16.mxu1 %v8771_v1  ;;  %523 = vmatprep.mubr.bf16.mxu0 %v8771_v1 }
  0x5e   :  { %4611 = vmatmul.mubr.msk.bf16.gmra.mrb[44].mxu1 %vm284_vm0, %v5897_v29  ;;  %4581 = vmatmul.mubr.msk.bf16.gmra.mrb[44].mxu0 %vm284_vm0, %v5900_v32 }
  0x5f   :  { %866 = vmatprep.mubr.bf16.mxu1 %v8771_v1  ;;  %533 = vmatprep.mubr.bf16.mxu0 %v8771_v1 }
  0x66   :  { %4612 = vmatmul.mubr.msk.bf16.gmra.mrb[48].mxu1 %vm284_vm0, %v5899_v31  ;;  %4582 = vmatmul.mubr.msk.bf16.gmra.mrb[48].mxu0 %vm284_vm0, %v5902_v34 }
  0x67   :  { %876 = vmatprep.mubr.bf16.mxu1 %v8771_v1  ;;  %543 = vmatprep.mubr.bf16.mxu0 %v8771_v1 }
  0x6e   :  { %4613 = vmatmul.mubr.msk.bf16.gmra.mrb[52].mxu1 %vm284_vm0, %v5900_v32  ;;  %4583 = vmatmul.mubr.msk.bf16.gmra.mrb[52].mxu0 %vm284_vm0, %v5903_v35 }
  0x6f   :  { %886 = vmatprep.mubr.bf16.mxu1 %v8771_v1  ;;  %553 = vmatprep.mubr.bf16.mxu0 %v8771_v1 }
  0x76   :  { %4614 = vmatmul.mubr.msk.bf16.gmra.mrb[56].mxu1 %vm284_vm0, %v5902_v34  ;;  %4584 = vmatmul.mubr.msk.bf16.gmra.mrb[56].mxu0 %vm284_vm0, %v5905_v36 }
  0x77   :  { %896 = vmatprep.mubr.bf16.mxu1 %v8771_v1  ;;  %563 = vmatprep.mubr.bf16.mxu0 %v8771_v1 }
  0x7e   :  { %4615 = vmatmul.mubr.msk.bf16.gmra.mrb[60].mxu1 %vm284_vm0, %v5903_v35  ;;  %4585 = vmatmul.mubr.msk.bf16.gmra.mrb[60].mxu0 %vm284_vm0, %v5906_v38 }
  0x7f   :  { %906 = vmatprep.mubr.bf16.mxu1 %v8771_v1  ;;  %573 = vmatprep.mubr.bf16.mxu0 %v8771_v1 }
  0x86   :  { %4616 = vmatmul.mubr.msk.bf16.gmra.mrb[64].mxu1 %vm284_vm0, %v5905_v36  ;;  %4586 = vmatmul.mubr.msk.bf16.gmra.mrb[64].mxu0 %vm284_vm0, %v5908_v39 }
  0x87   :  { %916 = vmatprep.mubr.bf16.mxu1 %v8771_v1  ;;  %583 = vmatprep.mubr.bf16.mxu0 %v8771_v1 }
  0x8e   :  { %4617 = vmatmul.mubr.msk.bf16.gmra.mrb[68].mxu1 %vm284_vm0, %v5906_v38  ;;  %4587 = vmatmul.mubr.msk.bf16.gmra.mrb[68].mxu0 %vm284_vm0, %v5909_v40 }
  0x8f   :  { %926 = vmatprep.mubr.bf16.mxu1 %v8771_v1  ;;  %593 = vmatprep.mubr.bf16.mxu0 %v8771_v1 }
  0x96   :  { %4618 = vmatmul.mubr.msk.bf16.gmra.mrb[72].mxu1 %vm284_vm0, %v5908_v39  ;;  %4588 = vmatmul.mubr.msk.bf16.gmra.mrb[72].mxu0 %vm284_vm0, %v5911_v41 }
  0x97   :  { %936 = vmatprep.mubr.bf16.mxu1 %v8771_v1  ;;  %603 = vmatprep.mubr.bf16.mxu0 %v8771_v1 }
  0x9e   :  { %4619 = vmatmul.mubr.msk.bf16.gmra.mrb[76].mxu1 %vm284_vm0, %v5909_v40  ;;  %4589 = vmatmul.mubr.msk.bf16.gmra.mrb[76].mxu0 %vm284_vm0, %v5912_v42 }
  0x9f   :  { %946 = vmatprep.mubr.bf16.mxu1 %v8771_v1  ;;  %613 = vmatprep.mubr.bf16.mxu0 %v8771_v1 }
  0xa6   :  { %4620 = vmatmul.mubr.msk.bf16.gmra.mrb[80].mxu1 %vm284_vm0, %v5911_v41  ;;  %4590 = vmatmul.mubr.msk.bf16.gmra.mrb[80].mxu0 %vm284_vm0, %v5914_v43 }
  0xa7   :  { %956 = vmatprep.mubr.bf16.mxu1 %v8771_v1  ;;  %623 = vmatprep.mubr.bf16.mxu0 %v8771_v1 }
  0xae   :  { %4621 = vmatmul.mubr.msk.bf16.gmra.mrb[84].mxu1 %vm284_vm0, %v5912_v42  ;;  %4591 = vmatmul.mubr.msk.bf16.gmra.mrb[84].mxu0 %vm284_vm0, %v5915_v44 }
  0xaf   :  { %966 = vmatprep.mubr.bf16.mxu1 %v8771_v1  ;;  %633 = vmatprep.mubr.bf16.mxu0 %v8771_v1 }
  0xb6   :  { %4622 = vmatmul.mubr.msk.bf16.gmra.mrb[88].mxu1 %vm284_vm0, %v5914_v43  ;;  %4592 = vmatmul.mubr.msk.bf16.gmra.mrb[88].mxu0 %vm284_vm0, %v5917_v45 }
  0xb7   :  { %976 = vmatprep.mubr.bf16.mxu1 %v8771_v1  ;;  %643 = vmatprep.mubr.bf16.mxu0 %v8771_v1 }
  0xbe   :  { %4623 = vmatmul.mubr.msk.bf16.gmra.mrb[92].mxu1 %vm284_vm0, %v5915_v44  ;;  %4593 = vmatmul.mubr.msk.bf16.gmra.mrb[92].mxu0 %vm284_vm0, %v5919_v46  ;;  %v8767_v44 = vmov 0.0  }
  0xbf   :  { %986 = vmatprep.mubr.bf16.mxu1 %v8771_v1  ;;  %653 = vmatprep.mubr.bf16.mxu0 %v8771_v1 }
  0xc6   :  { %4624 = vmatmul.mubr.msk.bf16.gmra.mrb[96].mxu1 %vm284_vm0, %v5917_v45  ;;  %4594 = vmatmul.mubr.msk.bf16.gmra.mrb[96].mxu0 %vm284_vm0, %v5920_v47 }
  0xc7   :  { %996 = vmatprep.mubr.bf16.mxu1 %v8771_v1  ;;  %663 = vmatprep.mubr.bf16.mxu0 %v8771_v1 }
  0xce   :  { %4625 = vmatmul.mubr.msk.bf16.gmra.mrb[100].mxu1 %vm284_vm0, %v5919_v46  ;;  %4595 = vmatmul.mubr.msk.bf16.gmra.mrb[100].mxu0 %vm284_vm0, %v5922_v48 }
  0xcf   :  { %1006 = vmatprep.mubr.bf16.mxu1 %v8771_v1  ;;  %673 = vmatprep.mubr.bf16.mxu0 %v8771_v1 }
  0xd6   :  { %4626 = vmatmul.mubr.msk.bf16.gmra.mrb[104].mxu1 %vm284_vm0, %v5920_v47  ;;  %4596 = vmatmul.mubr.msk.bf16.gmra.mrb[104].mxu0 %vm284_vm0, %v5923_v49  ;;  %v6403_v47 = vrot.slane %v8767_v44, 7 }
  0xd7   :  { %1016 = vmatprep.mubr.bf16.mxu1 %v8771_v1  ;;  %683 = vmatprep.mubr.bf16.mxu0 %v8771_v1 }
  0xd9   :  { %v6316_v50 = vpop.f32.mrb[0].mxu1  ;;  %v415_v51 = vpop.f32.mrb[0].mxu0 }
  0xda   :  { %v6318_v52 = vpop.f32.mrb[1].mxu1  ;;  %v417_v53 = vpop.f32.mrb[1].mxu0 }
  0xdb   :  { %v6323_v55 = vpop.f32.mrb[2].mxu1  ;;  %v1087_v56 = vmax.f32 %v415_v51, %v417_v53  ;;  %v419_v57 = vpop.f32.mrb[2].mxu0 }
  0xdc   :  { %v6327_v59 = vpop.f32.mrb[3].mxu1  ;;  %v421_v60 = vpop.f32.mrb[3].mxu0 }
  0xdd   :  { %v1088_v61 = vmax.f32 %v419_v57, %v421_v60 }
  0xde   :  { %4627 = vmatmul.mubr.msk.bf16.gmra.mrb[108].mxu1 %vm284_vm0, %v5922_v48  ;;  %4597 = vmatmul.mubr.msk.bf16.gmra.mrb[108].mxu0 %vm284_vm0, %v5925_v54 }
  0xdf   :  { %1026 = vmatprep.mubr.bf16.mxu1 %v8771_v1  ;;  %693 = vmatprep.mubr.bf16.mxu0 %v8771_v1 }
  0xe1   :  { %v6335_v63 = vpop.f32.mrb[4].mxu1  ;;  %v425_v0 = vpop.f32.mrb[4].mxu0 }
  0xe2   :  { %v6337_v2 = vpop.f32.mrb[5].mxu1  ;;  %v427_v3 = vpop.f32.mrb[5].mxu0 }
  0xe3   :  { %v6342_v5 = vpop.f32.mrb[6].mxu1  ;;  %v1089_v6 = vmax.f32 %v425_v0, %v427_v3  ;;  %v429_v7 = vpop.f32.mrb[6].mxu0  ;;  %v6421_v0 = vld [vmem:[%s8758_s4 + $0x80] sm:$0xff]  }
  0xe4   :  { %v6346_v9 = vpop.f32.mrb[7].mxu1  ;;  %v431_v10 = vpop.f32.mrb[7].mxu0 }
  0xe5   :  { %v1090_v11 = vmax.f32 %v429_v7, %v431_v10 }
  0xe6   :  { %4628 = vmatmul.mubr.msk.bf16.gmra.mrb[112].mxu1 %vm284_vm0, %v5923_v49  ;;  %4598 = vmatmul.mubr.msk.bf16.gmra.mrb[112].mxu0 %vm284_vm0, %v5926_v4 }
  0xe7   :  { %1036 = vmatprep.mubr.bf16.mxu1 %v8771_v1  ;;  %703 = vmatprep.mubr.bf16.mxu0 %v8771_v1 }
  0xe9   :  { %v768_v13 = vpop.f32.mrb[8].mxu1  ;;  %v6354_v14 = vpop.f32.mrb[8].mxu0 }
  0xea   :  { %v770_v15 = vpop.f32.mrb[9].mxu1  ;;  %v6356_v16 = vpop.f32.mrb[9].mxu0 }
  0xeb   :  { %v1151_v18 = vmax.f32 %v768_v13, %v770_v15  ;;  %v772_v19 = vpop.f32.mrb[10].mxu1  ;;  %v1091_v20 = vmax.f32 %v6354_v14, %v6356_v16  ;;  %v6365_v21 = vpop.f32.mrb[10].mxu0 }
  0xec   :  { %v774_v23 = vpop.f32.mrb[11].mxu1  ;;  %v6372_v24 = vpop.f32.mrb[11].mxu0 }
  0xed   :  { %v1215_v25 = vmax.f32 %v1087_v56, %v1151_v18  ;;  %v1152_v26 = vmax.f32 %v772_v19, %v774_v23  ;;  %v1092_v27 = vmax.f32 %v6365_v21, %v6372_v24 }
  0xee   :  { %4629 = vmatmul.mubr.msk.bf16.gmra.mrb[116].mxu1 %vm284_vm0, %v5925_v54  ;;  %4599 = vmatmul.mubr.msk.bf16.gmra.mrb[116].mxu0 %vm284_vm0, %v6361_v17 }
  0xef   :  { %v1286_v28 = vadd.f32 %v6370_v22, %v1215_v25  ;;  %v1216_v29 = vmax.f32 %v1088_v61, %v1152_v26  ;;  %1046 = vmatprep.mubr.bf16.mxu1 %v8771_v1 }
  0xf1   :  { %v1350_v30 = vmax.f32 %v1286_v28, 0.0  ;;  %v1287_v31 = vadd.f32 %v6370_v22, %v1216_v29  ;;  %v778_v32 = vpop.f32.mrb[12].mxu1  ;;  %v6382_v33 = vpop.f32.mrb[12].mxu0 }
  0xf2   :  { %v780_v34 = vpop.f32.mrb[13].mxu1  ;;  %v6384_v35 = vpop.f32.mrb[13].mxu0 }
  0xf3   :  { %v6386_v36 = vrot.slane %v1350_v30, 4  ;;  %v1351_v37 = vmax.f32 %v1287_v31, 0.0  ;;  %v1153_v38 = vmax.f32 %v778_v32, %v780_v34  ;;  %v782_v39 = vpop.f32.mrb[14].mxu1  ;;  %v1093_v40 = vmax.f32 %v6382_v33, %v6384_v35  ;;  %v6390_v41 = vpop.f32.mrb[14].mxu0  ;;  %v6450_v32 = vld [vmem:[%s8758_s4 + $0x88] sm:$0xff]  }
  0xf4   :  { %v784_v43 = vpop.f32.mrb[15].mxu1  ;;  %v6398_v45 = vpack.c.bf16 %v1350_v30, %v8767_v44  ;;  %v6400_v46 = vpop.f32.mrb[15].mxu0 }
  0xf5   :  { %8840 = vst [vmem:[#allocation2_spill] sm:$0xff] %v6386_v36  ;;  %v1217_v48 = vmax.f32 %v1089_v6, %v1153_v38  ;;  %v1154_v49 = vmax.f32 %v782_v39, %v784_v43  ;;  %v1094_v51 = vmax.f32 %v6390_v41, %v6400_v46  ;;  %v1671_v53 = vsel %vm1414_vm1, %v6386_v36, 0.0 }
  0xf6   :  { %4669 = vmatprep.mubr.msk.bf16.mxu0 %vm6393_vm3, %v6398_v45  ;;  %4630 = vmatmul.mubr.msk.bf16.gmra.mrb[120].mxu1 %vm284_vm0, %v5926_v4  ;;  %v1801_v54 = vrot.slane %v1671_v53, 7  ;;  %v6413_v56 = vrot.slane %v1351_v37, 4  ;;  %v6415_v57 = vpack.c.bf16 %v1351_v37, %v1350_v30 }
  0xf7   :  { %v1288_v60 = vadd.f32 %v6370_v22, %v1217_v48  ;;  %v1218_v61 = vmax.f32 %v1090_v11, %v1154_v49  ;;  %1056 = vmatprep.mubr.bf16.mxu1 %v8771_v1 }
  0xf8   :  { %8843 = vst [vmem:[#allocation3_spill] sm:$0xff] %v6413_v56  ;;  %v1996_v3 = vpack.c.bf16 %v1801_v54, %v6403_v47  ;;  %v1672_v4 = vsel %vm1414_vm1, %v6413_v56, 0.0 }
  0xf9   :  { %v1352_v7 = vmax.f32 %v1288_v60, 0.0  ;;  %v1289_v10 = vadd.f32 %v6370_v22, %v1218_v61  ;;  %v788_v13 = vpop.f32.mrb[16].mxu1  ;;  %v6430_v11 = vpop.f32.mrb[16].mxu0  ;;  %v1802_v15 = vrot.slane %v1672_v4, 7  ;;  %v6489_v4 = vld [vmem:[%s8758_s4 + $0x90] sm:$0xff]  }
  0xfa   :  { %v790_v18 = vpop.f32.mrb[17].mxu1  ;;  %2477 = vmatmul.mubr.bf16.vlgmr.msra.gmra.mrb[120].mxu0 %v1996_v3  ;;  %v6432_v19 = vpop.f32.mrb[17].mxu0 }
  0xfb   :  { %v1353_v25 = vmax.f32 %v1289_v10, 0.0  ;;  %v1155_v26 = vmax.f32 %v788_v13, %v790_v18  ;;  %v792_v28 = vpop.f32.mrb[18].mxu1  ;;  %2734 = vmatpush1.bf16.msra.mxu0 %v6421_v0  ;;  %v1095_v29 = vmax.f32 %v6430_v11, %v6432_v19  ;;  %v6443_v30 = vpop.f32.mrb[18].mxu0  ;;  %v6445_v31 = vpack.c.bf16 %v1352_v7, %v1351_v37 }
  0xfc   :  { %v794_v34 = vpop.f32.mrb[19].mxu1  ;;  %v6452_v38 = vpop.f32.mrb[19].mxu0  ;;  %v6454_v39 = vrot.slane %v1352_v7, 4  ;;  %v6456_v43 = vpack.c.bf16 %v1802_v15, %v1801_v54  ;;  %2735 = vmatprep.subr.bf16.mxu0 %v8771_v1 }
  0xfd   :  { %v1219_v48 = vmax.f32 %v1091_v20, %v1155_v26  ;;  %v1156_v37 = vmax.f32 %v792_v28, %v794_v34  ;;  %4672 = vmatprep.mubr.msk.bf16.mxu0 %vm6436_vm4, %v6445_v31  ;;  %v1096_v49 = vmax.f32 %v6443_v30, %v6452_v38  ;;  %v6467_v53 = vrot.slane %v1353_v25, 4 }
  0xfe   :  { %8846 = vst [vmem:[#allocation4_spill] sm:$0xff] %v6454_v39  ;;  %4631 = vmatmul.mubr.msk.bf16.gmra.mrb[124].mxu1 %vm284_vm0, %v6361_v17  ;;  %v1673_v54 = vsel %vm1414_vm1, %v6454_v39, 0.0  ;;  %v6475_v16 = vpack.c.bf16 %v1353_v25, %v1352_v7 }
  0xff   :  { %v1290_v20 = vadd.f32 %v6370_v22, %v1219_v48  ;;  %v1220_v60 = vmax.f32 %v1092_v27, %v1156_v37  ;;  %v1803_v61 = vrot.slane %v1673_v54, 7  ;;  %1066 = vmatprep.mubr.bf16.mxu1 %v8771_v1  ;;  %v1674_v17 = vsel %vm1414_vm1, %v6467_v53, 0.0  ;;  %2736 = vmatpush1.bf16.msra.mxu0 %v6450_v32 }
 0x100   :  { %v1804_v3 = vrot.slane %v1674_v17, 7  ;;  %2737 = vmatprep.subr.bf16.mxu0 %v8771_v1 }
 0x101   :  { %v1354_v24 = vmax.f32 %v1290_v20, 0.0  ;;  %v1291_v27 = vadd.f32 %v6370_v22, %v1220_v60  ;;  %v798_v7 = vpop.f32.mrb[20].mxu1  ;;  %v2000_v10 = vpack.c.bf16 %v1803_v61, %v1802_v15  ;;  %v6494_v13 = vpop.f32.mrb[20].mxu0 }
 0x102   :  { %v800_v18 = vpop.f32.mrb[21].mxu1  ;;  %v6496_v26 = vpop.f32.mrb[21].mxu0  ;;  %v6498_v28 = vpack.c.bf16 %v1804_v3, %v1803_v61  ;;  %v6514_v61 = vld [vmem:[%s8758_s4 + $0x98] sm:$0xff]  }
 0x103   :  { %v1355_v34 = vmax.f32 %v1291_v27, 0.0  ;;  %v1157_v48 = vmax.f32 %v798_v7, %v800_v18  ;;  %2485 = vmatmul.mubr.bf16.gmra.mrb[124].mxu0 %v2000_v10  ;;  %v802_v37 = vpop.f32.mrb[22].mxu1  ;;  %v6502_v17 = vpop.f32.mrb[22].mxu0  ;;  %v6504_v20 = vpack.c.bf16 %v1354_v24, %v1353_v25  ;;  %v6508_v21 = vrot.slane %v1354_v24, 4  ;;  %v5961_v18 = vld [vmem:[%s8757_s0 + $0xf0] sm:$0xff]  }
 0x104   :  { %v804_v60 = vpop.f32.mrb[23].mxu1  ;;  %v6506_v15 = vpop.f32.mrb[23].mxu0  ;;  %2738 = vmatpush1.bf16.msra.mxu0 %v6489_v4  ;;  %v4860_v25 = vpack.c.bf16 %v6386_v36, %v8767_v44 }
 0x105   :  { %8847 = vst [vmem:[#allocation5_spill] sm:$0xff] %v6508_v21  ;;  %v1221_v27 = vmax.f32 %v1093_v40, %v1157_v48  ;;  %v1158_v7 = vmax.f32 %v802_v37, %v804_v60  ;;  %4675 = vmatprep.mubr.msk.bf16.mxu0 %vm6436_vm4, %v6504_v20  ;;  %v6524_v10 = vrot.slane %v1355_v34, 4  ;;  %2739 = vmatprep.subr.bf16.mxu0 %v8771_v1  ;;  %v1675_v33 = vsel %vm1414_vm1, %v6508_v21, 0.0 }
 0x106   :  { %4632 = vmatmul.mubr.msk.bf16.gmra.mrb[128].mxu1 %vm284_vm0, %v5961_v18  ;;  %v6535_v40 = vpack.c.bf16 %v1355_v34, %v1354_v24  ;;  %v1805_v60 = vrot.slane %v1675_v33, 7  ;;  %v6548_v24 = vld [vmem:[%s8758_s4 + $0xa0] sm:$0xff]  }
 0x107   :  { %8848 = vst [vmem:[#allocation6_spill] sm:$0xff] %v6524_v10  ;;  %v1292_v48 = vadd.f32 %v6370_v22, %v1221_v27  ;;  %v1222_v37 = vmax.f32 %v1094_v51, %v1158_v7  ;;  %1076 = vmatprep.mubr.bf16.mxu1 %v8771_v1  ;;  %v1676_v18 = vsel %vm1414_vm1, %v6524_v10, 0.0 }
 0x108   :  { %8849 = vst [vmem:[#allocation7_spill] sm:$0xff] %v6535_v40  ;;  %v1806_v6 = vrot.slane %v1676_v18, 7  ;;  %2740 = vmatpush1.bf16.msra.mxu0 %v6514_v61  ;;  %v2004_v51 = vpack.c.bf16 %v1805_v60, %v1804_v3 }
 0x109   :  { %v1356_v12 = vmax.f32 %v1292_v48, 0.0  ;;  %v1293_v41 = vadd.f32 %v6370_v22, %v1222_v37  ;;  %v808_v46 = vpop.f32.mrb[24].mxu1  ;;  %v6553_v7 = vpop.f32.mrb[24].mxu0  ;;  %2741 = vmatprep.subr.bf16.mxu0 %v8771_v1 }
 0x10a   :  { %v810_v33 = vpop.f32.mrb[25].mxu1  ;;  %v6556_v18 = vpop.f32.mrb[25].mxu0  ;;  %v6558_v8 = vpack.c.bf16 %v1806_v6, %v1805_v60  ;;  %v6576_v60 = vld [vmem:[%s8758_s4 + $0xa8] sm:$0xff]  }
 0x10b   :  { %v1357_v62 = vmax.f32 %v1293_v41, 0.0  ;;  %v1159_v58 = vmax.f32 %v808_v46, %v810_v33  ;;  %2493 = vmatmul.mubr.bf16.gmra.mrb[128].mxu0 %v2004_v51  ;;  %v812_v35 = vpop.f32.mrb[26].mxu1  ;;  %v6562_v27 = vpop.f32.mrb[26].mxu0  ;;  %v6564_v37 = vpack.c.bf16 %v1356_v12, %v1355_v34  ;;  %v6570_v54 = vrot.slane %v1356_v12, 4  ;;  %v5962_v33 = vld [vmem:[%s8757_s0 + $0xf8] sm:$0xff]  }
 0x10c   :  { %8850 = vst [vmem:[#allocation8_spill] sm:$0xff] %v6558_v8  ;;  %v814_v3 = vpop.f32.mrb[27].mxu1  ;;  %v6566_v14 = vpop.f32.mrb[27].mxu0  ;;  %2742 = vmatpush1.bf16.msra.mxu0 %v6548_v24 }
 0x10d   :  { %8851 = vst [vmem:[#allocation9_spill] sm:$0xff] %v6570_v54  ;;  %v1223_v34 = vmax.f32 %v1095_v29, %v1159_v58  ;;  %v1160_v41 = vmax.f32 %v812_v35, %v814_v3  ;;  %4678 = vmatprep.mubr.msk.bf16.mxu0 %vm6436_vm4, %v6564_v37  ;;  %2743 = vmatprep.subr.bf16.mxu0 %v8771_v1  ;;  %v6587_v51 = vrot.slane %v1357_v62, 4  ;;  %v1677_v58 = vsel %vm1414_vm1, %v6570_v54, 0.0 }
 0x10e   :  { %4633 = vmatmul.mubr.msk.bf16.gmra.mrb[132].mxu1 %vm284_vm0, %v5962_v33  ;;  %v6597_v19 = vpack.c.bf16 %v1357_v62, %v1356_v12  ;;  %v1807_v3 = vrot.slane %v1677_v58, 7  ;;  %v6611_v62 = vld [vmem:[%s8758_s4 + $0xb0] sm:$0xff]  }
 0x10f   :  { %8852 = vst [vmem:[#allocation10_spill] sm:$0xff] %v6587_v51  ;;  %v1294_v29 = vadd.f32 %v6370_v22, %v1223_v34  ;;  %v1224_v35 = vmax.f32 %v1096_v49, %v1160_v41  ;;  %4861 = vmatprep.mubr.msk.bf16.mxu1 %vm6393_vm3, %v4860_v25  ;;  %v1678_v33 = vsel %vm1414_vm1, %v6587_v51, 0.0  ;;  %v8855_v51 = vmov 0.0   ;;  %v9011_v42 = vld [vmem:[#allocation7_spill] sm:$0xff] }
 0x110   :  { %8853 = vst [vmem:[#allocation11_spill] sm:$0xff] %v6597_v19  ;;  %2744 = vmatpush1.bf16.msra.mxu0 %v6576_v60  ;;  %v1808_v12 = vrot.slane %v1678_v33, 7  ;;  %v2008_v25 = vpack.c.bf16 %v1807_v3, %v1806_v6 }
 0x111   :  { %v1358_v30 = vmax.f32 %v1294_v29, 0.0  ;;  %v1295_v38 = vadd.f32 %v6370_v22, %v1224_v35  ;;  %v818_v49 = vpop.f32.mrb[28].mxu1  ;;  %v6616_v41 = vpop.f32.mrb[28].mxu0  ;;  %2745 = vmatprep.subr.bf16.mxu0 %v8771_v1  ;;  %v8857_v29 = vmov 0  }
 0x112   :  { %v820_v58 = vpop.f32.mrb[29].mxu1  ;;  %v6619_v11 = vpop.f32.mrb[29].mxu0  ;;  %v6621_v46 = vpack.c.bf16 %v1808_v12, %v1807_v3  ;;  %v6638_v3 = vld [vmem:[%s8758_s4 + $0xb8] sm:$0xff]  }
 0x113   :  { %v6623_v48 = vrot.slane %v1358_v30, 4  ;;  %v1359_v33 = vmax.f32 %v1295_v38, 0.0  ;;  %v1161_v44 = vmax.f32 %v818_v49, %v820_v58  ;;  %2501 = vmatmul.mubr.bf16.gmra.mrb[132].mxu0 %v2008_v25  ;;  %v822_v34 = vpop.f32.mrb[30].mxu1  ;;  %v6627_v35 = vpop.f32.mrb[30].mxu0  ;;  %v6630_v36 = vpack.c.bf16 %v1358_v30, %v8855_v51 }
 0x114   :  { %8854 = vst [vmem:[#allocation12_spill] sm:$0xff] %v6621_v46  ;;  %v824_v6 = vpop.f32.mrb[31].mxu1  ;;  %v6632_v1 = vpop.f32.mrb[31].mxu0  ;;  %2746 = vmatpush1.bf16.msra.mxu0 %v6611_v62  ;;  %v8856_v38 = vmax.f32 %v6494_v13, %v6496_v26  ;;  %v8859_v13 = vmax.f32 %v6502_v17, %v6506_v15  ;;  %v6674_v17 = vld [vmem:[%s8758_s4 + $0xc0] sm:$0xff]  }
 0x115   :  { %v6640_v12 = vrot.slane %v1359_v33, 4  ;;  %v1162_v25 = vmax.f32 %v822_v34, %v824_v6  ;;  %2747 = vmatprep.subr.bf16.mxu0 %v8857_v29  ;;  %4681 = vmatprep.mubr.msk.bf16.mxu0 %vm6393_vm3, %v6630_v36  ;;  %v1679_v46 = vsel %vm1414_vm1, %v6623_v48, 0.0  ;;  %v6656_v19 = vpack.c.bf16 %v1359_v33, %v1358_v30 }
 0x116   :  { %v1225_v49 = vmax.f32 %v8856_v38, %v1161_v44  ;;  %4864 = vmatmul.mubr.msk.bf16.vlgmr.msra.gmra.mrb[136].mxu1 %vm6393_vm3, %v6398_v45  ;;  %v8860_v34 = vpack.c.bf16 %v6454_v39, %v6413_v56  ;;  %v1809_v6 = vrot.slane %v1679_v46, 7 }
 0x117   :  { %8858 = vst [vmem:[#allocation13_spill] sm:$0xff] %v6656_v19  ;;  %v1226_v26 = vmax.f32 %v8859_v13, %v1162_v25  ;;  %v1680_v45 = vsel %vm1414_vm1, %v6640_v12, 0.0  ;;  %3312 = vmatpush1.bf16.msra.mxu1 %v6421_v0 }
 0x118   :  { %v1296_v44 = vadd.f32 %v6370_v22, %v1225_v49  ;;  %4867 = vmatprep.mubr.msk.bf16.mxu1 %vm6436_vm4, %v8860_v34  ;;  %v1810_v30 = vrot.slane %v1680_v45, 7  ;;  %2748 = vmatpush1.bf16.msra.mxu0 %v6638_v3  ;;  %v2012_v25 = vpack.c.bf16 %v1809_v6, %v6403_v47 }
 0x119   :  { %3313 = vmatprep.subr.bf16.mxu1 %v8857_v29  ;;  %v1297_v46 = vadd.f32 %v6370_v22, %v1226_v26  ;;  %v828_v49 = vpop.f32.mrb[32].mxu1  ;;  %v6681_v0 = vpop.f32.mrb[32].mxu0  ;;  %2749 = vmatprep.subr.bf16.mxu0 %v8857_v29 }
 0x11a   :  { %v1360_v38 = vmax.f32 %v1296_v44, 0.0  ;;  %v830_v13 = vpop.f32.mrb[33].mxu1  ;;  %v6684_v34 = vpop.f32.mrb[33].mxu0  ;;  %v6686_v45 = vpack.c.bf16 %v1810_v30, %v1809_v6  ;;  %v6703_v6 = vld [vmem:[%s8758_s4 + $0xc8] sm:$0xff]  }
 0x11b   :  { %v1361_v39 = vmax.f32 %v1297_v46, 0.0  ;;  %v1163_v19 = vmax.f32 %v828_v49, %v830_v13  ;;  %2509 = vmatmul.mubr.bf16.gmra.mrb[136].mxu0 %v2012_v25  ;;  %v832_v44 = vpop.f32.mrb[34].mxu1  ;;  %v6692_v15 = vpop.f32.mrb[34].mxu0  ;;  %3314 = vmatpush1.bf16.msra.mxu1 %v6450_v32  ;;  %v8862_v49 = vmax.f32 %v6553_v7, %v6556_v18 }
 0x11c   :  { %v6688_v58 = vrot.slane %v1360_v38, 4  ;;  %v834_v56 = vpop.f32.mrb[35].mxu1  ;;  %v6695_v8 = vpack.c.bf16 %v1360_v38, %v1359_v33  ;;  %v6697_v40 = vpop.f32.mrb[35].mxu0  ;;  %2750 = vmatpush1.bf16.msra.mxu0 %v6674_v17  ;;  %3315 = vmatprep.subr.bf16.mxu1 %v8857_v29 }
 0x11d   :  { %v6706_v46 = vrot.slane %v1361_v39, 4  ;;  %v1227_v32 = vmax.f32 %v8862_v49, %v1163_v19  ;;  %v1164_v25 = vmax.f32 %v832_v44, %v834_v56  ;;  %2751 = vmatprep.subr.bf16.mxu0 %v8857_v29  ;;  %v6724_v56 = vpack.c.bf16 %v1361_v39, %v1360_v38 }
 0x11e   :  { %8861 = vst [vmem:[#allocation14_spill] sm:$0xff] %v6688_v58  ;;  %4684 = vmatprep.mubr.msk.bf16.mxu0 %vm6436_vm4, %v6695_v8  ;;  %4870 = vmatmul.mubr.msk.bf16.gmra.mrb[140].mxu1 %vm6436_vm4, %v6445_v31  ;;  %v1681_v13 = vsel %vm1414_vm1, %v6688_v58, 0.0  ;;  %v8864_v19 = vmax.f32 %v6562_v27, %v6566_v14  ;;  %v8865_v49 = vpack.c.bf16 %v6508_v21, %v6467_v53 }
 0x11f   :  { %8863 = vst [vmem:[#allocation15_spill] sm:$0xff] %v6724_v56  ;;  %v1298_v18 = vadd.f32 %v6370_v22, %v1227_v32  ;;  %v1811_v31 = vrot.slane %v1681_v13, 7  ;;  %v1682_v33 = vsel %vm1414_vm1, %v6706_v46, 0.0  ;;  %3316 = vmatpush1.bf16.msra.mxu1 %v6489_v4 }
 0x120   :  { %v1228_v44 = vmax.f32 %v8864_v19, %v1164_v25  ;;  %4873 = vmatprep.mubr.msk.bf16.mxu1 %vm6436_vm4, %v8865_v49  ;;  %v1812_v38 = vrot.slane %v1682_v33, 7  ;;  %2752 = vmatpush1.bf16.msra.mxu0 %v6703_v6 }
 0x121   :  { %3317 = vmatprep.subr.bf16.mxu1 %v8857_v29  ;;  %v1362_v27 = vmax.f32 %v1298_v18, 0.0  ;;  %v838_v25 = vpop.f32.mrb[36].mxu1  ;;  %v2016_v19 = vpack.c.bf16 %v1811_v31, %v1810_v30  ;;  %v6743_v49 = vpop.f32.mrb[36].mxu0  ;;  %2753 = vmatprep.subr.bf16.mxu0 %v8857_v29  ;;  %v6759_v30 = vld [vmem:[%s8758_s4 + $0xd0] sm:$0xff]  }
 0x122   :  { %v1299_v32 = vadd.f32 %v6370_v22, %v1228_v44  ;;  %v840_v13 = vpop.f32.mrb[37].mxu1  ;;  %v6746_v7 = vpop.f32.mrb[37].mxu0  ;;  %v6748_v4 = vpack.c.bf16 %v1812_v38, %v1811_v31 }
 0x123   :  { %v6750_v33 = vrot.slane %v1362_v27, 4  ;;  %v1165_v21 = vmax.f32 %v838_v25, %v840_v13  ;;  %2517 = vmatmul.mubr.bf16.gmra.mrb[140].mxu0 %v2016_v19  ;;  %v842_v14 = vpop.f32.mrb[38].mxu1  ;;  %v6754_v44 = vpop.f32.mrb[38].mxu0  ;;  %3318 = vmatpush1.bf16.msra.mxu1 %v6514_v61  ;;  %v8869_v25 = vmax.f32 %v6616_v41, %v6619_v11  ;;  %v8871_v41 = vmax.f32 %v6627_v35, %v6632_v1 }
 0x124   :  { %8866 = vst [vmem:[#allocation16_spill] sm:$0xff] %v6748_v4  ;;  %v1363_v26 = vmax.f32 %v1299_v32, 0.0  ;;  %v844_v31 = vpop.f32.mrb[39].mxu1  ;;  %v6762_v4 = vpack.c.bf16 %v1362_v27, %v1361_v39  ;;  %v6764_v56 = vpop.f32.mrb[39].mxu0  ;;  %3319 = vmatprep.subr.bf16.mxu1 %v8857_v29  ;;  %2754 = vmatpush1.bf16.msra.mxu0 %v6759_v30 }
 0x125   :  { %8867 = vst [vmem:[#allocation17_spill] sm:$0xff] %v6750_v33  ;;  %v1229_v19 = vmax.f32 %v8869_v25, %v1165_v21  ;;  %v1166_v13 = vmax.f32 %v842_v14, %v844_v31  ;;  %v1683_v39 = vsel %vm1414_vm1, %v6750_v33, 0.0  ;;  %v8872_v31 = vpack.c.bf16 %v6570_v54, %v6524_v10  ;;  %2755 = vmatprep.subr.bf16.mxu0 %v8857_v29 }
 0x126   :  { %v6767_v32 = vrot.slane %v1363_v26, 4  ;;  %4687 = vmatprep.mubr.msk.bf16.mxu0 %vm6436_vm4, %v6762_v4  ;;  %4876 = vmatmul.mubr.msk.bf16.gmra.mrb[144].mxu1 %vm6436_vm4, %v6504_v20  ;;  %v6785_v61 = vpack.c.bf16 %v1363_v26, %v1362_v27  ;;  %v1813_v20 = vrot.slane %v1683_v39, 7 }
 0x127   :  { %v1300_v11 = vadd.f32 %v6370_v22, %v1229_v19  ;;  %v1230_v14 = vmax.f32 %v8871_v41, %v1166_v13  ;;  %4879 = vmatprep.mubr.msk.bf16.mxu1 %vm6436_vm4, %v8872_v31  ;;  %3320 = vmatpush1.bf16.msra.mxu1 %v6548_v24 }
 0x128   :  { %8868 = vst [vmem:[#allocation18_spill] sm:$0xff] %v6767_v32  ;;  %8870 = vst [vmem:[#allocation19_spill] sm:$0xff] %v6785_v61  ;;  %v1684_v25 = vsel %vm1414_vm1, %v6767_v32, 0.0  ;;  %v2020_v41 = vpack.c.bf16 %v1813_v20, %v1812_v38  ;;  %3321 = vmatprep.subr.bf16.mxu1 %v8857_v29 }
 0x129   :  { %v1814_v27 = vrot.slane %v1684_v25, 7  ;;  %v1364_v1 = vmax.f32 %v1300_v11, 0.0  ;;  %v1301_v35 = vadd.f32 %v6370_v22, %v1230_v14  ;;  %v848_v13 = vpop.f32.mrb[40].mxu1  ;;  %v6803_v21 = vpop.f32.mrb[40].mxu0 }
 0x12a   :  { %v850_v39 = vpop.f32.mrb[41].mxu1  ;;  %v6806_v31 = vpop.f32.mrb[41].mxu0 }
 0x12b   :  { %v6808_v18 = vpack.c.bf16 %v1814_v27, %v1813_v20  ;;  %v6810_v25 = vrot.slane %v1364_v1, 4  ;;  %v1365_v24 = vmax.f32 %v1301_v35, 0.0  ;;  %v1167_v54 = vmax.f32 %v848_v13, %v850_v39  ;;  %2525 = vmatmul.mubr.bf16.gmra.mrb[144].mxu0 %v2020_v41  ;;  %v852_v19 = vpop.f32.mrb[42].mxu1  ;;  %v6814_v14 = vpop.f32.mrb[42].mxu0  ;;  %3322 = vmatpush1.bf16.msra.mxu1 %v6576_v60 }
 0x12c   :  { %v854_v38 = vpop.f32.mrb[43].mxu1  ;;  %v6816_v61 = vpack.c.bf16 %v1364_v1, %v1363_v26  ;;  %v6818_v10 = vpop.f32.mrb[43].mxu0  ;;  %v4884_v20 = vpack.c.bf16 %v6623_v48, %v8855_v51  ;;  %v8876_v13 = vmax.f32 %v6681_v0, %v6684_v34  ;;  %3323 = vmatprep.subr.bf16.mxu1 %v8857_v29  ;;  %v8877_v34 = vmax.f32 %v6692_v15, %v6697_v40 }
 0x12d   :  { %8873 = vst [vmem:[#allocation20_spill] sm:$0xff] %v6808_v18  ;;  %8874 = vst [vmem:[#allocation21_spill] sm:$0xff] %v6810_v25  ;;  %v6823_v18 = vrot.slane %v1365_v24, 4  ;;  %v6825_v35 = vpack.c.bf16 %v1365_v24, %v1364_v1  ;;  %v1168_v39 = vmax.f32 %v852_v19, %v854_v38  ;;  %v1685_v60 = vsel %vm1414_vm1, %v6810_v25, 0.0 }
 0x12e   :  { %v1231_v41 = vmax.f32 %v8876_v13, %v1167_v54  ;;  %4690 = vmatprep.mubr.msk.bf16.mxu0 %vm6436_vm4, %v6816_v61  ;;  %4882 = vmatmul.mubr.msk.bf16.gmra.mrb[148].mxu1 %vm6436_vm4, %v6564_v37  ;;  %v1815_v1 = vrot.slane %v1685_v60, 7 }
 0x12f   :  { %8875 = vst [vmem:[#allocation22_spill] sm:$0xff] %v6823_v18  ;;  %v1232_v19 = vmax.f32 %v8877_v34, %v1168_v39  ;;  %4885 = vmatprep.mubr.msk.bf16.mxu1 %vm6393_vm3, %v4884_v20  ;;  %v1686_v24 = vsel %vm1414_vm1, %v6823_v18, 0.0  ;;  %3324 = vmatpush1.bf16.msra.mxu1 %v6611_v62 }
 0x130   :  { %v1302_v0 = vadd.f32 %v6370_v22, %v1231_v41  ;;  %v1816_v37 = vrot.slane %v1686_v24, 7  ;;  %v2024_v26 = vpack.c.bf16 %v1815_v1, %v1814_v27  ;;  %3325 = vmatprep.subr.bf16.mxu1 %v8857_v29  ;;  %v6871_v27 = vld [vmem:[%s8758_s4 + $0xd8] sm:$0xff]  }
 0x131   :  { %v1303_v41 = vadd.f32 %v6370_v22, %v1232_v19  ;;  %v858_v54 = vpop.f32.mrb[44].mxu1  ;;  %v6855_v40 = vpop.f32.mrb[44].mxu0  ;;  %2756 = vmatpush1.bf16.msra.mxu0 %v6871_v27 }
 0x132   :  { %v1366_v13 = vmax.f32 %v1302_v0, 0.0  ;;  %v860_v15 = vpop.f32.mrb[45].mxu1  ;;  %v6858_v20 = vpop.f32.mrb[45].mxu0  ;;  %v6860_v39 = vpack.c.bf16 %v1816_v37, %v1815_v1  ;;  %2757 = vmatprep.subr.bf16.mxu0 %v8857_v29 }
 0x133   :  { %v1367_v62 = vmax.f32 %v1303_v41, 0.0  ;;  %v1169_v34 = vmax.f32 %v858_v54, %v860_v15  ;;  %2533 = vmatmul.mubr.bf16.gmra.mrb[148].mxu0 %v2024_v26  ;;  %v862_v24 = vpop.f32.mrb[46].mxu1  ;;  %v6866_v19 = vpop.f32.mrb[46].mxu0  ;;  %3326 = vmatpush1.bf16.msra.mxu1 %v6638_v3  ;;  %v8881_v54 = vmax.f32 %v6743_v49, %v6746_v7 }
 0x134   :  { %8878 = vst [vmem:[#allocation23_spill] sm:$0xff] %v6860_v39  ;;  %v6862_v60 = vrot.slane %v1366_v13, 4  ;;  %v864_v38 = vpop.f32.mrb[47].mxu1  ;;  %v6874_v1 = vpack.c.bf16 %v1366_v13, %v8855_v51  ;;  %v6876_v37 = vpop.f32.mrb[47].mxu0  ;;  %3327 = vmatprep.subr.bf16.mxu1 %v8857_v29 }
 0x135   :  { %v6879_v26 = vrot.slane %v1367_v62, 4  ;;  %v1233_v41 = vmax.f32 %v8881_v54, %v1169_v34  ;;  %v1170_v15 = vmax.f32 %v862_v24, %v864_v38  ;;  %v6896_v7 = vpack.c.bf16 %v1367_v62, %v1366_v13 }
 0x136   :  { %8879 = vst [vmem:[#allocation24_spill] sm:$0xff] %v6862_v60  ;;  %4693 = vmatprep.mubr.msk.bf16.mxu0 %vm6393_vm3, %v6874_v1  ;;  %4888 = vmatmul.mubr.msk.bf16.gmra.mrb[152].mxu1 %vm6393_vm3, %v6630_v36  ;;  %v1687_v3 = vsel %vm1414_vm1, %v6862_v60, 0.0  ;;  %v8883_v38 = vmax.f32 %v6754_v44, %v6764_v56  ;;  %v8884_v24 = vpack.c.bf16 %v6688_v58, %v6640_v12 }
 0x137   :  { %8880 = vst [vmem:[#allocation25_spill] sm:$0xff] %v6879_v26  ;;  %8882 = vst [vmem:[#allocation26_spill] sm:$0xff] %v6896_v7  ;;  %v1304_v49 = vadd.f32 %v6370_v22, %v1233_v41  ;;  %v1817_v54 = vrot.slane %v1687_v3, 7  ;;  %v1688_v36 = vsel %vm1414_vm1, %v6879_v26, 0.0  ;;  %3328 = vmatpush1.bf16.msra.mxu1 %v6674_v17 }
 0x138   :  { %v1234_v34 = vmax.f32 %v8883_v38, %v1170_v15  ;;  %4891 = vmatprep.mubr.msk.bf16.mxu1 %vm6436_vm4, %v8884_v24  ;;  %v1818_v13 = vrot.slane %v1688_v36, 7  ;;  %3329 = vmatprep.subr.bf16.mxu1 %v8857_v29 }
 0x139   :  { %v1368_v56 = vmax.f32 %v1304_v49, 0.0  ;;  %v868_v15 = vpop.f32.mrb[48].mxu1  ;;  %v2028_v38 = vpack.c.bf16 %v1817_v54, %v6403_v47  ;;  %v6915_v0 = vpop.f32.mrb[48].mxu0 }
 0x13a   :  { %v1305_v44 = vadd.f32 %v6370_v22, %v1234_v34  ;;  %v870_v3 = vpop.f32.mrb[49].mxu1  ;;  %v6918_v24 = vpop.f32.mrb[49].mxu0  ;;  %v6920_v11 = vpack.c.bf16 %v1818_v13, %v1817_v54 }
 0x13b   :  { %v6922_v36 = vrot.slane %v1368_v56, 4  ;;  %v1171_v18 = vmax.f32 %v868_v15, %v870_v3  ;;  %2541 = vmatmul.mubr.bf16.gmra.mrb[152].mxu0 %v2028_v38  ;;  %v872_v49 = vpop.f32.mrb[50].mxu1  ;;  %v6926_v41 = vpop.f32.mrb[50].mxu0  ;;  %v6928_v7 = vpack.c.bf16 %v1368_v56, %v1367_v62  ;;  %3330 = vmatpush1.bf16.msra.mxu1 %v6703_v6 }
 0x13c   :  { %v1369_v17 = vmax.f32 %v1305_v44, 0.0  ;;  %v874_v58 = vpop.f32.mrb[51].mxu1  ;;  %v6930_v39 = vpop.f32.mrb[51].mxu0  ;;  %v8887_v44 = vmax.f32 %v6803_v21, %v6806_v31  ;;  %3331 = vmatprep.subr.bf16.mxu1 %v8857_v29  ;;  %v8889_v31 = vmax.f32 %v6814_v14, %v6818_v10 }
 0x13d   :  { %8885 = vst [vmem:[#allocation27_spill] sm:$0xff] %v6922_v36  ;;  %v1172_v38 = vmax.f32 %v872_v49, %v874_v58  ;;  %4696 = vmatprep.mubr.msk.bf16.mxu0 %vm6436_vm4, %v6928_v7  ;;  %v1689_v6 = vsel %vm1414_vm1, %v6922_v36, 0.0  ;;  %v8890_v49 = vpack.c.bf16 %v6750_v33, %v6706_v46 }
 0x13e   :  { %v6933_v54 = vrot.slane %v1369_v17, 4  ;;  %v1235_v15 = vmax.f32 %v8887_v44, %v1171_v18  ;;  %4894 = vmatmul.mubr.msk.bf16.gmra.mrb[156].mxu1 %vm6436_vm4, %v6695_v8  ;;  %v6951_v58 = vpack.c.bf16 %v1369_v17, %v1368_v56  ;;  %v1819_v8 = vrot.slane %v1689_v6, 7 }
 0x13f   :  { %v1236_v62 = vmax.f32 %v8889_v31, %v1172_v38  ;;  %4897 = vmatprep.mubr.msk.bf16.mxu1 %vm6436_vm4, %v8890_v49  ;;  %3332 = vmatpush1.bf16.msra.mxu1 %v6759_v30 }
 0x140   :  { %8886 = vst [vmem:[#allocation28_spill] sm:$0xff] %v6933_v54  ;;  %8888 = vst [vmem:[#allocation29_spill] sm:$0xff] %v6951_v58  ;;  %v1306_v21 = vadd.f32 %v6370_v22, %v1235_v15  ;;  %v1690_v44 = vsel %vm1414_vm1, %v6933_v54, 0.0  ;;  %v2032_v38 = vpack.c.bf16 %v1819_v8, %v1818_v13  ;;  %3333 = vmatprep.subr.bf16.mxu1 %v8857_v29  ;;  %v5941_v13 = vld [vmem:[%s8758_s4 + $0xe0] sm:$0xff]  }
 0x141   :  { %v1820_v3 = vrot.slane %v1690_v44, 7  ;;  %v1307_v10 = vadd.f32 %v6370_v22, %v1236_v62  ;;  %v878_v14 = vpop.f32.mrb[52].mxu1  ;;  %v6968_v31 = vpop.f32.mrb[52].mxu0  ;;  %2758 = vmatpush1.bf16.msra.mxu0 %v5941_v13 }
 0x142   :  { %v1370_v15 = vmax.f32 %v1306_v21, 0.0  ;;  %v880_v49 = vpop.f32.mrb[53].mxu1  ;;  %v6971_v6 = vpop.f32.mrb[53].mxu0  ;;  %2759 = vmatprep.subr.bf16.mxu0 %v8857_v29 }
 0x143   :  { %v6973_v18 = vpack.c.bf16 %v1820_v3, %v1819_v8  ;;  %v1371_v30 = vmax.f32 %v1307_v10, 0.0  ;;  %v1173_v34 = vmax.f32 %v878_v14, %v880_v49  ;;  %2549 = vmatmul.mubr.bf16.gmra.mrb[156].mxu0 %v2032_v38  ;;  %v882_v56 = vpop.f32.mrb[54].mxu1  ;;  %v6979_v62 = vpop.f32.mrb[54].mxu0  ;;  %3334 = vmatpush1.bf16.msra.mxu1 %v6871_v27  ;;  %v8894_v14 = vmax.f32 %v6855_v40, %v6858_v20 }
 0x144   :  { %v6975_v44 = vrot.slane %v1370_v15, 4  ;;  %v884_v33 = vpop.f32.mrb[55].mxu1  ;;  %v6984_v58 = vpack.c.bf16 %v1370_v15, %v1369_v17  ;;  %v6986_v8 = vpop.f32.mrb[55].mxu0  ;;  %3335 = vmatprep.subr.bf16.mxu1 %v8857_v29  ;;  %v8896_v17 = vmax.f32 %v6866_v19, %v6876_v37 }
 0x145   :  { %8891 = vst [vmem:[#allocation30_spill] sm:$0xff] %v6973_v18  ;;  %v6989_v10 = vrot.slane %v1371_v30, 4  ;;  %v1237_v38 = vmax.f32 %v8894_v14, %v1173_v34  ;;  %v1174_v49 = vmax.f32 %v882_v56, %v884_v33  ;;  %v7007_v40 = vpack.c.bf16 %v1371_v30, %v1370_v15 }
 0x146   :  { %8892 = vst [vmem:[#allocation31_spill] sm:$0xff] %v6975_v44  ;;  %4699 = vmatprep.mubr.msk.bf16.mxu0 %vm6436_vm4, %v6984_v58  ;;  %4900 = vmatmul.mubr.msk.bf16.gmra.mrb[160].mxu1 %vm6436_vm4, %v6762_v4  ;;  %v1691_v27 = vsel %vm1414_vm1, %v6975_v44, 0.0  ;;  %v8897_v56 = vpack.c.bf16 %v6810_v25, %v6767_v32 }
 0x147   :  { %8893 = vst [vmem:[#allocation32_spill] sm:$0xff] %v6989_v10  ;;  %8895 = vst [vmem:[#allocation33_spill] sm:$0xff] %v7007_v40  ;;  %v1308_v20 = vadd.f32 %v6370_v22, %v1237_v38  ;;  %v1238_v34 = vmax.f32 %v8896_v17, %v1174_v49  ;;  %v1821_v4 = vrot.slane %v1691_v27, 7  ;;  %v1692_v14 = vsel %vm1414_vm1, %v6989_v10, 0.0  ;;  %3336 = vmatpush1.bf16.msra.mxu1 %v5941_v13 }
 0x148   :  { %4903 = vmatprep.mubr.msk.bf16.mxu1 %vm6436_vm4, %v8897_v56  ;;  %v1822_v15 = vrot.slane %v1692_v14, 7  ;;  %3337 = vmatprep.subr.bf16.mxu1 %v8857_v29 }
 0x149   :  { %v1372_v33 = vmax.f32 %v1308_v20, 0.0  ;;  %v1309_v19 = vadd.f32 %v6370_v22, %v1238_v34  ;;  %v888_v37 = vpop.f32.mrb[56].mxu1  ;;  %v2036_v49 = vpack.c.bf16 %v1821_v4, %v1820_v3  ;;  %v7024_v17 = vpop.f32.mrb[56].mxu0 }
 0x14a   :  { %v890_v27 = vpop.f32.mrb[57].mxu1  ;;  %v7027_v56 = vpop.f32.mrb[57].mxu0  ;;  %v7029_v21 = vpack.c.bf16 %v1822_v15, %v1821_v4  ;;  %v4908_v4 = vpack.c.bf16 %v6862_v60, %v8855_v51 }
 0x14b   :  { %v7031_v25 = vrot.slane %v1372_v33, 4  ;;  %v1373_v13 = vmax.f32 %v1309_v19, 0.0  ;;  %v1175_v14 = vmax.f32 %v888_v37, %v890_v27  ;;  %2557 = vmatmul.mubr.bf16.gmra.mrb[160].mxu0 %v2036_v49  ;;  %v892_v38 = vpop.f32.mrb[58].mxu1  ;;  %v7035_v34 = vpop.f32.mrb[58].mxu0  ;;  %v7037_v40 = vpack.c.bf16 %v1372_v33, %v1371_v30 }
 0x14c   :  { %8898 = vst [vmem:[#allocation34_spill] sm:$0xff] %v7029_v21  ;;  %v894_v3 = vpop.f32.mrb[59].mxu1  ;;  %v7039_v18 = vpop.f32.mrb[59].mxu0  ;;  %v8902_v19 = vmax.f32 %v6915_v0, %v6918_v24  ;;  %v8903_v24 = vmax.f32 %v6926_v41, %v6930_v39 }
 0x14d   :  { %8899 = vst [vmem:[#allocation35_spill] sm:$0xff] %v7031_v25  ;;  %v7043_v21 = vrot.slane %v1373_v13, 4  ;;  %v7045_v32 = vpack.c.bf16 %v1373_v13, %v1372_v33  ;;  %v1176_v49 = vmax.f32 %v892_v38, %v894_v3  ;;  %4702 = vmatprep.mubr.msk.bf16.mxu0 %vm6436_vm4, %v7037_v40  ;;  %v1693_v33 = vsel %vm1414_vm1, %v7031_v25, 0.0 }
 0x14e   :  { %v1239_v37 = vmax.f32 %v8902_v19, %v1175_v14  ;;  %4906 = vmatmul.mubr.msk.bf16.gmra.mrb[164].mxu1 %vm6436_vm4, %v6816_v61  ;;  %v1823_v13 = vrot.slane %v1693_v33, 7 }
 0x14f   :  { %8900 = vst [vmem:[#allocation36_spill] sm:$0xff] %v7043_v21  ;;  %8901 = vst [vmem:[#allocation37_spill] sm:$0xff] %v7045_v32  ;;  %v1240_v38 = vmax.f32 %v8903_v24, %v1176_v49  ;;  %4909 = vmatprep.mubr.msk.bf16.mxu1 %vm6393_vm3, %v4908_v4  ;;  %v1694_v14 = vsel %vm1414_vm1, %v7043_v21, 0.0 }
 0x150   :  { %v1310_v0 = vadd.f32 %v6370_v22, %v1239_v37  ;;  %v1824_v61 = vrot.slane %v1694_v14, 7  ;;  %v2040_v37 = vpack.c.bf16 %v1823_v13, %v1822_v15 }
 0x151   :  { %v1311_v27 = vadd.f32 %v6370_v22, %v1240_v38  ;;  %v898_v30 = vpop.f32.mrb[60].mxu1  ;;  %v7073_v20 = vpop.f32.mrb[60].mxu0  ;;  %v5942_v22 = vld [vmem:[%s8758_s4 + $0xe8] sm:$0xff]  }
 0x152   :  { %v1374_v19 = vmax.f32 %v1310_v0, 0.0  ;;  %v900_v39 = vpop.f32.mrb[61].mxu1  ;;  %v7075_v41 = vpop.f32.mrb[61].mxu0  ;;  %v7077_v49 = vpack.c.bf16 %v1824_v61, %v1823_v13  ;;  %2760 = vmatpush1.bf16.msra.mxu0 %v5942_v22  ;;  %3338 = vmatpush1.bf16.msra.mxu1 %v5942_v22  ;;  %v8910_v22 = vpack.c.bf16 %v6922_v36, %v6879_v26 }
 0x153   :  { %v1375_v33 = vmax.f32 %v1311_v27, 0.0  ;;  %v1177_v24 = vmax.f32 %v898_v30, %v900_v39  ;;  %2565 = vmatmul.mubr.bf16.gmra.mrb[164].mxu0 %v2040_v37  ;;  %v902_v14 = vpop.f32.mrb[62].mxu1  ;;  %v7083_v3 = vpop.f32.mrb[62].mxu0  ;;  %v8907_v30 = vmax.f32 %v6968_v31, %v6971_v6  ;;  %v7113_v31 = vld [vmem:[%s8759_s3] ss:$0 sm:$0xff]  ;;  %2761 = vmatprep.subr.bf16.mxu0 %v8857_v29 }
 0x154   :  { %8904 = vst [vmem:[#allocation38_spill] sm:$0xff] %v7077_v49  ;;  %v7079_v4 = vrot.slane %v1374_v19, 4  ;;  %v904_v15 = vpop.f32.mrb[63].mxu1  ;;  %v7089_v38 = vpack.c.bf16 %v1374_v19, %v8855_v51  ;;  %v7091_v13 = vpop.f32.mrb[63].mxu0  ;;  %3339 = vmatprep.subr.bf16.mxu1 %v8857_v29 }
 0x155   :  { %v7093_v61 = vrot.slane %v1375_v33, 4  ;;  %v1241_v27 = vmax.f32 %v8907_v30, %v1177_v24  ;;  %v1178_v37 = vmax.f32 %v902_v14, %v904_v15  ;;  %v7108_v21 = vpack.c.bf16 %v1375_v33, %v1374_v19 }
 0x156   :  { %8905 = vst [vmem:[#allocation39_spill] sm:$0xff] %v7079_v4  ;;  %4705 = vmatprep.mubr.msk.bf16.mxu0 %vm6393_vm3, %v7089_v38  ;;  %4912 = vmatmul.mubr.msk.bf16.gmra.mrb[168].mxu1 %vm6393_vm3, %v6874_v1  ;;  %v1695_v0 = vsel %vm1414_vm1, %v7079_v4, 0.0  ;;  %v8909_v24 = vmax.f32 %v6979_v62, %v6986_v8 }
 0x157   :  { %8906 = vst [vmem:[#allocation40_spill] sm:$0xff] %v7093_v61  ;;  %8908 = vst [vmem:[#allocation41_spill] sm:$0xff] %v7108_v21  ;;  %v1312_v6 = vadd.f32 %v7113_v31, %v1241_v27  ;;  %4915 = vmatprep.mubr.msk.bf16.mxu1 %vm6436_vm4, %v8910_v22  ;;  %v1825_v1 = vrot.slane %v1695_v0, 7  ;;  %v1696_v19 = vsel %vm1414_vm1, %v7093_v61, 0.0 }
 0x158   :  { %v1242_v14 = vmax.f32 %v8909_v24, %v1178_v37  ;;  %v1826_v15 = vrot.slane %v1696_v19, 7 }
 0x159   :  { %v1376_v62 = vmax.f32 %v1312_v6, 0.0  ;;  %v908_v27 = vpop.f32.mrb[64].mxu1  ;;  %v2044_v37 = vpack.c.bf16 %v1825_v1, %v6403_v47  ;;  %v7132_v24 = vpop.f32.mrb[64].mxu0 }
 0x15a   :  { %v1313_v8 = vadd.f32 %v7113_v31, %v1242_v14  ;;  %v910_v0 = vpop.f32.mrb[65].mxu1  ;;  %v7134_v22 = vpop.f32.mrb[65].mxu0  ;;  %v7136_v39 = vpack.c.bf16 %v1826_v15, %v1825_v1  ;;  %v8914_v1 = vmax.f32 %v7024_v17, %v7027_v56  ;;  %v8916_v56 = vmax.f32 %v7035_v34, %v7039_v18 }
 0x15b   :  { %v7138_v36 = vrot.slane %v1376_v62, 4  ;;  %v1179_v21 = vmax.f32 %v908_v27, %v910_v0  ;;  %2573 = vmatmul.mubr.bf16.gmra.mrb[168].mxu0 %v2044_v37  ;;  %v912_v49 = vpop.f32.mrb[66].mxu1  ;;  %v7142_v14 = vpop.f32.mrb[66].mxu0  ;;  %v7144_v60 = vpack.c.bf16 %v1376_v62, %v1375_v33 }
 0x15c   :  { %8911 = vst [vmem:[#allocation42_spill] sm:$0xff] %v7136_v39  ;;  %v1377_v19 = vmax.f32 %v1313_v8, 0.0  ;;  %v914_v30 = vpop.f32.mrb[67].mxu1  ;;  %v7146_v26 = vpop.f32.mrb[67].mxu0 }
 0x15d   :  { %8912 = vst [vmem:[#allocation43_spill] sm:$0xff] %v7138_v36  ;;  %v1243_v39 = vmax.f32 %v8914_v1, %v1179_v21  ;;  %v1180_v8 = vmax.f32 %v912_v49, %v914_v30  ;;  %4708 = vmatprep.mubr.msk.bf16.mxu0 %vm6436_vm4, %v7144_v60  ;;  %v1697_v33 = vsel %vm1414_vm1, %v7138_v36, 0.0  ;;  %v8917_v30 = vpack.c.bf16 %v6975_v44, %v6933_v54 }
 0x15e   :  { %v7148_v32 = vrot.slane %v1377_v19, 4  ;;  %4918 = vmatmul.mubr.msk.bf16.gmra.mrb[172].mxu1 %vm6436_vm4, %v6928_v7  ;;  %v7165_v17 = vpack.c.bf16 %v1377_v19, %v1376_v62  ;;  %v1827_v7 = vrot.slane %v1697_v33, 7 }
 0x15f   :  { %v1314_v21 = vadd.f32 %v7113_v31, %v1243_v39  ;;  %v1244_v49 = vmax.f32 %v8916_v56, %v1180_v8  ;;  %4921 = vmatprep.mubr.msk.bf16.mxu1 %vm6436_vm4, %v8917_v30 }
 0x160   :  { %8913 = vst [vmem:[#allocation44_spill] sm:$0xff] %v7148_v32  ;;  %8915 = vst [vmem:[#allocation45_spill] sm:$0xff] %v7165_v17  ;;  %v1698_v0 = vsel %vm1414_vm1, %v7148_v32, 0.0  ;;  %v2048_v18 = vpack.c.bf16 %v1827_v7, %v1826_v15  ;;  %v5943_v15 = vld [vmem:[%s8758_s4 + $0xf0] sm:$0xff]  }
 0x161   :  { %v1828_v1 = vrot.slane %v1698_v0, 7  ;;  %v1378_v37 = vmax.f32 %v1314_v21, 0.0  ;;  %v1315_v39 = vadd.f32 %v7113_v31, %v1244_v49  ;;  %v918_v27 = vpop.f32.mrb[68].mxu1  ;;  %v7181_v34 = vpop.f32.mrb[68].mxu0  ;;  %2762 = vmatpush1.bf16.msra.mxu0 %v5943_v15  ;;  %3340 = vmatpush1.bf16.msra.mxu1 %v5943_v15 }
 0x162   :  { %v920_v8 = vpop.f32.mrb[69].mxu1  ;;  %v7183_v56 = vpop.f32.mrb[69].mxu0  ;;  %2763 = vmatprep.subr.bf16.mxu0 %v8857_v29  ;;  %3341 = vmatprep.subr.bf16.mxu1 %v8857_v29 }
 0x163   :  { %v7185_v6 = vpack.c.bf16 %v1828_v1, %v1827_v7  ;;  %v7187_v33 = vrot.slane %v1378_v37, 4  ;;  %v1379_v30 = vmax.f32 %v1315_v39, 0.0  ;;  %v1181_v44 = vmax.f32 %v918_v27, %v920_v8  ;;  %2581 = vmatmul.mubr.bf16.gmra.mrb[172].mxu0 %v2048_v18  ;;  %v922_v0 = vpop.f32.mrb[70].mxu1  ;;  %v7191_v62 = vpop.f32.mrb[70].mxu0 }
 0x164   :  { %v924_v49 = vpop.f32.mrb[71].mxu1  ;;  %v7196_v17 = vpack.c.bf16 %v1378_v37, %v1377_v19  ;;  %v7198_v7 = vpop.f32.mrb[71].mxu0  ;;  %v8921_v27 = vmax.f32 %v7073_v20, %v7075_v41 }
 0x165   :  { %8918 = vst [vmem:[#allocation46_spill] sm:$0xff] %v7185_v6  ;;  %8919 = vst [vmem:[#allocation47_spill] sm:$0xff] %v7187_v33  ;;  %v7200_v6 = vrot.slane %v1379_v30, 4  ;;  %v1182_v18 = vmax.f32 %v922_v0, %v924_v49  ;;  %v1699_v19 = vsel %vm1414_vm1, %v7187_v33, 0.0  ;;  %v7217_v20 = vpack.c.bf16 %v1379_v30, %v1378_v37 }
 0x166   :  { %v1245_v39 = vmax.f32 %v8921_v27, %v1181_v44  ;;  %4711 = vmatprep.mubr.msk.bf16.mxu0 %vm6436_vm4, %v7196_v17  ;;  %4924 = vmatmul.mubr.msk.bf16.gmra.mrb[176].mxu1 %vm6436_vm4, %v6984_v58  ;;  %v8923_v0 = vmax.f32 %v7083_v3, %v7091_v13  ;;  %v8924_v49 = vpack.c.bf16 %v7031_v25, %v6989_v10  ;;  %v1829_v58 = vrot.slane %v1699_v19, 7 }
 0x167   :  { %8920 = vst [vmem:[#allocation48_spill] sm:$0xff] %v7200_v6  ;;  %8922 = vst [vmem:[#allocation49_spill] sm:$0xff] %v7217_v20  ;;  %v1700_v27 = vsel %vm1414_vm1, %v7200_v6, 0.0 }
 0x168   :  { %v1316_v41 = vadd.f32 %v7113_v31, %v1245_v39  ;;  %v1246_v15 = vmax.f32 %v8923_v0, %v1182_v18  ;;  %4927 = vmatprep.mubr.msk.bf16.mxu1 %vm6436_vm4, %v8924_v49  ;;  %v1830_v37 = vrot.slane %v1700_v27, 7  ;;  %v2052_v0 = vpack.c.bf16 %v1829_v58, %v1828_v1 }
 0x169   :  { %v928_v18 = vpop.f32.mrb[72].mxu1  ;;  %v7235_v44 = vpop.f32.mrb[72].mxu0 }
 0x16a   :  { %v1380_v3 = vmax.f32 %v1316_v41, 0.0  ;;  %v1317_v13 = vadd.f32 %v7113_v31, %v1246_v15  ;;  %v930_v49 = vpop.f32.mrb[73].mxu1  ;;  %v7237_v19 = vpop.f32.mrb[73].mxu0  ;;  %v7239_v8 = vpack.c.bf16 %v1830_v37, %v1829_v58  ;;  %v4932_v58 = vpack.c.bf16 %v7079_v4, %v8855_v51 }
 0x16b   :  { %v1183_v25 = vmax.f32 %v928_v18, %v930_v49  ;;  %2589 = vmatmul.mubr.bf16.gmra.mrb[176].mxu0 %v2052_v0  ;;  %v932_v29 = vpop.f32.mrb[74].mxu1  ;;  %v7245_v39 = vpop.f32.mrb[74].mxu0  ;;  %v5944_v49 = vld [vmem:[%s8758_s4 + $0xf8] sm:$0xff]  }
 0x16c   :  { %8925 = vst [vmem:[#allocation50_spill] sm:$0xff] %v7239_v8  ;;  %v7241_v21 = vrot.slane %v1380_v3, 4  ;;  %v1381_v27 = vmax.f32 %v1317_v13, 0.0  ;;  %v934_v15 = vpop.f32.mrb[75].mxu1  ;;  %v7247_v1 = vpack.c.bf16 %v1380_v3, %v1379_v30  ;;  %v7249_v20 = vpop.f32.mrb[75].mxu0  ;;  %v8929_v13 = vmax.f32 %v7132_v24, %v7134_v22  ;;  %2764 = vmatpush1.bf16.msra.mxu0 %v5944_v49  ;;  %3342 = vmatpush1.bf16.msra.mxu1 %v5944_v49 }
 0x16d   :  { %v1184_v0 = vmax.f32 %v932_v29, %v934_v15  ;;  %v8930_v22 = vmax.f32 %v7142_v14, %v7146_v26 }
 0x16e   :  { %8926 = vst [vmem:[#allocation51_spill] sm:$0xff] %v7241_v21  ;;  %v7253_v8 = vrot.slane %v1381_v27, 4  ;;  %v7255_v10 = vpack.c.bf16 %v1381_v27, %v1380_v3  ;;  %v1247_v18 = vmax.f32 %v8929_v13, %v1183_v25  ;;  %4714 = vmatprep.mubr.msk.bf16.mxu0 %vm6436_vm4, %v7247_v1  ;;  %4930 = vmatmul.mubr.msk.bf16.gmra.mrb[180].mxu1 %vm6436_vm4, %v7037_v40  ;;  %v1701_v24 = vsel %vm1414_vm1, %v7241_v21, 0.0 }
 0x16f   :  { %v1248_v3 = vmax.f32 %v8930_v22, %v1184_v0  ;;  %4933 = vmatprep.mubr.msk.bf16.mxu1 %vm6393_vm3, %v4932_v58  ;;  %v1831_v27 = vrot.slane %v1701_v24, 7 }
 0x170   :  { %8927 = vst [vmem:[#allocation52_spill] sm:$0xff] %v7253_v8  ;;  %8928 = vst [vmem:[#allocation53_spill] sm:$0xff] %v7255_v10  ;;  %v1318_v25 = vadd.f32 %v7113_v31, %v1247_v18  ;;  %v1702_v40 = vsel %vm1414_vm1, %v7253_v8, 0.0 }
 0x171   :  { %v1832_v15 = vrot.slane %v1702_v40, 7  ;;  %v1319_v18 = vadd.f32 %v7113_v31, %v1248_v3  ;;  %v938_v30 = vpop.f32.mrb[76].mxu1  ;;  %v2056_v41 = vpack.c.bf16 %v1831_v27, %v1830_v37  ;;  %v7286_v26 = vpop.f32.mrb[76].mxu0 }
 0x172   :  { %v1382_v29 = vmax.f32 %v1318_v25, 0.0  ;;  %v940_v14 = vpop.f32.mrb[77].mxu1  ;;  %v7288_v0 = vpop.f32.mrb[77].mxu0 }
 0x173   :  { %v7290_v58 = vpack.c.bf16 %v1832_v15, %v1831_v27  ;;  %v1383_v22 = vmax.f32 %v1319_v18, 0.0  ;;  %v1185_v49 = vmax.f32 %v938_v30, %v940_v14  ;;  %2597 = vmatmul.mubr.bf16.gmra.mrb[180].mxu0 %v2056_v41  ;;  %v942_v40 = vpop.f32.mrb[78].mxu1  ;;  %v7296_v13 = vpop.f32.mrb[78].mxu0  ;;  %v8934_v27 = vmax.f32 %v7181_v34, %v7183_v56 }
 0x174   :  { %v7292_v24 = vrot.slane %v1382_v29, 4  ;;  %v944_v3 = vpop.f32.mrb[79].mxu1  ;;  %v7299_v37 = vpack.c.bf16 %v1382_v29, %v8855_v51  ;;  %v7301_v8 = vpop.f32.mrb[79].mxu0  ;;  %v8936_v56 = vmax.f32 %v7191_v62, %v7198_v7 }
 0x175   :  { %8931 = vst [vmem:[#allocation54_spill] sm:$0xff] %v7290_v58  ;;  %v7303_v4 = vrot.slane %v1383_v22, 4  ;;  %v1249_v15 = vmax.f32 %v8934_v27, %v1185_v49  ;;  %v1186_v30 = vmax.f32 %v942_v40, %v944_v3  ;;  %v7318_v14 = vpack.c.bf16 %v1383_v22, %v1382_v29 }
 0x176   :  { %8932 = vst [vmem:[#allocation55_spill] sm:$0xff] %v7292_v24  ;;  %4717 = vmatprep.mubr.msk.bf16.mxu0 %vm6393_vm3, %v7299_v37  ;;  %4936 = vmatmul.mubr.msk.bf16.gmra.mrb[184].mxu1 %vm6393_vm3, %v7089_v38  ;;  %v1703_v18 = vsel %vm1414_vm1, %v7292_v24, 0.0  ;;  %v8937_v40 = vpack.c.bf16 %v7138_v36, %v7093_v61 }
 0x177   :  { %8933 = vst [vmem:[#allocation56_spill] sm:$0xff] %v7303_v4  ;;  %8935 = vst [vmem:[#allocation57_spill] sm:$0xff] %v7318_v14  ;;  %v1320_v34 = vadd.f32 %v7113_v31, %v1249_v15  ;;  %v1250_v49 = vmax.f32 %v8936_v56, %v1186_v30  ;;  %v1833_v3 = vrot.slane %v1703_v18, 7  ;;  %v1704_v38 = vsel %vm1414_vm1, %v7303_v4, 0.0 }
 0x178   :  { %4939 = vmatprep.mubr.msk.bf16.mxu1 %vm6436_vm4, %v8937_v40  ;;  %v1834_v27 = vrot.slane %v1704_v38, 7 }
 0x179   :  { %v1384_v41 = vmax.f32 %v1320_v34, 0.0  ;;  %v1321_v15 = vadd.f32 %v7113_v31, %v1250_v49  ;;  %v948_v25 = vpop.f32.mrb[80].mxu1  ;;  %v2060_v62 = vpack.c.bf16 %v1833_v3, %v6403_v47  ;;  %v7335_v7 = vpop.f32.mrb[80].mxu0 }
 0x17a   :  { %v950_v30 = vpop.f32.mrb[81].mxu1  ;;  %v7337_v56 = vpop.f32.mrb[81].mxu0  ;;  %v7339_v40 = vpack.c.bf16 %v1834_v27, %v1833_v3  ;;  %v7354_v3 = vld.sshfl [vmem:[%s8760_s6] sm:$0x33 pattern:$0x76325410] }
 0x17b   :  { %v7341_v18 = vrot.slane %v1384_v41, 4  ;;  %v1385_v36 = vmax.f32 %v1321_v15, 0.0  ;;  %v1187_v38 = vmax.f32 %v948_v25, %v950_v30  ;;  %2605 = vmatmul.mubr.bf16.gmra.mrb[184].mxu0 %v2060_v62  ;;  %v952_v14 = vpop.f32.mrb[82].mxu1  ;;  %v7345_v49 = vpop.f32.mrb[82].mxu0  ;;  %v7347_v58 = vpack.c.bf16 %v1384_v41, %v1383_v22 }
 0x17c   :  { %8938 = vst [vmem:[#allocation58_spill] sm:$0xff] %v7339_v40  ;;  %v954_v29 = vpop.f32.mrb[83].mxu1  ;;  %v7349_v61 = vpop.f32.mrb[83].mxu0  ;;  %v8941_v25 = vmax.f32 %v7235_v44, %v7237_v19  ;;  %v3826_v44 = vcombine.high %v7354_v3, %v7354_v3 }
 0x17d   :  { %8939 = vst [vmem:[#allocation59_spill] sm:$0xff] %v7341_v18  ;;  %v7356_v40 = vrot.slane %v1385_v36, 4  ;;  %v1188_v62 = vmax.f32 %v952_v14, %v954_v29  ;;  %4720 = vmatprep.mubr.msk.bf16.mxu0 %vm6436_vm4, %v7347_v58  ;;  %v1705_v22 = vsel %vm1414_vm1, %v7341_v18, 0.0  ;;  %v8942_v14 = vmax.f32 %v7245_v39, %v7249_v20 }
 0x17e   :  { %v1251_v15 = vmax.f32 %v8941_v25, %v1187_v38  ;;  %4942 = vmatmul.mubr.msk.bf16.gmra.mrb[188].mxu1 %vm6436_vm4, %v7144_v60  ;;  %v8943_v38 = vpack.c.bf16 %v7187_v33, %v7148_v32  ;;  %v1835_v60 = vrot.slane %v1705_v22, 7  ;;  %5245 = vmatprep.subr.msk.bf16.mxu0 %vm3834_vm5, %v3826_v44  ;;  %v7387_v30 = vpack.c.bf16 %v1385_v36, %v1384_v41 }
 0x17f   :  { %8940 = vst [vmem:[#allocation60_spill] sm:$0xff] %v7356_v40  ;;  %v1252_v29 = vmax.f32 %v8942_v14, %v1188_v62  ;;  %v1706_v25 = vsel %vm1414_vm1, %v7356_v40, 0.0 }
 0x180   :  { %v1322_v19 = vadd.f32 %v7113_v31, %v1251_v15  ;;  %4945 = vmatprep.mubr.msk.bf16.mxu1 %vm6436_vm4, %v8943_v38  ;;  %v1836_v34 = vrot.slane %v1706_v25, 7  ;;  %8944 = vst [vmem:[#allocation61_spill] sm:$0xff] %v7387_v30  ;;  %v2064_v14 = vpack.c.bf16 %v1835_v60, %v1834_v27 }
 0x181   :  { %v1323_v39 = vadd.f32 %v7113_v31, %v1252_v29  ;;  %v958_v62 = vpop.f32.mrb[84].mxu1  ;;  %v7392_v33 = vpop.f32.mrb[84].mxu0 }
 0x182   :  { %v1386_v20 = vmax.f32 %v1322_v19, 0.0  ;;  %v960_v38 = vpop.f32.mrb[85].mxu1  ;;  %v7394_v22 = vpop.f32.mrb[85].mxu0  ;;  %v7396_v32 = vpack.c.bf16 %v1836_v34, %v1835_v60  ;;  %v8948_v60 = vmax.f32 %v7286_v26, %v7288_v0 }
 0x183   :  { %v1387_v44 = vmax.f32 %v1323_v39, 0.0  ;;  %v1189_v41 = vmax.f32 %v958_v62, %v960_v38  ;;  %2613 = vmatmul.mubr.bf16.gmra.mrb[188].mxu0 %v2064_v14  ;;  %v962_v30 = vpop.f32.mrb[86].mxu1  ;;  %v7402_v15 = vpop.f32.mrb[86].mxu0 }
 0x184   :  { %8945 = vst [vmem:[#allocation62_spill] sm:$0xff] %v7396_v32  ;;  %v7398_v25 = vrot.slane %v1386_v20, 4  ;;  %v964_v29 = vpop.f32.mrb[87].mxu1  ;;  %v7404_v27 = vpack.c.bf16 %v1386_v20, %v1385_v36  ;;  %v7406_v10 = vpop.f32.mrb[87].mxu0 }
 0x185   :  { %v7408_v54 = vrot.slane %v1387_v44, 4  ;;  %v1253_v32 = vmax.f32 %v8948_v60, %v1189_v41  ;;  %v1190_v39 = vmax.f32 %v962_v30, %v964_v29  ;;  %v7425_v26 = vpack.c.bf16 %v1387_v44, %v1386_v20 }
 0x186   :  { %8946 = vst [vmem:[#allocation63_spill] sm:$0xff] %v7398_v25  ;;  %4723 = vmatprep.mubr.msk.bf16.mxu0 %vm6436_vm4, %v7404_v27  ;;  %4948 = vmatmul.mubr.msk.bf16.gmra.mrb[192].mxu1 %vm6436_vm4, %v7196_v17  ;;  %v1707_v36 = vsel %vm1414_vm1, %v7398_v25, 0.0  ;;  %v8950_v30 = vmax.f32 %v7296_v13, %v7301_v8  ;;  %v8951_v41 = vpack.c.bf16 %v7241_v21, %v7200_v6 }
 0x187   :  { %8947 = vst [vmem:[#allocation64_spill] sm:$0xff] %v7408_v54  ;;  %8949 = vst [vmem:[#allocation65_spill] sm:$0xff] %v7425_v26  ;;  %v1324_v0 = vadd.f32 %v7113_v31, %v1253_v32  ;;  %v1837_v17 = vrot.slane %v1707_v36, 7  ;;  %v1708_v29 = vsel %vm1414_vm1, %v7408_v54, 0.0 }
 0x188   :  { %v1254_v38 = vmax.f32 %v8950_v30, %v1190_v39  ;;  %4951 = vmatprep.mubr.msk.bf16.mxu1 %vm6436_vm4, %v8951_v41  ;;  %v1838_v60 = vrot.slane %v1708_v29, 7 }
 0x189   :  { %v1388_v14 = vmax.f32 %v1324_v0, 0.0  ;;  %v968_v62 = vpop.f32.mrb[88].mxu1  ;;  %v2068_v8 = vpack.c.bf16 %v1837_v17, %v1836_v34  ;;  %v7441_v13 = vpop.f32.mrb[88].mxu0 }
 0x18a   :  { %v1325_v32 = vadd.f32 %v7113_v31, %v1254_v38  ;;  %v970_v39 = vpop.f32.mrb[89].mxu1  ;;  %v7443_v30 = vpop.f32.mrb[89].mxu0  ;;  %v7445_v19 = vpack.c.bf16 %v1838_v60, %v1837_v17  ;;  %v4956_v17 = vpack.c.bf16 %v7292_v24, %v8855_v51 }
 0x18b   :  { %v7447_v36 = vrot.slane %v1388_v14, 4  ;;  %v1191_v21 = vmax.f32 %v968_v62, %v970_v39  ;;  %2621 = vmatmul.mubr.bf16.gmra.mrb[192].mxu0 %v2068_v8  ;;  %v972_v29 = vpop.f32.mrb[90].mxu1  ;;  %v7451_v20 = vpop.f32.mrb[90].mxu0  ;;  %v7453_v34 = vpack.c.bf16 %v1388_v14, %v1387_v44  ;;  %v8956_v62 = vmax.f32 %v7335_v7, %v7337_v56 }
 0x18c   :  { %8952 = vst [vmem:[#allocation66_spill] sm:$0xff] %v7445_v19  ;;  %v1389_v41 = vmax.f32 %v1325_v32, 0.0  ;;  %v974_v38 = vpop.f32.mrb[91].mxu1  ;;  %v7455_v26 = vpop.f32.mrb[91].mxu0  ;;  %v8957_v7 = vmax.f32 %v7345_v49, %v7349_v61 }
 0x18d   :  { %8953 = vst [vmem:[#allocation67_spill] sm:$0xff] %v7447_v36  ;;  %v1255_v32 = vmax.f32 %v8956_v62, %v1191_v21  ;;  %v1192_v8 = vmax.f32 %v972_v29, %v974_v38  ;;  %4726 = vmatprep.mubr.msk.bf16.mxu0 %vm6436_vm4, %v7453_v34 }
 0x18e   :  { %v7459_v19 = vrot.slane %v1389_v41, 4  ;;  %v7461_v6 = vpack.c.bf16 %v1389_v41, %v1388_v14  ;;  %4954 = vmatmul.mubr.msk.bf16.gmra.mrb[196].mxu1 %vm6436_vm4, %v7247_v1  ;;  %v1709_v14 = vsel %vm1414_vm1, %v7447_v36, 0.0 }
 0x18f   :  { %v1326_v21 = vadd.f32 %v7113_v31, %v1255_v32  ;;  %v1256_v56 = vmax.f32 %v8957_v7, %v1192_v8  ;;  %4957 = vmatprep.mubr.msk.bf16.mxu1 %vm6393_vm3, %v4956_v17  ;;  %v1839_v41 = vrot.slane %v1709_v14, 7 }
 0x190   :  { %8954 = vst [vmem:[#allocation68_spill] sm:$0xff] %v7459_v19  ;;  %8955 = vst [vmem:[#allocation69_spill] sm:$0xff] %v7461_v6  ;;  %v1710_v29 = vsel %vm1414_vm1, %v7459_v19, 0.0 }
 0x191   :  { %v1840_v1 = vrot.slane %v1710_v29, 7  ;;  %v1390_v62 = vmax.f32 %v1326_v21, 0.0  ;;  %v1327_v39 = vadd.f32 %v7113_v31, %v1256_v56  ;;  %v978_v44 = vpop.f32.mrb[92].mxu1  ;;  %v2072_v32 = vpack.c.bf16 %v1839_v41, %v1838_v60  ;;  %v7489_v0 = vpop.f32.mrb[92].mxu0 }
 0x192   :  { %v980_v61 = vpop.f32.mrb[93].mxu1  ;;  %v7491_v49 = vpop.f32.mrb[93].mxu0 }
 0x193   :  { %v7493_v8 = vpack.c.bf16 %v1840_v1, %v1839_v41  ;;  %v7495_v17 = vrot.slane %v1390_v62, 4  ;;  %v1391_v14 = vmax.f32 %v1327_v39, 0.0  ;;  %v1193_v7 = vmax.f32 %v978_v44, %v980_v61  ;;  %2629 = vmatmul.mubr.bf16.gmra.mrb[196].mxu0 %v2072_v32  ;;  %v982_v29 = vpop.f32.mrb[94].mxu1  ;;  %v7499_v38 = vpop.f32.mrb[94].mxu0 }
 0x194   :  { %v984_v56 = vpop.f32.mrb[95].mxu1  ;;  %v7502_v60 = vpack.c.bf16 %v1390_v62, %v8855_v51  ;;  %v7504_v19 = vpop.f32.mrb[95].mxu0  ;;  %v8961_v41 = vmax.f32 %v7392_v33, %v7394_v22  ;;  %v8963_v22 = vmax.f32 %v7402_v15, %v7406_v10 }
 0x195   :  { %8958 = vst [vmem:[#allocation70_spill] sm:$0xff] %v7493_v8  ;;  %8959 = vst [vmem:[#allocation71_spill] sm:$0xff] %v7495_v17  ;;  %v7506_v24 = vrot.slane %v1391_v14, 4  ;;  %v1194_v44 = vmax.f32 %v982_v29, %v984_v56  ;;  %v1711_v32 = vsel %vm1414_vm1, %v7495_v17, 0.0  ;;  %v7521_v61 = vpack.c.bf16 %v1391_v14, %v1390_v62 }
 0x196   :  { %v1257_v39 = vmax.f32 %v8961_v41, %v1193_v7  ;;  %4729 = vmatprep.mubr.msk.bf16.mxu0 %vm6393_vm3, %v7502_v60  ;;  %4960 = vmatmul.mubr.msk.bf16.gmra.mrb[200].mxu1 %vm6393_vm3, %v7299_v37  ;;  %v8964_v29 = vpack.c.bf16 %v7341_v18, %v7303_v4  ;;  %v1841_v56 = vrot.slane %v1711_v32, 7 }
 0x197   :  { %8960 = vst [vmem:[#allocation72_spill] sm:$0xff] %v7506_v24  ;;  %8962 = vst [vmem:[#allocation73_spill] sm:$0xff] %v7521_v61  ;;  %v1258_v7 = vmax.f32 %v8963_v22, %v1194_v44  ;;  %v1712_v37 = vsel %vm1414_vm1, %v7506_v24, 0.0 }
 0x198   :  { %v1328_v33 = vadd.f32 %v7113_v31, %v1257_v39  ;;  %4963 = vmatprep.mubr.msk.bf16.mxu1 %vm6436_vm4, %v8964_v29  ;;  %v1842_v41 = vrot.slane %v1712_v37, 7  ;;  %v2076_v10 = vpack.c.bf16 %v1841_v56, %v6403_v47 }
 0x199   :  { %v1329_v39 = vadd.f32 %v7113_v31, %v1258_v7  ;;  %v988_v21 = vpop.f32.mrb[96].mxu1  ;;  %v7538_v15 = vpop.f32.mrb[96].mxu0 }
 0x19a   :  { %v1392_v1 = vmax.f32 %v1328_v33, 0.0  ;;  %v990_v44 = vpop.f32.mrb[97].mxu1  ;;  %v7540_v22 = vpop.f32.mrb[97].mxu0  ;;  %v7542_v29 = vpack.c.bf16 %v1842_v41, %v1841_v56  ;;  %v8968_v56 = vmax.f32 %v7441_v13, %v7443_v30 }
 0x19b   :  { %v1393_v18 = vmax.f32 %v1329_v39, 0.0  ;;  %v1195_v37 = vmax.f32 %v988_v21, %v990_v44  ;;  %2637 = vmatmul.mubr.bf16.gmra.mrb[200].mxu0 %v2076_v10  ;;  %v992_v61 = vpop.f32.mrb[98].mxu1  ;;  %v7548_v7 = vpop.f32.mrb[98].mxu0  ;;  %v8971_v44 = vpack.c.bf16 %v7398_v25, %v7356_v40 }
 0x19c   :  { %8965 = vst [vmem:[#allocation74_spill] sm:$0xff] %v7542_v29  ;;  %v7544_v32 = vrot.slane %v1392_v1, 4  ;;  %v994_v62 = vpop.f32.mrb[99].mxu1  ;;  %v7550_v8 = vpack.c.bf16 %v1392_v1, %v1391_v14  ;;  %v7552_v4 = vpop.f32.mrb[99].mxu0 }
 0x19d   :  { %v7554_v6 = vrot.slane %v1393_v18, 4  ;;  %v1259_v29 = vmax.f32 %v8968_v56, %v1195_v37  ;;  %v1196_v39 = vmax.f32 %v992_v61, %v994_v62  ;;  %v7571_v13 = vpack.c.bf16 %v1393_v18, %v1392_v1 }
 0x19e   :  { %8966 = vst [vmem:[#allocation75_spill] sm:$0xff] %v7544_v32  ;;  %4732 = vmatprep.mubr.msk.bf16.mxu0 %vm6436_vm4, %v7550_v8  ;;  %4966 = vmatmul.mubr.msk.bf16.gmra.mrb[204].mxu1 %vm6436_vm4, %v7347_v58  ;;  %v1713_v14 = vsel %vm1414_vm1, %v7544_v32, 0.0  ;;  %v8970_v61 = vmax.f32 %v7451_v20, %v7455_v26 }
 0x19f   :  { %8967 = vst [vmem:[#allocation76_spill] sm:$0xff] %v7554_v6  ;;  %8969 = vst [vmem:[#allocation77_spill] sm:$0xff] %v7571_v13  ;;  %v1330_v30 = vadd.f32 %v7113_v31, %v1259_v29  ;;  %4969 = vmatprep.mubr.msk.bf16.mxu1 %vm6436_vm4, %v8971_v44  ;;  %v1843_v58 = vrot.slane %v1713_v14, 7  ;;  %v1714_v37 = vsel %vm1414_vm1, %v7554_v6, 0.0 }
 0x1a0   :  { %v1260_v62 = vmax.f32 %v8970_v61, %v1196_v39  ;;  %v1844_v56 = vrot.slane %v1714_v37, 7 }
 0x1a1   :  { %v1394_v10 = vmax.f32 %v1330_v30, 0.0  ;;  %v998_v21 = vpop.f32.mrb[100].mxu1  ;;  %v2080_v26 = vpack.c.bf16 %v1843_v58, %v1842_v41  ;;  %v7587_v20 = vpop.f32.mrb[100].mxu0 }
 0x1a2   :  { %v1331_v29 = vadd.f32 %v7113_v31, %v1260_v62  ;;  %v1000_v39 = vpop.f32.mrb[101].mxu1  ;;  %v7589_v61 = vpop.f32.mrb[101].mxu0  ;;  %v7591_v33 = vpack.c.bf16 %v1844_v56, %v1843_v58  ;;  %v8974_v58 = vmax.f32 %v7489_v0, %v7491_v49  ;;  %v8976_v49 = vmax.f32 %v7499_v38, %v7504_v19 }
 0x1a3   :  { %v7593_v14 = vrot.slane %v1394_v10, 4  ;;  %v1197_v25 = vmax.f32 %v998_v21, %v1000_v39  ;;  %2645 = vmatmul.mubr.bf16.gmra.mrb[204].mxu0 %v2080_v26  ;;  %v1002_v37 = vpop.f32.mrb[102].mxu1  ;;  %v7597_v1 = vpop.f32.mrb[102].mxu0  ;;  %v7599_v41 = vpack.c.bf16 %v1394_v10, %v1393_v18 }
 0x1a4   :  { %8972 = vst [vmem:[#allocation78_spill] sm:$0xff] %v7591_v33  ;;  %v1395_v44 = vmax.f32 %v1331_v29, 0.0  ;;  %v1004_v62 = vpop.f32.mrb[103].mxu1  ;;  %v7601_v13 = vpop.f32.mrb[103].mxu0 }
 0x1a5   :  { %8973 = vst [vmem:[#allocation79_spill] sm:$0xff] %v7593_v14  ;;  %v1261_v33 = vmax.f32 %v8974_v58, %v1197_v25  ;;  %v1198_v29 = vmax.f32 %v1002_v37, %v1004_v62  ;;  %4735 = vmatprep.mubr.msk.bf16.mxu0 %vm6436_vm4, %v7599_v41  ;;  %v1715_v18 = vsel %vm1414_vm1, %v7593_v14, 0.0  ;;  %v8977_v37 = vpack.c.bf16 %v7447_v36, %v7408_v54 }
 0x1a6   :  { %v7603_v40 = vrot.slane %v1395_v44, 4  ;;  %4972 = vmatmul.mubr.msk.bf16.gmra.mrb[208].mxu1 %vm6436_vm4, %v7404_v27  ;;  %v7620_v0 = vpack.c.bf16 %v1395_v44, %v1394_v10  ;;  %v1845_v27 = vrot.slane %v1715_v18, 7 }
 0x1a7   :  { %v1332_v25 = vadd.f32 %v7113_v31, %v1261_v33  ;;  %v1262_v39 = vmax.f32 %v8976_v49, %v1198_v29  ;;  %4975 = vmatprep.mubr.msk.bf16.mxu1 %vm6436_vm4, %v8977_v37 }
 0x1a8   :  { %8975 = vst [vmem:[#allocation80_spill] sm:$0xff] %v7620_v0  ;;  %v1716_v62 = vsel %vm1414_vm1, %v7603_v40, 0.0  ;;  %v2084_v19 = vpack.c.bf16 %v1845_v27, %v1844_v56 }
 0x1a9   :  { %v1846_v58 = vrot.slane %v1716_v62, 7  ;;  %v1396_v26 = vmax.f32 %v1332_v25, 0.0  ;;  %v1333_v33 = vadd.f32 %v7113_v31, %v1262_v39  ;;  %v1008_v21 = vpop.f32.mrb[104].mxu1  ;;  %v7636_v38 = vpop.f32.mrb[104].mxu0 }
 0x1aa   :  { %v1010_v29 = vpop.f32.mrb[105].mxu1  ;;  %v7638_v49 = vpop.f32.mrb[105].mxu0 }
 0x1ab   :  { %v7640_v30 = vpack.c.bf16 %v1846_v58, %v1845_v27  ;;  %v7642_v18 = vrot.slane %v1396_v26, 4  ;;  %v1397_v37 = vmax.f32 %v1333_v33, 0.0  ;;  %v1199_v36 = vmax.f32 %v1008_v21, %v1010_v29  ;;  %2653 = vmatmul.mubr.bf16.gmra.mrb[208].mxu0 %v2084_v19  ;;  %v1012_v62 = vpop.f32.mrb[106].mxu1  ;;  %v7646_v10 = vpop.f32.mrb[106].mxu0 }
 0x1ac   :  { %v1014_v39 = vpop.f32.mrb[107].mxu1  ;;  %v7648_v56 = vpack.c.bf16 %v1396_v26, %v1395_v44  ;;  %v7650_v0 = vpop.f32.mrb[107].mxu0  ;;  %v4980_v27 = vpack.c.bf16 %v7495_v17, %v8855_v51  ;;  %v8982_v21 = vmax.f32 %v7538_v15, %v7540_v22  ;;  %v8983_v15 = vmax.f32 %v7548_v7, %v7552_v4 }
 0x1ad   :  { %8978 = vst [vmem:[#allocation81_spill] sm:$0xff] %v7640_v30  ;;  %8979 = vst [vmem:[#allocation82_spill] sm:$0xff] %v7642_v18  ;;  %v7654_v30 = vrot.slane %v1397_v37, 4  ;;  %v7656_v54 = vpack.c.bf16 %v1397_v37, %v1396_v26  ;;  %v1200_v19 = vmax.f32 %v1012_v62, %v1014_v39  ;;  %v1717_v26 = vsel %vm1414_vm1, %v7642_v18, 0.0 }
 0x1ae   :  { %v1263_v33 = vmax.f32 %v8982_v21, %v1199_v36  ;;  %4738 = vmatprep.mubr.msk.bf16.mxu0 %vm6436_vm4, %v7648_v56  ;;  %4978 = vmatmul.mubr.msk.bf16.gmra.mrb[212].mxu1 %vm6436_vm4, %v7453_v34  ;;  %v1847_v37 = vrot.slane %v1717_v26, 7 }
 0x1af   :  { %8980 = vst [vmem:[#allocation83_spill] sm:$0xff] %v7654_v30  ;;  %8981 = vst [vmem:[#allocation84_spill] sm:$0xff] %v7656_v54  ;;  %v1264_v22 = vmax.f32 %v8983_v15, %v1200_v19  ;;  %4981 = vmatprep.mubr.msk.bf16.mxu1 %vm6393_vm3, %v4980_v27  ;;  %v1718_v62 = vsel %vm1414_vm1, %v7654_v30, 0.0 }
 0x1b0   :  { %v1334_v36 = vadd.f32 %v7113_v31, %v1263_v33  ;;  %v1848_v34 = vrot.slane %v1718_v62, 7  ;;  %v2088_v33 = vpack.c.bf16 %v1847_v37, %v1846_v58 }
 0x1b1   :  { %v1335_v29 = vadd.f32 %v7113_v31, %v1264_v22  ;;  %v1018_v44 = vpop.f32.mrb[108].mxu1  ;;  %v7684_v25 = vpop.f32.mrb[108].mxu0 }
 0x1b2   :  { %v1398_v21 = vmax.f32 %v1334_v36, 0.0  ;;  %v1020_v4 = vpop.f32.mrb[109].mxu1  ;;  %v7686_v7 = vpop.f32.mrb[109].mxu0  ;;  %v7688_v19 = vpack.c.bf16 %v1848_v34, %v1847_v37  ;;  %v8985_v37 = vmax.f32 %v7587_v20, %v7589_v61  ;;  %v8987_v61 = vmax.f32 %v7597_v1, %v7601_v13 }
 0x1b3   :  { %v1399_v26 = vmax.f32 %v1335_v29, 0.0  ;;  %v1201_v15 = vmax.f32 %v1018_v44, %v1020_v4  ;;  %2661 = vmatmul.mubr.bf16.gmra.mrb[212].mxu0 %v2088_v33  ;;  %v1022_v62 = vpop.f32.mrb[110].mxu1  ;;  %v7694_v39 = vpop.f32.mrb[110].mxu0 }
 0x1b4   :  { %8984 = vst [vmem:[#allocation85_spill] sm:$0xff] %v7688_v19  ;;  %v7690_v27 = vrot.slane %v1398_v21, 4  ;;  %v1024_v22 = vpop.f32.mrb[111].mxu1  ;;  %v7697_v58 = vpack.c.bf16 %v1398_v21, %v8855_v51  ;;  %v7699_v30 = vpop.f32.mrb[111].mxu0 }
 0x1b5   :  { %v7701_v17 = vrot.slane %v1399_v26, 4  ;;  %v1265_v29 = vmax.f32 %v8985_v37, %v1201_v15  ;;  %v1202_v44 = vmax.f32 %v1022_v62, %v1024_v22  ;;  %v7716_v4 = vpack.c.bf16 %v1399_v26, %v1398_v21 }
 0x1b6   :  { %4741 = vmatprep.mubr.msk.bf16.mxu0 %vm6393_vm3, %v7697_v58  ;;  %4984 = vmatmul.mubr.msk.bf16.gmra.mrb[216].mxu1 %vm6393_vm3, %v7502_v60  ;;  %v1719_v33 = vsel %vm1414_vm1, %v7690_v27, 0.0  ;;  %v8988_v62 = vpack.c.bf16 %v7544_v32, %v7506_v24 }
 0x1b7   :  { %8986 = vst [vmem:[#allocation86_spill] sm:$0xff] %v7716_v4  ;;  %v1336_v20 = vadd.f32 %v7113_v31, %v1265_v29  ;;  %v1266_v15 = vmax.f32 %v8987_v61, %v1202_v44  ;;  %v1849_v22 = vrot.slane %v1719_v33, 7  ;;  %v1720_v60 = vsel %vm1414_vm1, %v7701_v17, 0.0 }
 0x1b8   :  { %4987 = vmatprep.mubr.msk.bf16.mxu1 %vm6436_vm4, %v8988_v62  ;;  %v1850_v37 = vrot.slane %v1720_v60, 7 }
 0x1b9   :  { %v1400_v34 = vmax.f32 %v1336_v20, 0.0  ;;  %v1337_v29 = vadd.f32 %v7113_v31, %v1266_v15  ;;  %v1028_v36 = vpop.f32.mrb[112].mxu1  ;;  %v2092_v13 = vpack.c.bf16 %v1849_v22, %v6403_v47  ;;  %v7733_v1 = vpop.f32.mrb[112].mxu0 }
 0x1ba   :  { %v1030_v44 = vpop.f32.mrb[113].mxu1  ;;  %v7735_v61 = vpop.f32.mrb[113].mxu0  ;;  %v7737_v62 = vpack.c.bf16 %v1850_v37, %v1849_v22  ;;  %v8990_v22 = vmax.f32 %v7636_v38, %v7638_v49 }
 0x1bb   :  { %v7739_v33 = vrot.slane %v1400_v34, 4  ;;  %v1401_v32 = vmax.f32 %v1337_v29, 0.0  ;;  %v1203_v60 = vmax.f32 %v1028_v36, %v1030_v44  ;;  %2669 = vmatmul.mubr.bf16.gmra.mrb[216].mxu0 %v2092_v13  ;;  %v1032_v4 = vpop.f32.mrb[114].mxu1  ;;  %v7743_v15 = vpop.f32.mrb[114].mxu0  ;;  %v7745_v19 = vpack.c.bf16 %v1400_v34, %v1399_v26 }
 0x1bc   :  { %8989 = vst [vmem:[#allocation87_spill] sm:$0xff] %v7737_v62  ;;  %v1034_v21 = vpop.f32.mrb[115].mxu1  ;;  %v7747_v24 = vpop.f32.mrb[115].mxu0  ;;  %v8993_v44 = vpack.c.bf16 %v7593_v14, %v7554_v6 }
 0x1bd   :  { %v7749_v54 = vrot.slane %v1401_v32, 4  ;;  %v1267_v62 = vmax.f32 %v8990_v22, %v1203_v60  ;;  %v1204_v29 = vmax.f32 %v1032_v4, %v1034_v21  ;;  %4744 = vmatprep.mubr.msk.bf16.mxu0 %vm6436_vm4, %v7745_v19  ;;  %v1721_v26 = vsel %vm1414_vm1, %v7739_v33, 0.0 }
 0x1be   :  { %4990 = vmatmul.mubr.msk.bf16.gmra.mrb[220].mxu1 %vm6436_vm4, %v7550_v8  ;;  %v7766_v38 = vpack.c.bf16 %v1401_v32, %v1400_v34  ;;  %v8992_v4 = vmax.f32 %v7646_v10, %v7650_v0  ;;  %v1851_v8 = vrot.slane %v1721_v26, 7 }
 0x1bf   :  { %v1338_v49 = vadd.f32 %v7113_v31, %v1267_v62  ;;  %4993 = vmatprep.mubr.msk.bf16.mxu1 %vm6436_vm4, %v8993_v44  ;;  %v1722_v60 = vsel %vm1414_vm1, %v7749_v54, 0.0 }
 0x1c0   :  { %8991 = vst [vmem:[#allocation88_spill] sm:$0xff] %v7766_v38  ;;  %v1268_v21 = vmax.f32 %v8992_v4, %v1204_v29  ;;  %v1852_v22 = vrot.slane %v1722_v60, 7  ;;  %v2096_v0 = vpack.c.bf16 %v1851_v8, %v1850_v37 }
 0x1c1   :  { %v1402_v13 = vmax.f32 %v1338_v49, 0.0  ;;  %v1038_v36 = vpop.f32.mrb[116].mxu1  ;;  %v7782_v10 = vpop.f32.mrb[116].mxu0 }
 0x1c2   :  { %v1339_v62 = vadd.f32 %v7113_v31, %v1268_v21  ;;  %v1040_v29 = vpop.f32.mrb[117].mxu1  ;;  %v7784_v4 = vpop.f32.mrb[117].mxu0  ;;  %v7786_v20 = vpack.c.bf16 %v1852_v22, %v1851_v8  ;;  %v8995_v8 = vmax.f32 %v7684_v25, %v7686_v7  ;;  %v8996_v7 = vmax.f32 %v7694_v39, %v7699_v30 }
 0x1c3   :  { %v7788_v26 = vrot.slane %v1402_v13, 4  ;;  %v1205_v14 = vmax.f32 %v1038_v36, %v1040_v29  ;;  %2677 = vmatmul.mubr.bf16.gmra.mrb[220].mxu0 %v2096_v0  ;;  %v1042_v60 = vpop.f32.mrb[118].mxu1  ;;  %v7792_v34 = vpop.f32.mrb[118].mxu0  ;;  %v7794_v37 = vpack.c.bf16 %v1402_v13, %v1401_v32 }
 0x1c4   :  { %8994 = vst [vmem:[#allocation89_spill] sm:$0xff] %v7786_v20  ;;  %v1403_v44 = vmax.f32 %v1339_v62, 0.0  ;;  %v1044_v21 = vpop.f32.mrb[119].mxu1  ;;  %v7796_v38 = vpop.f32.mrb[119].mxu0 }
 0x1c5   :  { %v1269_v20 = vmax.f32 %v8995_v8, %v1205_v14  ;;  %v1206_v62 = vmax.f32 %v1042_v60, %v1044_v21  ;;  %4747 = vmatprep.mubr.msk.bf16.mxu0 %vm6436_vm4, %v7794_v37  ;;  %v1723_v32 = vsel %vm1414_vm1, %v7788_v26, 0.0  ;;  %v8997_v60 = vpack.c.bf16 %v7642_v18, %v7603_v40 }
 0x1c6   :  { %v7798_v6 = vrot.slane %v1403_v44, 4  ;;  %4996 = vmatmul.mubr.msk.bf16.gmra.mrb[224].mxu1 %vm6436_vm4, %v7599_v41  ;;  %v7815_v25 = vpack.c.bf16 %v1403_v44, %v1402_v13  ;;  %v1853_v41 = vrot.slane %v1723_v32, 7  ;;  %v5004_v13 = vpack.c.bf16 %v7690_v27, %v8855_v51 }
 0x1c7   :  { %v1340_v14 = vadd.f32 %v7113_v31, %v1269_v20  ;;  %v1270_v29 = vmax.f32 %v8996_v7, %v1206_v62  ;;  %4999 = vmatprep.mubr.msk.bf16.mxu1 %vm6436_vm4, %v8997_v60 }
 0x1c8   :  { %v1724_v21 = vsel %vm1414_vm1, %v7798_v6, 0.0  ;;  %v2100_v30 = vpack.c.bf16 %v1853_v41, %v1852_v22  ;;  %v8999_v22 = vmax.f32 %v7733_v1, %v7735_v61  ;;  %v7859_v1 = vld [vmem:[%s8759_s3] ss:$0 sm:$0xff] }
 0x1c9   :  { %v1854_v8 = vrot.slane %v1724_v21, 7  ;;  %v1404_v0 = vmax.f32 %v1340_v14, 0.0  ;;  %v1341_v20 = vadd.f32 %v7113_v31, %v1270_v29  ;;  %v1048_v36 = vpop.f32.mrb[120].mxu1 }
 0x1ca   :  { %v1050_v39 = vpop.f32.mrb[121].mxu1 }
 0x1cb   :  { %v7831_v62 = vpack.c.bf16 %v1854_v8, %v1853_v41  ;;  %v7833_v7 = vrot.slane %v1404_v0, 4  ;;  %v1405_v49 = vmax.f32 %v1341_v20, 0.0  ;;  %v1207_v60 = vmax.f32 %v1048_v36, %v1050_v39  ;;  %2685 = vmatmul.mubr.bf16.gmra.mrb[224].mxu0 %v2100_v30  ;;  %v1052_v32 = vpop.f32.mrb[122].mxu1 }
 0x1cc   :  { %v7835_v18 = vpack.c.bf16 %v1404_v0, %v1403_v44  ;;  %v1054_v21 = vpop.f32.mrb[123].mxu1  ;;  %v9000_v36 = vmax.f32 %v7743_v15, %v7747_v24 }
 0x1cd   :  { %v7839_v14 = vrot.slane %v1405_v49, 4  ;;  %v7841_v31 = vpack.c.bf16 %v1405_v49, %v1404_v0  ;;  %v1271_v29 = vmax.f32 %v8999_v22, %v1207_v60  ;;  %v1208_v41 = vmax.f32 %v1052_v32, %v1054_v21 }
 0x1ce   :  { %4750 = vmatprep.mubr.msk.bf16.mxu0 %vm6436_vm4, %v7835_v18  ;;  %5002 = vmatmul.mubr.msk.bf16.gmra.mrb[228].mxu1 %vm6436_vm4, %v7648_v56  ;;  %v1725_v44 = vsel %vm1414_vm1, %v7833_v7, 0.0 }
 0x1cf   :  { %8998 = vst [vmem:[#allocation90_spill] sm:$0xff] %v7839_v14  ;;  %v1342_v61 = vadd.f32 %v7859_v1, %v1271_v29  ;;  %v1272_v0 = vmax.f32 %v9000_v36, %v1208_v41  ;;  %5005 = vmatprep.mubr.msk.bf16.mxu1 %vm6393_vm3, %v5004_v13  ;;  %v1855_v56 = vrot.slane %v1725_v44, 7  ;;  %v1726_v20 = vsel %vm1414_vm1, %v7839_v14, 0.0 }
 0x1d0   :  { %v1856_v30 = vrot.slane %v1726_v20, 7 }
 0x1d1   :  { %v1406_v60 = vmax.f32 %v1342_v61, 0.0  ;;  %v1343_v32 = vadd.f32 %v7859_v1, %v1272_v0  ;;  %v1058_v21 = vpop.f32.mrb[124].mxu1  ;;  %v2104_v22 = vpack.c.bf16 %v1855_v56, %v1854_v8  ;;  %v9002_v61 = vmax.f32 %v7782_v10, %v7784_v4 }
 0x1d2   :  { %v1060_v29 = vpop.f32.mrb[125].mxu1  ;;  %v7872_v49 = vpack.c.bf16 %v1856_v30, %v1855_v56  ;;  %v9003_v10 = vmax.f32 %v7792_v34, %v7796_v38 }
 0x1d3   :  { %v7874_v24 = vrot.slane %v1406_v60, 4  ;;  %v1407_v15 = vmax.f32 %v1343_v32, 0.0  ;;  %v1209_v13 = vmax.f32 %v1058_v21, %v1060_v29  ;;  %2693 = vmatmul.mubr.bf16.gmra.mrb[228].mxu0 %v2104_v22  ;;  %v1062_v41 = vpop.f32.mrb[126].mxu1  ;;  %v7877_v44 = vpack.c.bf16 %v1406_v60, %v8855_v51 }
 0x1d4   :  { %v1064_v36 = vpop.f32.mrb[127].mxu1  ;;  %v9004_v22 = vpack.c.bf16 %v7739_v33, %v7701_v17 }
 0x1d5   :  { %v7879_v20 = vrot.slane %v1407_v15, 4  ;;  %v1273_v0 = vmax.f32 %v9002_v61, %v1209_v13  ;;  %v1210_v8 = vmax.f32 %v1062_v41, %v1064_v36  ;;  %4753 = vmatprep.mubr.msk.bf16.mxu0 %vm6393_vm3, %v7877_v44  ;;  %v1727_v56 = vsel %vm1414_vm1, %v7874_v24, 0.0 }
 0x1d6   :  { %5008 = vmatmul.mubr.msk.bf16.gmra.mrb[232].mxu1 %vm6393_vm3, %v7697_v58  ;;  %v1857_v30 = vrot.slane %v1727_v56, 7  ;;  %v7892_v32 = vpack.c.bf16 %v1407_v15, %v1406_v60 }
 0x1d7   :  { %9001 = vst [vmem:[#allocation91_spill] sm:$0xff] %v7879_v20  ;;  %v1344_v21 = vadd.f32 %v7859_v1, %v1273_v0  ;;  %v1274_v4 = vmax.f32 %v9003_v10, %v1210_v8  ;;  %5011 = vmatprep.mubr.msk.bf16.mxu1 %vm6436_vm4, %v9004_v22  ;;  %v1728_v29 = vsel %vm1414_vm1, %v7879_v20, 0.0 }
 0x1d8   :  { %v2108_v60 = vpack.c.bf16 %v1857_v30, %v6403_v47  ;;  %v1858_v13 = vrot.slane %v1728_v29, 7  ;;  %v9005_v47 = vmax.f32 %v6316_v50, %v6318_v52  ;;  %v9006_v52 = vmax.f32 %v6323_v55, %v6327_v59 }
 0x1d9   :  { %v1408_v41 = vmax.f32 %v1344_v21, 0.0  ;;  %v1345_v36 = vadd.f32 %v7859_v1, %v1274_v4  ;;  %v1068_v38 = vpop.f32.mrb[128].mxu1 }
 0x1da   :  { %v1070_v34 = vpop.f32.mrb[129].mxu1  ;;  %v7909_v61 = vpack.c.bf16 %v1858_v13, %v1857_v30 }
 0x1db   :  { %v7911_v0 = vrot.slane %v1408_v41, 4  ;;  %v1409_v8 = vmax.f32 %v1345_v36, 0.0  ;;  %v1211_v56 = vmax.f32 %v1068_v38, %v1070_v34  ;;  %2701 = vmatmul.mubr.bf16.gmra.mrb[232].mxu0 %v2108_v60  ;;  %v1072_v10 = vpop.f32.mrb[130].mxu1  ;;  %v7913_v22 = vpack.c.bf16 %v1408_v41, %v1407_v15 }
 0x1dc   :  { %v1074_v39 = vpop.f32.mrb[131].mxu1  ;;  %v9007_v36 = vpack.c.bf16 %v7788_v26, %v7749_v54 }
 0x1dd   :  { %v7915_v58 = vrot.slane %v1409_v8, 4  ;;  %v1275_v21 = vmax.f32 %v9005_v47, %v1211_v56  ;;  %v1212_v4 = vmax.f32 %v1072_v10, %v1074_v39  ;;  %4756 = vmatprep.mubr.msk.bf16.mxu0 %vm6436_vm4, %v7913_v22  ;;  %v1729_v30 = vsel %vm1414_vm1, %v7911_v0, 0.0 }
 0x1de   :  { %5014 = vmatmul.mubr.msk.bf16.gmra.mrb[236].mxu1 %vm6436_vm4, %v7745_v19  ;;  %v1859_v15 = vrot.slane %v1729_v30, 7  ;;  %v5034_v29 = vpack.c.bf16 %v7911_v0, %v7879_v20  ;;  %v7930_v60 = vpack.c.bf16 %v1409_v8, %v1408_v41 }
 0x1df   :  { %v1346_v50 = vadd.f32 %v7859_v1, %v1275_v21  ;;  %v1276_v39 = vmax.f32 %v9006_v52, %v1212_v4  ;;  %5017 = vmatprep.mubr.msk.bf16.mxu1 %vm6436_vm4, %v9007_v36  ;;  %v1730_v19 = vsel %vm1414_vm1, %v7915_v58, 0.0  ;;  %v5226_v38 = vpack.c.bf16 %v7915_v58, %v7911_v0 }
 0x1e0   :  { %v2112_v41 = vpack.c.bf16 %v1859_v15, %v1858_v13  ;;  %v1860_v34 = vrot.slane %v1730_v19, 7  ;;  %v9008_v13 = vmax.f32 %v6335_v63, %v6337_v2  ;;  %v9009_v2 = vmax.f32 %v6342_v5, %v6346_v9 }
 0x1e1   :  { %v1410_v56 = vmax.f32 %v1346_v50, 0.0  ;;  %v1347_v10 = vadd.f32 %v7859_v1, %v1276_v39  ;;  %v1078_v47 = vpop.f32.mrb[132].mxu1 }
 0x1e2   :  { %v1080_v55 = vpop.f32.mrb[133].mxu1  ;;  %v7946_v59 = vpack.c.bf16 %v1860_v34, %v1859_v15 }
 0x1e3   :  { %v7948_v21 = vrot.slane %v1410_v56, 4  ;;  %v1411_v4 = vmax.f32 %v1347_v10, 0.0  ;;  %v1213_v30 = vmax.f32 %v1078_v47, %v1080_v55  ;;  %2709 = vmatmul.mubr.bf16.gmra.mrb[236].mxu0 %v2112_v41  ;;  %v1082_v52 = vpop.f32.mrb[134].mxu1  ;;  %v4758_v36 = vpack.c.bf16 %v1410_v56, %v1409_v8 }
 0x1e4   :  { %v1084_v20 = vpop.f32.mrb[135].mxu1  ;;  %v9010_v10 = vpack.c.bf16 %v7833_v7, %v7798_v6 }
 0x1e5   :  { %v7950_v14 = vrot.slane %v1411_v4, 4  ;;  %v1277_v50 = vmax.f32 %v9008_v13, %v1213_v30  ;;  %v1214_v19 = vmax.f32 %v1082_v52, %v1084_v20  ;;  %4759 = vmatprep.mubr.msk.bf16.mxu0 %vm6436_vm4, %v4758_v36  ;;  %v1731_v15 = vsel %vm1414_vm1, %v7948_v21, 0.0 }
 0x1e6   :  { %5020 = vmatmul.mubr.msk.bf16.gmra.mrb[240].mxu1 %vm6436_vm4, %v7794_v37  ;;  %v1861_v39 = vrot.slane %v1731_v15, 7  ;;  %v5040_v8 = vpack.c.bf16 %v7948_v21, %v7915_v58  ;;  %v7964_v41 = vpack.c.bf16 %v1411_v4, %v1410_v56 }
 0x1e7   :  { %v1348_v63 = vadd.f32 %v7859_v1, %v1277_v50  ;;  %v1278_v20 = vmax.f32 %v9009_v2, %v1214_v19  ;;  %5023 = vmatprep.mubr.msk.bf16.mxu1 %vm6436_vm4, %v9010_v10  ;;  %v1732_v37 = vsel %vm1414_vm1, %v7950_v14, 0.0  ;;  %v5232_v47 = vpack.c.bf16 %v7950_v14, %v7948_v21  ;;  %v5956_v21 = vld [vmem:[%s8761_s8 + $0x28] sm:$0xff]  }
 0x1e8   :  { %v2116_v56 = vpack.c.bf16 %v1861_v39, %v1860_v34  ;;  %v1862_v55 = vrot.slane %v1732_v37, 7  ;;  %v5028_v19 = vpack.c.bf16 %v7874_v24, %v8855_v51 }
 0x1e9   :  { %v1412_v30 = vmax.f32 %v1348_v63, 0.0  ;;  %v1349_v52 = vadd.f32 %v7859_v1, %v1278_v20 }
 0x1ea   :  { %v7980_v13 = vpack.c.bf16 %v1862_v55, %v1861_v39 }
 0x1eb   :  { %v7982_v5 = vrot.slane %v1412_v30, 4  ;;  %v1413_v9 = vmax.f32 %v1349_v52, 0.0  ;;  %2717 = vmatmul.mubr.bf16.gmra.mrb[240].mxu0 %v2116_v56  ;;  %v4761_v50 = vpack.c.bf16 %v1412_v30, %v1411_v4  ;;  %v9023_v52 = vld [vmem:[#allocation5_spill] sm:$0xff] }
 0x1ed   :  { %v7986_v15 = vrot.slane %v1413_v9, 4  ;;  %v7988_v2 = vpack.c.bf16 %v1413_v9, %v1412_v30  ;;  %4762 = vmatprep.mubr.msk.bf16.mxu0 %vm6436_vm4, %v4761_v50  ;;  %v1733_v1 = vsel %vm1414_vm1, %v7982_v5, 0.0  ;;  %v5046_v34 = vpack.c.bf16 %v7982_v5, %v7950_v14  ;;  %v9022_v30 = vld [vmem:[#allocation6_spill] sm:$0xff] }
 0x1ee   :  { %5026 = vmatmul.mubr.msk.bf16.gmra.mrb[244].mxu1 %vm6436_vm4, %v7835_v18  ;;  %v1863_v4 = vrot.slane %v1733_v1, 7  ;;  %v3836_v18 = vsel %vm3834_vm5, %v7354_v3, 0  ;;  %v9013_v3 = vld [vmem:[#allocation11_spill] sm:$0xff]  ;;  %v9024_v9 = vpack.c.bf16 %v9022_v30, %v9023_v52  ;;  %v9031_v1 = vpack.c.bf16 %v6640_v12, %v6623_v48  ;;  %v9036_v48 = vld [vmem:[#allocation29_spill] sm:$0xff]  ;;  %v9037_v12 = vld [vmem:[#allocation18_spill] sm:$0xff] }
 0x1ef   :  { %5029 = vmatprep.mubr.msk.bf16.mxu1 %vm6393_vm3, %v5028_v19  ;;  %v1734_v39 = vsel %vm1414_vm1, %v7986_v15, 0.0  ;;  %v5238_v63 = vpack.c.bf16 %v7986_v15, %v7982_v5  ;;  %v9053_v30 = vld [vmem:[#allocation27_spill] sm:$0xff] }
 0x1f0   :  { %v2120_v20 = vpack.c.bf16 %v1863_v4, %v1862_v55  ;;  %v1864_v10 = vrot.slane %v1734_v39, 7  ;;  %v9021_v55 = vld [vmem:[#allocation15_spill] sm:$0xff]  ;;  %v9034_v39 = vld [vmem:[#allocation14_spill] sm:$0xff] }
 0x1f2   :  { %v8005_v37 = vpack.c.bf16 %v1864_v10, %v1863_v4  ;;  %v9033_v4 = vld [vmem:[#allocation26_spill] sm:$0xff]  ;;  %v9038_v10 = vld [vmem:[#allocation17_spill] sm:$0xff] }
 0x1f3   :  { %2725 = vmatmul.mubr.bf16.gmra.mrb[244].mxu0 %v2120_v20  ;;  %v9035_v20 = vpack.c.bf16 %v6706_v46, %v9034_v39  ;;  %v9040_v46 = vld [vmem:[#allocation30_spill] sm:$0xff] }
 0x1f4   :  { %4765 = vmatprep.mubr.msk.bf16.mxu0 %vm6436_vm4, %v6415_v57 }
 0x1f6   :  { %5032 = vmatmul.mubr.msk.bf16.gmra.mrb[248].mxu1 %vm6393_vm3, %v7877_v44  ;;  %v9015_v44 = vld [vmem:[#allocation2_spill] sm:$0xff] }
 0x1f7   :  { %5035 = vmatprep.mubr.msk.bf16.mxu1 %vm6436_vm4, %v5034_v29  ;;  %v9017_v29 = vld [vmem:[#allocation12_spill] sm:$0xff] }
 0x1fb   :  { %2766 = vmatmul.mubr.bf16.vlgmr.msra.gmra.mrb[120].mxu0 %v6456_v43  ;;  %v9012_v43 = vld [vmem:[#allocation8_spill] sm:$0xff] }
 0x1fc   :  { %4768 = vmatprep.mubr.msk.bf16.mxu0 %vm6436_vm4, %v6475_v16  ;;  %3842 = vmatpush1.bf16.msra.mxu0 %v3836_v18  ;;  %v9039_v18 = vpack.c.bf16 %v9037_v12, %v9038_v10  ;;  %v9067_v12 = vld [vmem:[#allocation40_spill] sm:$0xff]  ;;  %v9068_v10 = vld [vmem:[#allocation39_spill] sm:$0xff] }
 0x1fe   :  { %5038 = vmatmul.mubr.msk.bf16.gmra.mrb[252].mxu1 %vm6436_vm4, %v7913_v22 }
 0x1ff   :  { %5041 = vmatprep.mubr.msk.bf16.mxu1 %vm6436_vm4, %v5040_v8  ;;  %v9019_v8 = vld [vmem:[#allocation4_spill] sm:$0xff] }
 0x200   :  { %v9020_v56 = vpack.c.bf16 %v6467_v53, %v9019_v8  ;;  %v9026_v53 = vld [vmem:[#allocation19_spill] sm:$0xff]  ;;  %v9050_v8 = vld [vmem:[#allocation38_spill] sm:$0xff] }
 0x203   :  { %2774 = vmatmul.mubr.bf16.gmra.mrb[124].mxu0 %v6498_v28  ;;  %v9014_v28 = vld [vmem:[#allocation3_spill] sm:$0xff] }
 0x204   :  { %4771 = vmatprep.mubr.msk.bf16.mxu0 %vm6436_vm4, %v9011_v42  ;;  %v9016_v22 = vpack.c.bf16 %v9014_v28, %v9015_v44  ;;  %v9045_v28 = vld [vmem:[#allocation34_spill] sm:$0xff]  ;;  %v9046_v44 = vld [vmem:[#allocation37_spill] sm:$0xff] }
 0x206   :  { %5044 = vmatmul.mubr.msk.bf16.gmra.mrb[0].mxu1 %vm6436_vm4, %v4758_v36  ;;  %v9018_v36 = vld [vmem:[#allocation13_spill] sm:$0xff] }
 0x207   :  { %5047 = vmatprep.mubr.msk.bf16.mxu1 %vm6436_vm4, %v5046_v34  ;;  %v9032_v34 = vld [vmem:[#allocation23_spill] sm:$0xff] }
 0x20b   :  { %2782 = vmatmul.mubr.bf16.gmra.mrb[128].mxu0 %v9012_v43  ;;  %v9043_v43 = vld [vmem:[#allocation21_spill] sm:$0xff] }
 0x20c   :  { %4774 = vmatprep.mubr.msk.bf16.mxu0 %vm6436_vm4, %v9013_v3 }
 0x20e   :  { %5050 = vmatmul.mubr.msk.bf16.gmra.mrb[4].mxu1 %vm6436_vm4, %v4761_v50  ;;  %v9028_v50 = vld [vmem:[#allocation9_spill] sm:$0xff] }
 0x20f   :  { %5053 = vmatprep.mubr.msk.bf16.mxu1 %vm6436_vm4, %v9016_v22  ;;  %v9047_v22 = vld [vmem:[#allocation25_spill] sm:$0xff] }
 0x213   :  { %2790 = vmatmul.mubr.bf16.gmra.mrb[132].mxu0 %v9017_v29  ;;  %v9048_v29 = vld [vmem:[#allocation24_spill] sm:$0xff] }
 0x214   :  { %4777 = vmatprep.mubr.msk.bf16.mxu0 %vm6436_vm4, %v9018_v36 }
 0x216   :  { %5056 = vmatmul.mubr.msk.bf16.vlgmr.msra.gmra.mrb[136].mxu1 %vm6436_vm4, %v6415_v57  ;;  %v9025_v57 = vld [vmem:[#allocation16_spill] sm:$0xff] }
 0x217   :  { %5059 = vmatprep.mubr.msk.bf16.mxu1 %vm6436_vm4, %v9020_v56  ;;  %v9051_v56 = vld [vmem:[#allocation41_spill] sm:$0xff] }
 0x21b   :  { %2798 = vmatmul.mubr.bf16.gmra.mrb[136].mxu0 %v6686_v45  ;;  %v9027_v45 = vld [vmem:[#allocation10_spill] sm:$0xff] }
 0x21c   :  { %4780 = vmatprep.mubr.msk.bf16.mxu0 %vm6436_vm4, %v9021_v55  ;;  %v9029_v19 = vpack.c.bf16 %v9027_v45, %v9028_v50  ;;  %v5945_v50 = vld [vmem:[%s8761_s8 + $0x40] sm:$0xff]  }
 0x21d   :  { %5533 = vmatprep.subr.bf16.mxu1 %v5945_v50  ;;  %5573 = vmatprep.subr.bf16.mxu0 %v5945_v50  ;;  %v9088_v50 = vld [vmem:[#allocation55_spill] sm:$0xff] }
 0x21e   :  { %5062 = vmatmul.mubr.msk.bf16.gmra.mrb[140].mxu1 %vm6436_vm4, %v6475_v16  ;;  %v9030_v16 = vld [vmem:[#allocation20_spill] sm:$0xff] }
 0x21f   :  { %5065 = vmatprep.mubr.msk.bf16.mxu1 %vm6436_vm4, %v9024_v9  ;;  %v9056_v9 = vld [vmem:[#allocation45_spill] sm:$0xff] }
 0x223   :  { %2806 = vmatmul.mubr.bf16.gmra.mrb[140].mxu0 %v9025_v57  ;;  %v9057_v57 = vld [vmem:[#allocation32_spill] sm:$0xff] }
 0x224   :  { %4783 = vmatprep.mubr.msk.bf16.mxu0 %vm6436_vm4, %v9026_v53 }
 0x226   :  { %5068 = vmatmul.mubr.msk.bf16.gmra.mrb[144].mxu1 %vm6436_vm4, %v9011_v42  ;;  %v9041_v42 = vld [vmem:[#allocation33_spill] sm:$0xff] }
 0x227   :  { %5071 = vmatprep.mubr.msk.bf16.mxu1 %vm6436_vm4, %v9029_v19  ;;  %v8171_v19 = vld [vmem:[%s8761_s8] sm:$0xff]  }
 0x228   :  { %5534 = vmatpush3.bf16.msra.mxu1 %v8171_v19 }
 0x22b   :  { %2814 = vmatmul.mubr.bf16.gmra.mrb[144].mxu0 %v9030_v16  ;;  %v9060_v16 = vld [vmem:[#allocation46_spill] sm:$0xff] }
 0x22c   :  { %4786 = vmatprep.mubr.msk.bf16.mxu0 %vm6436_vm4, %v6825_v35 }
 0x22e   :  { %5074 = vmatmul.mubr.msk.bf16.gmra.mrb[148].mxu1 %vm6436_vm4, %v9013_v3 }
 0x22f   :  { %5077 = vmatprep.mubr.msk.bf16.mxu1 %vm6436_vm4, %v9031_v1  ;;  %v9061_v1 = vld [vmem:[#allocation49_spill] sm:$0xff] }
 0x233   :  { %2822 = vmatmul.mubr.bf16.gmra.mrb[148].mxu0 %v9032_v34  ;;  %v9062_v34 = vld [vmem:[#allocation36_spill] sm:$0xff] }
 0x234   :  { %4789 = vmatprep.mubr.msk.bf16.mxu0 %vm6436_vm4, %v9033_v4 }
 0x236   :  { %5080 = vmatmul.mubr.msk.bf16.gmra.mrb[152].mxu1 %vm6436_vm4, %v9018_v36  ;;  %v9049_v36 = vpack.c.bf16 %v9047_v22, %v9048_v29  ;;  %v9077_v22 = vld [vmem:[#allocation48_spill] sm:$0xff]  ;;  %v9078_v29 = vld [vmem:[#allocation47_spill] sm:$0xff] }
 0x237   :  { %5083 = vmatprep.mubr.msk.bf16.mxu1 %vm6436_vm4, %v9035_v20  ;;  %v9065_v20 = vld [vmem:[#allocation50_spill] sm:$0xff] }
 0x23b   :  { %2830 = vmatmul.mubr.bf16.gmra.mrb[152].mxu0 %v6920_v11  ;;  %v9042_v11 = vld [vmem:[#allocation22_spill] sm:$0xff] }
 0x23c   :  { %4792 = vmatprep.mubr.msk.bf16.mxu0 %vm6436_vm4, %v9036_v48  ;;  %v9044_v3 = vpack.c.bf16 %v9042_v11, %v9043_v43  ;;  %v9072_v11 = vld [vmem:[#allocation44_spill] sm:$0xff]  ;;  %v9073_v43 = vld [vmem:[#allocation43_spill] sm:$0xff] }
 0x23e   :  { %5086 = vmatmul.mubr.msk.bf16.gmra.mrb[156].mxu1 %vm6436_vm4, %v9021_v55  ;;  %v9052_v55 = vld [vmem:[#allocation28_spill] sm:$0xff] }
 0x23f   :  { %5089 = vmatprep.mubr.msk.bf16.mxu1 %vm6436_vm4, %v9039_v18  ;;  %v9054_v52 = vpack.c.bf16 %v9052_v55, %v9053_v30  ;;  %v9069_v18 = vpack.c.bf16 %v9067_v12, %v9068_v10  ;;  %v8231_v55 = vld [vmem:[%s8761_s8 + $0x8] sm:$0xff]   ;;  %v9081_v30 = vld [vmem:[#allocation65_spill] sm:$0xff]  ;;  %v9097_v10 = vld [vmem:[#allocation64_spill] sm:$0xff] }
 0x240   :  { %v9096_v12 = vld [vmem:[#allocation77_spill] sm:$0xff] }
 0x243   :  { %2838 = vmatmul.mubr.bf16.gmra.mrb[156].mxu0 %v9040_v46  ;;  %v9070_v46 = vld [vmem:[#allocation54_spill] sm:$0xff] }
 0x244   :  { %4795 = vmatprep.mubr.msk.bf16.mxu0 %vm6436_vm4, %v9041_v42 }
 0x246   :  { %5092 = vmatmul.mubr.msk.bf16.gmra.mrb[160].mxu1 %vm6436_vm4, %v9026_v53  ;;  %v9058_v53 = vld [vmem:[#allocation31_spill] sm:$0xff] }
 0x247   :  { %5095 = vmatprep.mubr.msk.bf16.mxu1 %vm6436_vm4, %v9044_v3  ;;  %v9059_v45 = vpack.c.bf16 %v9057_v57, %v9058_v53  ;;  %v9074_v3 = vpack.c.bf16 %v9072_v11, %v9073_v43  ;;  %v9085_v57 = vld [vmem:[#allocation66_spill] sm:$0xff]  ;;  %v9086_v53 = vld [vmem:[#allocation69_spill] sm:$0xff]  ;;  %v8291_v43 = vld [vmem:[%s8761_s8 + $0x10] sm:$0xff]  }
 0x248   :  { %v9100_v11 = vld [vmem:[#allocation78_spill] sm:$0xff] }
 0x24b   :  { %2846 = vmatmul.mubr.bf16.gmra.mrb[160].mxu0 %v9045_v28  ;;  %v9075_v28 = vld [vmem:[#allocation58_spill] sm:$0xff] }
 0x24c   :  { %4798 = vmatprep.mubr.msk.bf16.mxu0 %vm6436_vm4, %v9046_v44 }
 0x24e   :  { %5098 = vmatmul.mubr.msk.bf16.gmra.mrb[164].mxu1 %vm6436_vm4, %v6825_v35  ;;  %v9055_v35 = vld [vmem:[#allocation42_spill] sm:$0xff] }
 0x24f   :  { %5101 = vmatprep.mubr.msk.bf16.mxu1 %vm6436_vm4, %v9049_v36  ;;  %v9079_v36 = vpack.c.bf16 %v9077_v22, %v9078_v29  ;;  %v9105_v29 = vld [vmem:[#allocation81_spill] sm:$0xff] }
 0x253   :  { %2854 = vmatmul.mubr.bf16.gmra.mrb[164].mxu0 %v9050_v8  ;;  %v8225_v8 = vld [vmem:[%s8761_s8 + $0x48] sm:$0xff]  }
 0x254   :  { %4801 = vmatprep.mubr.msk.bf16.mxu0 %vm6436_vm4, %v9051_v56  ;;  %5535 = vmatprep.subr.bf16.mxu1 %v8225_v8 }
 0x255   :  { %5536 = vmatpush3.bf16.msra.mxu1 %v8231_v55 }
 0x256   :  { %5104 = vmatmul.mubr.msk.bf16.gmra.mrb[168].mxu1 %vm6436_vm4, %v9033_v4  ;;  %v9063_v4 = vld [vmem:[#allocation35_spill] sm:$0xff] }
 0x257   :  { %5107 = vmatprep.mubr.msk.bf16.mxu1 %vm6436_vm4, %v9054_v52  ;;  %v9064_v39 = vpack.c.bf16 %v9062_v34, %v9063_v4  ;;  %v9082_v52 = vld [vmem:[#allocation52_spill] sm:$0xff]  ;;  %v9091_v34 = vld [vmem:[#allocation73_spill] sm:$0xff] }
 0x258   :  { %v9092_v4 = vld [vmem:[#allocation60_spill] sm:$0xff] }
 0x25b   :  { %2862 = vmatmul.mubr.bf16.gmra.mrb[168].mxu0 %v9055_v35  ;;  %v9083_v35 = vld [vmem:[#allocation51_spill] sm:$0xff] }
 0x25c   :  { %4804 = vmatprep.mubr.msk.bf16.mxu0 %vm6436_vm4, %v9056_v9 }
 0x25e   :  { %5110 = vmatmul.mubr.msk.bf16.gmra.mrb[172].mxu1 %vm6436_vm4, %v9036_v48  ;;  %v9066_v48 = vld [vmem:[#allocation53_spill] sm:$0xff] }
 0x25f   :  { %5113 = vmatprep.mubr.msk.bf16.mxu1 %vm6436_vm4, %v9059_v45  ;;  %v9087_v45 = vld [vmem:[#allocation56_spill] sm:$0xff] }
 0x263   :  { %2870 = vmatmul.mubr.bf16.gmra.mrb[172].mxu0 %v9060_v16  ;;  %v9089_v16 = vpack.c.bf16 %v9087_v45, %v9088_v50  ;;  %v9113_v45 = vld [vmem:[#allocation75_spill] sm:$0xff] }
 0x264   :  { %4807 = vmatprep.mubr.msk.bf16.mxu0 %vm6436_vm4, %v9061_v1 }
 0x266   :  { %5116 = vmatmul.mubr.msk.bf16.gmra.mrb[176].mxu1 %vm6436_vm4, %v9041_v42  ;;  %v9071_v42 = vld [vmem:[#allocation57_spill] sm:$0xff] }
 0x267   :  { %5119 = vmatprep.mubr.msk.bf16.mxu1 %vm6436_vm4, %v9064_v39  ;;  %v9093_v39 = vld [vmem:[#allocation59_spill] sm:$0xff] }
 0x26b   :  { %2878 = vmatmul.mubr.bf16.gmra.mrb[176].mxu0 %v9065_v20  ;;  %v9094_v20 = vpack.c.bf16 %v9092_v4, %v9093_v39  ;;  %v9119_v39 = vld [vmem:[#allocation89_spill] sm:$0xff] }
 0x26c   :  { %4810 = vmatprep.mubr.msk.bf16.mxu0 %vm6436_vm4, %v9066_v48 }
 0x26e   :  { %5122 = vmatmul.mubr.msk.bf16.gmra.mrb[180].mxu1 %vm6436_vm4, %v9046_v44  ;;  %v9076_v44 = vld [vmem:[#allocation61_spill] sm:$0xff] }
 0x26f   :  { %5125 = vmatprep.mubr.msk.bf16.mxu1 %vm6436_vm4, %v9069_v18  ;;  %v9098_v18 = vld [vmem:[#allocation63_spill] sm:$0xff] }
 0x273   :  { %2886 = vmatmul.mubr.bf16.gmra.mrb[180].mxu0 %v9070_v46  ;;  %v9099_v46 = vpack.c.bf16 %v9097_v10, %v9098_v18 }
 0x274   :  { %4813 = vmatprep.mubr.msk.bf16.mxu0 %vm6436_vm4, %v9071_v42 }
 0x276   :  { %5128 = vmatmul.mubr.msk.bf16.gmra.mrb[184].mxu1 %vm6436_vm4, %v9051_v56  ;;  %v9080_v56 = vld [vmem:[#allocation62_spill] sm:$0xff] }
 0x277   :  { %5131 = vmatprep.mubr.msk.bf16.mxu1 %vm6436_vm4, %v9074_v3  ;;  %v9101_v3 = vld [vmem:[#allocation80_spill] sm:$0xff] }
 0x27b   :  { %2894 = vmatmul.mubr.bf16.gmra.mrb[184].mxu0 %v9075_v28  ;;  %v9102_v28 = vld [vmem:[#allocation68_spill] sm:$0xff] }
 0x27c   :  { %4816 = vmatprep.mubr.msk.bf16.mxu0 %vm6436_vm4, %v9076_v44 }
 0x27e   :  { %5134 = vmatmul.mubr.msk.bf16.gmra.mrb[188].mxu1 %vm6436_vm4, %v9056_v9  ;;  %v9084_v9 = vpack.c.bf16 %v9082_v52, %v9083_v35  ;;  %v9108_v52 = vld [vmem:[#allocation71_spill] sm:$0xff] }
 0x27f   :  { %5137 = vmatprep.mubr.msk.bf16.mxu1 %vm6436_vm4, %v9079_v36  ;;  %v9106_v36 = vld [vmem:[#allocation84_spill] sm:$0xff] }
 0x283   :  { %2902 = vmatmul.mubr.bf16.gmra.mrb[188].mxu0 %v9080_v56  ;;  %v9107_v56 = vld [vmem:[#allocation72_spill] sm:$0xff] }
 0x284   :  { %4819 = vmatprep.mubr.msk.bf16.mxu0 %vm6436_vm4, %v9081_v30  ;;  %v9109_v35 = vpack.c.bf16 %v9107_v56, %v9108_v52  ;;  %v5969_v52 = vmov 1983009808  }
 0x286   :  { %5140 = vmatmul.mubr.msk.bf16.gmra.mrb[192].mxu1 %vm6436_vm4, %v9061_v1  ;;  %v9090_v1 = vld [vmem:[#allocation70_spill] sm:$0xff] }
 0x287   :  { %5143 = vmatprep.mubr.msk.bf16.mxu1 %vm6436_vm4, %v9084_v9  ;;  %v9111_v9 = vld [vmem:[#allocation86_spill] sm:$0xff] }
 0x28b   :  { %2910 = vmatmul.mubr.bf16.gmra.mrb[192].mxu0 %v9085_v57  ;;  %v9112_v57 = vld [vmem:[#allocation76_spill] sm:$0xff] }
 0x28c   :  { %4822 = vmatprep.mubr.msk.bf16.mxu0 %vm6436_vm4, %v9086_v53  ;;  %v9114_v50 = vpack.c.bf16 %v9112_v57, %v9113_v45 }
 0x28e   :  { %5146 = vmatmul.mubr.msk.bf16.gmra.mrb[196].mxu1 %vm6436_vm4, %v9066_v48  ;;  %v9095_v48 = vld [vmem:[#allocation74_spill] sm:$0xff] }
 0x28f   :  { %5149 = vmatprep.mubr.msk.bf16.mxu1 %vm6436_vm4, %v9089_v16  ;;  %v9116_v16 = vld [vmem:[#allocation88_spill] sm:$0xff] }
 0x293   :  { %2918 = vmatmul.mubr.bf16.gmra.mrb[196].mxu0 %v9090_v1  ;;  %v9117_v1 = vld [vmem:[#allocation79_spill] sm:$0xff] }
 0x294   :  { %4825 = vmatprep.mubr.msk.bf16.mxu0 %vm6436_vm4, %v9091_v34  ;;  %v9118_v4 = vpack.c.bf16 %v7603_v40, %v9117_v1  ;;  %v9120_v40 = vld [vmem:[#allocation83_spill] sm:$0xff] }
 0x296   :  { %5152 = vmatmul.mubr.msk.bf16.gmra.mrb[200].mxu1 %vm6436_vm4, %v9071_v42  ;;  %v8285_v42 = vld [vmem:[%s8761_s8 + $0x50] sm:$0xff]  }
 0x297   :  { %5155 = vmatprep.mubr.msk.bf16.mxu1 %vm6436_vm4, %v9094_v20  ;;  %5537 = vmatprep.subr.bf16.mxu1 %v8285_v42  ;;  %v8351_v20 = vld [vmem:[%s8761_s8 + $0x18] sm:$0xff]  }
 0x298   :  { %5538 = vmatpush3.bf16.msra.mxu1 %v8291_v43 }
 0x29b   :  { %2926 = vmatmul.mubr.bf16.gmra.mrb[200].mxu0 %v9095_v48  ;;  %v9121_v48 = vld [vmem:[#allocation82_spill] sm:$0xff] }
 0x29c   :  { %4828 = vmatprep.mubr.msk.bf16.mxu0 %vm6436_vm4, %v9096_v12 }
 0x29e   :  { %5158 = vmatmul.mubr.msk.bf16.gmra.mrb[204].mxu1 %vm6436_vm4, %v9076_v44  ;;  %v9103_v44 = vld [vmem:[#allocation67_spill] sm:$0xff] }
 0x29f   :  { %5161 = vmatprep.mubr.msk.bf16.mxu1 %vm6436_vm4, %v9099_v46  ;;  %v9104_v22 = vpack.c.bf16 %v9102_v28, %v9103_v44  ;;  %v9123_v46 = vpack.c.bf16 %v7701_v17, %v7690_v27  ;;  %v9124_v17 = vpack.c.bf16 %v7749_v54, %v7739_v33  ;;  %v9125_v54 = vpack.c.bf16 %v7798_v6, %v7788_v26 }
 0x2a3   :  { %2934 = vmatmul.mubr.bf16.gmra.mrb[204].mxu0 %v9100_v11 }
 0x2a4   :  { %4831 = vmatprep.mubr.msk.bf16.mxu0 %vm6436_vm4, %v9101_v3 }
 0x2a6   :  { %5164 = vmatmul.mubr.msk.bf16.gmra.mrb[208].mxu1 %vm6436_vm4, %v9081_v30  ;;  %v9110_v30 = vld [vmem:[#allocation85_spill] sm:$0xff] }
 0x2a7   :  { %5167 = vmatprep.mubr.msk.bf16.mxu1 %vm6436_vm4, %v9104_v22 }
 0x2ab   :  { %2942 = vmatmul.mubr.bf16.gmra.mrb[208].mxu0 %v9105_v29  ;;  %v8413_v29 = vld [vmem:[%s8761_s8 + $0x60] sm:$0xff]  }
 0x2ac   :  { %4834 = vmatprep.mubr.msk.bf16.mxu0 %vm6436_vm4, %v9106_v36 }
 0x2ae   :  { %5170 = vmatmul.mubr.msk.bf16.gmra.mrb[212].mxu1 %vm6436_vm4, %v9086_v53  ;;  %v9115_v53 = vld [vmem:[#allocation87_spill] sm:$0xff] }
 0x2af   :  { %5173 = vmatprep.mubr.msk.bf16.mxu1 %vm6436_vm4, %v9109_v35  ;;  %v3787_v35 = vunpack.c.l.s4 %v5969_v52  ;;  %v3771_v52 = vld [vmem:[%s8762_s1 + $0x8] sm:$0x3] }
 0x2b1   :  { %v3788_v1 = vunpack.c.0.s8 %v3787_v35  ;;  %v3772_v35 = vld [vmem:[%s8762_s1 + $0xa] sm:$0x3] }
 0x2b3   :  { %2950 = vmatmul.mubr.bf16.gmra.mrb[212].mxu0 %v9110_v30  ;;  %v3789_v30 = vlaneseq }
 0x2b4   :  { %4837 = vmatprep.mubr.msk.bf16.mxu0 %vm6436_vm4, %v9111_v9 }
 0x2b6   :  { %5176 = vmatmul.mubr.msk.bf16.gmra.mrb[216].mxu1 %vm6436_vm4, %v9091_v34  ;;  %v8345_v34 = vld [vmem:[%s8761_s8 + $0x58] sm:$0xff]  }
 0x2b7   :  { %5179 = vmatprep.mubr.msk.bf16.mxu1 %vm6436_vm4, %v9114_v50  ;;  %5539 = vmatprep.subr.bf16.mxu1 %v8345_v34 }
 0x2b8   :  { %5540 = vmatpush3.bf16.msra.mxu1 %v8351_v20 }
 0x2b9   :  { %5541 = vmatprep.subr.bf16.mxu1 %v8413_v29 }
 0x2bb   :  { %2958 = vmatmul.mubr.bf16.gmra.mrb[216].mxu0 %v9115_v53 }
 0x2bc   :  { %4840 = vmatprep.mubr.msk.bf16.mxu0 %vm6436_vm4, %v9116_v16 }
 0x2be   :  { %5182 = vmatmul.mubr.msk.bf16.gmra.mrb[220].mxu1 %vm6436_vm4, %v9096_v12  ;;  %v9122_v12 = vpack.c.bf16 %v9120_v40, %v9121_v48  ;;  %v3770_v48 = vld [vmem:[%s8762_s1 + $0x6] sm:$0x3] }
 0x2bf   :  { %5185 = vmatprep.mubr.msk.bf16.mxu1 %vm6436_vm4, %v9118_v4  ;;  %v3790_v4 = vshrl.u32 %v3789_v30, 7 }
 0x2c3   :  { %2966 = vmatmul.mubr.bf16.gmra.mrb[220].mxu0 %v9119_v39 }
 0x2c4   :  { %4843 = vmatprep.mubr.msk.bf16.mxu0 %vm6436_vm4, %v7815_v25 }
 0x2c6   :  { %5188 = vmatmul.mubr.msk.bf16.gmra.mrb[224].mxu1 %vm6436_vm4, %v9101_v3 }
 0x2c7   :  { %5191 = vmatprep.mubr.msk.bf16.mxu1 %vm6436_vm4, %v9122_v12 }
 0x2cb   :  { %2974 = vmatmul.mubr.bf16.gmra.mrb[224].mxu0 %v7831_v62 }
 0x2cc   :  { %4846 = vmatprep.mubr.msk.bf16.mxu0 %vm6436_vm4, %v7841_v31 }
 0x2ce   :  { %v2767_v10 = vpop.f32.mrb[120].mxu0  ;;  %5194 = vmatmul.mubr.msk.bf16.gmra.mrb[228].mxu1 %vm6436_vm4, %v9106_v36  ;;  %v8419_v36 = vld [vmem:[%s8761_s8 + $0x20] sm:$0xff]  }
 0x2cf   :  { %v2769_v18 = vpop.f32.mrb[121].mxu0  ;;  %5197 = vmatprep.mubr.msk.bf16.mxu1 %vm6436_vm4, %v9123_v46  ;;  %5542 = vmatpush3.bf16.msra.mxu1 %v8419_v36  ;;  %v9128_v46 = vld [vmem:[#allocation91_spill] sm:$0xff] }
 0x2d0   :  { %v2770_v11 = vpop.f32.mrb[122].mxu0 }
 0x2d1   :  { %v2772_v3 = vpop.f32.mrb[123].mxu0 }
 0x2d3   :  { %2982 = vmatmul.mubr.bf16.gmra.mrb[228].mxu0 %v7872_v49 }
 0x2d4   :  { %4849 = vmatprep.mubr.msk.bf16.mxu0 %vm6436_vm4, %v7892_v32 }
 0x2d6   :  { %v8382_v62 = vpop.f32.mrb[124].mxu0  ;;  %5200 = vmatmul.mubr.msk.bf16.gmra.mrb[232].mxu1 %vm6436_vm4, %v9111_v9 }
 0x2d7   :  { %v2777_v28 = vpop.f32.mrb[125].mxu0  ;;  %5203 = vmatprep.mubr.msk.bf16.mxu1 %vm6436_vm4, %v9124_v17  ;;  %v3791_v17 = vsub.s32 %v3788_v1, %v3790_v4 }
 0x2d8   :  { %v8392_v27 = vpop.f32.mrb[126].mxu0 }
 0x2d9   :  { %v2780_v49 = vpop.f32.mrb[127].mxu0 }
 0x2db   :  { %2990 = vmatmul.mubr.bf16.gmra.mrb[232].mxu0 %v7909_v61 }
 0x2dc   :  { %4852 = vmatprep.mubr.msk.bf16.mxu0 %vm6436_vm4, %v7930_v60 }
 0x2de   :  { %v8398_v44 = vpop.f32.mrb[128].mxu0  ;;  %5206 = vmatmul.mubr.msk.bf16.gmra.mrb[236].mxu1 %vm6436_vm4, %v9116_v16 }
 0x2df   :  { %v2785_v22 = vpop.f32.mrb[129].mxu0  ;;  %5209 = vmatprep.mubr.msk.bf16.mxu1 %vm6436_vm4, %v9125_v54 }
 0x2e0   :  { %v8408_v33 = vpop.f32.mrb[130].mxu0 }
 0x2e1   :  { %v2788_v61 = vpop.f32.mrb[131].mxu0 }
 0x2e2   :  { %v8469_v61 = vld [vmem:[%s8763_s5] ss:$0 sm:$0xff] }
 0x2e3   :  { %2998 = vmatmul.mubr.bf16.gmra.mrb[236].mxu0 %v7946_v59  ;;  %v9126_v59 = vld [vmem:[#allocation90_spill] sm:$0xff] }
 0x2e4   :  { %4855 = vmatprep.mubr.msk.bf16.mxu0 %vm6436_vm4, %v7964_v41  ;;  %v9127_v56 = vpack.c.bf16 %v9126_v59, %v7833_v7  ;;  %v3768_v7 = vld [vmem:[%s8762_s1 + $0x2] sm:$0x3] }
 0x2e6   :  { %v8426_v6 = vpop.f32.mrb[132].mxu0  ;;  %5212 = vmatmul.mubr.msk.bf16.gmra.mrb[240].mxu1 %vm6436_vm4, %v7815_v25  ;;  %v3767_v25 = vld [vmem:[%s8762_s1] sm:$0x3] }
 0x2e7   :  { %v2793_v26 = vpop.f32.mrb[133].mxu0  ;;  %5215 = vmatprep.mubr.msk.bf16.mxu1 %vm6436_vm4, %v9127_v56  ;;  %v3784_v3 = vcombine.low %v3767_v25, %v3768_v7  ;;  %v3801_v7 = vcombine.low %v3771_v52, %v3772_v35 }
 0x2e8   :  { %v8436_v9 = vpop.f32.mrb[134].mxu0 }
 0x2e9   :  { %v2796_v57 = vpop.f32.mrb[135].mxu0  ;;  %v3345_v45 = vpop.f32.mrb[136].mxu1  ;;  %v3792_v59 = vrot.slane %v3784_v3, %v3791_v17  ;;  %v3809_v0 = vrot.slane %v3801_v7, %v3791_v17 }
 0x2ea   :  { %v3600_v50 = vmax.f32 %v2767_v10, %v3345_v45  ;;  %v3347_v53 = vpop.f32.mrb[137].mxu1  ;;  %v9130_v45 = vmov 0  }
 0x2eb   :  { %3006 = vmatmul.mubr.bf16.gmra.mrb[240].mxu0 %v7980_v13  ;;  %v3348_v16 = vpop.f32.mrb[138].mxu1  ;;  %v3769_v13 = vld [vmem:[%s8762_s1 + $0x4] sm:$0x3] }
 0x2ec   :  { %4858 = vmatprep.mubr.msk.bf16.mxu0 %vm6436_vm4, %v7988_v2  ;;  %v3601_v39 = vmax.f32 %v2770_v11, %v3348_v16  ;;  %v3350_v40 = vpop.f32.mrb[139].mxu1  ;;  %v9129_v11 = vpack.c.bf16 %v9128_v46, %v7874_v24  ;;  %v3785_v28 = vcombine.low %v3769_v13, %v3770_v48 }
 0x2ee   :  { %v3664_v12 = vmax.f32 %v3600_v50, %v3601_v39  ;;  %v8454_v10 = vpop.f32.mrb[136].mxu0  ;;  %5218 = vmatmul.mubr.msk.bf16.gmra.mrb[244].mxu1 %vm6436_vm4, %v7841_v31  ;;  %v3799_v56 = vrot.slane %v3785_v28, %v3791_v17 }
 0x2ef   :  { %v2801_v18 = vpop.f32.mrb[137].mxu0  ;;  %5221 = vmatprep.mubr.msk.bf16.mxu1 %vm6436_vm4, %v9129_v11 }
 0x2f0   :  { %v8464_v49 = vpop.f32.mrb[138].mxu0  ;;  %v3703_v50 = vadd.f32 %v8469_v61, %v3664_v12  ;;  %v3800_v25 = vcombine.low %v3792_v59, %v3799_v56 }
 0x2f1   :  { %v2804_v22 = vpop.f32.mrb[139].mxu0  ;;  %v3353_v54 = vpop.f32.mrb[140].mxu1 }
 0x2f2   :  { %v3602_v31 = vmax.f32 %v8382_v62, %v3353_v54  ;;  %v3355_v26 = vpop.f32.mrb[141].mxu1  ;;  %v3774_v62 = vld [vmem:[%s8762_s1 + $0xe] sm:$0x3]  ;;  %v3735_v48 = vmax.f32 %v3703_v50, 0.0 }
 0x2f3   :  { %3014 = vmatmul.mubr.bf16.gmra.mrb[244].mxu0 %v8005_v37  ;;  %v3356_v24 = vpop.f32.mrb[142].mxu1  ;;  %v3773_v37 = vld [vmem:[%s8762_s1 + $0xc] sm:$0x3] }
 0x2f4   :  { %v3603_v30 = vmax.f32 %v8392_v27, %v3356_v24  ;;  %v3358_v57 = vpop.f32.mrb[143].mxu1  ;;  %3873 = vmatprep.mubr.bf16.mxu0 %v9130_v45  ;;  %v3802_v1 = vcombine.low %v3773_v37, %v3774_v62 }
 0x2f6   :  { %v3665_v53 = vmax.f32 %v3602_v31, %v3603_v30  ;;  %v8488_v16 = vpop.f32.mrb[140].mxu0  ;;  %5224 = vmatmul.mubr.msk.bf16.gmra.mrb[248].mxu1 %vm6436_vm4, %v7892_v32 }
 0x2f7   :  { %v2809_v27 = vpop.f32.mrb[141].mxu0  ;;  %5227 = vmatprep.mubr.msk.bf16.mxu1 %vm6436_vm4, %v5226_v38  ;;  %v3816_v38 = vrot.slane %v3802_v1, %v3791_v17 }
 0x2f8   :  { %v3704_v4 = vadd.f32 %v8469_v61, %v3665_v53  ;;  %v8499_v39 = vpop.f32.mrb[142].mxu0 }
 0x2f9   :  { %v2812_v40 = vpop.f32.mrb[143].mxu0  ;;  %v3361_v13 = vpop.f32.mrb[144].mxu1 }
 0x2fa   :  { %v3736_v12 = vmax.f32 %v3704_v4, 0.0  ;;  %v3604_v32 = vmax.f32 %v8398_v44, %v3361_v13  ;;  %v3363_v18 = vpop.f32.mrb[145].mxu1 }
 0x2fb   :  { %5246 = vmatmul.mubr.msk.bf16.vlgmr.msra.gmra.mrb[248].mxu0 %vm3827_vm6, %v3800_v25  ;;  %v3364_v58 = vpop.f32.mrb[146].mxu1 }
 0x2fc   :  { %v5401_v46 = vpack.c.bf16 %v3736_v12, %v3735_v48  ;;  %v3605_v11 = vmax.f32 %v8408_v33, %v3364_v58  ;;  %v3366_v3 = vpop.f32.mrb[147].mxu1  ;;  %3883 = vmatprep.mubr.bf16.mxu0 %v9130_v45  ;;  %5574 = vmatpush3.bf16.msra.mxu0 %v8171_v19  ;;  %v3817_v19 = vcombine.low %v3809_v0, %v3816_v38 }
 0x2fd   :  { %5575 = vmatprep.subr.bf16.mxu0 %v8225_v8 }
 0x2fe   :  { %5402 = vst [vmem:[%s8764_s10] sm:$0xff] %v5401_v46   ;;  %v3666_v44 = vmax.f32 %v3604_v32, %v3605_v11  ;;  %v8510_v28 = vpop.f32.mrb[144].mxu0  ;;  %5230 = vmatmul.mubr.msk.bf16.gmra.mrb[252].mxu1 %vm6436_vm4, %v7930_v60  ;;  %v5955_v60 = vld [vmem:[%s8761_s8 + $0x68] sm:$0xff]  }
 0x2ff   :  { %v2817_v17 = vpop.f32.mrb[145].mxu0  ;;  %5233 = vmatprep.mubr.msk.bf16.mxu1 %vm6436_vm4, %v5232_v47  ;;  %5543 = vmatprep.subr.bf16.mxu1 %v5955_v60 }
 0x300   :  { %v8520_v8 = vpop.f32.mrb[146].mxu0  ;;  %5576 = vmatpush3.bf16.msra.mxu0 %v8231_v55  ;;  %5544 = vmatpush3.bf16.msra.mxu1 %v5956_v21 }
 0x301   :  { %v2820_v33 = vpop.f32.mrb[147].mxu0  ;;  %v3369_v22 = vpop.f32.mrb[148].mxu1  ;;  %5577 = vmatprep.subr.bf16.mxu0 %v8285_v42  ;;  %v3705_v42 = vadd.f32 %v8469_v61, %v3666_v44 }
 0x302   :  { %v3606_v54 = vmax.f32 %v8426_v6, %v3369_v22  ;;  %v3371_v31 = vpop.f32.mrb[149].mxu1 }
 0x303   :  { %v3372_v14 = vpop.f32.mrb[150].mxu1  ;;  %5247 = vmatmul.mubr.msk.bf16.gmra.mrb[252].mxu0 %vm3827_vm6, %v3817_v19  ;;  %v3737_v56 = vmax.f32 %v3705_v42, 0.0 }
 0x304   :  { %v3607_v47 = vmax.f32 %v8436_v9, %v3372_v14  ;;  %v3374_v55 = vpop.f32.mrb[151].mxu1  ;;  %5578 = vmatpush3.bf16.msra.mxu0 %v8291_v43 }
 0x305   :  { %5579 = vmatprep.subr.bf16.mxu0 %v8345_v34 }
 0x306   :  { %v3667_v6 = vmax.f32 %v3606_v54, %v3607_v47  ;;  %v8536_v26 = vpop.f32.mrb[148].mxu0  ;;  %5236 = vmatmul.mubr.msk.bf16.gmra.mrb[0].mxu1 %vm6436_vm4, %v7964_v41 }
 0x307   :  { %v2825_v24 = vpop.f32.mrb[149].mxu0  ;;  %5239 = vmatprep.mubr.msk.bf16.mxu1 %vm6436_vm4, %v5238_v63 }
 0x308   :  { %v3706_v43 = vadd.f32 %v8469_v61, %v3667_v6  ;;  %v8547_v9 = vpop.f32.mrb[150].mxu0  ;;  %5580 = vmatpush3.bf16.msra.mxu0 %v8351_v20 }
 0x309   :  { %v2828_v34 = vpop.f32.mrb[151].mxu0  ;;  %v3377_v59 = vpop.f32.mrb[152].mxu1  ;;  %5581 = vmatprep.subr.bf16.mxu0 %v8413_v29 }
 0x30a   :  { %v3738_v52 = vmax.f32 %v3706_v43, 0.0  ;;  %v3608_v41 = vmax.f32 %v8454_v10, %v3377_v59  ;;  %v3379_v35 = vpop.f32.mrb[153].mxu1 }
 0x30b   :  { %v3380_v30 = vpop.f32.mrb[154].mxu1 }
 0x30c   :  { %v5406_v5 = vpack.c.bf16 %v3738_v52, %v3737_v56  ;;  %v3609_v15 = vmax.f32 %v8464_v49, %v3380_v30  ;;  %v3382_v63 = vpop.f32.mrb[155].mxu1  ;;  %5582 = vmatpush3.bf16.msra.mxu0 %v8419_v36 }
 0x30d   :  { %5583 = vmatprep.subr.bf16.mxu0 %v5955_v60 }
 0x30e   :  { %5510 = vst [vmem:[%s8764_s10 + $0x8] sm:$0xff] %v5406_v5   ;;  %v3668_v20 = vmax.f32 %v3608_v41, %v3609_v15  ;;  %v8557_v57 = vpop.f32.mrb[152].mxu0  ;;  %5242 = vmatmul.mubr.msk.bf16.gmra.mrb[4].mxu1 %vm6436_vm4, %v7988_v2 }
 0x30f   :  { %v2833_v29 = vpop.f32.mrb[153].mxu0 }
 0x310   :  { %v2834_v10 = vpop.f32.mrb[154].mxu0  ;;  %5584 = vmatpush3.bf16.msra.mxu0 %v5956_v21  ;;  %v3707_v27 = vadd.f32 %v8469_v61, %v3668_v20 }
 0x311   :  { %v2836_v45 = vpop.f32.mrb[155].mxu0  ;;  %v3385_v49 = vpop.f32.mrb[156].mxu1 }
 0x312   :  { %v3610_v37 = vmax.f32 %v8488_v16, %v3385_v49  ;;  %v3387_v36 = vpop.f32.mrb[157].mxu1  ;;  %v3739_v13 = vmax.f32 %v3707_v27, 0.0 }
 0x313   :  { %v3388_v62 = vpop.f32.mrb[158].mxu1 }
 0x314   :  { %v3611_v50 = vmax.f32 %v8499_v39, %v3388_v62  ;;  %v3390_v53 = vpop.f32.mrb[159].mxu1 }
 0x316   :  { %v3669_v25 = vmax.f32 %v3610_v37, %v3611_v50  ;;  %v2839_v7 = vpop.f32.mrb[156].mxu0 }
 0x317   :  { %v2841_v1 = vpop.f32.mrb[157].mxu0 }
 0x318   :  { %v3708_v23 = vadd.f32 %v8469_v61, %v3669_v25  ;;  %v2842_v2 = vpop.f32.mrb[158].mxu0 }
 0x319   :  { %v2844_v4 = vpop.f32.mrb[159].mxu0  ;;  %v3393_v40 = vpop.f32.mrb[160].mxu1 }
 0x31a   :  { %v3740_v48 = vmax.f32 %v3708_v23, 0.0  ;;  %v3612_v12 = vmax.f32 %v8510_v28, %v3393_v40  ;;  %v3395_v16 = vpop.f32.mrb[161].mxu1  ;;  %v5957_v28 = vld [vmem:[%s8761_s8 + $0x70] sm:$0xff]  }
 0x31b   :  { %v3396_v32 = vpop.f32.mrb[162].mxu1  ;;  %5545 = vmatprep.subr.bf16.mxu1 %v5957_v28  ;;  %5585 = vmatprep.subr.bf16.mxu0 %v5957_v28 }
 0x31c   :  { %v5415_v18 = vpack.c.bf16 %v3740_v48, %v3739_v13  ;;  %v3613_v39 = vmax.f32 %v8520_v8, %v3396_v32  ;;  %v3398_v58 = vpop.f32.mrb[163].mxu1  ;;  %v5958_v8 = vld [vmem:[%s8761_s8 + $0x30] sm:$0xff]  }
 0x31d   :  { %5546 = vmatpush3.bf16.msra.mxu1 %v5958_v8  ;;  %5586 = vmatpush3.bf16.msra.mxu0 %v5958_v8 }
 0x31e   :  { %5512 = vst [vmem:[%s8764_s10 + $0x18] sm:$0xff] %v5415_v18   ;;  %v3670_v0 = vmax.f32 %v3612_v12, %v3613_v39  ;;  %v2847_v38 = vpop.f32.mrb[160].mxu0 }
 0x31f   :  { %v2849_v46 = vpop.f32.mrb[161].mxu0 }
 0x320   :  { %v2850_v11 = vpop.f32.mrb[162].mxu0  ;;  %v3709_v31 = vadd.f32 %v8469_v61, %v3670_v0 }
 0x321   :  { %v2852_v3 = vpop.f32.mrb[163].mxu0  ;;  %v3401_v44 = vpop.f32.mrb[164].mxu1 }
 0x322   :  { %v3614_v17 = vmax.f32 %v8536_v26, %v3401_v44  ;;  %v3403_v19 = vpop.f32.mrb[165].mxu1  ;;  %v3741_v26 = vmax.f32 %v3709_v31, 0.0 }
 0x323   :  { %v3404_v33 = vpop.f32.mrb[166].mxu1 }
 0x324   :  { %v3615_v22 = vmax.f32 %v8547_v9, %v3404_v33  ;;  %v3406_v54 = vpop.f32.mrb[167].mxu1 }
 0x326   :  { %v3671_v60 = vmax.f32 %v3614_v17, %v3615_v22  ;;  %v2855_v14 = vpop.f32.mrb[164].mxu0 }
 0x327   :  { %v2857_v21 = vpop.f32.mrb[165].mxu0 }
 0x328   :  { %v3710_v47 = vadd.f32 %v8469_v61, %v3671_v60  ;;  %v2858_v55 = vpop.f32.mrb[166].mxu0 }
 0x329   :  { %v2860_v42 = vpop.f32.mrb[167].mxu0  ;;  %v3409_v6 = vpop.f32.mrb[168].mxu1 }
 0x32a   :  { %v3742_v24 = vmax.f32 %v3710_v47, 0.0  ;;  %v3616_v43 = vmax.f32 %v8557_v57, %v3409_v6  ;;  %v3411_v9 = vpop.f32.mrb[169].mxu1 }
 0x32b   :  { %v3412_v34 = vpop.f32.mrb[170].mxu1 }
 0x32c   :  { %v5420_v59 = vpack.c.bf16 %v3742_v24, %v3741_v26  ;;  %v3617_v56 = vmax.f32 %v2834_v10, %v3412_v34  ;;  %v3414_v52 = vpop.f32.mrb[171].mxu1 }
 0x32e   :  { %5513 = vst [vmem:[%s8764_s10 + $0x20] sm:$0xff] %v5420_v59   ;;  %v3672_v41 = vmax.f32 %v3616_v43, %v3617_v56  ;;  %v2863_v35 = vpop.f32.mrb[168].mxu0 }
 0x32f   :  { %v2865_v30 = vpop.f32.mrb[169].mxu0 }
 0x330   :  { %v2866_v5 = vpop.f32.mrb[170].mxu0  ;;  %v3711_v37 = vadd.f32 %v8469_v61, %v3672_v41 }
 0x331   :  { %v2868_v15 = vpop.f32.mrb[171].mxu0  ;;  %v3417_v63 = vpop.f32.mrb[172].mxu1 }
 0x332   :  { %v3618_v20 = vmax.f32 %v2839_v7, %v3417_v63  ;;  %v3419_v29 = vpop.f32.mrb[173].mxu1  ;;  %v3743_v1 = vmax.f32 %v3711_v37, 0.0 }
 0x333   :  { %v3420_v45 = vpop.f32.mrb[174].mxu1 }
 0x334   :  { %v3619_v49 = vmax.f32 %v2842_v2, %v3420_v45  ;;  %v3422_v57 = vpop.f32.mrb[175].mxu1 }
 0x336   :  { %v3673_v36 = vmax.f32 %v3618_v20, %v3619_v49  ;;  %v2871_v10 = vpop.f32.mrb[172].mxu0 }
 0x337   :  { %v2873_v62 = vpop.f32.mrb[173].mxu0 }
 0x338   :  { %v3712_v50 = vadd.f32 %v8469_v61, %v3673_v36  ;;  %v2874_v53 = vpop.f32.mrb[174].mxu0 }
 0x339   :  { %v2876_v27 = vpop.f32.mrb[175].mxu0  ;;  %v3425_v25 = vpop.f32.mrb[176].mxu1 }
 0x33a   :  { %v3744_v23 = vmax.f32 %v3712_v50, 0.0  ;;  %v3620_v4 = vmax.f32 %v2847_v38, %v3425_v25  ;;  %v3427_v40 = vpop.f32.mrb[177].mxu1  ;;  %v5959_v38 = vld [vmem:[%s8761_s8 + $0x78] sm:$0xff]  }
 0x33b   :  { %v3428_v13 = vpop.f32.mrb[178].mxu1  ;;  %5547 = vmatprep.subr.bf16.mxu1 %v5959_v38  ;;  %5587 = vmatprep.subr.bf16.mxu0 %v5959_v38 }
 0x33c   :  { %v5429_v7 = vpack.c.bf16 %v3744_v23, %v3743_v1  ;;  %v3621_v48 = vmax.f32 %v2850_v11, %v3428_v13  ;;  %v3430_v12 = vpop.f32.mrb[179].mxu1  ;;  %v5960_v11 = vld [vmem:[%s8761_s8 + $0x38] sm:$0xff]  }
 0x33d   :  { %5548 = vmatpush3.bf16.msra.mxu1 %v5960_v11  ;;  %5588 = vmatpush3.bf16.msra.mxu0 %v5960_v11 }
 0x33e   :  { %5515 = vst [vmem:[%s8764_s10 + $0x30] sm:$0xff] %v5429_v7   ;;  %v3674_v2 = vmax.f32 %v3620_v4, %v3621_v48  ;;  %v2879_v16 = vpop.f32.mrb[176].mxu0 }
 0x33f   :  { %v2881_v32 = vpop.f32.mrb[177].mxu0 }
 0x340   :  { %v2882_v18 = vpop.f32.mrb[178].mxu0  ;;  %v3713_v19 = vadd.f32 %v8469_v61, %v3674_v2 }
 0x341   :  { %v2884_v39 = vpop.f32.mrb[179].mxu0  ;;  %v3433_v58 = vpop.f32.mrb[180].mxu1 }
 0x342   :  { %v3622_v0 = vmax.f32 %v2855_v14, %v3433_v58  ;;  %v3435_v46 = vpop.f32.mrb[181].mxu1  ;;  %v3745_v14 = vmax.f32 %v3713_v19, 0.0 }
 0x343   :  { %v3436_v3 = vpop.f32.mrb[182].mxu1 }
 0x344   :  { %v3623_v44 = vmax.f32 %v2858_v55, %v3436_v3  ;;  %v3438_v17 = vpop.f32.mrb[183].mxu1 }
 0x346   :  { %v3675_v28 = vmax.f32 %v3622_v0, %v3623_v44  ;;  %v2887_v8 = vpop.f32.mrb[180].mxu0 }
 0x347   :  { %v2889_v33 = vpop.f32.mrb[181].mxu0 }
 0x348   :  { %v3714_v22 = vadd.f32 %v8469_v61, %v3675_v28  ;;  %v2890_v54 = vpop.f32.mrb[182].mxu0 }
 0x349   :  { %v2892_v31 = vpop.f32.mrb[183].mxu0  ;;  %v3441_v60 = vpop.f32.mrb[184].mxu1 }
 0x34a   :  { %v3746_v21 = vmax.f32 %v3714_v22, 0.0  ;;  %v3624_v47 = vmax.f32 %v2863_v35, %v3441_v60  ;;  %v3443_v42 = vpop.f32.mrb[185].mxu1 }
 0x34b   :  { %v3444_v55 = vpop.f32.mrb[186].mxu1 }
 0x34c   :  { %v5434_v6 = vpack.c.bf16 %v3746_v21, %v3745_v14  ;;  %v3625_v26 = vmax.f32 %v2866_v5, %v3444_v55  ;;  %v3446_v24 = vpop.f32.mrb[187].mxu1 }
 0x34e   :  { %5516 = vst [vmem:[%s8764_s10 + $0x38] sm:$0xff] %v5434_v6   ;;  %v3676_v43 = vmax.f32 %v3624_v47, %v3625_v26  ;;  %v2895_v9 = vpop.f32.mrb[184].mxu0 }
 0x34f   :  { %v2897_v34 = vpop.f32.mrb[185].mxu0 }
 0x350   :  { %v2898_v59 = vpop.f32.mrb[186].mxu0  ;;  %v3715_v20 = vadd.f32 %v8469_v61, %v3676_v43 }
 0x351   :  { %v2900_v56 = vpop.f32.mrb[187].mxu0  ;;  %v3449_v52 = vpop.f32.mrb[188].mxu1 }
 0x352   :  { %v3626_v41 = vmax.f32 %v2871_v10, %v3449_v52  ;;  %v3451_v30 = vpop.f32.mrb[189].mxu1  ;;  %v3747_v62 = vmax.f32 %v3715_v20, 0.0 }
 0x353   :  { %v3452_v15 = vpop.f32.mrb[190].mxu1 }
 0x354   :  { %v3627_v63 = vmax.f32 %v2874_v53, %v3452_v15  ;;  %v3454_v35 = vpop.f32.mrb[191].mxu1 }
 0x356   :  { %v3677_v29 = vmax.f32 %v3626_v41, %v3627_v63  ;;  %v2903_v5 = vpop.f32.mrb[188].mxu0 }
 0x357   :  { %v2905_v45 = vpop.f32.mrb[189].mxu0 }
 0x358   :  { %v3716_v49 = vadd.f32 %v8469_v61, %v3677_v29  ;;  %v2906_v57 = vpop.f32.mrb[190].mxu0 }
 0x359   :  { %v2908_v37 = vpop.f32.mrb[191].mxu0  ;;  %v3457_v36 = vpop.f32.mrb[192].mxu1 }
 0x35a   :  { %v3748_v50 = vmax.f32 %v3716_v49, 0.0  ;;  %v3628_v27 = vmax.f32 %v2879_v16, %v3457_v36  ;;  %v3459_v25 = vpop.f32.mrb[193].mxu1 }
 0x35b   :  { %v3460_v1 = vpop.f32.mrb[194].mxu1 }
 0x35c   :  { %v5443_v10 = vpack.c.bf16 %v3748_v50, %v3747_v62  ;;  %v3629_v23 = vmax.f32 %v2882_v18, %v3460_v1  ;;  %v3462_v4 = vpop.f32.mrb[195].mxu1 }
 0x35e   :  { %5518 = vst [vmem:[%s8764_s10 + $0x48] sm:$0xff] %v5443_v10   ;;  %v3678_v53 = vmax.f32 %v3628_v27, %v3629_v23  ;;  %v2911_v40 = vpop.f32.mrb[192].mxu0 }
 0x35f   :  { %v2913_v13 = vpop.f32.mrb[193].mxu0 }
 0x360   :  { %v2914_v7 = vpop.f32.mrb[194].mxu0  ;;  %v3717_v0 = vadd.f32 %v8469_v61, %v3678_v53 }
 0x361   :  { %v2916_v48 = vpop.f32.mrb[195].mxu0  ;;  %v3465_v12 = vpop.f32.mrb[196].mxu1 }
 0x362   :  { %v3630_v2 = vmax.f32 %v2887_v8, %v3465_v12  ;;  %v3467_v32 = vpop.f32.mrb[197].mxu1  ;;  %v3749_v19 = vmax.f32 %v3717_v0, 0.0 }
 0x363   :  { %v3468_v39 = vpop.f32.mrb[198].mxu1 }
 0x364   :  { %v3631_v58 = vmax.f32 %v2890_v54, %v3468_v39  ;;  %v3470_v16 = vpop.f32.mrb[199].mxu1 }
 0x366   :  { %v3679_v46 = vmax.f32 %v3630_v2, %v3631_v58  ;;  %v2919_v18 = vpop.f32.mrb[196].mxu0 }
 0x367   :  { %v2921_v38 = vpop.f32.mrb[197].mxu0 }
 0x368   :  { %v3718_v11 = vadd.f32 %v8469_v61, %v3679_v46  ;;  %v2922_v3 = vpop.f32.mrb[198].mxu0 }
 0x369   :  { %v2924_v44 = vpop.f32.mrb[199].mxu0  ;;  %v3473_v17 = vpop.f32.mrb[200].mxu1 }
 0x36a   :  { %v3750_v28 = vmax.f32 %v3718_v11, 0.0  ;;  %v3632_v33 = vmax.f32 %v2895_v9, %v3473_v17  ;;  %v3475_v22 = vpop.f32.mrb[201].mxu1 }
 0x36b   :  { %v3476_v31 = vpop.f32.mrb[202].mxu1 }
 0x36c   :  { %v5448_v8 = vpack.c.bf16 %v3750_v28, %v3749_v19  ;;  %v3633_v60 = vmax.f32 %v2898_v59, %v3476_v31  ;;  %v3478_v14 = vpop.f32.mrb[203].mxu1 }
 0x36e   :  { %5519 = vst [vmem:[%s8764_s10 + $0x50] sm:$0xff] %v5448_v8   ;;  %v3680_v54 = vmax.f32 %v3632_v33, %v3633_v60  ;;  %v2927_v21 = vpop.f32.mrb[200].mxu0 }
 0x36f   :  { %v2929_v47 = vpop.f32.mrb[201].mxu0 }
 0x370   :  { %v2930_v42 = vpop.f32.mrb[202].mxu0  ;;  %v3719_v56 = vadd.f32 %v8469_v61, %v3680_v54 }
 0x371   :  { %v2932_v55 = vpop.f32.mrb[203].mxu0  ;;  %v3481_v6 = vpop.f32.mrb[204].mxu1 }
 0x372   :  { %v3634_v26 = vmax.f32 %v2903_v5, %v3481_v6  ;;  %v3483_v24 = vpop.f32.mrb[205].mxu1  ;;  %v3751_v20 = vmax.f32 %v3719_v56, 0.0 }
 0x373   :  { %v3484_v43 = vpop.f32.mrb[206].mxu1 }
 0x374   :  { %v3635_v34 = vmax.f32 %v2906_v57, %v3484_v43  ;;  %v3486_v9 = vpop.f32.mrb[207].mxu1 }
 0x376   :  { %v3681_v52 = vmax.f32 %v3634_v26, %v3635_v34  ;;  %v2935_v59 = vpop.f32.mrb[204].mxu0 }
 0x377   :  { %v2937_v41 = vpop.f32.mrb[205].mxu0 }
 0x378   :  { %v3720_v30 = vadd.f32 %v8469_v61, %v3681_v52  ;;  %v2938_v15 = vpop.f32.mrb[206].mxu0 }
 0x379   :  { %v2940_v63 = vpop.f32.mrb[207].mxu0  ;;  %v3489_v35 = vpop.f32.mrb[208].mxu1 }
 0x37a   :  { %v3752_v29 = vmax.f32 %v3720_v30, 0.0  ;;  %v3636_v45 = vmax.f32 %v2911_v40, %v3489_v35  ;;  %v3491_v49 = vpop.f32.mrb[209].mxu1 }
 0x37b   :  { %v3492_v37 = vpop.f32.mrb[210].mxu1 }
 0x37c   :  { %v5457_v5 = vpack.c.bf16 %v3752_v29, %v3751_v20  ;;  %v3637_v36 = vmax.f32 %v2914_v7, %v3492_v37  ;;  %v3494_v62 = vpop.f32.mrb[211].mxu1 }
 0x37e   :  { %5521 = vst [vmem:[%s8764_s10 + $0x60] sm:$0xff] %v5457_v5   ;;  %v3682_v57 = vmax.f32 %v3636_v45, %v3637_v36  ;;  %v2943_v50 = vpop.f32.mrb[208].mxu0 }
 0x37f   :  { %v2945_v27 = vpop.f32.mrb[209].mxu0 }
 0x380   :  { %v2946_v25 = vpop.f32.mrb[210].mxu0  ;;  %v3721_v48 = vadd.f32 %v8469_v61, %v3682_v57 }
 0x381   :  { %v2948_v1 = vpop.f32.mrb[211].mxu0  ;;  %v3497_v10 = vpop.f32.mrb[212].mxu1 }
 0x382   :  { %v3638_v23 = vmax.f32 %v2919_v18, %v3497_v10  ;;  %v3499_v4 = vpop.f32.mrb[213].mxu1  ;;  %v3753_v0 = vmax.f32 %v3721_v48, 0.0 }
 0x383   :  { %v3500_v53 = vpop.f32.mrb[214].mxu1 }
 0x384   :  { %v3639_v13 = vmax.f32 %v2922_v3, %v3500_v53  ;;  %v3502_v40 = vpop.f32.mrb[215].mxu1 }
 0x386   :  { %v3683_v12 = vmax.f32 %v3638_v23, %v3639_v13  ;;  %v2951_v7 = vpop.f32.mrb[212].mxu0 }
 0x387   :  { %v2953_v2 = vpop.f32.mrb[213].mxu0 }
 0x388   :  { %v3722_v32 = vadd.f32 %v8469_v61, %v3683_v12  ;;  %v2954_v39 = vpop.f32.mrb[214].mxu0 }
 0x389   :  { %v2956_v58 = vpop.f32.mrb[215].mxu0  ;;  %v3505_v16 = vpop.f32.mrb[216].mxu1 }
 0x38a   :  { %v3754_v46 = vmax.f32 %v3722_v32, 0.0  ;;  %v3640_v38 = vmax.f32 %v2927_v21, %v3505_v16  ;;  %v3507_v11 = vpop.f32.mrb[217].mxu1 }
 0x38b   :  { %v3508_v44 = vpop.f32.mrb[218].mxu1 }
 0x38c   :  { %v5462_v18 = vpack.c.bf16 %v3754_v46, %v3753_v0  ;;  %v3641_v17 = vmax.f32 %v2930_v42, %v3508_v44  ;;  %v3510_v19 = vpop.f32.mrb[219].mxu1 }
 0x38e   :  { %5522 = vst [vmem:[%s8764_s10 + $0x68] sm:$0xff] %v5462_v18   ;;  %v3684_v3 = vmax.f32 %v3640_v38, %v3641_v17  ;;  %v2959_v28 = vpop.f32.mrb[216].mxu0 }
 0x38f   :  { %v2961_v33 = vpop.f32.mrb[217].mxu0 }
 0x390   :  { %v2962_v22 = vpop.f32.mrb[218].mxu0  ;;  %v3723_v55 = vadd.f32 %v8469_v61, %v3684_v3 }
 0x391   :  { %v2964_v31 = vpop.f32.mrb[219].mxu0  ;;  %v3513_v8 = vpop.f32.mrb[220].mxu1 }
 0x392   :  { %v3642_v60 = vmax.f32 %v2935_v59, %v3513_v8  ;;  %v3515_v14 = vpop.f32.mrb[221].mxu1  ;;  %v3755_v56 = vmax.f32 %v3723_v55, 0.0 }
 0x393   :  { %v3516_v54 = vpop.f32.mrb[222].mxu1 }
 0x394   :  { %v3643_v47 = vmax.f32 %v2938_v15, %v3516_v54  ;;  %v3518_v21 = vpop.f32.mrb[223].mxu1 }
 0x396   :  { %v3685_v6 = vmax.f32 %v3642_v60, %v3643_v47  ;;  %v2967_v42 = vpop.f32.mrb[220].mxu0 }
 0x397   :  { %v2969_v26 = vpop.f32.mrb[221].mxu0 }
 0x398   :  { %v3724_v24 = vadd.f32 %v8469_v61, %v3685_v6  ;;  %v2970_v43 = vpop.f32.mrb[222].mxu0 }
 0x399   :  { %v2972_v34 = vpop.f32.mrb[223].mxu0  ;;  %v3521_v9 = vpop.f32.mrb[224].mxu1 }
 0x39a   :  { %v3756_v52 = vmax.f32 %v3724_v24, 0.0  ;;  %v3644_v41 = vmax.f32 %v2943_v50, %v3521_v9  ;;  %v3523_v30 = vpop.f32.mrb[225].mxu1 }
 0x39b   :  { %v3524_v63 = vpop.f32.mrb[226].mxu1 }
 0x39c   :  { %v5471_v59 = vpack.c.bf16 %v3756_v52, %v3755_v56  ;;  %v3645_v35 = vmax.f32 %v2946_v25, %v3524_v63  ;;  %v3526_v20 = vpop.f32.mrb[227].mxu1 }
 0x39e   :  { %5524 = vst [vmem:[%s8764_s10 + $0x78] sm:$0xff] %v5471_v59   ;;  %v3686_v15 = vmax.f32 %v3644_v41, %v3645_v35  ;;  %v2975_v29 = vpop.f32.mrb[224].mxu0 }
 0x39f   :  { %v2977_v45 = vpop.f32.mrb[225].mxu0 }
 0x3a0   :  { %v2978_v49 = vpop.f32.mrb[226].mxu0  ;;  %v3725_v1 = vadd.f32 %v8469_v61, %v3686_v15 }
 0x3a1   :  { %v2980_v37 = vpop.f32.mrb[227].mxu0  ;;  %v3529_v5 = vpop.f32.mrb[228].mxu1 }
 0x3a2   :  { %v3646_v36 = vmax.f32 %v2951_v7, %v3529_v5  ;;  %v3531_v62 = vpop.f32.mrb[229].mxu1  ;;  %v3757_v48 = vmax.f32 %v3725_v1, 0.0 }
 0x3a3   :  { %v3532_v57 = vpop.f32.mrb[230].mxu1 }
 0x3a4   :  { %v3647_v27 = vmax.f32 %v2954_v39, %v3532_v57  ;;  %v3534_v50 = vpop.f32.mrb[231].mxu1 }
 0x3a6   :  { %v3687_v10 = vmax.f32 %v3646_v36, %v3647_v27  ;;  %v2983_v25 = vpop.f32.mrb[228].mxu0 }
 0x3a7   :  { %v2985_v23 = vpop.f32.mrb[229].mxu0 }
 0x3a8   :  { %v3726_v4 = vadd.f32 %v8469_v61, %v3687_v10  ;;  %v2986_v53 = vpop.f32.mrb[230].mxu0 }
 0x3a9   :  { %v2988_v13 = vpop.f32.mrb[231].mxu0  ;;  %v3537_v40 = vpop.f32.mrb[232].mxu1 }
 0x3aa   :  { %v3758_v12 = vmax.f32 %v3726_v4, 0.0  ;;  %v3648_v2 = vmax.f32 %v2959_v28, %v3537_v40  ;;  %v3539_v32 = vpop.f32.mrb[233].mxu1 }
 0x3ab   :  { %v3540_v58 = vpop.f32.mrb[234].mxu1  ;;  %v5248_v32 = vld [vmem:[%s8765_s7] ss:$0 sm:$0xff] }
 0x3ac   :  { %v5476_v7 = vpack.c.bf16 %v3758_v12, %v3757_v48  ;;  %v3649_v16 = vmax.f32 %v2962_v22, %v3540_v58  ;;  %v3542_v0 = vpop.f32.mrb[235].mxu1 }
 0x3ae   :  { %5525 = vst [vmem:[%s8764_s10 + $0x80] sm:$0xff] %v5476_v7   ;;  %v3688_v39 = vmax.f32 %v3648_v2, %v3649_v16  ;;  %v2991_v46 = vpop.f32.mrb[232].mxu0 }
 0x3af   :  { %v2993_v38 = vpop.f32.mrb[233].mxu0 }
 0x3b0   :  { %v2994_v11 = vpop.f32.mrb[234].mxu0  ;;  %v3727_v31 = vadd.f32 %v8469_v61, %v3688_v39 }
 0x3b1   :  { %v2996_v44 = vpop.f32.mrb[235].mxu0  ;;  %v3545_v18 = vpop.f32.mrb[236].mxu1 }
 0x3b2   :  { %v3650_v17 = vmax.f32 %v2967_v42, %v3545_v18  ;;  %v3547_v19 = vpop.f32.mrb[237].mxu1  ;;  %v3759_v55 = vmax.f32 %v3727_v31, 0.0 }
 0x3b3   :  { %v3548_v3 = vpop.f32.mrb[238].mxu1 }
 0x3b4   :  { %v3651_v33 = vmax.f32 %v2970_v43, %v3548_v3  ;;  %v3550_v28 = vpop.f32.mrb[239].mxu1 }
 0x3b6   :  { %v3689_v8 = vmax.f32 %v3650_v17, %v3651_v33  ;;  %v8632_v22 = vpop.f32.mrb[236].mxu0 }
 0x3b7   :  { %v3001_v60 = vpop.f32.mrb[237].mxu0 }
 0x3b8   :  { %v3728_v14 = vadd.f32 %v8469_v61, %v3689_v8  ;;  %v8635_v54 = vpop.f32.mrb[238].mxu0 }
 0x3b9   :  { %v3004_v47 = vpop.f32.mrb[239].mxu0  ;;  %v3553_v21 = vpop.f32.mrb[240].mxu1 }
 0x3ba   :  { %v3760_v6 = vmax.f32 %v3728_v14, 0.0  ;;  %v3652_v26 = vmax.f32 %v2975_v29, %v3553_v21  ;;  %v3555_v42 = vpop.f32.mrb[241].mxu1 }
 0x3bb   :  { %v3556_v24 = vpop.f32.mrb[242].mxu1 }
 0x3bc   :  { %v5485_v34 = vpack.c.bf16 %v3760_v6, %v3759_v55  ;;  %v3653_v43 = vmax.f32 %v2978_v49, %v3556_v24  ;;  %v3558_v9 = vpop.f32.mrb[243].mxu1 }
 0x3be   :  { %5527 = vst [vmem:[%s8764_s10 + $0x90] sm:$0xff] %v5485_v34   ;;  %v3690_v56 = vmax.f32 %v3652_v26, %v3653_v43  ;;  %v8640_v52 = vpop.f32.mrb[240].mxu0 }
 0x3bf   :  { %v3009_v41 = vpop.f32.mrb[241].mxu0 }
 0x3c0   :  { %v8642_v30 = vpop.f32.mrb[242].mxu0  ;;  %v3729_v49 = vadd.f32 %v8469_v61, %v3690_v56 }
 0x3c1   :  { %v3012_v63 = vpop.f32.mrb[243].mxu0  ;;  %v3561_v59 = vpop.f32.mrb[244].mxu1 }
 0x3c2   :  { %v3654_v35 = vmax.f32 %v2983_v25, %v3561_v59  ;;  %v3563_v20 = vpop.f32.mrb[245].mxu1  ;;  %v3761_v1 = vmax.f32 %v3729_v49, 0.0 }
 0x3c3   :  { %v3564_v15 = vpop.f32.mrb[246].mxu1 }
 0x3c4   :  { %v3655_v29 = vmax.f32 %v2986_v53, %v3564_v15  ;;  %v3566_v45 = vpop.f32.mrb[247].mxu1 }
 0x3c6   :  { %v3691_v37 = vmax.f32 %v3654_v35, %v3655_v29  ;;  %v8645_v5 = vpop.f32.mrb[244].mxu0 }
 0x3c7   :  { %v3017_v36 = vpop.f32.mrb[245].mxu0 }
 0x3c8   :  { %v3730_v62 = vadd.f32 %v8469_v61, %v3691_v37  ;;  %v8648_v57 = vpop.f32.mrb[246].mxu0 }
 0x3c9   :  { %v3020_v27 = vpop.f32.mrb[247].mxu0  ;;  %v3569_v50 = vpop.f32.mrb[248].mxu1 }
 0x3ca   :  { %v3762_v10 = vmax.f32 %v3730_v62, 0.0  ;;  %v3656_v23 = vmax.f32 %v2991_v46, %v3569_v50  ;;  %v3571_v25 = vpop.f32.mrb[249].mxu1 }
 0x3cb   :  { %v3572_v4 = vpop.f32.mrb[250].mxu1 }
 0x3cc   :  { %v5490_v13 = vpack.c.bf16 %v3762_v10, %v3761_v1  ;;  %v3657_v53 = vmax.f32 %v2994_v11, %v3572_v4  ;;  %v3574_v40 = vpop.f32.mrb[251].mxu1 }
 0x3ce   :  { %5528 = vst [vmem:[%s8764_s10 + $0x98] sm:$0xff] %v5490_v13   ;;  %v3692_v48 = vmax.f32 %v3656_v23, %v3657_v53  ;;  %v3875_v12 = vpop.f32.mrb[248].mxu0 }
 0x3cf   :  { %v3877_v2 = vpop.f32.mrb[249].mxu0 }
 0x3d0   :  { %v3894_v58 = vmax.f32 %v3875_v12, %v3877_v2  ;;  %v3879_v7 = vpop.f32.mrb[250].mxu0  ;;  %v3731_v33 = vadd.f32 %v8469_v61, %v3692_v48 }
 0x3d1   :  { %v3881_v16 = vpop.f32.mrb[251].mxu0  ;;  %v3577_v0 = vpop.f32.mrb[252].mxu1 }
 0x3d2   :  { %v3905_v39 = vadd.f32 %v5248_v32, %v3894_v58  ;;  %v3895_v46 = vmax.f32 %v3879_v7, %v3881_v16  ;;  %v3658_v38 = vmax.f32 %v8632_v22, %v3577_v0  ;;  %v3579_v11 = vpop.f32.mrb[253].mxu1  ;;  %v3763_v9 = vmax.f32 %v3731_v33, 0.0 }
 0x3d3   :  { %v3580_v44 = vpop.f32.mrb[254].mxu1 }
 0x3d4   :  { %v3909_v18 = vmax.f32 %v3905_v39, 0.0  ;;  %v3906_v17 = vadd.f32 %v5248_v32, %v3895_v46  ;;  %v3659_v19 = vmax.f32 %v8635_v54, %v3580_v44  ;;  %v3582_v3 = vpop.f32.mrb[255].mxu1  ;;  %v5965_v44 = vld [vmem:[%s8763_s5] ss:$0 sm:$0xff] }
 0x3d6   :  { %v3917_v28 = vcombine.high %v3909_v18, %v3909_v18  ;;  %v3933_v31 = vrot.slane %v3909_v18, 2  ;;  %v3910_v8 = vmax.f32 %v3906_v17, 0.0  ;;  %v3693_v60 = vmax.f32 %v3658_v38, %v3659_v19  ;;  %v3885_v14 = vpop.f32.mrb[252].mxu0 }
 0x3d7   :  { %v3887_v47 = vpop.f32.mrb[253].mxu0 }
 0x3d8   :  { %v3949_v21 = vsel %vm3834_vm5, %v3933_v31, 0.0  ;;  %v3732_v55 = vadd.f32 %v8469_v61, %v3693_v60  ;;  %v3889_v54 = vpop.f32.mrb[254].mxu0  ;;  %v3918_v6 = vcombine.high %v3910_v8, %v3910_v8  ;;  %v5266_v42 = vpack.c.bf16 %v3917_v28, %v3909_v18 }
 0x3d9   :  { %v3585_v26 = vpop.f32.mrb[0].mxu1  ;;  %v3896_v24 = vmax.f32 %v3885_v14, %v3887_v47  ;;  %v3934_v34 = vrot.slane %v3917_v28, 2  ;;  %v3891_v43 = vpop.f32.mrb[255].mxu0  ;;  %v3965_v29 = vrot.slane %v3949_v21, 7  ;;  %v3935_v62 = vrot.slane %v3910_v8, 2 }
 0x3da   :  { %v3764_v56 = vmax.f32 %v3732_v55, 0.0  ;;  %v3660_v41 = vmax.f32 %v8640_v52, %v3585_v26  ;;  %v3587_v63 = vpop.f32.mrb[1].mxu1  ;;  %v3897_v59 = vmax.f32 %v3889_v54, %v3891_v43  ;;  %5267 = vmatprep.mubr.msk.bf16.mxu1 %vm8663_vm7, %v5266_v42  ;;  %v3936_v50 = vrot.slane %v3918_v6, 2 }
 0x3db   :  { %v3907_v61 = vadd.f32 %v5248_v32, %v3896_v24  ;;  %v3588_v35 = vpop.f32.mrb[2].mxu1  ;;  %v3950_v20 = vsel %vm3834_vm5, %v3934_v34, 0.0  ;;  %v5278_v15 = vpack.c.bf16 %v3934_v34, %v3933_v31  ;;  %v5269_v23 = vpack.c.bf16 %v3918_v6, %v3910_v8 }
 0x3dc   :  { %v5499_v45 = vpack.c.bf16 %v3764_v56, %v3763_v9  ;;  %v3661_v49 = vmax.f32 %v8642_v30, %v3588_v35  ;;  %v3966_v37 = vrot.slane %v3950_v20, 7  ;;  %v3590_v36 = vpop.f32.mrb[3].mxu1  ;;  %v3908_v52 = vadd.f32 %v5248_v32, %v3897_v59 }
 0x3dd   :  { %v3911_v27 = vmax.f32 %v3907_v61, 0.0  ;;  %5279 = vmatprep.mubr.msk.bf16.mxu0 %vm8663_vm7, %v5278_v15  ;;  %v3952_v4 = vsel %vm3834_vm5, %v3936_v50, 0.0  ;;  %v5284_v13 = vpack.c.bf16 %v3936_v50, %v3935_v62  ;;  %v3951_v53 = vsel %vm3834_vm5, %v3935_v62, 0.0 }
 0x3de   :  { %5530 = vst [vmem:[%s8764_s10 + $0xa8] sm:$0xff] %v5499_v45   ;;  %v3694_v1 = vmax.f32 %v3660_v41, %v3661_v49  ;;  %v3989_v10 = vpack.c.bf16 %v3966_v37, %v3965_v29  ;;  %5282 = vmatmul.mubr.msk.bf16.vlgmr.msra.gmra.mrb[0].mxu0 %vm8663_vm7, %v5266_v42  ;;  %v3912_v40 = vmax.f32 %v3908_v52, 0.0  ;;  %v3968_v2 = vrot.slane %v3952_v4, 7  ;;  %v8714_v29 = vld [vmem:[%s8766_s9] ss:$0 sm:$0xff] }
 0x3df   :  { %v3919_v30 = vcombine.high %v3911_v27, %v3911_v27  ;;  %v3937_v25 = vrot.slane %v3911_v27, 2  ;;  %5285 = vmatprep.mubr.msk.bf16.mxu0 %vm8663_vm7, %v5284_v13  ;;  %v3967_v0 = vrot.slane %v3951_v53, 7 }
 0x3e0   :  { %4162 = vmatmul.mubr.bf16.vlgmr.msra.gmra.mrb[8].mxu1 %v3989_v10  ;;  %v3920_v38 = vcombine.high %v3912_v40, %v3912_v40  ;;  %v3733_v18 = vadd.f32 %v5965_v44, %v3694_v1  ;;  %v3939_v33 = vrot.slane %v3912_v40, 2 }
 0x3e1   :  { %5270 = vmatprep.mubr.msk.bf16.mxu1 %vm8663_vm7, %v5269_v23  ;;  %v3593_v48 = vpop.f32.mrb[4].mxu1  ;;  %v3938_v12 = vrot.slane %v3919_v30, 2  ;;  %v5272_v11 = vpack.c.bf16 %v3919_v30, %v3911_v27  ;;  %v3991_v17 = vpack.c.bf16 %v3968_v2, %v3967_v0 }
 0x3e2   :  { %v3595_v32 = vpop.f32.mrb[5].mxu1  ;;  %v3662_v58 = vmax.f32 %v8645_v5, %v3593_v48  ;;  %v3953_v5 = vsel %vm3834_vm5, %v3937_v25, 0.0  ;;  %v3940_v28 = vrot.slane %v3920_v38, 2  ;;  %v3765_v8 = vmax.f32 %v3733_v18, 0.0 }
 0x3e3   :  { %v3596_v7 = vpop.f32.mrb[6].mxu1  ;;  %v5290_v16 = vpack.c.bf16 %v3938_v12, %v3937_v25  ;;  %v3954_v3 = vsel %vm3834_vm5, %v3938_v12, 0.0  ;;  %v3969_v31 = vrot.slane %v3953_v5, 7  ;;  %v3955_v54 = vsel %vm3834_vm5, %v3939_v33, 0.0 }
 0x3e4   :  { %v3663_v39 = vmax.f32 %v8648_v57, %v3596_v7  ;;  %v3598_v46 = vpop.f32.mrb[7].mxu1  ;;  %v3970_v14 = vrot.slane %v3954_v3, 7  ;;  %v5296_v21 = vpack.c.bf16 %v3940_v28, %v3939_v33  ;;  %v3956_v6 = vsel %vm3834_vm5, %v3940_v28, 0.0 }
 0x3e5   :  { %v5275_v26 = vpack.c.bf16 %v3920_v38, %v3912_v40  ;;  %v3971_v42 = vrot.slane %v3955_v54, 7  ;;  %v3972_v24 = vrot.slane %v3956_v6, 7 }
 0x3e6   :  { %v3695_v19 = vmax.f32 %v3662_v58, %v3663_v39  ;;  %5288 = vmatmul.mubr.msk.bf16.gmra.mrb[4].mxu0 %vm8663_vm7, %v5269_v23  ;;  %v3993_v55 = vpack.c.bf16 %v3970_v14, %v3969_v31 }
 0x3e7   :  { %5291 = vmatprep.mubr.msk.bf16.mxu0 %vm8663_vm7, %v5290_v16  ;;  %v3995_v34 = vpack.c.bf16 %v3972_v24, %v3971_v42 }
 0x3e8   :  { %v3734_v57 = vadd.f32 %v5965_v44, %v3695_v19  ;;  %4170 = vmatmul.mubr.bf16.gmra.mrb[12].mxu1 %v3991_v17 }
 0x3e9   :  { %5273 = vmatprep.mubr.msk.bf16.mxu1 %vm8663_vm7, %v5272_v11 }
 0x3ea   :  { %v3766_v60 = vmax.f32 %v3734_v57, 0.0 }
 0x3ec   :  { %v5504_v47 = vpack.c.bf16 %v3766_v60, %v3765_v8 }
 0x3ee   :  { %5531 = vst [vmem:[%s8764_s10 + $0xb0] sm:$0xff] %v5504_v47   ;;  %5294 = vmatmul.mubr.msk.bf16.gmra.mrb[8].mxu0 %vm8663_vm7, %v5272_v11 }
 0x3ef   :  { %5297 = vmatprep.mubr.msk.bf16.mxu0 %vm8663_vm7, %v5296_v21 }
 0x3f0   :  { %4178 = vmatmul.mubr.bf16.gmra.mrb[16].mxu1 %v3993_v55 }
 0x3f1   :  { %5276 = vmatprep.mubr.msk.bf16.mxu1 %vm8663_vm7, %v5275_v26 }
 0x3f6   :  { %5300 = vmatmul.mubr.msk.bf16.gmra.mrb[12].mxu0 %vm8663_vm7, %v5275_v26 }
 0x3f8   :  { %4186 = vmatmul.mubr.bf16.gmra.mrb[20].mxu1 %v3995_v34 }
 0x4b1   :  { %v5589_v43 = vpop.f32.mrb[0].mxu0 }
 0x4b2   :  { %v5590_v9 = vpop.f32.mrb[1].mxu0 }
 0x4b3   :  { %v5591_v56 = vadd.f32 %v5590_v9, %v5589_v43  ;;  %v5549_v41 = vpop.f32.mrb[8].mxu1  ;;  %v5592_v63 = vpop.f32.mrb[2].mxu0 }
 0x4b4   :  { %v5550_v59 = vpop.f32.mrb[9].mxu1  ;;  %v5593_v61 = vpop.f32.mrb[3].mxu0 }
 0x4b5   :  { %v5551_v35 = vadd.f32 %v5550_v59, %v5549_v41  ;;  %v5594_v20 = vadd.f32 %v5593_v61, %v5592_v63  ;;  %v5552_v15 = vpop.f32.mrb[10].mxu1 }
 0x4b6   :  { %v5553_v45 = vpop.f32.mrb[11].mxu1 }
 0x4b7   :  { %v4259_v49 = vmax.f32 %v5551_v35, %v5591_v56  ;;  %v5554_v22 = vadd.f32 %v5553_v45, %v5552_v15 }
 0x4b9   :  { %v4274_v37 = vadd.f32 %v8714_v29, %v4259_v49  ;;  %v4260_v36 = vmax.f32 %v5554_v22, %v5594_v20  ;;  %v5595_v62 = vpop.f32.mrb[4].mxu0 }
 0x4ba   :  { %v5596_v27 = vpop.f32.mrb[5].mxu0 }
 0x4bb   :  { %v4282_v52 = vmax.f32 %v4274_v37, 0.0  ;;  %v4275_v50 = vadd.f32 %v8714_v29, %v4260_v36  ;;  %v5597_v1 = vadd.f32 %v5596_v27, %v5595_v62  ;;  %v5555_v10 = vpop.f32.mrb[12].mxu1  ;;  %v5598_v23 = vpop.f32.mrb[6].mxu0 }
 0x4bc   :  { %v5556_v30 = vpop.f32.mrb[13].mxu1  ;;  %v5599_v25 = vpop.f32.mrb[7].mxu0 }
 0x4bd   :  { %v5410_v4 = vpack.c.bf16 %v8855_v51, %v4282_v52  ;;  %v4283_v13 = vmax.f32 %v4275_v50, 0.0  ;;  %v5557_v53 = vadd.f32 %v5556_v30, %v5555_v10  ;;  %v5600_v40 = vadd.f32 %v5599_v25, %v5598_v23  ;;  %v5558_v48 = vpop.f32.mrb[14].mxu1 }
 0x4be   :  { %v5559_v12 = vpop.f32.mrb[15].mxu1 }
 0x4bf   :  { %5511 = vst [vmem:[%s8764_s10 + $0x10] sm:$0xff] %v5410_v4   ;;  %v5424_v2 = vpack.c.bf16 %v8855_v51, %v4283_v13  ;;  %v4261_v32 = vmax.f32 %v5557_v53, %v5597_v1  ;;  %v5560_v58 = vadd.f32 %v5559_v12, %v5558_v48 }
 0x4c1   :  { %5514 = vst [vmem:[%s8764_s10 + $0x28] sm:$0xff] %v5424_v2   ;;  %v4276_v7 = vadd.f32 %v8714_v29, %v4261_v32  ;;  %v4262_v16 = vmax.f32 %v5560_v58, %v5600_v40  ;;  %v5601_v0 = vpop.f32.mrb[8].mxu0 }
 0x4c2   :  { %v5602_v39 = vpop.f32.mrb[9].mxu0 }
 0x4c3   :  { %v4284_v46 = vmax.f32 %v4276_v7, 0.0  ;;  %v4277_v38 = vadd.f32 %v8714_v29, %v4262_v16  ;;  %v5603_v11 = vadd.f32 %v5602_v39, %v5601_v0  ;;  %v5561_v44 = vpop.f32.mrb[16].mxu1  ;;  %v5604_v18 = vpop.f32.mrb[10].mxu0 }
 0x4c4   :  { %v5562_v17 = vpop.f32.mrb[17].mxu1  ;;  %v5605_v19 = vpop.f32.mrb[11].mxu0 }
 0x4c5   :  { %v5438_v5 = vpack.c.bf16 %v8855_v51, %v4284_v46  ;;  %v4285_v3 = vmax.f32 %v4277_v38, 0.0  ;;  %v5563_v57 = vadd.f32 %v5562_v17, %v5561_v44  ;;  %v5606_v33 = vadd.f32 %v5605_v19, %v5604_v18  ;;  %v5564_v28 = vpop.f32.mrb[18].mxu1 }
 0x4c6   :  { %v5565_v31 = vpop.f32.mrb[19].mxu1 }
 0x4c7   :  { %5517 = vst [vmem:[%s8764_s10 + $0x40] sm:$0xff] %v5438_v5   ;;  %v5452_v8 = vpack.c.bf16 %v8855_v51, %v4285_v3  ;;  %v4263_v60 = vmax.f32 %v5563_v57, %v5603_v11  ;;  %v5566_v14 = vadd.f32 %v5565_v31, %v5564_v28 }
 0x4c9   :  { %5520 = vst [vmem:[%s8764_s10 + $0x58] sm:$0xff] %v5452_v8   ;;  %v4278_v47 = vadd.f32 %v8714_v29, %v4263_v60  ;;  %v4264_v21 = vmax.f32 %v5566_v14, %v5606_v33  ;;  %v5607_v55 = vpop.f32.mrb[12].mxu0 }
 0x4ca   :  { %v5608_v54 = vpop.f32.mrb[13].mxu0 }
 0x4cb   :  { %v4286_v6 = vmax.f32 %v4278_v47, 0.0  ;;  %v4279_v26 = vadd.f32 %v8714_v29, %v4264_v21  ;;  %v5609_v42 = vadd.f32 %v5608_v54, %v5607_v55  ;;  %v5567_v24 = vpop.f32.mrb[20].mxu1  ;;  %v5610_v34 = vpop.f32.mrb[14].mxu0 }
 0x4cc   :  { %v5568_v43 = vpop.f32.mrb[21].mxu1  ;;  %v5611_v9 = vpop.f32.mrb[15].mxu0 }
 0x4cd   :  { %v5466_v56 = vpack.c.bf16 %v8855_v51, %v4286_v6  ;;  %v4287_v41 = vmax.f32 %v4279_v26, 0.0  ;;  %v5569_v63 = vadd.f32 %v5568_v43, %v5567_v24  ;;  %v5612_v59 = vadd.f32 %v5611_v9, %v5610_v34  ;;  %v5570_v61 = vpop.f32.mrb[22].mxu1 }
 0x4ce   :  { %v5571_v35 = vpop.f32.mrb[23].mxu1 }
 0x4cf   :  { %5523 = vst [vmem:[%s8764_s10 + $0x70] sm:$0xff] %v5466_v56   ;;  %v5480_v20 = vpack.c.bf16 %v8855_v51, %v4287_v41  ;;  %v4265_v15 = vmax.f32 %v5569_v63, %v5609_v42  ;;  %v5572_v45 = vadd.f32 %v5571_v35, %v5570_v61 }
 0x4d1   :  { %5526 = vst [vmem:[%s8764_s10 + $0x88] sm:$0xff] %v5480_v20   ;;  %v4280_v49 = vadd.f32 %v8714_v29, %v4265_v15  ;;  %v4266_v22 = vmax.f32 %v5572_v45, %v5612_v59 }
 0x4d3   :  { %v4288_v37 = vmax.f32 %v4280_v49, 0.0  ;;  %v4281_v36 = vadd.f32 %v8714_v29, %v4266_v22 }
 0x4d5   :  { %v5494_v62 = vpack.c.bf16 %v8855_v51, %v4288_v37  ;;  %v4289_v27 = vmax.f32 %v4281_v36, 0.0 }
 0x4d7   :  { %5529 = vst [vmem:[%s8764_s10 + $0xa0] sm:$0xff] %v5494_v62   ;;  %v5508_v52 = vpack.c.bf16 %v8855_v51, %v4289_v27 }
 0x4d9   :  { %5532 = vst [vmem:[%s8764_s10 + $0xb8] sm:$0xff] %v5508_v52  }

// kernel: forward.3
= control target key start
LH: loop header
LB: loop body
LE: loop exit
PB: predicated region body
PF: predicated region fallthrough
CT: control target
= control target key end

     0   :  { %vm6054_vm0 = vmmov 0   ;;  %s7496_s1 = inlined_call_operand.vmem [shape: bf16[6144,128], index: 1, kind: input, shape index: {}]   ;;  %s7497_s0 = inlined_call_operand.vmem [shape: bf16[16,6144], index: 0, kind: input, shape index: {}]   ;;  %s7498_s2 = inlined_call_operand.vmem [shape: f32[1,128], index: 2, kind: input, shape index: {}]   ;;  %s7499_s3 = inlined_call_operand.vmem [shape: bf16[128,128], index: 3, kind: input, shape index: {}]   ;;  %s7500_s5 = inlined_call_operand.vmem [shape: bf16[128,128], index: 5, kind: input, shape index: {}]   ;;  %s7501_s4 = inlined_call_operand.vmem [shape: f32[1,128], index: 4, kind: input, shape index: {}]   ;;  %s7502_s6 = inlined_call_operand.vmem [shape: f32[1,128], index: 6, kind: input, shape index: {}]   ;;  %s7503_s7 = inlined_call_operand.vmem [shape: f32[16,128], index: 7, kind: output, shape index: {}]  }
   0x1   :  { %v5653_v0 = vld [vmem:[%s7496_s1 + $0x40] sm:$0xff]   ;;  %v5657_v4 = vld [vmem:[%s7496_s1 + $0x48] sm:$0xff]   ;;  %v5661_v8 = vld [vmem:[%s7496_s1 + $0x50] sm:$0xff]  }
   0x2   :  { %v5654_v1 = vld [vmem:[%s7496_s1 + $0xc0] sm:$0xff]   ;;  %5065 = vmatprep.subr.bf16.mxu0 %v5653_v0  ;;  %v5658_v5 = vld [vmem:[%s7496_s1 + $0xc8] sm:$0xff]   ;;  %v5662_v9 = vld [vmem:[%s7496_s1 + $0xd0] sm:$0xff]  }
   0x3   :  { %v5655_v2 = vld [vmem:[%s7496_s1] sm:$0xff]   ;;  %5087 = vmatprep.subr.bf16.mxu1 %v5654_v1  ;;  %v5659_v6 = vld [vmem:[%s7496_s1 + $0x8] sm:$0xff]   ;;  %v5663_v10 = vld [vmem:[%s7496_s1 + $0x10] sm:$0xff]  }
   0x4   :  { %v5656_v3 = vld [vmem:[%s7496_s1 + $0x80] sm:$0xff]   ;;  %5066 = vmatpush3.bf16.msra.mxu0 %v5655_v2  ;;  %v5660_v7 = vld [vmem:[%s7496_s1 + $0x88] sm:$0xff]   ;;  %v5664_v11 = vld [vmem:[%s7496_s1 + $0x90] sm:$0xff]  }
   0x5   :  { %5088 = vmatpush3.bf16.msra.mxu1 %v5656_v3  ;;  %5067 = vmatprep.subr.bf16.mxu0 %v5657_v4  ;;  %v5665_v12 = vld [vmem:[%s7496_s1 + $0x58] sm:$0xff]   ;;  %v5669_v16 = vld [vmem:[%s7496_s1 + $0x60] sm:$0xff]   ;;  %v5673_v20 = vld [vmem:[%s7496_s1 + $0x68] sm:$0xff]  }
   0x6   :  { %5089 = vmatprep.subr.bf16.mxu1 %v5658_v5  ;;  %v5666_v13 = vld [vmem:[%s7496_s1 + $0xd8] sm:$0xff]   ;;  %v5670_v17 = vld [vmem:[%s7496_s1 + $0xe0] sm:$0xff]   ;;  %v5674_v21 = vld [vmem:[%s7496_s1 + $0xe8] sm:$0xff]  }
   0x7   :  { %v5667_v14 = vld [vmem:[%s7496_s1 + $0x18] sm:$0xff]   ;;  %v5671_v18 = vld [vmem:[%s7496_s1 + $0x20] sm:$0xff]   ;;  %v5675_v22 = vld [vmem:[%s7496_s1 + $0x28] sm:$0xff]  }
   0x8   :  { %5068 = vmatpush3.bf16.msra.mxu0 %v5659_v6  ;;  %v5668_v15 = vld [vmem:[%s7496_s1 + $0x98] sm:$0xff]   ;;  %v5672_v19 = vld [vmem:[%s7496_s1 + $0xa0] sm:$0xff]   ;;  %v5676_v23 = vld [vmem:[%s7496_s1 + $0xa8] sm:$0xff]  }
   0x9   :  { %5090 = vmatpush3.bf16.msra.mxu1 %v5660_v7  ;;  %5069 = vmatprep.subr.bf16.mxu0 %v5661_v8  ;;  %v5677_v24 = vld [vmem:[%s7496_s1 + $0x70] sm:$0xff]   ;;  %v5681_v28 = vld [vmem:[%s7496_s1 + $0x78] sm:$0xff]   ;;  %v27_v32 = vld [vmem:[%s7497_s0] sm:$0xff] }
   0xa   :  { %5091 = vmatprep.subr.bf16.mxu1 %v5662_v9  ;;  %v5678_v25 = vld [vmem:[%s7496_s1 + $0xf0] sm:$0xff]   ;;  %v5682_v29 = vld [vmem:[%s7496_s1 + $0xf8] sm:$0xff]   ;;  %v51_v33 = vld [vmem:[%s7497_s0 + $0xc0] sm:$0xff] }
   0xb   :  { %v5679_v26 = vld [vmem:[%s7496_s1 + $0x30] sm:$0xff]   ;;  %v5683_v30 = vld [vmem:[%s7496_s1 + $0x38] sm:$0xff]   ;;  %v28_v34 = vld [vmem:[%s7497_s0 + $0x8] sm:$0xff]  ;;  %v4615_v35 = vcombine.low %v27_v32, %v51_v33  ;;  %v4616_v36 = vcombine.high %v27_v32, %v51_v33 }
   0xc   :  { %5070 = vmatpush3.bf16.msra.mxu0 %v5663_v10  ;;  %v5680_v27 = vld [vmem:[%s7496_s1 + $0xb0] sm:$0xff]   ;;  %v5684_v31 = vld [vmem:[%s7496_s1 + $0xb8] sm:$0xff]   ;;  %v52_v37 = vld [vmem:[%s7497_s0 + $0xc8] sm:$0xff] }
   0xd   :  { %5092 = vmatpush3.bf16.msra.mxu1 %v5664_v11  ;;  %5071 = vmatprep.subr.bf16.mxu0 %v5665_v12  ;;  %v4617_v38 = vcombine.low %v28_v34, %v52_v37  ;;  %v4618_v39 = vcombine.high %v28_v34, %v52_v37  ;;  %v5685_v40 = vld [vmem:[%s7496_s1 + $0x140] sm:$0xff]   ;;  %v5689_v44 = vld [vmem:[%s7496_s1 + $0x148] sm:$0xff]   ;;  %v5693_v48 = vld [vmem:[%s7496_s1 + $0x150] sm:$0xff]  }
   0xe   :  { %5093 = vmatprep.subr.bf16.mxu1 %v5666_v13  ;;  %3426 = vmatprep.mubr.bf16.mxu0 %v4616_v36  ;;  %v5686_v41 = vld [vmem:[%s7496_s1 + $0x1c0] sm:$0xff]   ;;  %v5690_v45 = vld [vmem:[%s7496_s1 + $0x1c8] sm:$0xff]   ;;  %v5694_v49 = vld [vmem:[%s7496_s1 + $0x1d0] sm:$0xff]  }
   0xf   :  { %3467 = vmatprep.mubr.bf16.mxu1 %v4618_v39  ;;  %v5687_v42 = vld [vmem:[%s7496_s1 + $0x100] sm:$0xff]   ;;  %v5691_v46 = vld [vmem:[%s7496_s1 + $0x108] sm:$0xff]   ;;  %v5695_v50 = vld [vmem:[%s7496_s1 + $0x110] sm:$0xff]  }
  0x10   :  { %5072 = vmatpush3.bf16.msra.mxu0 %v5667_v14  ;;  %v5688_v43 = vld [vmem:[%s7496_s1 + $0x180] sm:$0xff]   ;;  %v5692_v47 = vld [vmem:[%s7496_s1 + $0x188] sm:$0xff]   ;;  %v5696_v51 = vld [vmem:[%s7496_s1 + $0x190] sm:$0xff]  }
  0x11   :  { %5094 = vmatpush3.bf16.msra.mxu1 %v5668_v15  ;;  %5073 = vmatprep.subr.bf16.mxu0 %v5669_v16  ;;  %v5697_v52 = vld [vmem:[%s7496_s1 + $0x158] sm:$0xff]   ;;  %v5701_v56 = vld [vmem:[%s7496_s1 + $0x160] sm:$0xff]   ;;  %v5705_v60 = vld [vmem:[%s7496_s1 + $0x168] sm:$0xff]  }
  0x12   :  { %5095 = vmatprep.subr.bf16.mxu1 %v5670_v17  ;;  %v5698_v53 = vld [vmem:[%s7496_s1 + $0x1d8] sm:$0xff]   ;;  %v5702_v57 = vld [vmem:[%s7496_s1 + $0x1e0] sm:$0xff]   ;;  %v5706_v61 = vld [vmem:[%s7496_s1 + $0x1e8] sm:$0xff]  }
  0x13   :  { %v5699_v54 = vld [vmem:[%s7496_s1 + $0x118] sm:$0xff]   ;;  %v5703_v58 = vld [vmem:[%s7496_s1 + $0x120] sm:$0xff]   ;;  %v5707_v62 = vld [vmem:[%s7496_s1 + $0x128] sm:$0xff]  }
  0x14   :  { %5074 = vmatpush3.bf16.msra.mxu0 %v5671_v18  ;;  %v5700_v55 = vld [vmem:[%s7496_s1 + $0x198] sm:$0xff]   ;;  %v5704_v59 = vld [vmem:[%s7496_s1 + $0x1a0] sm:$0xff]   ;;  %v5708_v63 = vld [vmem:[%s7496_s1 + $0x1a8] sm:$0xff]  }
  0x15   :  { %5096 = vmatpush3.bf16.msra.mxu1 %v5672_v19  ;;  %5075 = vmatprep.subr.bf16.mxu0 %v5673_v20  ;;  %v5709_v0 = vld [vmem:[%s7496_s1 + $0x170] sm:$0xff]   ;;  %v5713_v4 = vld [vmem:[%s7496_s1 + $0x178] sm:$0xff]   ;;  %v5717_v16 = vld [vmem:[%s7496_s1 + $0x240] sm:$0xff]  }
  0x16   :  { %5097 = vmatprep.subr.bf16.mxu1 %v5674_v21  ;;  %v5710_v1 = vld [vmem:[%s7496_s1 + $0x1f0] sm:$0xff]   ;;  %v5714_v5 = vld [vmem:[%s7496_s1 + $0x1f8] sm:$0xff]   ;;  %v5718_v17 = vld [vmem:[%s7496_s1 + $0x2c0] sm:$0xff]  }
  0x17   :  { %v5711_v2 = vld [vmem:[%s7496_s1 + $0x130] sm:$0xff]   ;;  %v5715_v6 = vld [vmem:[%s7496_s1 + $0x138] sm:$0xff]   ;;  %v5719_v18 = vld [vmem:[%s7496_s1 + $0x200] sm:$0xff]  }
  0x18   :  { %5076 = vmatpush3.bf16.msra.mxu0 %v5675_v22  ;;  %v5712_v3 = vld [vmem:[%s7496_s1 + $0x1b0] sm:$0xff]   ;;  %v5716_v7 = vld [vmem:[%s7496_s1 + $0x1b8] sm:$0xff]   ;;  %v5720_v19 = vld [vmem:[%s7496_s1 + $0x280] sm:$0xff]  }
  0x19   :  { %5098 = vmatpush3.bf16.msra.mxu1 %v5676_v23  ;;  %5077 = vmatprep.subr.bf16.mxu0 %v5677_v24  ;;  %v29_v8 = vld [vmem:[%s7497_s0 + $0x10] sm:$0xff]  ;;  %v30_v12 = vld [vmem:[%s7497_s0 + $0x18] sm:$0xff]  ;;  %v5721_v20 = vld [vmem:[%s7496_s1 + $0x248] sm:$0xff]  }
  0x1a   :  { %5099 = vmatprep.subr.bf16.mxu1 %v5678_v25  ;;  %v53_v9 = vld [vmem:[%s7497_s0 + $0xd0] sm:$0xff]  ;;  %v54_v13 = vld [vmem:[%s7497_s0 + $0xd8] sm:$0xff]  ;;  %v5722_v21 = vld [vmem:[%s7496_s1 + $0x2c8] sm:$0xff]  }
  0x1b   :  { %v4619_v10 = vcombine.low %v29_v8, %v53_v9  ;;  %v4620_v11 = vcombine.high %v29_v8, %v53_v9  ;;  %v4621_v14 = vcombine.low %v30_v12, %v54_v13  ;;  %v4622_v15 = vcombine.high %v30_v12, %v54_v13  ;;  %v5723_v22 = vld [vmem:[%s7496_s1 + $0x208] sm:$0xff]   ;;  %v5725_v24 = vld [vmem:[%s7496_s1 + $0x250] sm:$0xff]   ;;  %v5733_v32 = vld [vmem:[%s7496_s1 + $0x260] sm:$0xff]  }
  0x1c   :  { %5078 = vmatpush3.bf16.msra.mxu0 %v5679_v26  ;;  %v5724_v23 = vld [vmem:[%s7496_s1 + $0x288] sm:$0xff]   ;;  %v5726_v25 = vld [vmem:[%s7496_s1 + $0x2d0] sm:$0xff]   ;;  %v5734_v33 = vld [vmem:[%s7496_s1 + $0x2e0] sm:$0xff]  }
  0x1d   :  { %5100 = vmatpush3.bf16.msra.mxu1 %v5680_v27  ;;  %5079 = vmatprep.subr.bf16.mxu0 %v5681_v28  ;;  %v5727_v26 = vld [vmem:[%s7496_s1 + $0x210] sm:$0xff]   ;;  %v5729_v28 = vld [vmem:[%s7496_s1 + $0x258] sm:$0xff]   ;;  %v5735_v34 = vld [vmem:[%s7496_s1 + $0x220] sm:$0xff]  }
  0x1e   :  { %5101 = vmatprep.subr.bf16.mxu1 %v5682_v29  ;;  %v5728_v27 = vld [vmem:[%s7496_s1 + $0x290] sm:$0xff]   ;;  %v5730_v29 = vld [vmem:[%s7496_s1 + $0x2d8] sm:$0xff]   ;;  %v5737_v36 = vld [vmem:[%s7496_s1 + $0x268] sm:$0xff]  }
  0x1f   :  { %v5738_v37 = vld [vmem:[%s7496_s1 + $0x2e8] sm:$0xff]   ;;  %v5765_v8 = vld [vmem:[%s7496_s1 + $0x360] sm:$0xff]  }
  0x20   :  { %5080 = vmatpush3.bf16.msra.mxu0 %v5683_v30  ;;  %v5731_v30 = vld [vmem:[%s7496_s1 + $0x218] sm:$0xff]   ;;  %v5740_v39 = vld [vmem:[%s7496_s1 + $0x2a8] sm:$0xff]   ;;  %v5766_v9 = vld [vmem:[%s7496_s1 + $0x3e0] sm:$0xff]  }
  0x21   :  { %5102 = vmatpush3.bf16.msra.mxu1 %v5684_v31  ;;  %5109 = vmatprep.subr.bf16.mxu0 %v5685_v40  ;;  %v5732_v31 = vld [vmem:[%s7496_s1 + $0x298] sm:$0xff]   ;;  %v5741_v40 = vld [vmem:[%s7496_s1 + $0x270] sm:$0xff]   ;;  %v5769_v12 = vld [vmem:[%s7496_s1 + $0x368] sm:$0xff]  }
  0x22   :  { %5131 = vmatprep.subr.bf16.mxu1 %v5686_v41  ;;  %v5742_v41 = vld [vmem:[%s7496_s1 + $0x2f0] sm:$0xff]   ;;  %v5770_v13 = vld [vmem:[%s7496_s1 + $0x3e8] sm:$0xff]  }
  0x23   :  { %3427 = vmatmul.mubr.bf16.vlgmr.msra.gmra.mrb[0].mxu0 %v4615_v35  ;;  %v5736_v35 = vld [vmem:[%s7496_s1 + $0x2a0] sm:$0xff]  }
  0x24   :  { %3468 = vmatmul.mubr.bf16.vlgmr.msra.gmra.mrb[0].mxu1 %v4617_v38  ;;  %5110 = vmatpush3.bf16.msra.mxu0 %v5687_v42  ;;  %v5739_v38 = vld [vmem:[%s7496_s1 + $0x228] sm:$0xff]   ;;  %v5743_v42 = vld [vmem:[%s7496_s1 + $0x230] sm:$0xff]  }
  0x25   :  { %5132 = vmatpush3.bf16.msra.mxu1 %v5688_v43  ;;  %5111 = vmatprep.subr.bf16.mxu0 %v5689_v44  ;;  %v5744_v43 = vld [vmem:[%s7496_s1 + $0x2b0] sm:$0xff]   ;;  %v5745_v44 = vld [vmem:[%s7496_s1 + $0x278] sm:$0xff]  }
  0x26   :  { %5133 = vmatprep.subr.bf16.mxu1 %v5690_v45  ;;  %3508 = vmatprep.mubr.bf16.mxu0 %v4620_v11  ;;  %v5746_v45 = vld [vmem:[%s7496_s1 + $0x2f8] sm:$0xff]   ;;  %v5768_v11 = vld [vmem:[%s7496_s1 + $0x3a0] sm:$0xff]  }
  0x27   :  { %3549 = vmatprep.mubr.bf16.mxu1 %v4622_v15  ;;  %v5772_v15 = vld [vmem:[%s7496_s1 + $0x3a8] sm:$0xff]  }
  0x28   :  { %5112 = vmatpush3.bf16.msra.mxu0 %v5691_v46  ;;  %v5747_v46 = vld [vmem:[%s7496_s1 + $0x238] sm:$0xff]  }
  0x29   :  { %5134 = vmatpush3.bf16.msra.mxu1 %v5692_v47  ;;  %5113 = vmatprep.subr.bf16.mxu0 %v5693_v48  ;;  %v5748_v47 = vld [vmem:[%s7496_s1 + $0x2b8] sm:$0xff]   ;;  %v31_v48 = vld [vmem:[%s7497_s0 + $0x20] sm:$0xff] }
  0x2a   :  { %5135 = vmatprep.subr.bf16.mxu1 %v5694_v49  ;;  %v55_v49 = vld [vmem:[%s7497_s0 + $0xe0] sm:$0xff] }
  0x2c   :  { %5114 = vmatpush3.bf16.msra.mxu0 %v5695_v50  ;;  %v32_v50 = vld [vmem:[%s7497_s0 + $0x28] sm:$0xff] }
  0x2d   :  { %5136 = vmatpush3.bf16.msra.mxu1 %v5696_v51  ;;  %5115 = vmatprep.subr.bf16.mxu0 %v5697_v52  ;;  %v56_v51 = vld [vmem:[%s7497_s0 + $0xe8] sm:$0xff]  ;;  %v4623_v52 = vcombine.low %v31_v48, %v55_v49 }
  0x2e   :  { %5137 = vmatprep.subr.bf16.mxu1 %v5698_v53  ;;  %v4624_v53 = vcombine.high %v31_v48, %v55_v49  ;;  %v5797_v48 = vld [vmem:[%s7496_s1 + $0x460] sm:$0xff]  }
  0x2f   :  { %v5798_v49 = vld [vmem:[%s7496_s1 + $0x4e0] sm:$0xff]  }
  0x30   :  { %5116 = vmatpush3.bf16.msra.mxu0 %v5699_v54  ;;  %v4625_v54 = vcombine.low %v32_v50, %v56_v51 }
  0x31   :  { %5138 = vmatpush3.bf16.msra.mxu1 %v5700_v55  ;;  %5117 = vmatprep.subr.bf16.mxu0 %v5701_v56  ;;  %v4626_v55 = vcombine.high %v32_v50, %v56_v51  ;;  %v5749_v56 = vld [vmem:[%s7496_s1 + $0x340] sm:$0xff]  }
  0x32   :  { %5139 = vmatprep.subr.bf16.mxu1 %v5702_v57  ;;  %v5750_v57 = vld [vmem:[%s7496_s1 + $0x3c0] sm:$0xff]  }
  0x33   :  { %v5799_v50 = vld [vmem:[%s7496_s1 + $0x420] sm:$0xff]  }
  0x34   :  { %5118 = vmatpush3.bf16.msra.mxu0 %v5703_v58  ;;  %v5751_v58 = vld [vmem:[%s7496_s1 + $0x300] sm:$0xff]  }
  0x35   :  { %5140 = vmatpush3.bf16.msra.mxu1 %v5704_v59  ;;  %5119 = vmatprep.subr.bf16.mxu0 %v5705_v60  ;;  %v5752_v59 = vld [vmem:[%s7496_s1 + $0x380] sm:$0xff]   ;;  %v5753_v60 = vld [vmem:[%s7496_s1 + $0x348] sm:$0xff]  }
  0x36   :  { %5141 = vmatprep.subr.bf16.mxu1 %v5706_v61  ;;  %v5754_v61 = vld [vmem:[%s7496_s1 + $0x3c8] sm:$0xff]   ;;  %v5800_v51 = vld [vmem:[%s7496_s1 + $0x4a0] sm:$0xff]  }
  0x38   :  { %5120 = vmatpush3.bf16.msra.mxu0 %v5707_v62  ;;  %v5755_v62 = vld [vmem:[%s7496_s1 + $0x308] sm:$0xff]  }
  0x39   :  { %5142 = vmatpush3.bf16.msra.mxu1 %v5708_v63  ;;  %5121 = vmatprep.subr.bf16.mxu0 %v5709_v0  ;;  %v5756_v63 = vld [vmem:[%s7496_s1 + $0x388] sm:$0xff]   ;;  %v5757_v0 = vld [vmem:[%s7496_s1 + $0x350] sm:$0xff]  }
  0x3a   :  { %5143 = vmatprep.subr.bf16.mxu1 %v5710_v1  ;;  %v5758_v1 = vld [vmem:[%s7496_s1 + $0x3d0] sm:$0xff]  }
  0x3c   :  { %5122 = vmatpush3.bf16.msra.mxu0 %v5711_v2  ;;  %v5759_v2 = vld [vmem:[%s7496_s1 + $0x310] sm:$0xff]  }
  0x3d   :  { %5144 = vmatpush3.bf16.msra.mxu1 %v5712_v3  ;;  %5123 = vmatprep.subr.bf16.mxu0 %v5713_v4  ;;  %v5760_v3 = vld [vmem:[%s7496_s1 + $0x390] sm:$0xff]   ;;  %v5761_v4 = vld [vmem:[%s7496_s1 + $0x358] sm:$0xff]  }
  0x3e   :  { %5145 = vmatprep.subr.bf16.mxu1 %v5714_v5  ;;  %v5762_v5 = vld [vmem:[%s7496_s1 + $0x3d8] sm:$0xff]  }
  0x40   :  { %5124 = vmatpush3.bf16.msra.mxu0 %v5715_v6  ;;  %v5763_v6 = vld [vmem:[%s7496_s1 + $0x318] sm:$0xff]  }
  0x41   :  { %5146 = vmatpush3.bf16.msra.mxu1 %v5716_v7  ;;  %5153 = vmatprep.subr.bf16.mxu0 %v5717_v16  ;;  %v5764_v7 = vld [vmem:[%s7496_s1 + $0x398] sm:$0xff]   ;;  %v5773_v16 = vld [vmem:[%s7496_s1 + $0x370] sm:$0xff]  }
  0x42   :  { %5175 = vmatprep.subr.bf16.mxu1 %v5718_v17  ;;  %v5774_v17 = vld [vmem:[%s7496_s1 + $0x3f0] sm:$0xff]  }
  0x43   :  { %3509 = vmatmul.mubr.bf16.vlgmr.msra.gmra.mrb[4].mxu0 %v4619_v10  ;;  %v5767_v10 = vld [vmem:[%s7496_s1 + $0x320] sm:$0xff]  }
  0x44   :  { %3550 = vmatmul.mubr.bf16.vlgmr.msra.gmra.mrb[4].mxu1 %v4621_v14  ;;  %5154 = vmatpush3.bf16.msra.mxu0 %v5719_v18  ;;  %v5771_v14 = vld [vmem:[%s7496_s1 + $0x328] sm:$0xff]   ;;  %v5775_v18 = vld [vmem:[%s7496_s1 + $0x330] sm:$0xff]  }
  0x45   :  { %5176 = vmatpush3.bf16.msra.mxu1 %v5720_v19  ;;  %5155 = vmatprep.subr.bf16.mxu0 %v5721_v20  ;;  %v5776_v19 = vld [vmem:[%s7496_s1 + $0x3b0] sm:$0xff]   ;;  %v5777_v20 = vld [vmem:[%s7496_s1 + $0x378] sm:$0xff]  }
  0x46   :  { %5177 = vmatprep.subr.bf16.mxu1 %v5722_v21  ;;  %3590 = vmatprep.mubr.bf16.mxu0 %v4624_v53  ;;  %v5778_v21 = vld [vmem:[%s7496_s1 + $0x3f8] sm:$0xff]   ;;  %v5802_v53 = vld [vmem:[%s7496_s1 + $0x4e8] sm:$0xff]  }
  0x47   :  { %3631 = vmatprep.mubr.bf16.mxu1 %v4626_v55  ;;  %v5804_v55 = vld [vmem:[%s7496_s1 + $0x4a8] sm:$0xff]  }
  0x48   :  { %5156 = vmatpush3.bf16.msra.mxu0 %v5723_v22  ;;  %v5779_v22 = vld [vmem:[%s7496_s1 + $0x338] sm:$0xff]  }
  0x49   :  { %5178 = vmatpush3.bf16.msra.mxu1 %v5724_v23  ;;  %5157 = vmatprep.subr.bf16.mxu0 %v5725_v24  ;;  %v5780_v23 = vld [vmem:[%s7496_s1 + $0x3b8] sm:$0xff]   ;;  %v33_v24 = vld [vmem:[%s7497_s0 + $0x30] sm:$0xff] }
  0x4a   :  { %5179 = vmatprep.subr.bf16.mxu1 %v5726_v25  ;;  %v57_v25 = vld [vmem:[%s7497_s0 + $0xf0] sm:$0xff] }
  0x4c   :  { %5158 = vmatpush3.bf16.msra.mxu0 %v5727_v26  ;;  %v34_v26 = vld [vmem:[%s7497_s0 + $0x38] sm:$0xff] }
  0x4d   :  { %5180 = vmatpush3.bf16.msra.mxu1 %v5728_v27  ;;  %5159 = vmatprep.subr.bf16.mxu0 %v5729_v28  ;;  %v4627_v27 = vcombine.low %v33_v24, %v57_v25  ;;  %v4628_v28 = vcombine.high %v33_v24, %v57_v25  ;;  %v5829_v24 = vld [vmem:[%s7496_s1 + $0x560] sm:$0xff]  }
  0x4e   :  { %5181 = vmatprep.subr.bf16.mxu1 %v5730_v29  ;;  %v58_v29 = vld [vmem:[%s7497_s0 + $0xf8] sm:$0xff]  ;;  %v5830_v25 = vld [vmem:[%s7496_s1 + $0x5e0] sm:$0xff]  }
  0x50   :  { %5160 = vmatpush3.bf16.msra.mxu0 %v5731_v30  ;;  %v4629_v30 = vcombine.low %v34_v26, %v58_v29 }
  0x51   :  { %5182 = vmatpush3.bf16.msra.mxu1 %v5732_v31  ;;  %5161 = vmatprep.subr.bf16.mxu0 %v5733_v32  ;;  %v4630_v31 = vcombine.high %v34_v26, %v58_v29  ;;  %v5781_v32 = vld [vmem:[%s7496_s1 + $0x440] sm:$0xff]   ;;  %v5834_v29 = vld [vmem:[%s7496_s1 + $0x5e8] sm:$0xff]  }
  0x52   :  { %5183 = vmatprep.subr.bf16.mxu1 %v5734_v33  ;;  %v5782_v33 = vld [vmem:[%s7496_s1 + $0x4c0] sm:$0xff]  }
  0x53   :  { %v5831_v26 = vld [vmem:[%s7496_s1 + $0x520] sm:$0xff]  }
  0x54   :  { %5162 = vmatpush3.bf16.msra.mxu0 %v5735_v34  ;;  %v5783_v34 = vld [vmem:[%s7496_s1 + $0x400] sm:$0xff]  }
  0x55   :  { %5184 = vmatpush3.bf16.msra.mxu1 %v5736_v35  ;;  %5163 = vmatprep.subr.bf16.mxu0 %v5737_v36  ;;  %v5784_v35 = vld [vmem:[%s7496_s1 + $0x480] sm:$0xff]   ;;  %v5785_v36 = vld [vmem:[%s7496_s1 + $0x448] sm:$0xff]  }
  0x56   :  { %5185 = vmatprep.subr.bf16.mxu1 %v5738_v37  ;;  %v5786_v37 = vld [vmem:[%s7496_s1 + $0x4c8] sm:$0xff]  }
  0x58   :  { %5164 = vmatpush3.bf16.msra.mxu0 %v5739_v38  ;;  %v5787_v38 = vld [vmem:[%s7496_s1 + $0x408] sm:$0xff]  }
  0x59   :  { %5186 = vmatpush3.bf16.msra.mxu1 %v5740_v39  ;;  %5165 = vmatprep.subr.bf16.mxu0 %v5741_v40  ;;  %v5788_v39 = vld [vmem:[%s7496_s1 + $0x488] sm:$0xff]   ;;  %v5789_v40 = vld [vmem:[%s7496_s1 + $0x450] sm:$0xff]  }
  0x5a   :  { %5187 = vmatprep.subr.bf16.mxu1 %v5742_v41  ;;  %v5790_v41 = vld [vmem:[%s7496_s1 + $0x4d0] sm:$0xff]  }
  0x5c   :  { %5166 = vmatpush3.bf16.msra.mxu0 %v5743_v42  ;;  %v5791_v42 = vld [vmem:[%s7496_s1 + $0x410] sm:$0xff]  }
  0x5d   :  { %5188 = vmatpush3.bf16.msra.mxu1 %v5744_v43  ;;  %5167 = vmatprep.subr.bf16.mxu0 %v5745_v44  ;;  %v5792_v43 = vld [vmem:[%s7496_s1 + $0x490] sm:$0xff]   ;;  %v5793_v44 = vld [vmem:[%s7496_s1 + $0x458] sm:$0xff]  }
  0x5e   :  { %5189 = vmatprep.subr.bf16.mxu1 %v5746_v45  ;;  %v5794_v45 = vld [vmem:[%s7496_s1 + $0x4d8] sm:$0xff]  }
  0x60   :  { %5168 = vmatpush3.bf16.msra.mxu0 %v5747_v46  ;;  %v5795_v46 = vld [vmem:[%s7496_s1 + $0x418] sm:$0xff]  }
  0x61   :  { %5190 = vmatpush3.bf16.msra.mxu1 %v5748_v47  ;;  %5197 = vmatprep.subr.bf16.mxu0 %v5749_v56  ;;  %v5796_v47 = vld [vmem:[%s7496_s1 + $0x498] sm:$0xff]   ;;  %v5805_v56 = vld [vmem:[%s7496_s1 + $0x470] sm:$0xff]  }
  0x62   :  { %5219 = vmatprep.subr.bf16.mxu1 %v5750_v57  ;;  %v5806_v57 = vld [vmem:[%s7496_s1 + $0x4f0] sm:$0xff]  }
  0x63   :  { %3591 = vmatmul.mubr.bf16.vlgmr.msra.gmra.mrb[8].mxu0 %v4623_v52  ;;  %v5801_v52 = vld [vmem:[%s7496_s1 + $0x468] sm:$0xff]  }
  0x64   :  { %3632 = vmatmul.mubr.bf16.vlgmr.msra.gmra.mrb[8].mxu1 %v4625_v54  ;;  %5198 = vmatpush3.bf16.msra.mxu0 %v5751_v58  ;;  %v5803_v54 = vld [vmem:[%s7496_s1 + $0x428] sm:$0xff]   ;;  %v5807_v58 = vld [vmem:[%s7496_s1 + $0x430] sm:$0xff]  }
  0x65   :  { %5220 = vmatpush3.bf16.msra.mxu1 %v5752_v59  ;;  %5199 = vmatprep.subr.bf16.mxu0 %v5753_v60  ;;  %v5808_v59 = vld [vmem:[%s7496_s1 + $0x4b0] sm:$0xff]   ;;  %v5809_v60 = vld [vmem:[%s7496_s1 + $0x478] sm:$0xff]  }
  0x66   :  { %5221 = vmatprep.subr.bf16.mxu1 %v5754_v61  ;;  %3672 = vmatprep.mubr.bf16.mxu0 %v4628_v28  ;;  %v5810_v61 = vld [vmem:[%s7496_s1 + $0x4f8] sm:$0xff]   ;;  %v5833_v28 = vld [vmem:[%s7496_s1 + $0x568] sm:$0xff]  }
  0x67   :  { %3713 = vmatprep.mubr.bf16.mxu1 %v4630_v31  ;;  %v5836_v31 = vld [vmem:[%s7496_s1 + $0x5a8] sm:$0xff]  }
  0x68   :  { %5200 = vmatpush3.bf16.msra.mxu0 %v5755_v62  ;;  %v5811_v62 = vld [vmem:[%s7496_s1 + $0x438] sm:$0xff]  }
  0x69   :  { %5222 = vmatpush3.bf16.msra.mxu1 %v5756_v63  ;;  %5201 = vmatprep.subr.bf16.mxu0 %v5757_v0  ;;  %v5812_v63 = vld [vmem:[%s7496_s1 + $0x4b8] sm:$0xff]   ;;  %v35_v0 = vld [vmem:[%s7497_s0 + $0x40] sm:$0xff] }
  0x6a   :  { %5223 = vmatprep.subr.bf16.mxu1 %v5758_v1  ;;  %v59_v1 = vld [vmem:[%s7497_s0 + $0x100] sm:$0xff] }
  0x6c   :  { %5202 = vmatpush3.bf16.msra.mxu0 %v5759_v2  ;;  %v4631_v2 = vcombine.low %v35_v0, %v59_v1 }
  0x6d   :  { %5224 = vmatpush3.bf16.msra.mxu1 %v5760_v3  ;;  %5203 = vmatprep.subr.bf16.mxu0 %v5761_v4  ;;  %v4632_v3 = vcombine.high %v35_v0, %v59_v1  ;;  %v36_v4 = vld [vmem:[%s7497_s0 + $0x48] sm:$0xff]  ;;  %v5861_v0 = vld [vmem:[%s7496_s1 + $0x660] sm:$0xff]  }
  0x6e   :  { %5225 = vmatprep.subr.bf16.mxu1 %v5762_v5  ;;  %v60_v5 = vld [vmem:[%s7497_s0 + $0x108] sm:$0xff]  ;;  %v5862_v1 = vld [vmem:[%s7496_s1 + $0x6e0] sm:$0xff]  }
  0x70   :  { %5204 = vmatpush3.bf16.msra.mxu0 %v5763_v6  ;;  %v4633_v6 = vcombine.low %v36_v4, %v60_v5 }
  0x71   :  { %5226 = vmatpush3.bf16.msra.mxu1 %v5764_v7  ;;  %5205 = vmatprep.subr.bf16.mxu0 %v5765_v8  ;;  %v4634_v7 = vcombine.high %v36_v4, %v60_v5  ;;  %v5813_v8 = vld [vmem:[%s7496_s1 + $0x540] sm:$0xff]   ;;  %v5865_v4 = vld [vmem:[%s7496_s1 + $0x668] sm:$0xff]  }
  0x72   :  { %5227 = vmatprep.subr.bf16.mxu1 %v5766_v9  ;;  %v5814_v9 = vld [vmem:[%s7496_s1 + $0x5c0] sm:$0xff]   ;;  %v5866_v5 = vld [vmem:[%s7496_s1 + $0x6e8] sm:$0xff]  }
  0x74   :  { %5206 = vmatpush3.bf16.msra.mxu0 %v5767_v10  ;;  %v5815_v10 = vld [vmem:[%s7496_s1 + $0x500] sm:$0xff]  }
  0x75   :  { %5228 = vmatpush3.bf16.msra.mxu1 %v5768_v11  ;;  %5207 = vmatprep.subr.bf16.mxu0 %v5769_v12  ;;  %v5816_v11 = vld [vmem:[%s7496_s1 + $0x580] sm:$0xff]   ;;  %v5817_v12 = vld [vmem:[%s7496_s1 + $0x548] sm:$0xff]  }
  0x76   :  { %5229 = vmatprep.subr.bf16.mxu1 %v5770_v13  ;;  %v5818_v13 = vld [vmem:[%s7496_s1 + $0x5c8] sm:$0xff]  }
  0x78   :  { %5208 = vmatpush3.bf16.msra.mxu0 %v5771_v14  ;;  %v5819_v14 = vld [vmem:[%s7496_s1 + $0x508] sm:$0xff]  }
  0x79   :  { %5230 = vmatpush3.bf16.msra.mxu1 %v5772_v15  ;;  %5209 = vmatprep.subr.bf16.mxu0 %v5773_v16  ;;  %v5820_v15 = vld [vmem:[%s7496_s1 + $0x588] sm:$0xff]   ;;  %v5821_v16 = vld [vmem:[%s7496_s1 + $0x550] sm:$0xff]  }
  0x7a   :  { %5231 = vmatprep.subr.bf16.mxu1 %v5774_v17  ;;  %v5822_v17 = vld [vmem:[%s7496_s1 + $0x5d0] sm:$0xff]  }
  0x7c   :  { %5210 = vmatpush3.bf16.msra.mxu0 %v5775_v18  ;;  %v5823_v18 = vld [vmem:[%s7496_s1 + $0x510] sm:$0xff]  }
  0x7d   :  { %5232 = vmatpush3.bf16.msra.mxu1 %v5776_v19  ;;  %5211 = vmatprep.subr.bf16.mxu0 %v5777_v20  ;;  %v5824_v19 = vld [vmem:[%s7496_s1 + $0x590] sm:$0xff]   ;;  %v5825_v20 = vld [vmem:[%s7496_s1 + $0x558] sm:$0xff]  }
  0x7e   :  { %5233 = vmatprep.subr.bf16.mxu1 %v5778_v21  ;;  %v5826_v21 = vld [vmem:[%s7496_s1 + $0x5d8] sm:$0xff]  }
  0x80   :  { %5212 = vmatpush3.bf16.msra.mxu0 %v5779_v22  ;;  %v5827_v22 = vld [vmem:[%s7496_s1 + $0x518] sm:$0xff]  }
  0x81   :  { %5234 = vmatpush3.bf16.msra.mxu1 %v5780_v23  ;;  %5241 = vmatprep.subr.bf16.mxu0 %v5781_v32  ;;  %v5828_v23 = vld [vmem:[%s7496_s1 + $0x598] sm:$0xff]   ;;  %v5837_v32 = vld [vmem:[%s7496_s1 + $0x570] sm:$0xff]  }
  0x82   :  { %5263 = vmatprep.subr.bf16.mxu1 %v5782_v33  ;;  %v5838_v33 = vld [vmem:[%s7496_s1 + $0x5f0] sm:$0xff]  }
  0x83   :  { %3673 = vmatmul.mubr.bf16.vlgmr.msra.gmra.mrb[12].mxu0 %v4627_v27  ;;  %v5832_v27 = vld [vmem:[%s7496_s1 + $0x5a0] sm:$0xff]  }
  0x84   :  { %3714 = vmatmul.mubr.bf16.vlgmr.msra.gmra.mrb[12].mxu1 %v4629_v30  ;;  %5242 = vmatpush3.bf16.msra.mxu0 %v5783_v34  ;;  %v5835_v30 = vld [vmem:[%s7496_s1 + $0x528] sm:$0xff]   ;;  %v5839_v34 = vld [vmem:[%s7496_s1 + $0x530] sm:$0xff]  }
  0x85   :  { %5264 = vmatpush3.bf16.msra.mxu1 %v5784_v35  ;;  %5243 = vmatprep.subr.bf16.mxu0 %v5785_v36  ;;  %v5840_v35 = vld [vmem:[%s7496_s1 + $0x5b0] sm:$0xff]   ;;  %v5841_v36 = vld [vmem:[%s7496_s1 + $0x578] sm:$0xff]  }
  0x86   :  { %5265 = vmatprep.subr.bf16.mxu1 %v5786_v37  ;;  %3754 = vmatprep.mubr.bf16.mxu0 %v4632_v3  ;;  %v5842_v37 = vld [vmem:[%s7496_s1 + $0x5f8] sm:$0xff]   ;;  %v5864_v3 = vld [vmem:[%s7496_s1 + $0x6a0] sm:$0xff]  }
  0x87   :  { %3795 = vmatprep.mubr.bf16.mxu1 %v4634_v7  ;;  %v5868_v7 = vld [vmem:[%s7496_s1 + $0x6a8] sm:$0xff]  }
  0x88   :  { %5244 = vmatpush3.bf16.msra.mxu0 %v5787_v38  ;;  %v5843_v38 = vld [vmem:[%s7496_s1 + $0x538] sm:$0xff]  }
  0x89   :  { %5266 = vmatpush3.bf16.msra.mxu1 %v5788_v39  ;;  %5245 = vmatprep.subr.bf16.mxu0 %v5789_v40  ;;  %v5844_v39 = vld [vmem:[%s7496_s1 + $0x5b8] sm:$0xff]   ;;  %v37_v40 = vld [vmem:[%s7497_s0 + $0x50] sm:$0xff] }
  0x8a   :  { %5267 = vmatprep.subr.bf16.mxu1 %v5790_v41  ;;  %v61_v41 = vld [vmem:[%s7497_s0 + $0x110] sm:$0xff] }
  0x8c   :  { %5246 = vmatpush3.bf16.msra.mxu0 %v5791_v42  ;;  %v38_v42 = vld [vmem:[%s7497_s0 + $0x58] sm:$0xff] }
  0x8d   :  { %5268 = vmatpush3.bf16.msra.mxu1 %v5792_v43  ;;  %5247 = vmatprep.subr.bf16.mxu0 %v5793_v44  ;;  %v62_v43 = vld [vmem:[%s7497_s0 + $0x118] sm:$0xff]  ;;  %v4635_v44 = vcombine.low %v37_v40, %v61_v41 }
  0x8e   :  { %5269 = vmatprep.subr.bf16.mxu1 %v5794_v45  ;;  %v4636_v45 = vcombine.high %v37_v40, %v61_v41  ;;  %v5892_v41 = vld [vmem:[%s7496_s1 + $0x798] sm:$0xff]  }
  0x90   :  { %5248 = vmatpush3.bf16.msra.mxu0 %v5795_v46  ;;  %v4637_v46 = vcombine.low %v38_v42, %v62_v43 }
  0x91   :  { %5270 = vmatpush3.bf16.msra.mxu1 %v5796_v47  ;;  %5249 = vmatprep.subr.bf16.mxu0 %v5797_v48  ;;  %v4638_v47 = vcombine.high %v38_v42, %v62_v43  ;;  %v5845_v48 = vld [vmem:[%s7496_s1 + $0x640] sm:$0xff]  }
  0x92   :  { %5271 = vmatprep.subr.bf16.mxu1 %v5798_v49  ;;  %v5846_v49 = vld [vmem:[%s7496_s1 + $0x6c0] sm:$0xff]  }
  0x93   :  { %v5893_v43 = vld [vmem:[%s7496_s1 + $0x760] sm:$0xff]  }
  0x94   :  { %5250 = vmatpush3.bf16.msra.mxu0 %v5799_v50  ;;  %v5847_v50 = vld [vmem:[%s7496_s1 + $0x600] sm:$0xff]  }
  0x95   :  { %5272 = vmatpush3.bf16.msra.mxu1 %v5800_v51  ;;  %5251 = vmatprep.subr.bf16.mxu0 %v5801_v52  ;;  %v5848_v51 = vld [vmem:[%s7496_s1 + $0x680] sm:$0xff]   ;;  %v5849_v52 = vld [vmem:[%s7496_s1 + $0x648] sm:$0xff]  }
  0x96   :  { %5273 = vmatprep.subr.bf16.mxu1 %v5802_v53  ;;  %v5850_v53 = vld [vmem:[%s7496_s1 + $0x6c8] sm:$0xff]  }
  0x98   :  { %5252 = vmatpush3.bf16.msra.mxu0 %v5803_v54  ;;  %v5851_v54 = vld [vmem:[%s7496_s1 + $0x608] sm:$0xff]  }
  0x99   :  { %5274 = vmatpush3.bf16.msra.mxu1 %v5804_v55  ;;  %5253 = vmatprep.subr.bf16.mxu0 %v5805_v56  ;;  %v5852_v55 = vld [vmem:[%s7496_s1 + $0x688] sm:$0xff]   ;;  %v5853_v56 = vld [vmem:[%s7496_s1 + $0x650] sm:$0xff]  }
  0x9a   :  { %5275 = vmatprep.subr.bf16.mxu1 %v5806_v57  ;;  %v5854_v57 = vld [vmem:[%s7496_s1 + $0x6d0] sm:$0xff]  }
  0x9c   :  { %5254 = vmatpush3.bf16.msra.mxu0 %v5807_v58  ;;  %v5855_v58 = vld [vmem:[%s7496_s1 + $0x610] sm:$0xff]  }
  0x9d   :  { %5276 = vmatpush3.bf16.msra.mxu1 %v5808_v59  ;;  %5255 = vmatprep.subr.bf16.mxu0 %v5809_v60  ;;  %v5856_v59 = vld [vmem:[%s7496_s1 + $0x690] sm:$0xff]   ;;  %v5857_v60 = vld [vmem:[%s7496_s1 + $0x658] sm:$0xff]  }
  0x9e   :  { %5277 = vmatprep.subr.bf16.mxu1 %v5810_v61  ;;  %v5858_v61 = vld [vmem:[%s7496_s1 + $0x6d8] sm:$0xff]  }
  0xa0   :  { %5256 = vmatpush3.bf16.msra.mxu0 %v5811_v62  ;;  %v5859_v62 = vld [vmem:[%s7496_s1 + $0x618] sm:$0xff]  }
  0xa1   :  { %5278 = vmatpush3.bf16.msra.mxu1 %v5812_v63  ;;  %5285 = vmatprep.subr.bf16.mxu0 %v5813_v8  ;;  %v5860_v63 = vld [vmem:[%s7496_s1 + $0x698] sm:$0xff]   ;;  %v5869_v8 = vld [vmem:[%s7496_s1 + $0x670] sm:$0xff]  }
  0xa2   :  { %5307 = vmatprep.subr.bf16.mxu1 %v5814_v9  ;;  %v5870_v9 = vld [vmem:[%s7496_s1 + $0x6f0] sm:$0xff]  }
  0xa3   :  { %3755 = vmatmul.mubr.bf16.vlgmr.msra.gmra.mrb[16].mxu0 %v4631_v2  ;;  %v5863_v2 = vld [vmem:[%s7496_s1 + $0x620] sm:$0xff]  }
  0xa4   :  { %3796 = vmatmul.mubr.bf16.vlgmr.msra.gmra.mrb[16].mxu1 %v4633_v6  ;;  %5286 = vmatpush3.bf16.msra.mxu0 %v5815_v10  ;;  %v5867_v6 = vld [vmem:[%s7496_s1 + $0x628] sm:$0xff]   ;;  %v5871_v10 = vld [vmem:[%s7496_s1 + $0x630] sm:$0xff]  }
  0xa5   :  { %5308 = vmatpush3.bf16.msra.mxu1 %v5816_v11  ;;  %5287 = vmatprep.subr.bf16.mxu0 %v5817_v12  ;;  %v5872_v11 = vld [vmem:[%s7496_s1 + $0x6b0] sm:$0xff]   ;;  %v5873_v12 = vld [vmem:[%s7496_s1 + $0x678] sm:$0xff]  }
  0xa6   :  { %5309 = vmatprep.subr.bf16.mxu1 %v5818_v13  ;;  %3836 = vmatprep.mubr.bf16.mxu0 %v4636_v45  ;;  %v5874_v13 = vld [vmem:[%s7496_s1 + $0x6f8] sm:$0xff]  }
  0xa7   :  { %3877 = vmatprep.mubr.bf16.mxu1 %v4638_v47 }
  0xa8   :  { %5288 = vmatpush3.bf16.msra.mxu0 %v5819_v14  ;;  %v5875_v14 = vld [vmem:[%s7496_s1 + $0x638] sm:$0xff]  }
  0xa9   :  { %5310 = vmatpush3.bf16.msra.mxu1 %v5820_v15  ;;  %5289 = vmatprep.subr.bf16.mxu0 %v5821_v16  ;;  %v5876_v15 = vld [vmem:[%s7496_s1 + $0x6b8] sm:$0xff]   ;;  %v39_v16 = vld [vmem:[%s7497_s0 + $0x60] sm:$0xff] }
  0xaa   :  { %5311 = vmatprep.subr.bf16.mxu1 %v5822_v17  ;;  %v63_v17 = vld [vmem:[%s7497_s0 + $0x120] sm:$0xff] }
  0xac   :  { %5290 = vmatpush3.bf16.msra.mxu0 %v5823_v18  ;;  %v40_v18 = vld [vmem:[%s7497_s0 + $0x68] sm:$0xff] }
  0xad   :  { %5312 = vmatpush3.bf16.msra.mxu1 %v5824_v19  ;;  %5291 = vmatprep.subr.bf16.mxu0 %v5825_v20  ;;  %v4639_v19 = vcombine.low %v39_v16, %v63_v17  ;;  %v4640_v20 = vcombine.high %v39_v16, %v63_v17  ;;  %v5909_v17 = vld [vmem:[%s7496_s1 + $0x840] sm:$0xff]  }
  0xae   :  { %5313 = vmatprep.subr.bf16.mxu1 %v5826_v21  ;;  %v64_v21 = vld [vmem:[%s7497_s0 + $0x128] sm:$0xff] }
  0xb0   :  { %5292 = vmatpush3.bf16.msra.mxu0 %v5827_v22  ;;  %v4641_v22 = vcombine.low %v40_v18, %v64_v21 }
  0xb1   :  { %5314 = vmatpush3.bf16.msra.mxu1 %v5828_v23  ;;  %5293 = vmatprep.subr.bf16.mxu0 %v5829_v24  ;;  %v4642_v23 = vcombine.high %v40_v18, %v64_v21  ;;  %v5877_v24 = vld [vmem:[%s7496_s1 + $0x740] sm:$0xff]   ;;  %v5913_v21 = vld [vmem:[%s7496_s1 + $0x848] sm:$0xff]  }
  0xb2   :  { %5315 = vmatprep.subr.bf16.mxu1 %v5830_v25  ;;  %v5878_v25 = vld [vmem:[%s7496_s1 + $0x7c0] sm:$0xff]  }
  0xb3   :  { %v5910_v18 = vld [vmem:[%s7496_s1 + $0x8c0] sm:$0xff]  }
  0xb4   :  { %5294 = vmatpush3.bf16.msra.mxu0 %v5831_v26  ;;  %v5879_v26 = vld [vmem:[%s7496_s1 + $0x700] sm:$0xff]  }
  0xb5   :  { %5316 = vmatpush3.bf16.msra.mxu1 %v5832_v27  ;;  %5295 = vmatprep.subr.bf16.mxu0 %v5833_v28  ;;  %v5880_v27 = vld [vmem:[%s7496_s1 + $0x780] sm:$0xff]   ;;  %v5881_v28 = vld [vmem:[%s7496_s1 + $0x748] sm:$0xff]  }
  0xb6   :  { %5317 = vmatprep.subr.bf16.mxu1 %v5834_v29  ;;  %v5882_v29 = vld [vmem:[%s7496_s1 + $0x7c8] sm:$0xff]  }
  0xb8   :  { %5296 = vmatpush3.bf16.msra.mxu0 %v5835_v30  ;;  %v5883_v30 = vld [vmem:[%s7496_s1 + $0x708] sm:$0xff]  }
  0xb9   :  { %5318 = vmatpush3.bf16.msra.mxu1 %v5836_v31  ;;  %5297 = vmatprep.subr.bf16.mxu0 %v5837_v32  ;;  %v5884_v31 = vld [vmem:[%s7496_s1 + $0x788] sm:$0xff]   ;;  %v5885_v32 = vld [vmem:[%s7496_s1 + $0x750] sm:$0xff]  }
  0xba   :  { %5319 = vmatprep.subr.bf16.mxu1 %v5838_v33  ;;  %v5886_v33 = vld [vmem:[%s7496_s1 + $0x7d0] sm:$0xff]  }
  0xbc   :  { %5298 = vmatpush3.bf16.msra.mxu0 %v5839_v34  ;;  %v5887_v34 = vld [vmem:[%s7496_s1 + $0x710] sm:$0xff]  }
  0xbd   :  { %5320 = vmatpush3.bf16.msra.mxu1 %v5840_v35  ;;  %5299 = vmatprep.subr.bf16.mxu0 %v5841_v36  ;;  %v5888_v35 = vld [vmem:[%s7496_s1 + $0x790] sm:$0xff]   ;;  %v5889_v36 = vld [vmem:[%s7496_s1 + $0x758] sm:$0xff]  }
  0xbe   :  { %5321 = vmatprep.subr.bf16.mxu1 %v5842_v37  ;;  %v5890_v37 = vld [vmem:[%s7496_s1 + $0x7d8] sm:$0xff]  }
  0xc0   :  { %5300 = vmatpush3.bf16.msra.mxu0 %v5843_v38 }
  0xc1   :  { %5322 = vmatpush3.bf16.msra.mxu1 %v5844_v39  ;;  %5329 = vmatprep.subr.bf16.mxu0 %v5845_v48  ;;  %v5891_v39 = vld [vmem:[%s7496_s1 + $0x718] sm:$0xff]  }
  0xc2   :  { %5351 = vmatprep.subr.bf16.mxu1 %v5846_v49  ;;  %v5895_v49 = vld [vmem:[%s7496_s1 + $0x720] sm:$0xff]  }
  0xc3   :  { %3837 = vmatmul.mubr.bf16.vlgmr.msra.gmra.mrb[20].mxu0 %v4635_v44 }
  0xc4   :  { %3878 = vmatmul.mubr.bf16.vlgmr.msra.gmra.mrb[20].mxu1 %v4637_v46  ;;  %5330 = vmatpush3.bf16.msra.mxu0 %v5847_v50  ;;  %v5894_v46 = vld [vmem:[%s7496_s1 + $0x7e0] sm:$0xff]  }
  0xc5   :  { %5352 = vmatpush3.bf16.msra.mxu1 %v5848_v51  ;;  %5331 = vmatprep.subr.bf16.mxu0 %v5849_v52  ;;  %v5896_v51 = vld [vmem:[%s7496_s1 + $0x7a0] sm:$0xff]  }
  0xc6   :  { %5353 = vmatprep.subr.bf16.mxu1 %v5850_v53  ;;  %3918 = vmatprep.mubr.bf16.mxu0 %v4640_v20  ;;  %v4614_v52 = vld [vmem:[%s7498_s2] ss:$0 sm:$0xff] }
  0xc7   :  { %3959 = vmatprep.mubr.bf16.mxu1 %v4642_v23  ;;  %v5912_v20 = vld [vmem:[%s7496_s1 + $0x880] sm:$0xff]   ;;  %v5915_v23 = vld [vmem:[%s7496_s1 + $0x808] sm:$0xff]  }
  0xc8   :  { %5332 = vmatpush3.bf16.msra.mxu0 %v5851_v54 }
  0xc9   :  { %5354 = vmatpush3.bf16.msra.mxu1 %v5852_v55  ;;  %5333 = vmatprep.subr.bf16.mxu0 %v5853_v56  ;;  %v5897_v55 = vld [vmem:[%s7496_s1 + $0x768] sm:$0xff]  }
  0xca   :  { %5355 = vmatprep.subr.bf16.mxu1 %v5854_v57 }
  0xcc   :  { %5334 = vmatpush3.bf16.msra.mxu0 %v5855_v58  ;;  %v5898_v58 = vld [vmem:[%s7496_s1 + $0x7e8] sm:$0xff]  }
  0xcd   :  { %5356 = vmatpush3.bf16.msra.mxu1 %v5856_v59  ;;  %5335 = vmatprep.subr.bf16.mxu0 %v5857_v60 }
  0xce   :  { %5357 = vmatprep.subr.bf16.mxu1 %v5858_v61  ;;  %v5899_v61 = vld [vmem:[%s7496_s1 + $0x728] sm:$0xff]  }
  0xd0   :  { %5336 = vmatpush3.bf16.msra.mxu0 %v5859_v62 }
  0xd1   :  { %5358 = vmatpush3.bf16.msra.mxu1 %v5860_v63  ;;  %5337 = vmatprep.subr.bf16.mxu0 %v5861_v0  ;;  %v5900_v63 = vld [vmem:[%s7496_s1 + $0x7a8] sm:$0xff]  }
  0xd2   :  { %5359 = vmatprep.subr.bf16.mxu1 %v5862_v1  ;;  %v5901_v1 = vld [vmem:[%s7496_s1 + $0x770] sm:$0xff]  }
  0xd4   :  { %5338 = vmatpush3.bf16.msra.mxu0 %v5863_v2  ;;  %v5902_v2 = vld [vmem:[%s7496_s1 + $0x7f0] sm:$0xff]  }
  0xd5   :  { %5360 = vmatpush3.bf16.msra.mxu1 %v5864_v3  ;;  %5339 = vmatprep.subr.bf16.mxu0 %v5865_v4  ;;  %v5903_v3 = vld [vmem:[%s7496_s1 + $0x730] sm:$0xff]  }
  0xd6   :  { %5361 = vmatprep.subr.bf16.mxu1 %v5866_v5  ;;  %v5904_v4 = vld [vmem:[%s7496_s1 + $0x7b0] sm:$0xff]   ;;  %v5905_v5 = vld [vmem:[%s7496_s1 + $0x778] sm:$0xff]  }
  0xd8   :  { %5340 = vmatpush3.bf16.msra.mxu0 %v5867_v6  ;;  %v5906_v6 = vld [vmem:[%s7496_s1 + $0x7f8] sm:$0xff]  }
  0xd9   :  { %5362 = vmatpush3.bf16.msra.mxu1 %v5868_v7  ;;  %5341 = vmatprep.subr.bf16.mxu0 %v5869_v8  ;;  %v5907_v7 = vld [vmem:[%s7496_s1 + $0x738] sm:$0xff]  }
  0xda   :  { %5363 = vmatprep.subr.bf16.mxu1 %v5870_v9  ;;  %v5908_v8 = vld [vmem:[%s7496_s1 + $0x7b8] sm:$0xff]   ;;  %v41_v9 = vld [vmem:[%s7497_s0 + $0x70] sm:$0xff] }
  0xdc   :  { %5342 = vmatpush3.bf16.msra.mxu0 %v5871_v10  ;;  %v65_v10 = vld [vmem:[%s7497_s0 + $0x130] sm:$0xff] }
  0xdd   :  { %5364 = vmatpush3.bf16.msra.mxu1 %v5872_v11  ;;  %5343 = vmatprep.subr.bf16.mxu0 %v5873_v12  ;;  %v42_v11 = vld [vmem:[%s7497_s0 + $0x78] sm:$0xff] }
  0xde   :  { %5365 = vmatprep.subr.bf16.mxu1 %v5874_v13  ;;  %v66_v12 = vld [vmem:[%s7497_s0 + $0x138] sm:$0xff]  ;;  %v4643_v13 = vcombine.low %v41_v9, %v65_v10 }
  0xdf   :  { %v4646_v16 = vcombine.high %v42_v11, %v66_v12 }
  0xe0   :  { %5344 = vmatpush3.bf16.msra.mxu0 %v5875_v14  ;;  %v4644_v14 = vcombine.high %v41_v9, %v65_v10  ;;  %v5941_v9 = vld [vmem:[%s7496_s1 + $0x940] sm:$0xff]  }
  0xe1   :  { %5366 = vmatpush3.bf16.msra.mxu1 %v5876_v15  ;;  %5373 = vmatprep.subr.bf16.mxu0 %v5877_v24  ;;  %v4645_v15 = vcombine.low %v42_v11, %v66_v12  ;;  %v5916_v24 = vld [vmem:[%s7496_s1 + $0x888] sm:$0xff]   ;;  %v5942_v10 = vld [vmem:[%s7496_s1 + $0x9c0] sm:$0xff]  }
  0xe2   :  { %5395 = vmatprep.subr.bf16.mxu1 %v5878_v25  ;;  %v5917_v25 = vld [vmem:[%s7496_s1 + $0x850] sm:$0xff]   ;;  %v5943_v11 = vld [vmem:[%s7496_s1 + $0x900] sm:$0xff]  }
  0xe3   :  { %3919 = vmatmul.mubr.bf16.vlgmr.msra.gmra.mrb[24].mxu0 %v4639_v19  ;;  %v5911_v19 = vld [vmem:[%s7496_s1 + $0x800] sm:$0xff]  }
  0xe4   :  { %3960 = vmatmul.mubr.bf16.vlgmr.msra.gmra.mrb[24].mxu1 %v4641_v22  ;;  %5374 = vmatpush3.bf16.msra.mxu0 %v5879_v26  ;;  %v5914_v22 = vld [vmem:[%s7496_s1 + $0x8c8] sm:$0xff]   ;;  %v5918_v26 = vld [vmem:[%s7496_s1 + $0x8d0] sm:$0xff]   ;;  %v5944_v12 = vld [vmem:[%s7496_s1 + $0x980] sm:$0xff]  }
  0xe5   :  { %5396 = vmatpush3.bf16.msra.mxu1 %v5880_v27  ;;  %5375 = vmatprep.subr.bf16.mxu0 %v5881_v28  ;;  %v5919_v27 = vld [vmem:[%s7496_s1 + $0x810] sm:$0xff]  }
  0xe6   :  { %5397 = vmatprep.subr.bf16.mxu1 %v5882_v29  ;;  %4000 = vmatprep.mubr.bf16.mxu0 %v4644_v14  ;;  %v5920_v28 = vld [vmem:[%s7496_s1 + $0x890] sm:$0xff]   ;;  %v5921_v29 = vld [vmem:[%s7496_s1 + $0x858] sm:$0xff]   ;;  %v5946_v14 = vld [vmem:[%s7496_s1 + $0x9c8] sm:$0xff]  }
  0xe7   :  { %4041 = vmatprep.mubr.bf16.mxu1 %v4646_v16  ;;  %v5948_v16 = vld [vmem:[%s7496_s1 + $0x988] sm:$0xff]  }
  0xe8   :  { %5376 = vmatpush3.bf16.msra.mxu0 %v5883_v30  ;;  %v5922_v30 = vld [vmem:[%s7496_s1 + $0x8d8] sm:$0xff]  }
  0xe9   :  { %5398 = vmatpush3.bf16.msra.mxu1 %v5884_v31  ;;  %5377 = vmatprep.subr.bf16.mxu0 %v5885_v32  ;;  %v5923_v32 = vld [vmem:[%s7496_s1 + $0x818] sm:$0xff]  }
  0xea   :  { %5399 = vmatprep.subr.bf16.mxu1 %v5886_v33 }
  0xec   :  { %5378 = vmatpush3.bf16.msra.mxu0 %v5887_v34  ;;  %v5924_v34 = vld [vmem:[%s7496_s1 + $0x898] sm:$0xff]  }
  0xed   :  { %5400 = vmatpush3.bf16.msra.mxu1 %v5888_v35  ;;  %5379 = vmatprep.subr.bf16.mxu0 %v5889_v36  ;;  %v5925_v36 = vld [vmem:[%s7496_s1 + $0x860] sm:$0xff]  }
  0xee   :  { %5401 = vmatprep.subr.bf16.mxu1 %v5890_v37 }
  0xf0   :  { %5380 = vmatpush3.bf16.msra.mxu0 %v5891_v39  ;;  %v5926_v39 = vld [vmem:[%s7496_s1 + $0x8e0] sm:$0xff]  }
  0xf1   :  { %5402 = vmatpush3.bf16.msra.mxu1 %v5892_v41  ;;  %5381 = vmatprep.subr.bf16.mxu0 %v5893_v43 }
  0xf2   :  { %5403 = vmatprep.subr.bf16.mxu1 %v5894_v46 }
  0xf4   :  { %5382 = vmatpush3.bf16.msra.mxu0 %v5895_v49 }
  0xf5   :  { %5404 = vmatpush3.bf16.msra.mxu1 %v5896_v51  ;;  %5383 = vmatprep.subr.bf16.mxu0 %v5897_v55  ;;  %v5930_v51 = vld [vmem:[%s7496_s1 + $0x8e8] sm:$0xff]  }
  0xf6   :  { %v5081_v38 = vpop.f32.mrb[0].mxu0  ;;  %5405 = vmatprep.subr.bf16.mxu1 %v5898_v58  ;;  %v5932_v55 = vld [vmem:[%s7496_s1 + $0x8a8] sm:$0xff]   ;;  %v5934_v58 = vld [vmem:[%s7496_s1 + $0x8f0] sm:$0xff]  }
  0xf7   :  { %v5103_v40 = vpop.f32.mrb[0].mxu1  ;;  %v5082_v42 = vpop.f32.mrb[1].mxu0 }
  0xf8   :  { %v5083_v44 = vadd.f32 %v5082_v42, %v5081_v38  ;;  %v5104_v45 = vpop.f32.mrb[1].mxu1  ;;  %v5084_v48 = vpop.f32.mrb[2].mxu0  ;;  %5384 = vmatpush3.bf16.msra.mxu0 %v5899_v61  ;;  %v5927_v42 = vld [vmem:[%s7496_s1 + $0x820] sm:$0xff]   ;;  %v5937_v61 = vld [vmem:[%s7496_s1 + $0x878] sm:$0xff]  }
  0xf9   :  { %v5105_v47 = vadd.f32 %v5104_v45, %v5103_v40  ;;  %v5106_v50 = vpop.f32.mrb[2].mxu1  ;;  %v5085_v53 = vpop.f32.mrb[3].mxu0  ;;  %5406 = vmatpush3.bf16.msra.mxu1 %v5900_v63  ;;  %5385 = vmatprep.subr.bf16.mxu0 %v5901_v1  ;;  %v5928_v45 = vld [vmem:[%s7496_s1 + $0x8a0] sm:$0xff]   ;;  %v5939_v63 = vld [vmem:[%s7496_s1 + $0x838] sm:$0xff]  }
  0xfa   :  { %v3429_v54 = vadd.f32 %v5083_v44, %v4614_v52  ;;  %v5086_v56 = vadd.f32 %v5085_v53, %v5084_v48  ;;  %v5107_v57 = vpop.f32.mrb[3].mxu1  ;;  %5407 = vmatprep.subr.bf16.mxu1 %v5902_v2  ;;  %v5929_v48 = vld [vmem:[%s7496_s1 + $0x868] sm:$0xff]   ;;  %v43_v1 = vld [vmem:[%s7497_s0 + $0x80] sm:$0xff] }
  0xfb   :  { %v5108_v59 = vadd.f32 %v5107_v57, %v5106_v50  ;;  %v5931_v53 = vld [vmem:[%s7496_s1 + $0x828] sm:$0xff]   ;;  %v5933_v57 = vld [vmem:[%s7496_s1 + $0x870] sm:$0xff]   ;;  %v67_v2 = vld [vmem:[%s7497_s0 + $0x140] sm:$0xff] }
  0xfc   :  { %v6920_v60 = vadd.f32 %v5105_v47, %v3429_v54  ;;  %v3432_v62 = vadd.f32 %v5086_v56, %v4614_v52  ;;  %5386 = vmatpush3.bf16.msra.mxu0 %v5903_v3  ;;  %v44_v3 = vld [vmem:[%s7497_s0 + $0x88] sm:$0xff] }
  0xfd   :  { %5408 = vmatpush3.bf16.msra.mxu1 %v5904_v4  ;;  %5387 = vmatprep.subr.bf16.mxu0 %v5905_v5  ;;  %v4647_v4 = vcombine.low %v43_v1, %v67_v2  ;;  %v4648_v5 = vcombine.high %v43_v1, %v67_v2  ;;  %v5973_v1 = vld [vmem:[%s7496_s1 + $0xa40] sm:$0xff]  }
  0xfe   :  { %v6928_v0 = vadd.f32 %v5108_v59, %v3432_v62  ;;  %5409 = vmatprep.subr.bf16.mxu1 %v5906_v6  ;;  %v5935_v59 = vld [vmem:[%s7496_s1 + $0x830] sm:$0xff]   ;;  %v5938_v62 = vld [vmem:[%s7496_s1 + $0x8f8] sm:$0xff]   ;;  %v68_v6 = vld [vmem:[%s7497_s0 + $0x148] sm:$0xff] }
  0xff   :  { %v5974_v2 = vld [vmem:[%s7496_s1 + $0xac0] sm:$0xff]  }
 0x100   :  { %5388 = vmatpush3.bf16.msra.mxu0 %v5907_v7  ;;  %v4649_v7 = vcombine.low %v44_v3, %v68_v6 }
 0x101   :  { %5410 = vmatpush3.bf16.msra.mxu1 %v5908_v8  ;;  %5417 = vmatprep.subr.bf16.mxu0 %v5909_v17  ;;  %v4650_v8 = vcombine.high %v44_v3, %v68_v6  ;;  %v5949_v17 = vld [vmem:[%s7496_s1 + $0x950] sm:$0xff]   ;;  %v5975_v3 = vld [vmem:[%s7496_s1 + $0xa00] sm:$0xff]   ;;  %v5978_v6 = vld [vmem:[%s7496_s1 + $0xac8] sm:$0xff]  }
 0x102   :  { %5439 = vmatprep.subr.bf16.mxu1 %v5910_v18  ;;  %v5950_v18 = vld [vmem:[%s7496_s1 + $0x9d0] sm:$0xff]  }
 0x103   :  { %4001 = vmatmul.mubr.bf16.vlgmr.msra.gmra.mrb[28].mxu0 %v4643_v13  ;;  %v5945_v13 = vld [vmem:[%s7496_s1 + $0x948] sm:$0xff]  }
 0x104   :  { %4042 = vmatmul.mubr.bf16.vlgmr.msra.gmra.mrb[28].mxu1 %v4645_v15  ;;  %5418 = vmatpush3.bf16.msra.mxu0 %v5911_v19  ;;  %v5947_v15 = vld [vmem:[%s7496_s1 + $0x908] sm:$0xff]   ;;  %v5951_v19 = vld [vmem:[%s7496_s1 + $0x910] sm:$0xff]  }
 0x105   :  { %5440 = vmatpush3.bf16.msra.mxu1 %v5912_v20  ;;  %5419 = vmatprep.subr.bf16.mxu0 %v5913_v21  ;;  %v5952_v20 = vld [vmem:[%s7496_s1 + $0x990] sm:$0xff]   ;;  %v5953_v21 = vld [vmem:[%s7496_s1 + $0x958] sm:$0xff]  }
 0x106   :  { %5441 = vmatprep.subr.bf16.mxu1 %v5914_v22  ;;  %4082 = vmatprep.mubr.bf16.mxu0 %v4648_v5  ;;  %v5954_v22 = vld [vmem:[%s7496_s1 + $0x9d8] sm:$0xff]   ;;  %v5977_v5 = vld [vmem:[%s7496_s1 + $0xa48] sm:$0xff]  }
 0x107   :  { %4123 = vmatprep.mubr.bf16.mxu1 %v4650_v8  ;;  %v5980_v8 = vld [vmem:[%s7496_s1 + $0xa88] sm:$0xff]  }
 0x108   :  { %5420 = vmatpush3.bf16.msra.mxu0 %v5915_v23 }
 0x109   :  { %5442 = vmatpush3.bf16.msra.mxu1 %v5916_v24  ;;  %5421 = vmatprep.subr.bf16.mxu0 %v5917_v25  ;;  %v5955_v24 = vld [vmem:[%s7496_s1 + $0x918] sm:$0xff]  }
 0x10a   :  { %5443 = vmatprep.subr.bf16.mxu1 %v5918_v26  ;;  %v5956_v26 = vld [vmem:[%s7496_s1 + $0x998] sm:$0xff]  }
 0x10c   :  { %5422 = vmatpush3.bf16.msra.mxu0 %v5919_v27 }
 0x10d   :  { %5444 = vmatpush3.bf16.msra.mxu1 %v5920_v28  ;;  %5423 = vmatprep.subr.bf16.mxu0 %v5921_v29  ;;  %v5957_v28 = vld [vmem:[%s7496_s1 + $0x960] sm:$0xff]  }
 0x10e   :  { %5445 = vmatprep.subr.bf16.mxu1 %v5922_v30 }
 0x110   :  { %5424 = vmatpush3.bf16.msra.mxu0 %v5923_v32 }
 0x111   :  { %5446 = vmatpush3.bf16.msra.mxu1 %v5924_v34  ;;  %5425 = vmatprep.subr.bf16.mxu0 %v5925_v36  ;;  %v5959_v34 = vld [vmem:[%s7496_s1 + $0x920] sm:$0xff]  }
 0x112   :  { %5447 = vmatprep.subr.bf16.mxu1 %v5926_v39 }
 0x114   :  { %5426 = vmatpush3.bf16.msra.mxu0 %v5927_v42 }
 0x115   :  { %5448 = vmatpush3.bf16.msra.mxu1 %v5928_v45  ;;  %5427 = vmatprep.subr.bf16.mxu0 %v5929_v48  ;;  %v5963_v45 = vld [vmem:[%s7496_s1 + $0x928] sm:$0xff]  }
 0x116   :  { %v5125_v31 = vpop.f32.mrb[4].mxu0  ;;  %5449 = vmatprep.subr.bf16.mxu1 %v5930_v51  ;;  %v5967_v51 = vld [vmem:[%s7496_s1 + $0x930] sm:$0xff]  }
 0x117   :  { %v5147_v33 = vpop.f32.mrb[4].mxu1  ;;  %v5126_v35 = vpop.f32.mrb[5].mxu0 }
 0x118   :  { %v5127_v37 = vadd.f32 %v5126_v35, %v5125_v31  ;;  %v5148_v38 = vpop.f32.mrb[5].mxu1  ;;  %v5128_v41 = vpop.f32.mrb[6].mxu0  ;;  %5428 = vmatpush3.bf16.msra.mxu0 %v5931_v53  ;;  %v5958_v31 = vld [vmem:[%s7496_s1 + $0x9e0] sm:$0xff]   ;;  %v5969_v53 = vld [vmem:[%s7496_s1 + $0x978] sm:$0xff]  }
 0x119   :  { %v5149_v40 = vadd.f32 %v5148_v38, %v5147_v33  ;;  %v5150_v44 = vpop.f32.mrb[6].mxu1  ;;  %v5129_v46 = vpop.f32.mrb[7].mxu0  ;;  %5450 = vmatpush3.bf16.msra.mxu1 %v5932_v55  ;;  %5429 = vmatprep.subr.bf16.mxu0 %v5933_v57  ;;  %v5971_v55 = vld [vmem:[%s7496_s1 + $0x938] sm:$0xff]   ;;  %v45_v57 = vld [vmem:[%s7497_s0 + $0x90] sm:$0xff] }
 0x11a   :  { %v3511_v43 = vadd.f32 %v5127_v37, %v6920_v60  ;;  %v5130_v49 = vadd.f32 %v5129_v46, %v5128_v41  ;;  %v5151_v50 = vpop.f32.mrb[7].mxu1  ;;  %5451 = vmatprep.subr.bf16.mxu1 %v5934_v58  ;;  %v5936_v60 = vld [vmem:[%s7496_s1 + $0x8b0] sm:$0xff]   ;;  %v5960_v37 = vld [vmem:[%s7496_s1 + $0x9a0] sm:$0xff]  }
 0x11b   :  { %v5152_v52 = vadd.f32 %v5151_v50, %v5150_v44  ;;  %v5966_v50 = vld [vmem:[%s7496_s1 + $0x9f0] sm:$0xff]  }
 0x11c   :  { %v7027_v47 = vadd.f32 %v5149_v40, %v3511_v43  ;;  %v3514_v54 = vadd.f32 %v5130_v49, %v6928_v0  ;;  %5430 = vmatpush3.bf16.msra.mxu0 %v5935_v59  ;;  %v5940_v0 = vld [vmem:[%s7496_s1 + $0x8b8] sm:$0xff]   ;;  %v5961_v40 = vld [vmem:[%s7496_s1 + $0x968] sm:$0xff]   ;;  %v5965_v49 = vld [vmem:[%s7496_s1 + $0x970] sm:$0xff]  }
 0x11d   :  { %5452 = vmatpush3.bf16.msra.mxu1 %v5936_v60  ;;  %5431 = vmatprep.subr.bf16.mxu0 %v5937_v61  ;;  %v5962_v43 = vld [vmem:[%s7496_s1 + $0x9e8] sm:$0xff]   ;;  %v69_v58 = vld [vmem:[%s7497_s0 + $0x150] sm:$0xff]  ;;  %v46_v61 = vld [vmem:[%s7497_s0 + $0x98] sm:$0xff] }
 0x11e   :  { %v7042_v56 = vadd.f32 %v5152_v52, %v3514_v54  ;;  %5453 = vmatprep.subr.bf16.mxu1 %v5938_v62  ;;  %v5968_v52 = vld [vmem:[%s7496_s1 + $0x9b0] sm:$0xff]   ;;  %v5970_v54 = vld [vmem:[%s7496_s1 + $0x9f8] sm:$0xff]   ;;  %v4651_v59 = vcombine.low %v45_v57, %v69_v58  ;;  %v4652_v60 = vcombine.high %v45_v57, %v69_v58  ;;  %v6005_v57 = vld [vmem:[%s7496_s1 + $0xb40] sm:$0xff]  }
 0x11f   :  { %v70_v62 = vld [vmem:[%s7497_s0 + $0x158] sm:$0xff]  ;;  %v6006_v58 = vld [vmem:[%s7496_s1 + $0xbc0] sm:$0xff]  }
 0x120   :  { %5432 = vmatpush3.bf16.msra.mxu0 %v5939_v63  ;;  %v4653_v63 = vcombine.low %v46_v61, %v70_v62 }
 0x121   :  { %5454 = vmatpush3.bf16.msra.mxu1 %v5940_v0  ;;  %5461 = vmatprep.subr.bf16.mxu0 %v5941_v9  ;;  %v4654_v0 = vcombine.high %v46_v61, %v70_v62  ;;  %v5981_v9 = vld [vmem:[%s7496_s1 + $0xa50] sm:$0xff]   ;;  %v6009_v61 = vld [vmem:[%s7496_s1 + $0xb48] sm:$0xff]  }
 0x122   :  { %5483 = vmatprep.subr.bf16.mxu1 %v5942_v10  ;;  %v5982_v10 = vld [vmem:[%s7496_s1 + $0xad0] sm:$0xff]   ;;  %v6010_v62 = vld [vmem:[%s7496_s1 + $0xbc8] sm:$0xff]  }
 0x123   :  { %4083 = vmatmul.mubr.bf16.vlgmr.msra.gmra.mrb[32].mxu0 %v4647_v4  ;;  %v5976_v4 = vld [vmem:[%s7496_s1 + $0xa80] sm:$0xff]  }
 0x124   :  { %4124 = vmatmul.mubr.bf16.vlgmr.msra.gmra.mrb[32].mxu1 %v4649_v7  ;;  %5462 = vmatpush3.bf16.msra.mxu0 %v5943_v11  ;;  %v5979_v7 = vld [vmem:[%s7496_s1 + $0xa08] sm:$0xff]   ;;  %v5983_v11 = vld [vmem:[%s7496_s1 + $0xa10] sm:$0xff]  }
 0x125   :  { %5484 = vmatpush3.bf16.msra.mxu1 %v5944_v12  ;;  %5463 = vmatprep.subr.bf16.mxu0 %v5945_v13  ;;  %v5984_v12 = vld [vmem:[%s7496_s1 + $0xa90] sm:$0xff]   ;;  %v5985_v13 = vld [vmem:[%s7496_s1 + $0xa58] sm:$0xff]  }
 0x126   :  { %5485 = vmatprep.subr.bf16.mxu1 %v5946_v14  ;;  %4164 = vmatprep.mubr.bf16.mxu0 %v4652_v60  ;;  %v5986_v14 = vld [vmem:[%s7496_s1 + $0xad8] sm:$0xff]   ;;  %v6008_v60 = vld [vmem:[%s7496_s1 + $0xb80] sm:$0xff]  }
 0x127   :  { %4205 = vmatprep.mubr.bf16.mxu1 %v4654_v0  ;;  %v6012_v0 = vld [vmem:[%s7496_s1 + $0xb88] sm:$0xff]  }
 0x128   :  { %5464 = vmatpush3.bf16.msra.mxu0 %v5947_v15 }
 0x129   :  { %5486 = vmatpush3.bf16.msra.mxu1 %v5948_v16  ;;  %5465 = vmatprep.subr.bf16.mxu0 %v5949_v17  ;;  %v5987_v16 = vld [vmem:[%s7496_s1 + $0xa18] sm:$0xff]  }
 0x12a   :  { %5487 = vmatprep.subr.bf16.mxu1 %v5950_v18  ;;  %v5988_v18 = vld [vmem:[%s7496_s1 + $0xa98] sm:$0xff]  }
 0x12c   :  { %5466 = vmatpush3.bf16.msra.mxu0 %v5951_v19 }
 0x12d   :  { %5488 = vmatpush3.bf16.msra.mxu1 %v5952_v20  ;;  %5467 = vmatprep.subr.bf16.mxu0 %v5953_v21  ;;  %v5989_v20 = vld [vmem:[%s7496_s1 + $0xa60] sm:$0xff]  }
 0x12e   :  { %5489 = vmatprep.subr.bf16.mxu1 %v5954_v22 }
 0x130   :  { %5468 = vmatpush3.bf16.msra.mxu0 %v5955_v24 }
 0x131   :  { %5490 = vmatpush3.bf16.msra.mxu1 %v5956_v26  ;;  %5469 = vmatprep.subr.bf16.mxu0 %v5957_v28  ;;  %v5991_v26 = vld [vmem:[%s7496_s1 + $0xa20] sm:$0xff]  }
 0x132   :  { %5491 = vmatprep.subr.bf16.mxu1 %v5958_v31 }
 0x134   :  { %5470 = vmatpush3.bf16.msra.mxu0 %v5959_v34 }
 0x135   :  { %5492 = vmatpush3.bf16.msra.mxu1 %v5960_v37  ;;  %5471 = vmatprep.subr.bf16.mxu0 %v5961_v40  ;;  %v5995_v37 = vld [vmem:[%s7496_s1 + $0xa28] sm:$0xff]  }
 0x136   :  { %v5169_v23 = vpop.f32.mrb[8].mxu0  ;;  %5493 = vmatprep.subr.bf16.mxu1 %v5962_v43  ;;  %v5999_v43 = vld [vmem:[%s7496_s1 + $0xa30] sm:$0xff]  }
 0x137   :  { %v5191_v25 = vpop.f32.mrb[8].mxu1  ;;  %v5170_v27 = vpop.f32.mrb[9].mxu0 }
 0x138   :  { %v5171_v29 = vadd.f32 %v5170_v27, %v5169_v23  ;;  %v5192_v30 = vpop.f32.mrb[9].mxu1  ;;  %v5172_v33 = vpop.f32.mrb[10].mxu0  ;;  %5472 = vmatpush3.bf16.msra.mxu0 %v5963_v45  ;;  %v5990_v23 = vld [vmem:[%s7496_s1 + $0xae0] sm:$0xff]   ;;  %v6001_v45 = vld [vmem:[%s7496_s1 + $0xa78] sm:$0xff]  }
 0x139   :  { %v5193_v32 = vadd.f32 %v5192_v30, %v5191_v25  ;;  %v5194_v36 = vpop.f32.mrb[10].mxu1  ;;  %v5173_v38 = vpop.f32.mrb[11].mxu0  ;;  %5473 = vmatprep.subr.bf16.mxu0 %v5965_v49  ;;  %v47_v49 = vld [vmem:[%s7497_s0 + $0xa0] sm:$0xff] }
 0x13a   :  { %v3593_v35 = vadd.f32 %v5171_v29, %v7027_v47  ;;  %v5174_v41 = vadd.f32 %v5173_v38, %v5172_v33  ;;  %v5195_v42 = vpop.f32.mrb[11].mxu1  ;;  %v5964_v47 = vld [vmem:[%s7496_s1 + $0x9a8] sm:$0xff]   ;;  %v5992_v29 = vld [vmem:[%s7496_s1 + $0xaa0] sm:$0xff]  }
 0x13b   :  { %v5196_v44 = vadd.f32 %v5195_v42, %v5194_v36  ;;  %5494 = vmatpush3.bf16.msra.mxu1 %v5964_v47  ;;  %v5998_v42 = vld [vmem:[%s7496_s1 + $0xaf0] sm:$0xff]   ;;  %v6003_v47 = vld [vmem:[%s7496_s1 + $0xa38] sm:$0xff]  }
 0x13c   :  { %v7141_v39 = vadd.f32 %v5193_v32, %v3593_v35  ;;  %v3596_v46 = vadd.f32 %v5174_v41, %v7042_v56  ;;  %5495 = vmatprep.subr.bf16.mxu1 %v5966_v50  ;;  %5474 = vmatpush3.bf16.msra.mxu0 %v5967_v51  ;;  %v5972_v56 = vld [vmem:[%s7496_s1 + $0x9b8] sm:$0xff]   ;;  %v5993_v32 = vld [vmem:[%s7496_s1 + $0xa68] sm:$0xff]   ;;  %v5997_v41 = vld [vmem:[%s7496_s1 + $0xa70] sm:$0xff]  }
 0x13d   :  { %5475 = vmatprep.subr.bf16.mxu0 %v5969_v53  ;;  %v5994_v35 = vld [vmem:[%s7496_s1 + $0xae8] sm:$0xff]   ;;  %v71_v50 = vld [vmem:[%s7497_s0 + $0x160] sm:$0xff] }
 0x13e   :  { %v7156_v48 = vadd.f32 %v5196_v44, %v3596_v46  ;;  %v6000_v44 = vld [vmem:[%s7496_s1 + $0xab0] sm:$0xff]   ;;  %v6002_v46 = vld [vmem:[%s7496_s1 + $0xaf8] sm:$0xff]   ;;  %v48_v51 = vld [vmem:[%s7497_s0 + $0xa8] sm:$0xff]  ;;  %v4655_v53 = vcombine.low %v47_v49, %v71_v50 }
 0x13f   :  { %5496 = vmatpush3.bf16.msra.mxu1 %v5968_v52  ;;  %v72_v52 = vld [vmem:[%s7497_s0 + $0x168] sm:$0xff] }
 0x140   :  { %5497 = vmatprep.subr.bf16.mxu1 %v5970_v54  ;;  %5476 = vmatpush3.bf16.msra.mxu0 %v5971_v55  ;;  %v4656_v54 = vcombine.high %v47_v49, %v71_v50  ;;  %v4657_v55 = vcombine.low %v48_v51, %v72_v52 }
 0x141   :  { %5505 = vmatprep.subr.bf16.mxu0 %v5973_v1  ;;  %v6013_v1 = vld [vmem:[%s7496_s1 + $0xb50] sm:$0xff]  }
 0x143   :  { %5498 = vmatpush3.bf16.msra.mxu1 %v5972_v56  ;;  %4165 = vmatmul.mubr.bf16.vlgmr.msra.gmra.mrb[36].mxu0 %v4651_v59  ;;  %v4658_v56 = vcombine.high %v48_v51, %v72_v52  ;;  %v6007_v59 = vld [vmem:[%s7496_s1 + $0xb00] sm:$0xff]  }
 0x144   :  { %5527 = vmatprep.subr.bf16.mxu1 %v5974_v2  ;;  %5506 = vmatpush3.bf16.msra.mxu0 %v5975_v3  ;;  %v6014_v2 = vld [vmem:[%s7496_s1 + $0xbd0] sm:$0xff]  }
 0x145   :  { %5507 = vmatprep.subr.bf16.mxu0 %v5977_v5  ;;  %4246 = vmatprep.mubr.bf16.mxu0 %v4656_v54  ;;  %v6015_v3 = vld [vmem:[%s7496_s1 + $0xb10] sm:$0xff]   ;;  %v6017_v5 = vld [vmem:[%s7496_s1 + $0xb58] sm:$0xff]  }
 0x146   :  { %4206 = vmatmul.mubr.bf16.vlgmr.msra.gmra.mrb[36].mxu1 %v4653_v63  ;;  %v6011_v63 = vld [vmem:[%s7496_s1 + $0xb08] sm:$0xff]  }
 0x147   :  { %5528 = vmatpush3.bf16.msra.mxu1 %v5976_v4  ;;  %4287 = vmatprep.mubr.bf16.mxu1 %v4658_v56  ;;  %v6016_v4 = vld [vmem:[%s7496_s1 + $0xb90] sm:$0xff]  }
 0x148   :  { %5529 = vmatprep.subr.bf16.mxu1 %v5978_v6  ;;  %5508 = vmatpush3.bf16.msra.mxu0 %v5979_v7  ;;  %v6018_v6 = vld [vmem:[%s7496_s1 + $0xbd8] sm:$0xff]  }
 0x149   :  { %5509 = vmatprep.subr.bf16.mxu0 %v5981_v9 }
 0x14b   :  { %5530 = vmatpush3.bf16.msra.mxu1 %v5980_v8  ;;  %v6019_v8 = vld [vmem:[%s7496_s1 + $0xb18] sm:$0xff]  }
 0x14c   :  { %5531 = vmatprep.subr.bf16.mxu1 %v5982_v10  ;;  %5510 = vmatpush3.bf16.msra.mxu0 %v5983_v11  ;;  %v6020_v10 = vld [vmem:[%s7496_s1 + $0xb98] sm:$0xff]  }
 0x14d   :  { %5511 = vmatprep.subr.bf16.mxu0 %v5985_v13 }
 0x14f   :  { %5532 = vmatpush3.bf16.msra.mxu1 %v5984_v12  ;;  %v6021_v12 = vld [vmem:[%s7496_s1 + $0xb60] sm:$0xff]  }
 0x150   :  { %5533 = vmatprep.subr.bf16.mxu1 %v5986_v14  ;;  %5512 = vmatpush3.bf16.msra.mxu0 %v5987_v16 }
 0x151   :  { %5513 = vmatprep.subr.bf16.mxu0 %v5989_v20 }
 0x153   :  { %5534 = vmatpush3.bf16.msra.mxu1 %v5988_v18  ;;  %v6023_v18 = vld [vmem:[%s7496_s1 + $0xb20] sm:$0xff]  }
 0x154   :  { %5535 = vmatprep.subr.bf16.mxu1 %v5990_v23  ;;  %5514 = vmatpush3.bf16.msra.mxu0 %v5991_v26 }
 0x155   :  { %5515 = vmatprep.subr.bf16.mxu0 %v5993_v32 }
 0x156   :  { %v5213_v15 = vpop.f32.mrb[12].mxu0 }
 0x157   :  { %v5235_v17 = vpop.f32.mrb[12].mxu1  ;;  %v5214_v19 = vpop.f32.mrb[13].mxu0  ;;  %5536 = vmatpush3.bf16.msra.mxu1 %v5992_v29  ;;  %v6027_v29 = vld [vmem:[%s7496_s1 + $0xb28] sm:$0xff]  }
 0x158   :  { %v5215_v21 = vadd.f32 %v5214_v19, %v5213_v15  ;;  %v5236_v22 = vpop.f32.mrb[13].mxu1  ;;  %v5216_v25 = vpop.f32.mrb[14].mxu0  ;;  %5537 = vmatprep.subr.bf16.mxu1 %v5994_v35  ;;  %5516 = vmatpush3.bf16.msra.mxu0 %v5995_v37  ;;  %v6022_v15 = vld [vmem:[%s7496_s1 + $0xbe0] sm:$0xff]   ;;  %v6031_v35 = vld [vmem:[%s7496_s1 + $0xb30] sm:$0xff]   ;;  %v6033_v37 = vld [vmem:[%s7496_s1 + $0xb78] sm:$0xff]  }
 0x159   :  { %v5237_v24 = vadd.f32 %v5236_v22, %v5235_v17  ;;  %v5238_v28 = vpop.f32.mrb[14].mxu1  ;;  %v5217_v30 = vpop.f32.mrb[15].mxu0  ;;  %5517 = vmatprep.subr.bf16.mxu0 %v5997_v41  ;;  %v49_v41 = vld [vmem:[%s7497_s0 + $0xb0] sm:$0xff] }
 0x15a   :  { %v3675_v27 = vadd.f32 %v5215_v21, %v7141_v39  ;;  %v5218_v33 = vadd.f32 %v5217_v30, %v5216_v25  ;;  %v5239_v34 = vpop.f32.mrb[15].mxu1  ;;  %v5996_v39 = vld [vmem:[%s7496_s1 + $0xaa8] sm:$0xff]   ;;  %v6024_v21 = vld [vmem:[%s7496_s1 + $0xba0] sm:$0xff]  }
 0x15b   :  { %v5240_v36 = vadd.f32 %v5239_v34, %v5238_v28  ;;  %5538 = vmatpush3.bf16.msra.mxu1 %v5996_v39  ;;  %v6030_v34 = vld [vmem:[%s7496_s1 + $0xbf0] sm:$0xff]   ;;  %v6035_v39 = vld [vmem:[%s7496_s1 + $0xb38] sm:$0xff]  }
 0x15c   :  { %v7255_v31 = vadd.f32 %v5237_v24, %v3675_v27  ;;  %v3678_v38 = vadd.f32 %v5218_v33, %v7156_v48  ;;  %5539 = vmatprep.subr.bf16.mxu1 %v5998_v42  ;;  %5518 = vmatpush3.bf16.msra.mxu0 %v5999_v43  ;;  %v6004_v48 = vld [vmem:[%s7496_s1 + $0xab8] sm:$0xff]   ;;  %v6025_v24 = vld [vmem:[%s7496_s1 + $0xb68] sm:$0xff]   ;;  %v6029_v33 = vld [vmem:[%s7496_s1 + $0xb70] sm:$0xff]  }
 0x15d   :  { %5519 = vmatprep.subr.bf16.mxu0 %v6001_v45  ;;  %v6026_v27 = vld [vmem:[%s7496_s1 + $0xbe8] sm:$0xff]   ;;  %v73_v42 = vld [vmem:[%s7497_s0 + $0x170] sm:$0xff]  ;;  %v50_v43 = vld [vmem:[%s7497_s0 + $0xb8] sm:$0xff] }
 0x15e   :  { %v7270_v40 = vadd.f32 %v5240_v36, %v3678_v38  ;;  %v6032_v36 = vld [vmem:[%s7496_s1 + $0xbb0] sm:$0xff]   ;;  %v6034_v38 = vld [vmem:[%s7496_s1 + $0xbf8] sm:$0xff]   ;;  %v4660_v45 = vcombine.high %v49_v41, %v73_v42 }
 0x15f   :  { %5540 = vmatpush3.bf16.msra.mxu1 %v6000_v44  ;;  %v4659_v44 = vcombine.low %v49_v41, %v73_v42  ;;  %v6044_v41 = vld [vmem:[%s7499_s3 + $0x38] sm:$0xff]   ;;  %v6045_v42 = vld [vmem:[%s7500_s5] sm:$0xff]  }
 0x160   :  { %5541 = vmatprep.subr.bf16.mxu1 %v6002_v46  ;;  %5520 = vmatpush3.bf16.msra.mxu0 %v6003_v47  ;;  %v74_v46 = vld [vmem:[%s7497_s0 + $0x178] sm:$0xff] }
 0x161   :  { %5549 = vmatprep.subr.bf16.mxu0 %v6005_v57  ;;  %v4661_v47 = vcombine.low %v50_v43, %v74_v46 }
 0x163   :  { %5542 = vmatpush3.bf16.msra.mxu1 %v6004_v48  ;;  %4247 = vmatmul.mubr.bf16.vlgmr.msra.gmra.mrb[40].mxu0 %v4655_v53  ;;  %v4662_v48 = vcombine.high %v50_v43, %v74_v46  ;;  %v6046_v43 = vld [vmem:[%s7500_s5 + $0x8] sm:$0xff]  }
 0x164   :  { %5571 = vmatprep.subr.bf16.mxu1 %v6006_v58  ;;  %5550 = vmatpush3.bf16.msra.mxu0 %v6007_v59 }
 0x165   :  { %5551 = vmatprep.subr.bf16.mxu0 %v6009_v61  ;;  %4328 = vmatprep.mubr.bf16.mxu0 %v4660_v45  ;;  %v6048_v45 = vld [vmem:[%s7500_s5 + $0x18] sm:$0xff]  }
 0x166   :  { %4288 = vmatmul.mubr.bf16.vlgmr.msra.gmra.mrb[40].mxu1 %v4657_v55 }
 0x167   :  { %5572 = vmatpush3.bf16.msra.mxu1 %v6008_v60  ;;  %4369 = vmatprep.mubr.bf16.mxu1 %v4662_v48 }
 0x168   :  { %5573 = vmatprep.subr.bf16.mxu1 %v6010_v62  ;;  %5552 = vmatpush3.bf16.msra.mxu0 %v6011_v63 }
 0x169   :  { %5553 = vmatprep.subr.bf16.mxu0 %v6013_v1 }
 0x16b   :  { %5574 = vmatpush3.bf16.msra.mxu1 %v6012_v0 }
 0x16c   :  { %5575 = vmatprep.subr.bf16.mxu1 %v6014_v2  ;;  %5554 = vmatpush3.bf16.msra.mxu0 %v6015_v3 }
 0x16d   :  { %5555 = vmatprep.subr.bf16.mxu0 %v6017_v5 }
 0x16f   :  { %5576 = vmatpush3.bf16.msra.mxu1 %v6016_v4 }
 0x170   :  { %5577 = vmatprep.subr.bf16.mxu1 %v6018_v6  ;;  %5556 = vmatpush3.bf16.msra.mxu0 %v6019_v8 }
 0x171   :  { %5557 = vmatprep.subr.bf16.mxu0 %v6021_v12 }
 0x173   :  { %5578 = vmatpush3.bf16.msra.mxu1 %v6020_v10 }
 0x174   :  { %5579 = vmatprep.subr.bf16.mxu1 %v6022_v15  ;;  %5558 = vmatpush3.bf16.msra.mxu0 %v6023_v18  ;;  %v6037_v18 = vld [vmem:[%s7499_s3] sm:$0xff]  }
 0x175   :  { %5559 = vmatprep.subr.bf16.mxu0 %v6025_v24 }
 0x176   :  { %v5257_v7 = vpop.f32.mrb[16].mxu0 }
 0x177   :  { %v5279_v9 = vpop.f32.mrb[16].mxu1  ;;  %v5258_v11 = vpop.f32.mrb[17].mxu0  ;;  %5580 = vmatpush3.bf16.msra.mxu1 %v6024_v21  ;;  %v6040_v21 = vld [vmem:[%s7499_s3 + $0x18] sm:$0xff]  }
 0x178   :  { %v5259_v13 = vadd.f32 %v5258_v11, %v5257_v7  ;;  %v5280_v14 = vpop.f32.mrb[17].mxu1  ;;  %v5260_v17 = vpop.f32.mrb[18].mxu0  ;;  %5581 = vmatprep.subr.bf16.mxu1 %v6026_v27  ;;  %5560 = vmatpush3.bf16.msra.mxu0 %v6027_v29 }
 0x179   :  { %v5281_v16 = vadd.f32 %v5280_v14, %v5279_v9  ;;  %v5282_v20 = vpop.f32.mrb[18].mxu1  ;;  %v5261_v22 = vpop.f32.mrb[19].mxu0  ;;  %5561 = vmatprep.subr.bf16.mxu0 %v6029_v33 }
 0x17a   :  { %v3757_v19 = vadd.f32 %v5259_v13, %v7255_v31  ;;  %v5262_v25 = vadd.f32 %v5261_v22, %v5260_v17  ;;  %v5283_v26 = vpop.f32.mrb[19].mxu1  ;;  %v6028_v31 = vld [vmem:[%s7496_s1 + $0xba8] sm:$0xff]   ;;  %v6053_v17 = vmov 0.0   ;;  %v6041_v22 = vld [vmem:[%s7499_s3 + $0x20] sm:$0xff]  }
 0x17b   :  { %v5284_v28 = vadd.f32 %v5283_v26, %v5282_v20  ;;  %5582 = vmatpush3.bf16.msra.mxu1 %v6028_v31  ;;  %v6039_v20 = vld [vmem:[%s7499_s3 + $0x10] sm:$0xff]  }
 0x17c   :  { %v3798_v23 = vadd.f32 %v5281_v16, %v3757_v19  ;;  %v3760_v30 = vadd.f32 %v5262_v25, %v7270_v40  ;;  %5583 = vmatprep.subr.bf16.mxu1 %v6030_v34  ;;  %5562 = vmatpush3.bf16.msra.mxu0 %v6031_v35  ;;  %v6036_v40 = vld [vmem:[%s7496_s1 + $0xbb8] sm:$0xff]   ;;  %v6038_v19 = vld [vmem:[%s7499_s3 + $0x8] sm:$0xff]  }
 0x17d   :  { %5563 = vmatprep.subr.bf16.mxu0 %v6033_v37 }
 0x17e   :  { %v3801_v32 = vadd.f32 %v5284_v28, %v3760_v30 }
 0x17f   :  { %5584 = vmatpush3.bf16.msra.mxu1 %v6032_v36 }
 0x180   :  { %5585 = vmatprep.subr.bf16.mxu1 %v6034_v38  ;;  %5564 = vmatpush3.bf16.msra.mxu0 %v6035_v39  ;;  %v6042_v38 = vld [vmem:[%s7499_s3 + $0x28] sm:$0xff]  }
 0x181   :  { %5611 = vmatprep.subr.bf16.mxu0 %v6053_v17 }
 0x183   :  { %5586 = vmatpush3.bf16.msra.mxu1 %v6036_v40  ;;  %4329 = vmatmul.mubr.bf16.vlgmr.msra.gmra.mrb[44].mxu0 %v4659_v44  ;;  %v6043_v40 = vld [vmem:[%s7499_s3 + $0x30] sm:$0xff]  }
 0x184   :  { %5631 = vmatprep.subr.bf16.mxu1 %v6053_v17  ;;  %5612 = vmatpush3.bf16.msra.mxu0 %v6037_v18  ;;  %v6047_v44 = vld [vmem:[%s7500_s5 + $0x10] sm:$0xff]  }
 0x185   :  { %5613 = vmatprep.subr.bf16.mxu0 %v6053_v17  ;;  %5627 = vmatprep.mubr.msk.bf16.mxu0 %vm6054_vm0, %v6053_v17 }
 0x186   :  { %4370 = vmatmul.mubr.bf16.vlgmr.msra.gmra.mrb[44].mxu1 %v4661_v47 }
 0x187   :  { %5647 = vmatprep.mubr.msk.bf16.mxu1 %vm6054_vm0, %v6053_v17  ;;  %5632 = vmatpush3.bf16.msra.mxu1 %v6045_v42 }
 0x188   :  { %5614 = vmatpush3.bf16.msra.mxu0 %v6038_v19  ;;  %5633 = vmatprep.subr.bf16.mxu1 %v6053_v17 }
 0x189   :  { %5615 = vmatprep.subr.bf16.mxu0 %v6053_v17 }
 0x18b   :  { %5634 = vmatpush3.bf16.msra.mxu1 %v6046_v43 }
 0x18c   :  { %5616 = vmatpush3.bf16.msra.mxu0 %v6039_v20  ;;  %5635 = vmatprep.subr.bf16.mxu1 %v6053_v17 }
 0x18d   :  { %5617 = vmatprep.subr.bf16.mxu0 %v6053_v17 }
 0x18f   :  { %5636 = vmatpush3.bf16.msra.mxu1 %v6047_v44 }
 0x190   :  { %5618 = vmatpush3.bf16.msra.mxu0 %v6040_v21  ;;  %5637 = vmatprep.subr.bf16.mxu1 %v6053_v17 }
 0x191   :  { %5619 = vmatprep.subr.bf16.mxu0 %v6053_v17 }
 0x193   :  { %5638 = vmatpush3.bf16.msra.mxu1 %v6048_v45 }
 0x194   :  { %5620 = vmatpush3.bf16.msra.mxu0 %v6041_v22  ;;  %5639 = vmatprep.subr.bf16.mxu1 %v6053_v17 }
 0x195   :  { %5621 = vmatprep.subr.bf16.mxu0 %v6053_v17 }
 0x196   :  { %v5301_v49 = vpop.f32.mrb[20].mxu0 }
 0x197   :  { %v5323_v50 = vpop.f32.mrb[20].mxu1  ;;  %v5302_v51 = vpop.f32.mrb[21].mxu0 }
 0x198   :  { %v5324_v52 = vpop.f32.mrb[21].mxu1  ;;  %v5303_v53 = vadd.f32 %v5302_v51, %v5301_v49  ;;  %v5304_v55 = vpop.f32.mrb[22].mxu0  ;;  %5622 = vmatpush3.bf16.msra.mxu0 %v6042_v38  ;;  %v6049_v49 = vld [vmem:[%s7500_s5 + $0x20] sm:$0xff]  }
 0x199   :  { %v5325_v54 = vadd.f32 %v5324_v52, %v5323_v50  ;;  %v5326_v56 = vpop.f32.mrb[22].mxu1  ;;  %v5305_v57 = vpop.f32.mrb[23].mxu0  ;;  %5623 = vmatprep.subr.bf16.mxu0 %v6053_v17  ;;  %5640 = vmatpush3.bf16.msra.mxu1 %v6049_v49 }
 0x19a   :  { %v5327_v58 = vpop.f32.mrb[23].mxu1  ;;  %v3839_v59 = vadd.f32 %v5303_v53, %v3798_v23  ;;  %v5306_v60 = vadd.f32 %v5305_v57, %v5304_v55  ;;  %5641 = vmatprep.subr.bf16.mxu1 %v6053_v17 }
 0x19b   :  { %v5328_v61 = vadd.f32 %v5327_v58, %v5326_v56 }
 0x19c   :  { %v3880_v62 = vadd.f32 %v5325_v54, %v3839_v59  ;;  %v3842_v63 = vadd.f32 %v5306_v60, %v3801_v32  ;;  %5624 = vmatpush3.bf16.msra.mxu0 %v6043_v40  ;;  %v6050_v60 = vld [vmem:[%s7500_s5 + $0x28] sm:$0xff]  }
 0x19d   :  { %5625 = vmatprep.subr.bf16.mxu0 %v6053_v17  ;;  %5642 = vmatpush3.bf16.msra.mxu1 %v6050_v60 }
 0x19e   :  { %v3883_v0 = vadd.f32 %v5328_v61, %v3842_v63  ;;  %5643 = vmatprep.subr.bf16.mxu1 %v6053_v17 }
 0x1a0   :  { %5626 = vmatpush3.bf16.msra.mxu0 %v6044_v41 }
 0x1b6   :  { %v5345_v1 = vpop.f32.mrb[24].mxu0 }
 0x1b7   :  { %v5367_v2 = vpop.f32.mrb[24].mxu1  ;;  %v5346_v3 = vpop.f32.mrb[25].mxu0 }
 0x1b8   :  { %v5347_v4 = vadd.f32 %v5346_v3, %v5345_v1  ;;  %v5368_v5 = vpop.f32.mrb[25].mxu1  ;;  %v5348_v6 = vpop.f32.mrb[26].mxu0 }
 0x1b9   :  { %v5369_v7 = vadd.f32 %v5368_v5, %v5367_v2  ;;  %v5370_v8 = vpop.f32.mrb[26].mxu1  ;;  %v5349_v9 = vpop.f32.mrb[27].mxu0 }
 0x1ba   :  { %v3921_v10 = vadd.f32 %v5347_v4, %v3880_v62  ;;  %v5350_v11 = vadd.f32 %v5349_v9, %v5348_v6  ;;  %v5371_v12 = vpop.f32.mrb[27].mxu1 }
 0x1bb   :  { %v5372_v13 = vadd.f32 %v5371_v12, %v5370_v8 }
 0x1bc   :  { %v3962_v14 = vadd.f32 %v5369_v7, %v3921_v10  ;;  %v3924_v15 = vadd.f32 %v5350_v11, %v3883_v0 }
 0x1be   :  { %v3965_v16 = vadd.f32 %v5372_v13, %v3924_v15 }
 0x1d6   :  { %v5389_v23 = vpop.f32.mrb[28].mxu0 }
 0x1d7   :  { %v5411_v24 = vpop.f32.mrb[28].mxu1  ;;  %v5390_v25 = vpop.f32.mrb[29].mxu0 }
 0x1d8   :  { %v5412_v26 = vpop.f32.mrb[29].mxu1  ;;  %v5391_v27 = vadd.f32 %v5390_v25, %v5389_v23  ;;  %v5392_v29 = vpop.f32.mrb[30].mxu0 }
 0x1d9   :  { %v5413_v28 = vadd.f32 %v5412_v26, %v5411_v24  ;;  %v5414_v30 = vpop.f32.mrb[30].mxu1  ;;  %v5393_v31 = vpop.f32.mrb[31].mxu0 }
 0x1da   :  { %v5415_v32 = vpop.f32.mrb[31].mxu1  ;;  %v4003_v33 = vadd.f32 %v5391_v27, %v3962_v14  ;;  %v5394_v34 = vadd.f32 %v5393_v31, %v5392_v29 }
 0x1db   :  { %v5416_v35 = vadd.f32 %v5415_v32, %v5414_v30 }
 0x1dc   :  { %v4044_v36 = vadd.f32 %v5413_v28, %v4003_v33  ;;  %v4006_v37 = vadd.f32 %v5394_v34, %v3965_v16 }
 0x1de   :  { %v4047_v39 = vadd.f32 %v5416_v35, %v4006_v37 }
 0x1f6   :  { %v5433_v46 = vpop.f32.mrb[32].mxu0 }
 0x1f7   :  { %v5455_v47 = vpop.f32.mrb[32].mxu1  ;;  %v5434_v48 = vpop.f32.mrb[33].mxu0 }
 0x1f8   :  { %v5435_v50 = vadd.f32 %v5434_v48, %v5433_v46  ;;  %v5456_v51 = vpop.f32.mrb[33].mxu1  ;;  %v5436_v52 = vpop.f32.mrb[34].mxu0 }
 0x1f9   :  { %v5457_v53 = vadd.f32 %v5456_v51, %v5455_v47  ;;  %v5458_v54 = vpop.f32.mrb[34].mxu1  ;;  %v5437_v55 = vpop.f32.mrb[35].mxu0 }
 0x1fa   :  { %v4085_v56 = vadd.f32 %v5435_v50, %v4044_v36  ;;  %v5438_v57 = vadd.f32 %v5437_v55, %v5436_v52  ;;  %v5459_v58 = vpop.f32.mrb[35].mxu1  ;;  %v6051_v52 = vld [vmem:[%s7500_s5 + $0x30] sm:$0xff]  }
 0x1fb   :  { %v5460_v59 = vadd.f32 %v5459_v58, %v5458_v54  ;;  %5644 = vmatpush3.bf16.msra.mxu1 %v6051_v52  ;;  %v5047_v54 = vld [vmem:[%s7501_s4] ss:$0 sm:$0xff] }
 0x1fc   :  { %v4126_v61 = vadd.f32 %v5457_v53, %v4085_v56  ;;  %v4088_v62 = vadd.f32 %v5438_v57, %v4047_v39  ;;  %5645 = vmatprep.subr.bf16.mxu1 %v6053_v17  ;;  %v6052_v53 = vld [vmem:[%s7500_s5 + $0x38] sm:$0xff]   ;;  %v5056_v17 = vld [vmem:[%s7502_s6] ss:$0 sm:$0xff] }
 0x1fe   :  { %v4129_v63 = vadd.f32 %v5460_v59, %v4088_v62 }
 0x1ff   :  { %5646 = vmatpush3.bf16.msra.mxu1 %v6052_v53 }
 0x216   :  { %v5477_v0 = vpop.f32.mrb[36].mxu0 }
 0x217   :  { %v5478_v2 = vpop.f32.mrb[37].mxu0 }
 0x218   :  { %v5479_v3 = vadd.f32 %v5478_v2, %v5477_v0  ;;  %v5480_v5 = vpop.f32.mrb[38].mxu0 }
 0x219   :  { %v5499_v1 = vpop.f32.mrb[36].mxu1  ;;  %v5481_v8 = vpop.f32.mrb[39].mxu0 }
 0x21a   :  { %v5500_v4 = vpop.f32.mrb[37].mxu1  ;;  %v4167_v9 = vadd.f32 %v5479_v3, %v4126_v61  ;;  %v5482_v10 = vadd.f32 %v5481_v8, %v5480_v5 }
 0x21b   :  { %v5501_v6 = vadd.f32 %v5500_v4, %v5499_v1  ;;  %v5502_v7 = vpop.f32.mrb[38].mxu1 }
 0x21c   :  { %v5503_v11 = vpop.f32.mrb[39].mxu1  ;;  %v4170_v14 = vadd.f32 %v5482_v10, %v4129_v63 }
 0x21d   :  { %v5504_v12 = vadd.f32 %v5503_v11, %v5502_v7  ;;  %v4208_v13 = vadd.f32 %v5501_v6, %v4167_v9 }
 0x21f   :  { %v4211_v15 = vadd.f32 %v5504_v12, %v4170_v14 }
 0x236   :  { %v5521_v16 = vpop.f32.mrb[40].mxu0 }
 0x237   :  { %v5522_v19 = vpop.f32.mrb[41].mxu0 }
 0x238   :  { %v5523_v21 = vadd.f32 %v5522_v19, %v5521_v16  ;;  %v5524_v23 = vpop.f32.mrb[42].mxu0 }
 0x239   :  { %v5543_v18 = vpop.f32.mrb[40].mxu1  ;;  %v5525_v25 = vpop.f32.mrb[43].mxu0 }
 0x23a   :  { %v5544_v20 = vpop.f32.mrb[41].mxu1  ;;  %v4249_v27 = vadd.f32 %v5523_v21, %v4208_v13  ;;  %v5526_v28 = vadd.f32 %v5525_v25, %v5524_v23 }
 0x23b   :  { %v5545_v22 = vadd.f32 %v5544_v20, %v5543_v18  ;;  %v5546_v24 = vpop.f32.mrb[42].mxu1 }
 0x23c   :  { %v5547_v26 = vpop.f32.mrb[43].mxu1  ;;  %v4252_v31 = vadd.f32 %v5526_v28, %v4211_v15 }
 0x23d   :  { %v5548_v29 = vadd.f32 %v5547_v26, %v5546_v24  ;;  %v4290_v30 = vadd.f32 %v5545_v22, %v4249_v27 }
 0x23f   :  { %v4293_v32 = vadd.f32 %v5548_v29, %v4252_v31 }
 0x256   :  { %v5565_v33 = vpop.f32.mrb[44].mxu0 }
 0x257   :  { %v5566_v35 = vpop.f32.mrb[45].mxu0 }
 0x258   :  { %v5567_v36 = vadd.f32 %v5566_v35, %v5565_v33  ;;  %v5568_v38 = vpop.f32.mrb[46].mxu0 }
 0x259   :  { %v5587_v34 = vpop.f32.mrb[44].mxu1  ;;  %v5569_v41 = vpop.f32.mrb[47].mxu0 }
 0x25a   :  { %v5588_v37 = vpop.f32.mrb[45].mxu1  ;;  %v4331_v42 = vadd.f32 %v5567_v36, %v4290_v30  ;;  %v5570_v43 = vadd.f32 %v5569_v41, %v5568_v38 }
 0x25b   :  { %v5589_v39 = vadd.f32 %v5588_v37, %v5587_v34  ;;  %v5590_v40 = vpop.f32.mrb[46].mxu1 }
 0x25c   :  { %v5591_v44 = vpop.f32.mrb[47].mxu1  ;;  %v4334_v47 = vadd.f32 %v5570_v43, %v4293_v32 }
 0x25d   :  { %v5592_v45 = vadd.f32 %v5591_v44, %v5590_v40  ;;  %v4372_v46 = vadd.f32 %v5589_v39, %v4331_v42 }
 0x25f   :  { %v4375_v48 = vadd.f32 %v5592_v45, %v4334_v47  ;;  %v4378_v49 = vmax.f32 %v4372_v46, 0.0 }
 0x261   :  { %v4379_v50 = vmax.f32 %v4375_v48, 0.0 }
 0x263   :  { %v4380_v51 = vpack.c.bf16 %v4379_v50, %v4378_v49 }
 0x265   :  { %5628 = vmatmul.mubr.bf16.vlgmr.msra.gmra.mrb[48].mxu0 %v4380_v51 }
 0x338   :  { %v4486_v55 = vpop.f32.mrb[48].mxu0 }
 0x339   :  { %v4487_v56 = vadd.f32 %v5047_v54, %v4486_v55  ;;  %v5629_v57 = vpop.f32.mrb[49].mxu0 }
 0x33a   :  { %v4489_v58 = vpop.f32.mrb[50].mxu0 }
 0x33b   :  { %v4490_v59 = vadd.f32 %v5047_v54, %v4489_v58  ;;  %v5630_v60 = vpop.f32.mrb[51].mxu0  ;;  %v4493_v61 = vmax.f32 %v4487_v56, 0.0 }
 0x33d   :  { %v4494_v62 = vmax.f32 %v4490_v59, 0.0 }
 0x33f   :  { %v4495_v63 = vpack.c.bf16 %v4494_v62, %v4493_v61 }
 0x341   :  { %5648 = vmatmul.mubr.bf16.vlgmr.msra.gmra.mrb[48].mxu1 %v4495_v63 }
 0x414   :  { %v4601_v0 = vpop.f32.mrb[48].mxu1 }
 0x415   :  { %v4602_v1 = vadd.f32 %v5056_v17, %v4601_v0  ;;  %v5649_v2 = vpop.f32.mrb[49].mxu1 }
 0x416   :  { %v4604_v3 = vpop.f32.mrb[50].mxu1 }
 0x417   :  { %4608 = vst [vmem:[%s7503_s7] sm:$0xff] %v4602_v1  ;;  %v4605_v4 = vadd.f32 %v5056_v17, %v4604_v3  ;;  %v5650_v5 = vpop.f32.mrb[51].mxu1 }
 0x419   :  { %4609 = vst [vmem:[%s7503_s7 + $0x8] sm:$0xff] %v4605_v4 }

</bundles_post_ra>
